<compile_context>
chip_gen: v5e
topology: v5e:2x2
jax: 0.10.0
libtpu: 0.0.40
codegen_flags: <defaults>
</compile_context>

<pallas_src>
import jax
import jax.numpy as jnp
from jax import lax
from jax.experimental import pallas as pl
from jax.experimental.pallas import tpu as pltpu


NP = 4096   # policy width
NV = 256    # value hidden width


# ----------------------------------------------------------------------------
# Kernel 1: fused conv stack over a block of Bt boards.
#   Conv2d(12,32,3,pad=1) + ReLU + Conv2d(32,64,3,pad=1) + ReLU
# Both 3x3 convs are computed as 9 shifted (Bt*64, K) @ (K, N) MXU dots with
# f32 accumulation; zero padding lives in VMEM scratch; the conv1 activation
# never leaves VMEM.  Output is (Bt, 64, 64) in NHWC order — the matching
# weight-row permutation was applied to the linear weights at init.
# ----------------------------------------------------------------------------
def conv_stack_kernel(x_ref, w1_ref, b1_ref, w2_ref, b2_ref, o_ref,
                      pad1_ref, pad2_ref):
    # x_ref : (Bt, H, W, Cin)   NHWC boards
    # w1_ref: (3, 3, Cin, C1)   HWIO
    # b1_ref: (1, C1)
    # w2_ref: (3, 3, C1, C2)    HWIO
    # b2_ref: (1, C2)
    # o_ref : (Bt, H*W, C2)     NHWC-ordered features
    # pad*_ref: VMEM scratch (Bt, H+2, W+2, C)
    Bt, H, W, Cin = x_ref.shape
    C1 = w1_ref.shape[-1]
    C2 = w2_ref.shape[-1]
    HW = H * W
    M = Bt * HW

    # Zero-pad the boards into VMEM scratch.  The full scratch is re-zeroed
    # every step (trivial cost) so correctness does not depend on persistent
    # borders when the "parallel" batch axis is split across cores.
    pad1_ref[...] = jnp.zeros_like(pad1_ref)
    pad1_ref[:, 1:H + 1, 1:W + 1, :] = x_ref[...]

    # conv1: 9 shifted (Bt*HW, Cin) @ (Cin, C1) MXU dots, f32 accumulate.
    # TODO(synk): fold the 9 taps into one im2col dot (K=9*Cin) once
    # misaligned lane-concatenation lowering is verified on target Mosaic.
    acc1 = jnp.zeros((M, C1), jnp.float32)
    for dy in range(3):
        for dx in range(3):
            patch = pad1_ref[:, dy:dy + H, dx:dx + W, :].reshape(M, Cin)
            acc1 = acc1 + jnp.dot(patch, w1_ref[dy, dx],
                                  preferred_element_type=jnp.float32)
    h1 = jnp.maximum(acc1 + b1_ref[...], 0.0)            # (Bt*HW, C1)

    # conv2: intermediate never leaves VMEM; natural (M, K) x (K, N) form.
    pad2_ref[...] = jnp.zeros_like(pad2_ref)
    pad2_ref[:, 1:H + 1, 1:W + 1, :] = h1.reshape(Bt, H, W, C1)

    acc2 = jnp.zeros((M, C2), jnp.float32)
    for dy in range(3):
        for dx in range(3):
            patch = pad2_ref[:, dy:dy + H, dx:dx + W, :].reshape(M, C1)
            acc2 = acc2 + jnp.dot(patch, w2_ref[dy, dx],
                                  preferred_element_type=jnp.float32)
    h2 = jnp.maximum(acc2 + b2_ref[...], 0.0)             # (Bt*HW, C2)

    o_ref[...] = h2.reshape(Bt, HW, C2)                   # NHWC order


def _pick_board_block(B, bt_max=16):
    # Boards per conv grid step.  The (Bt, HW, C2) output block needs
    # Bt % 8 == 0 or Bt == B; prefer >= 2 grid steps so v7x's two cores both
    # get conv work for real batch sizes.
    if B <= bt_max:
        return B
    for bt in range(bt_max, 7, -1):
        if B % bt == 0 and bt % 8 == 0:
            return bt
    return B


def conv_stack(x_nhwc, w1, b1, w2, b2, *, bt_max=16):
    B, H, W, Cin = x_nhwc.shape
    C1 = w1.shape[-1]
    C2 = w2.shape[-1]
    Bt = _pick_board_block(B, bt_max)
    return pl.pallas_call(
        conv_stack_kernel,
        out_shape=jax.ShapeDtypeStruct((B, H * W, C2), jnp.float32),
        grid_spec=pltpu.PrefetchScalarGridSpec(
            num_scalar_prefetch=0,
            grid=(B // Bt,),
            in_specs=[
                pl.BlockSpec((Bt, H, W, Cin), lambda b: (b, 0, 0, 0)),
                pl.BlockSpec((3, 3, Cin, C1), lambda b: (0, 0, 0, 0)),
                pl.BlockSpec((1, C1), lambda b: (0, 0)),
                pl.BlockSpec((3, 3, C1, C2), lambda b: (0, 0, 0, 0)),
                pl.BlockSpec((1, C2), lambda b: (0, 0)),
            ],
            out_specs=pl.BlockSpec((Bt, H * W, C2), lambda b: (b, 0, 0)),
            scratch_shapes=[
                pltpu.VMEM((Bt, H + 2, W + 2, Cin), jnp.float32),
                pltpu.VMEM((Bt, H + 2, W + 2, C1), jnp.float32),
            ],
        ),
        compiler_params=pltpu.CompilerParams(
            dimension_semantics=("parallel",)),
    )(x_nhwc, w1, b1.reshape(1, C1), w2, b2.reshape(1, C2))


# ----------------------------------------------------------------------------
# Kernel 2: fused policy + value-hidden linear  y = x @ W_bf16 + b.
# Full K=4096 contraction per step; grid = output-column tiles only.  The
# (B, 4096) activation block stays resident in VMEM; bf16 weight tiles
# (2 MiB each at tn=256) are streamed/double-buffered from HBM.
# ----------------------------------------------------------------------------
def linear_bias_kernel(x_ref, w_ref, b_ref, o_ref):
    x = x_ref[...].astype(jnp.bfloat16)          # bf16 x bf16 -> f32 on MXU
    o_ref[...] = jnp.dot(x, w_ref[...],
                         preferred_element_type=jnp.float32) + b_ref[...]


def fused_linear(x, w_bf16, b, *, tn=256):
    M, K = x.shape
    N = w_bf16.shape[1]
    assert N % tn == 0 and w_bf16.dtype == jnp.bfloat16
    return pl.pallas_call(
        linear_bias_kernel,
        out_shape=jax.ShapeDtypeStruct((M, N), jnp.float32),
        grid_spec=pltpu.PrefetchScalarGridSpec(
            num_scalar_prefetch=0,
            grid=(N // tn,),
            in_specs=[
                pl.BlockSpec((M, K), lambda n: (0, 0)),    # resident activations
                pl.BlockSpec((K, tn), lambda n: (0, n)),   # streamed bf16 weights
                pl.BlockSpec((1, tn), lambda n: (0, n)),
            ],
            out_specs=pl.BlockSpec((M, tn), lambda n: (0, n)),
        ),
        compiler_params=pltpu.CompilerParams(
            dimension_semantics=("parallel",),
            vmem_limit_bytes=24 << 20),
    )(x, w_bf16, b.reshape(1, N))


# ----------------------------------------------------------------------------
# Kernel 3: value tail  ReLU -> Linear(256, 1) -> Tanh  (everything in VMEM).
# ----------------------------------------------------------------------------
def value_tail_kernel(h_ref, w_ref, b_ref, o_ref):
    h = jnp.maximum(h_ref[...], 0.0)
    v = jnp.dot(h, w_ref[...], preferred_element_type=jnp.float32) + b_ref[...]
    o_ref[...] = jnp.tanh(v)


def value_tail(hv, wv2_t, bv2):
    M = hv.shape[0]
    vmem = pltpu.MemorySpace.VMEM
    return pl.pallas_call(
        value_tail_kernel,
        out_shape=jax.ShapeDtypeStruct((M, 1), jnp.float32),
        in_specs=[pl.BlockSpec(memory_space=vmem)] * 3,
        out_specs=pl.BlockSpec(memory_space=vmem),
    )(hv, wv2_t, bv2.reshape(1, 1))


# ----------------------------------------------------------------------------
# Parameter init.  Weights are generated in PyTorch layout (fan-in scaling),
# then ALL layout work happens here exactly once:
#   * conv weights -> HWIO
#   * policy / value-hidden weights -> (in, out), rows permuted from torch's
#     NCHW-flatten order to the kernel's NHWC-flatten order, concatenated
#     into one (4096, 4352) streaming weight and quantized to bf16.
# ----------------------------------------------------------------------------
def init_params(key):
    ks = jax.random.split(key, 10)

    def uinit(k, shape, fan_in):
        bound = 1.0 / (fan_in ** 0.5)
        return jax.random.uniform(k, shape, jnp.float32, -bound, bound)

    w1 = uinit(ks[0], (32, 12, 3, 3), 12 * 9)     # torch (out, in, kh, kw)
    b1 = uinit(ks[1], (32,), 12 * 9)
    w2 = uinit(ks[2], (64, 32, 3, 3), 32 * 9)
    b2 = uinit(ks[3], (64,), 32 * 9)
    wp = uinit(ks[4], (NP, NP), NP)               # torch (out, in)
    bp = uinit(ks[5], (NP,), NP)
    wv1 = uinit(ks[6], (NV, NP), NP)
    bv1 = uinit(ks[7], (NV,), NP)
    wv2 = uinit(ks[8], (1, NV), NV)
    bv2 = uinit(ks[9], (1,), NV)

    def nchw_rows_to_nhwc(w_t):                   # (4096_in, out)
        # torch input index = c*64 + hw  ->  kernel input index = hw*64 + c
        return (w_t.reshape(64, 64, -1)           # (c, hw, out)
                   .transpose(1, 0, 2)            # (hw, c, out)
                   .reshape(NP, -1))

    wp_k = nchw_rows_to_nhwc(wp.T)                # (4096, 4096)
    wv1_k = nchw_rows_to_nhwc(wv1.T)              # (4096, 256)
    w_pv = jnp.concatenate([wp_k, wv1_k], axis=1).astype(jnp.bfloat16)
    b_pv = jnp.concatenate([bp, bv1], axis=0)     # (4352,) f32

    return {
        "w1": jnp.transpose(w1, (2, 3, 1, 0)),    # (3,3,12,32) HWIO
        "b1": b1,
        "w2": jnp.transpose(w2, (2, 3, 1, 0)),    # (3,3,32,64) HWIO
        "b2": b2,
        "w_pv": w_pv,                             # (4096, 4352) bf16
        "b_pv": b_pv,                             # (4352,) f32
        "wv2_t": wv2.T,                           # (256, 1) f32
        "bv2": bv2,                               # (1,) f32
    }


# ----------------------------------------------------------------------------
# Full forward pass (matches RookstarNet.forward, with policy/value-hidden
# weights stored in bf16 as an inference-precision choice).
# ----------------------------------------------------------------------------
@jax.jit
def rookstar_forward(x_nchw, params):
    B = x_nchw.shape[0]
    x = jnp.transpose(x_nchw, (0, 2, 3, 1))                       # (B,8,8,12)

    feat = conv_stack(x, params["w1"], params["b1"],
                      params["w2"], params["b2"])                 # (B,64,64)
    feat = feat.reshape(B, -1)                                    # NHWC flatten

    fused = fused_linear(feat, params["w_pv"], params["b_pv"])    # (B, 4352)
    policy = fused[:, :NP]                                        # (B, 4096)
    value = value_tail(fused[:, NP:], params["wv2_t"], params["bv2"])
    return policy, value


# ----------------------------------------------------------------------------
# Pure-JAX reference using the same (bf16-stored) parameters.
# ----------------------------------------------------------------------------
def reference_forward(x_nchw, params):
    hp = lax.Precision.HIGHEST
    x = jnp.transpose(x_nchw, (0, 2, 3, 1))
    h = lax.conv_general_dilated(x, params["w1"], (1, 1), "SAME",
                                 dimension_numbers=("NHWC", "HWIO", "NHWC"),
                                 precision=hp)
    h = jnp.maximum(h + params["b1"], 0.0)
    h = lax.conv_general_dilated(h, params["w2"], (1, 1), "SAME",
                                 dimension_numbers=("NHWC", "HWIO", "NHWC"),
                                 precision=hp)
    h = jnp.maximum(h + params["b2"], 0.0)
    feat = h.reshape(x.shape[0], -1)                              # NHWC flatten
    fused = jnp.dot(feat, params["w_pv"].astype(jnp.float32),
                    precision=hp) + params["b_pv"]
    policy = fused[:, :NP]
    hv = jnp.maximum(fused[:, NP:], 0.0)
    value = jnp.tanh(jnp.dot(hv, params["wv2_t"], precision=hp)
                     + params["bv2"])
    return policy, value


if __name__ == "__main__":
    key = jax.random.PRNGKey(0)
    kx, kp = jax.random.split(key)

    # Input implied by the module: 12 board planes on an 8x8 chess board.
    x = jax.random.normal(kx, (2, 12, 8, 8), jnp.float32)
    params = init_params(kp)

    policy, value = rookstar_forward(x, params)
    jax.block_until_ready((policy, value))

    assert policy.shape == (2, 4096) and policy.dtype == jnp.float32
    assert value.shape == (2, 1) and value.dtype == jnp.float32
    assert bool(jnp.all(jnp.isfinite(policy)))
    assert bool(jnp.all(jnp.abs(value) <= 1.0))

    ref_policy, ref_value = reference_forward(x, params)
    assert float(jnp.max(jnp.abs(policy - ref_policy))) < 2e-2
    assert float(jnp.max(jnp.abs(value - ref_value))) < 2e-2

    print("KERNEL_OK")
</pallas_src>

<mosaic_0001>
module attributes {stable_mosaic.version = 11 : i64} {
  func.func @linear_bias_kernel(%arg0: i32, %arg1: memref<2x4096xf32, #tpu.memory_space<vmem>>, %arg2: memref<4096x256xbf16, #tpu.memory_space<vmem>>, %arg3: memref<1x256xf32, #tpu.memory_space<vmem>>, %arg4: memref<2x256xf32, #tpu.memory_space<vmem>>) attributes {dimension_semantics = [#tpu.dimension_semantics<parallel>], iteration_bounds = array<i64: 17>, scalar_prefetch = 0 : i64, scratch_operands = 0 : i64, tpu.core_type = #tpu.core_type<tc>, window_params = [{pipeline_mode = #tpu.pipeline_mode<synchronous>, transform_indices = @transform_0, window_bounds = array<i64: 2, 4096>}, {transform_indices = @transform_1, window_bounds = array<i64: 4096, 256>}, {transform_indices = @transform_2, window_bounds = array<i64: 1, 256>}, {transform_indices = @transform_3, window_bounds = array<i64: 2, 256>}]} {
    %c0 = arith.constant 0 : index
    %c0_0 = arith.constant 0 : index
    %0 = vector.load %arg1[%c0, %c0_0] : memref<2x4096xf32, #tpu.memory_space<vmem>>, vector<2x4096xf32>
    %1 = arith.truncf %0 : vector<2x4096xf32> to vector<2x4096xbf16>
    %c0_1 = arith.constant 0 : index
    %c0_2 = arith.constant 0 : index
    %2 = vector.load %arg2[%c0_1, %c0_2] : memref<4096x256xbf16, #tpu.memory_space<vmem>>, vector<4096x256xbf16>
    %cst = arith.constant dense<0.000000e+00> : vector<2x256xf32>
    %3 = tpu.matmul %1, %2, %cst {dimension_numbers = #tpu.dot_dimension_numbers<[1], [0], [0], [1], [0, 0, 1, 1], [], []>} : vector<2x4096xbf16>, vector<4096x256xbf16>, vector<2x256xf32> -> vector<2x256xf32>
    %c0_3 = arith.constant 0 : index
    %c0_4 = arith.constant 0 : index
    %4 = vector.load %arg3[%c0_3, %c0_4] : memref<1x256xf32, #tpu.memory_space<vmem>>, vector<1x256xf32>
    %5 = vector.broadcast %4 : vector<1x256xf32> to vector<2x256xf32>
    %6 = arith.addf %3, %5 : vector<2x256xf32>
    %c0_5 = arith.constant 0 : index
    %c0_6 = arith.constant 0 : index
    %7 = vector.load %arg4[%c0_5, %c0_6] : memref<2x256xf32, #tpu.memory_space<vmem>>, vector<2x256xf32>
    tpu.vector_store %arg4[%c0_5, %c0_6], %6 {strides = array<i32>} : memref<2x256xf32, #tpu.memory_space<vmem>>, vector<2x256xf32>,
    return
  }
  func.func @transform_0(%arg0: i32) -> (i32, i32) {
    %c0_i32 = arith.constant 0 : i32
    %c0_i32_0 = arith.constant 0 : i32
    %c0_i32_1 = arith.constant 0 : i32
    return %c0_i32, %c0_i32_0 : i32, i32
  }
  func.func @transform_1(%arg0: i32) -> (i32, i32) {
    %c0_i32 = arith.constant 0 : i32
    %c0_i32_0 = arith.constant 0 : i32
    return %c0_i32, %arg0 : i32, i32
  }
  func.func @transform_2(%arg0: i32) -> (i32, i32) {
    %c0_i32 = arith.constant 0 : i32
    %c0_i32_0 = arith.constant 0 : i32
    return %c0_i32, %arg0 : i32, i32
  }
  func.func @transform_3(%arg0: i32) -> (i32, i32) {
    %c0_i32 = arith.constant 0 : i32
    %c0_i32_0 = arith.constant 0 : i32
    return %c0_i32, %arg0 : i32, i32
  }
}

module attributes {stable_mosaic.version = 11 : i64} {
  func.func @conv_stack_kernel(%arg0: i32, %arg1: memref<2x8x8x12xf32, #tpu.memory_space<vmem>>, %arg2: memref<3x3x12x32xf32, #tpu.memory_space<vmem>>, %arg3: memref<1x32xf32, #tpu.memory_space<vmem>>, %arg4: memref<3x3x32x64xf32, #tpu.memory_space<vmem>>, %arg5: memref<1x64xf32, #tpu.memory_space<vmem>>, %arg6: memref<2x64x64xf32, #tpu.memory_space<vmem>>, %arg7: memref<2x10x10x12xf32, #tpu.memory_space<vmem>>, %arg8: memref<2x10x10x32xf32, #tpu.memory_space<vmem>>) attributes {dimension_semantics = [#tpu.dimension_semantics<parallel>], iteration_bounds = array<i64: 1>, scalar_prefetch = 0 : i64, scratch_operands = 2 : i64, tpu.core_type = #tpu.core_type<tc>, window_params = [{transform_indices = @transform_0, window_bounds = array<i64: 2, 8, 8, 12>}, {pipeline_mode = #tpu.pipeline_mode<synchronous>, transform_indices = @transform_1, window_bounds = array<i64: 3, 3, 12, 32>}, {pipeline_mode = #tpu.pipeline_mode<synchronous>, transform_indices = @transform_2, window_bounds = array<i64: 1, 32>}, {pipeline_mode = #tpu.pipeline_mode<synchronous>, transform_indices = @transform_3, window_bounds = array<i64: 3, 3, 32, 64>}, {pipeline_mode = #tpu.pipeline_mode<synchronous>, transform_indices = @transform_4, window_bounds = array<i64: 1, 64>}, {transform_indices = @transform_5, window_bounds = array<i64: 2, 64, 64>}]} {
    %cst = arith.constant 0.000000e+00 : f32
    %0 = vector.broadcast %cst : f32 to vector<2x10x10x12xf32>
    %c0 = arith.constant 0 : index
    %c0_0 = arith.constant 0 : index
    %c0_1 = arith.constant 0 : index
    %c0_2 = arith.constant 0 : index
    %1 = vector.load %arg7[%c0, %c0_0, %c0_1, %c0_2] : memref<2x10x10x12xf32, #tpu.memory_space<vmem>>, vector<2x10x10x12xf32>
    tpu.vector_store %arg7[%c0, %c0_0, %c0_1, %c0_2], %0 {strides = array<i32>} : memref<2x10x10x12xf32, #tpu.memory_space<vmem>>, vector<2x10x10x12xf32>,
    %c0_3 = arith.constant 0 : index
    %c0_4 = arith.constant 0 : index
    %c0_5 = arith.constant 0 : index
    %c0_6 = arith.constant 0 : index
    %2 = vector.load %arg1[%c0_3, %c0_4, %c0_5, %c0_6] : memref<2x8x8x12xf32, #tpu.memory_space<vmem>>, vector<2x8x8x12xf32>
    %c0_7 = arith.constant 0 : index
    %c1 = arith.constant 1 : index
    %c1_8 = arith.constant 1 : index
    %c0_9 = arith.constant 0 : index
    %3 = vector.load %arg7[%c0_7, %c1, %c1_8, %c0_9] : memref<2x10x10x12xf32, #tpu.memory_space<vmem>>, vector<2x8x8x12xf32>
    tpu.vector_store %arg7[%c0_7, %c1, %c1_8, %c0_9], %2 {strides = array<i32>} : memref<2x10x10x12xf32, #tpu.memory_space<vmem>>, vector<2x8x8x12xf32>,
    %cst_10 = arith.constant 0.000000e+00 : f32
    %4 = vector.broadcast %cst_10 : f32 to vector<128x32xf32>
    %c0_11 = arith.constant 0 : index
    %c0_12 = arith.constant 0 : index
    %c0_13 = arith.constant 0 : index
    %c0_14 = arith.constant 0 : index
    %5 = vector.load %arg7[%c0_11, %c0_12, %c0_13, %c0_14] : memref<2x10x10x12xf32, #tpu.memory_space<vmem>>, vector<2x8x8x12xf32>
    %6 = vector.shape_cast %5 : vector<2x8x8x12xf32> to vector<128x12xf32>
    %c0_15 = arith.constant 0 : index
    %c0_16 = arith.constant 0 : index
    %c0_17 = arith.constant 0 : index
    %c0_18 = arith.constant 0 : index
    %7 = vector.load %arg2[%c0_15, %c0_16, %c0_17, %c0_18] : memref<3x3x12x32xf32, #tpu.memory_space<vmem>>, vector<1x1x12x32xf32>
    %8 = vector.shape_cast %7 : vector<1x1x12x32xf32> to vector<12x32xf32>
    %cst_19 = arith.constant dense<0.000000e+00> : vector<128x32xf32>
    %9 = tpu.matmul %6, %8, %cst_19 {dimension_numbers = #tpu.dot_dimension_numbers<[1], [0], [0], [1], [0, 0, 1, 1], [], []>} : vector<128x12xf32>, vector<12x32xf32>, vector<128x32xf32> -> vector<128x32xf32>
    %10 = arith.addf %4, %9 : vector<128x32xf32>
    %c0_20 = arith.constant 0 : index
    %c0_21 = arith.constant 0 : index
    %c1_22 = arith.constant 1 : index
    %c0_23 = arith.constant 0 : index
    %11 = vector.load %arg7[%c0_20, %c0_21, %c1_22, %c0_23] : memref<2x10x10x12xf32, #tpu.memory_space<vmem>>, vector<2x8x8x12xf32>
    %12 = vector.shape_cast %11 : vector<2x8x8x12xf32> to vector<128x12xf32>
    %c0_24 = arith.constant 0 : index
    %c1_25 = arith.constant 1 : index
    %c0_26 = arith.constant 0 : index
    %c0_27 = arith.constant 0 : index
    %13 = vector.load %arg2[%c0_24, %c1_25, %c0_26, %c0_27] : memref<3x3x12x32xf32, #tpu.memory_space<vmem>>, vector<1x1x12x32xf32>
    %14 = vector.shape_cast %13 : vector<1x1x12x32xf32> to vector<12x32xf32>
    %cst_28 = arith.constant dense<0.000000e+00> : vector<128x32xf32>
    %15 = tpu.matmul %12, %14, %cst_28 {dimension_numbers = #tpu.dot_dimension_numbers<[1], [0], [0], [1], [0, 0, 1, 1], [], []>} : vector<128x12xf32>, vector<12x32xf32>, vector<128x32xf32> -> vector<128x32xf32>
    %16 = arith.addf %10, %15 : vector<128x32xf32>
    %c0_29 = arith.constant 0 : index
    %c0_30 = arith.constant 0 : index
    %c2 = arith.constant 2 : index
    %c0_31 = arith.constant 0 : index
    %17 = vector.load %arg7[%c0_29, %c0_30, %c2, %c0_31] : memref<2x10x10x12xf32, #tpu.memory_space<vmem>>, vector<2x8x8x12xf32>
    %18 = vector.shape_cast %17 : vector<2x8x8x12xf32> to vector<128x12xf32>
    %c0_32 = arith.constant 0 : index
    %c2_33 = arith.constant 2 : index
    %c0_34 = arith.constant 0 : index
    %c0_35 = arith.constant 0 : index
    %19 = vector.load %arg2[%c0_32, %c2_33, %c0_34, %c0_35] : memref<3x3x12x32xf32, #tpu.memory_space<vmem>>, vector<1x1x12x32xf32>
    %20 = vector.shape_cast %19 : vector<1x1x12x32xf32> to vector<12x32xf32>
    %cst_36 = arith.constant dense<0.000000e+00> : vector<128x32xf32>
    %21 = tpu.matmul %18, %20, %cst_36 {dimension_numbers = #tpu.dot_dimension_numbers<[1], [0], [0], [1], [0, 0, 1, 1], [], []>} : vector<128x12xf32>, vector<12x32xf32>, vector<128x32xf32> -> vector<128x32xf32>
    %22 = arith.addf %16, %21 : vector<128x32xf32>
    %c0_37 = arith.constant 0 : index
    %c1_38 = arith.constant 1 : index
    %c0_39 = arith.constant 0 : index
    %c0_40 = arith.constant 0 : index
    %23 = vector.load %arg7[%c0_37, %c1_38, %c0_39, %c0_40] : memref<2x10x10x12xf32, #tpu.memory_space<vmem>>, vector<2x8x8x12xf32>
    %24 = vector.shape_cast %23 : vector<2x8x8x12xf32> to vector<128x12xf32>
    %c1_41 = arith.constant 1 : index
    %c0_42 = arith.constant 0 : index
    %c0_43 = arith.constant 0 : index
    %c0_44 = arith.constant 0 : index
    %25 = vector.load %arg2[%c1_41, %c0_42, %c0_43, %c0_44] : memref<3x3x12x32xf32, #tpu.memory_space<vmem>>, vector<1x1x12x32xf32>
    %26 = vector.shape_cast %25 : vector<1x1x12x32xf32> to vector<12x32xf32>
    %cst_45 = arith.constant dense<0.000000e+00> : vector<128x32xf32>
    %27 = tpu.matmul %24, %26, %cst_45 {dimension_numbers = #tpu.dot_dimension_numbers<[1], [0], [0], [1], [0, 0, 1, 1], [], []>} : vector<128x12xf32>, vector<12x32xf32>, vector<128x32xf32> -> vector<128x32xf32>
    %28 = arith.addf %22, %27 : vector<128x32xf32>
    %c0_46 = arith.constant 0 : index
    %c1_47 = arith.constant 1 : index
    %c1_48 = arith.constant 1 : index
    %c0_49 = arith.constant 0 : index
    %29 = vector.load %arg7[%c0_46, %c1_47, %c1_48, %c0_49] : memref<2x10x10x12xf32, #tpu.memory_space<vmem>>, vector<2x8x8x12xf32>
    %30 = vector.shape_cast %29 : vector<2x8x8x12xf32> to vector<128x12xf32>
    %c1_50 = arith.constant 1 : index
    %c1_51 = arith.constant 1 : index
    %c0_52 = arith.constant 0 : index
    %c0_53 = arith.constant 0 : index
    %31 = vector.load %arg2[%c1_50, %c1_51, %c0_52, %c0_53] : memref<3x3x12x32xf32, #tpu.memory_space<vmem>>, vector<1x1x12x32xf32>
    %32 = vector.shape_cast %31 : vector<1x1x12x32xf32> to vector<12x32xf32>
    %cst_54 = arith.constant dense<0.000000e+00> : vector<128x32xf32>
    %33 = tpu.matmul %30, %32, %cst_54 {dimension_numbers = #tpu.dot_dimension_numbers<[1], [0], [0], [1], [0, 0, 1, 1], [], []>} : vector<128x12xf32>, vector<12x32xf32>, vector<128x32xf32> -> vector<128x32xf32>
    %34 = arith.addf %28, %33 : vector<128x32xf32>
    %c0_55 = arith.constant 0 : index
    %c1_56 = arith.constant 1 : index
    %c2_57 = arith.constant 2 : index
    %c0_58 = arith.constant 0 : index
    %35 = vector.load %arg7[%c0_55, %c1_56, %c2_57, %c0_58] : memref<2x10x10x12xf32, #tpu.memory_space<vmem>>, vector<2x8x8x12xf32>
    %36 = vector.shape_cast %35 : vector<2x8x8x12xf32> to vector<128x12xf32>
    %c1_59 = arith.constant 1 : index
    %c2_60 = arith.constant 2 : index
    %c0_61 = arith.constant 0 : index
    %c0_62 = arith.constant 0 : index
    %37 = vector.load %arg2[%c1_59, %c2_60, %c0_61, %c0_62] : memref<3x3x12x32xf32, #tpu.memory_space<vmem>>, vector<1x1x12x32xf32>
    %38 = vector.shape_cast %37 : vector<1x1x12x32xf32> to vector<12x32xf32>
    %cst_63 = arith.constant dense<0.000000e+00> : vector<128x32xf32>
    %39 = tpu.matmul %36, %38, %cst_63 {dimension_numbers = #tpu.dot_dimension_numbers<[1], [0], [0], [1], [0, 0, 1, 1], [], []>} : vector<128x12xf32>, vector<12x32xf32>, vector<128x32xf32> -> vector<128x32xf32>
    %40 = arith.addf %34, %39 : vector<128x32xf32>
    %c0_64 = arith.constant 0 : index
    %c2_65 = arith.constant 2 : index
    %c0_66 = arith.constant 0 : index
    %c0_67 = arith.constant 0 : index
    %41 = vector.load %arg7[%c0_64, %c2_65, %c0_66, %c0_67] : memref<2x10x10x12xf32, #tpu.memory_space<vmem>>, vector<2x8x8x12xf32>
    %42 = vector.shape_cast %41 : vector<2x8x8x12xf32> to vector<128x12xf32>
    %c2_68 = arith.constant 2 : index
    %c0_69 = arith.constant 0 : index
    %c0_70 = arith.constant 0 : index
    %c0_71 = arith.constant 0 : index
    %43 = vector.load %arg2[%c2_68, %c0_69, %c0_70, %c0_71] : memref<3x3x12x32xf32, #tpu.memory_space<vmem>>, vector<1x1x12x32xf32>
    %44 = vector.shape_cast %43 : vector<1x1x12x32xf32> to vector<12x32xf32>
    %cst_72 = arith.constant dense<0.000000e+00> : vector<128x32xf32>
    %45 = tpu.matmul %42, %44, %cst_72 {dimension_numbers = #tpu.dot_dimension_numbers<[1], [0], [0], [1], [0, 0, 1, 1], [], []>} : vector<128x12xf32>, vector<12x32xf32>, vector<128x32xf32> -> vector<128x32xf32>
    %46 = arith.addf %40, %45 : vector<128x32xf32>
    %c0_73 = arith.constant 0 : index
    %c2_74 = arith.constant 2 : index
    %c1_75 = arith.constant 1 : index
    %c0_76 = arith.constant 0 : index
    %47 = vector.load %arg7[%c0_73, %c2_74, %c1_75, %c0_76] : memref<2x10x10x12xf32, #tpu.memory_space<vmem>>, vector<2x8x8x12xf32>
    %48 = vector.shape_cast %47 : vector<2x8x8x12xf32> to vector<128x12xf32>
    %c2_77 = arith.constant 2 : index
    %c1_78 = arith.constant 1 : index
    %c0_79 = arith.constant 0 : index
    %c0_80 = arith.constant 0 : index
    %49 = vector.load %arg2[%c2_77, %c1_78, %c0_79, %c0_80] : memref<3x3x12x32xf32, #tpu.memory_space<vmem>>, vector<1x1x12x32xf32>
    %50 = vector.shape_cast %49 : vector<1x1x12x32xf32> to vector<12x32xf32>
    %cst_81 = arith.constant dense<0.000000e+00> : vector<128x32xf32>
    %51 = tpu.matmul %48, %50, %cst_81 {dimension_numbers = #tpu.dot_dimension_numbers<[1], [0], [0], [1], [0, 0, 1, 1], [], []>} : vector<128x12xf32>, vector<12x32xf32>, vector<128x32xf32> -> vector<128x32xf32>
    %52 = arith.addf %46, %51 : vector<128x32xf32>
    %c0_82 = arith.constant 0 : index
    %c2_83 = arith.constant 2 : index
    %c2_84 = arith.constant 2 : index
    %c0_85 = arith.constant 0 : index
    %53 = vector.load %arg7[%c0_82, %c2_83, %c2_84, %c0_85] : memref<2x10x10x12xf32, #tpu.memory_space<vmem>>, vector<2x8x8x12xf32>
    %54 = vector.shape_cast %53 : vector<2x8x8x12xf32> to vector<128x12xf32>
    %c2_86 = arith.constant 2 : index
    %c2_87 = arith.constant 2 : index
    %c0_88 = arith.constant 0 : index
    %c0_89 = arith.constant 0 : index
    %55 = vector.load %arg2[%c2_86, %c2_87, %c0_88, %c0_89] : memref<3x3x12x32xf32, #tpu.memory_space<vmem>>, vector<1x1x12x32xf32>
    %56 = vector.shape_cast %55 : vector<1x1x12x32xf32> to vector<12x32xf32>
    %cst_90 = arith.constant dense<0.000000e+00> : vector<128x32xf32>
    %57 = tpu.matmul %54, %56, %cst_90 {dimension_numbers = #tpu.dot_dimension_numbers<[1], [0], [0], [1], [0, 0, 1, 1], [], []>} : vector<128x12xf32>, vector<12x32xf32>, vector<128x32xf32> -> vector<128x32xf32>
    %58 = arith.addf %52, %57 : vector<128x32xf32>
    %c0_91 = arith.constant 0 : index
    %c0_92 = arith.constant 0 : index
    %59 = vector.load %arg3[%c0_91, %c0_92] : memref<1x32xf32, #tpu.memory_space<vmem>>, vector<1x32xf32>
    %60 = vector.broadcast %59 : vector<1x32xf32> to vector<128x32xf32>
    %61 = arith.addf %58, %60 : vector<128x32xf32>
    %cst_93 = arith.constant 0.000000e+00 : f32
    %62 = vector.broadcast %cst_93 : f32 to vector<128x32xf32>
    %63 = arith.maximumf %61, %62 : vector<128x32xf32>
    %cst_94 = arith.constant 0.000000e+00 : f32
    %64 = vector.broadcast %cst_94 : f32 to vector<2x10x10x32xf32>
    %c0_95 = arith.constant 0 : index
    %c0_96 = arith.constant 0 : index
    %c0_97 = arith.constant 0 : index
    %c0_98 = arith.constant 0 : index
    %65 = vector.load %arg8[%c0_95, %c0_96, %c0_97, %c0_98] : memref<2x10x10x32xf32, #tpu.memory_space<vmem>>, vector<2x10x10x32xf32>
    tpu.vector_store %arg8[%c0_95, %c0_96, %c0_97, %c0_98], %64 {strides = array<i32>} : memref<2x10x10x32xf32, #tpu.memory_space<vmem>>, vector<2x10x10x32xf32>,
    %66 = vector.shape_cast %63 : vector<128x32xf32> to vector<2x8x8x32xf32>
    %c0_99 = arith.constant 0 : index
    %c1_100 = arith.constant 1 : index
    %c1_101 = arith.constant 1 : index
    %c0_102 = arith.constant 0 : index
    %67 = vector.load %arg8[%c0_99, %c1_100, %c1_101, %c0_102] : memref<2x10x10x32xf32, #tpu.memory_space<vmem>>, vector<2x8x8x32xf32>
    tpu.vector_store %arg8[%c0_99, %c1_100, %c1_101, %c0_102], %66 {strides = array<i32>} : memref<2x10x10x32xf32, #tpu.memory_space<vmem>>, vector<2x8x8x32xf32>,
    %cst_103 = arith.constant 0.000000e+00 : f32
    %68 = vector.broadcast %cst_103 : f32 to vector<128x64xf32>
    %c0_104 = arith.constant 0 : index
    %c0_105 = arith.constant 0 : index
    %c0_106 = arith.constant 0 : index
    %c0_107 = arith.constant 0 : index
    %69 = vector.load %arg8[%c0_104, %c0_105, %c0_106, %c0_107] : memref<2x10x10x32xf32, #tpu.memory_space<vmem>>, vector<2x8x8x32xf32>
    %70 = vector.shape_cast %69 : vector<2x8x8x32xf32> to vector<128x32xf32>
    %c0_108 = arith.constant 0 : index
    %c0_109 = arith.constant 0 : index
    %c0_110 = arith.constant 0 : index
    %c0_111 = arith.constant 0 : index
    %71 = vector.load %arg4[%c0_108, %c0_109, %c0_110, %c0_111] : memref<3x3x32x64xf32, #tpu.memory_space<vmem>>, vector<1x1x32x64xf32>
    %72 = vector.shape_cast %71 : vector<1x1x32x64xf32> to vector<32x64xf32>
    %cst_112 = arith.constant dense<0.000000e+00> : vector<128x64xf32>
    %73 = tpu.matmul %70, %72, %cst_112 {dimension_numbers = #tpu.dot_dimension_numbers<[1], [0], [0], [1], [0, 0, 1, 1], [], []>} : vector<128x32xf32>, vector<32x64xf32>, vector<128x64xf32> -> vector<128x64xf32>
    %74 = arith.addf %68, %73 : vector<128x64xf32>
    %c0_113 = arith.constant 0 : index
    %c0_114 = arith.constant 0 : index
    %c1_115 = arith.constant 1 : index
    %c0_116 = arith.constant 0 : index
    %75 = vector.load %arg8[%c0_113, %c0_114, %c1_115, %c0_116] : memref<2x10x10x32xf32, #tpu.memory_space<vmem>>, vector<2x8x8x32xf32>
    %76 = vector.shape_cast %75 : vector<2x8x8x32xf32> to vector<128x32xf32>
    %c0_117 = arith.constant 0 : index
    %c1_118 = arith.constant 1 : index
    %c0_119 = arith.constant 0 : index
    %c0_120 = arith.constant 0 : index
    %77 = vector.load %arg4[%c0_117, %c1_118, %c0_119, %c0_120] : memref<3x3x32x64xf32, #tpu.memory_space<vmem>>, vector<1x1x32x64xf32>
    %78 = vector.shape_cast %77 : vector<1x1x32x64xf32> to vector<32x64xf32>
    %cst_121 = arith.constant dense<0.000000e+00> : vector<128x64xf32>
    %79 = tpu.matmul %76, %78, %cst_121 {dimension_numbers = #tpu.dot_dimension_numbers<[1], [0], [0], [1], [0, 0, 1, 1], [], []>} : vector<128x32xf32>, vector<32x64xf32>, vector<128x64xf32> -> vector<128x64xf32>
    %80 = arith.addf %74, %79 : vector<128x64xf32>
    %c0_122 = arith.constant 0 : index
    %c0_123 = arith.constant 0 : index
    %c2_124 = arith.constant 2 : index
    %c0_125 = arith.constant 0 : index
    %81 = vector.load %arg8[%c0_122, %c0_123, %c2_124, %c0_125] : memref<2x10x10x32xf32, #tpu.memory_space<vmem>>, vector<2x8x8x32xf32>
    %82 = vector.shape_cast %81 : vector<2x8x8x32xf32> to vector<128x32xf32>
    %c0_126 = arith.constant 0 : index
    %c2_127 = arith.constant 2 : index
    %c0_128 = arith.constant 0 : index
    %c0_129 = arith.constant 0 : index
    %83 = vector.load %arg4[%c0_126, %c2_127, %c0_128, %c0_129] : memref<3x3x32x64xf32, #tpu.memory_space<vmem>>, vector<1x1x32x64xf32>
    %84 = vector.shape_cast %83 : vector<1x1x32x64xf32> to vector<32x64xf32>
    %cst_130 = arith.constant dense<0.000000e+00> : vector<128x64xf32>
    %85 = tpu.matmul %82, %84, %cst_130 {dimension_numbers = #tpu.dot_dimension_numbers<[1], [0], [0], [1], [0, 0, 1, 1], [], []>} : vector<128x32xf32>, vector<32x64xf32>, vector<128x64xf32> -> vector<128x64xf32>
    %86 = arith.addf %80, %85 : vector<128x64xf32>
    %c0_131 = arith.constant 0 : index
    %c1_132 = arith.constant 1 : index
    %c0_133 = arith.constant 0 : index
    %c0_134 = arith.constant 0 : index
    %87 = vector.load %arg8[%c0_131, %c1_132, %c0_133, %c0_134] : memref<2x10x10x32xf32, #tpu.memory_space<vmem>>, vector<2x8x8x32xf32>
    %88 = vector.shape_cast %87 : vector<2x8x8x32xf32> to vector<128x32xf32>
    %c1_135 = arith.constant 1 : index
    %c0_136 = arith.constant 0 : index
    %c0_137 = arith.constant 0 : index
    %c0_138 = arith.constant 0 : index
    %89 = vector.load %arg4[%c1_135, %c0_136, %c0_137, %c0_138] : memref<3x3x32x64xf32, #tpu.memory_space<vmem>>, vector<1x1x32x64xf32>
    %90 = vector.shape_cast %89 : vector<1x1x32x64xf32> to vector<32x64xf32>
    %cst_139 = arith.constant dense<0.000000e+00> : vector<128x64xf32>
    %91 = tpu.matmul %88, %90, %cst_139 {dimension_numbers = #tpu.dot_dimension_numbers<[1], [0], [0], [1], [0, 0, 1, 1], [], []>} : vector<128x32xf32>, vector<32x64xf32>, vector<128x64xf32> -> vector<128x64xf32>
    %92 = arith.addf %86, %91 : vector<128x64xf32>
    %c0_140 = arith.constant 0 : index
    %c1_141 = arith.constant 1 : index
    %c1_142 = arith.constant 1 : index
    %c0_143 = arith.constant 0 : index
    %93 = vector.load %arg8[%c0_140, %c1_141, %c1_142, %c0_143] : memref<2x10x10x32xf32, #tpu.memory_space<vmem>>, vector<2x8x8x32xf32>
    %94 = vector.shape_cast %93 : vector<2x8x8x32xf32> to vector<128x32xf32>
    %c1_144 = arith.constant 1 : index
    %c1_145 = arith.constant 1 : index
    %c0_146 = arith.constant 0 : index
    %c0_147 = arith.constant 0 : index
    %95 = vector.load %arg4[%c1_144, %c1_145, %c0_146, %c0_147] : memref<3x3x32x64xf32, #tpu.memory_space<vmem>>, vector<1x1x32x64xf32>
    %96 = vector.shape_cast %95 : vector<1x1x32x64xf32> to vector<32x64xf32>
    %cst_148 = arith.constant dense<0.000000e+00> : vector<128x64xf32>
    %97 = tpu.matmul %94, %96, %cst_148 {dimension_numbers = #tpu.dot_dimension_numbers<[1], [0], [0], [1], [0, 0, 1, 1], [], []>} : vector<128x32xf32>, vector<32x64xf32>, vector<128x64xf32> -> vector<128x64xf32>
    %98 = arith.addf %92, %97 : vector<128x64xf32>
    %c0_149 = arith.constant 0 : index
    %c1_150 = arith.constant 1 : index
    %c2_151 = arith.constant 2 : index
    %c0_152 = arith.constant 0 : index
    %99 = vector.load %arg8[%c0_149, %c1_150, %c2_151, %c0_152] : memref<2x10x10x32xf32, #tpu.memory_space<vmem>>, vector<2x8x8x32xf32>
    %100 = vector.shape_cast %99 : vector<2x8x8x32xf32> to vector<128x32xf32>
    %c1_153 = arith.constant 1 : index
    %c2_154 = arith.constant 2 : index
    %c0_155 = arith.constant 0 : index
    %c0_156 = arith.constant 0 : index
    %101 = vector.load %arg4[%c1_153, %c2_154, %c0_155, %c0_156] : memref<3x3x32x64xf32, #tpu.memory_space<vmem>>, vector<1x1x32x64xf32>
    %102 = vector.shape_cast %101 : vector<1x1x32x64xf32> to vector<32x64xf32>
    %cst_157 = arith.constant dense<0.000000e+00> : vector<128x64xf32>
    %103 = tpu.matmul %100, %102, %cst_157 {dimension_numbers = #tpu.dot_dimension_numbers<[1], [0], [0], [1], [0, 0, 1, 1], [], []>} : vector<128x32xf32>, vector<32x64xf32>, vector<128x64xf32> -> vector<128x64xf32>
    %104 = arith.addf %98, %103 : vector<128x64xf32>
    %c0_158 = arith.constant 0 : index
    %c2_159 = arith.constant 2 : index
    %c0_160 = arith.constant 0 : index
    %c0_161 = arith.constant 0 : index
    %105 = vector.load %arg8[%c0_158, %c2_159, %c0_160, %c0_161] : memref<2x10x10x32xf32, #tpu.memory_space<vmem>>, vector<2x8x8x32xf32>
    %106 = vector.shape_cast %105 : vector<2x8x8x32xf32> to vector<128x32xf32>
    %c2_162 = arith.constant 2 : index
    %c0_163 = arith.constant 0 : index
    %c0_164 = arith.constant 0 : index
    %c0_165 = arith.constant 0 : index
    %107 = vector.load %arg4[%c2_162, %c0_163, %c0_164, %c0_165] : memref<3x3x32x64xf32, #tpu.memory_space<vmem>>, vector<1x1x32x64xf32>
    %108 = vector.shape_cast %107 : vector<1x1x32x64xf32> to vector<32x64xf32>
    %cst_166 = arith.constant dense<0.000000e+00> : vector<128x64xf32>
    %109 = tpu.matmul %106, %108, %cst_166 {dimension_numbers = #tpu.dot_dimension_numbers<[1], [0], [0], [1], [0, 0, 1, 1], [], []>} : vector<128x32xf32>, vector<32x64xf32>, vector<128x64xf32> -> vector<128x64xf32>
    %110 = arith.addf %104, %109 : vector<128x64xf32>
    %c0_167 = arith.constant 0 : index
    %c2_168 = arith.constant 2 : index
    %c1_169 = arith.constant 1 : index
    %c0_170 = arith.constant 0 : index
    %111 = vector.load %arg8[%c0_167, %c2_168, %c1_169, %c0_170] : memref<2x10x10x32xf32, #tpu.memory_space<vmem>>, vector<2x8x8x32xf32>
    %112 = vector.shape_cast %111 : vector<2x8x8x32xf32> to vector<128x32xf32>
    %c2_171 = arith.constant 2 : index
    %c1_172 = arith.constant 1 : index
    %c0_173 = arith.constant 0 : index
    %c0_174 = arith.constant 0 : index
    %113 = vector.load %arg4[%c2_171, %c1_172, %c0_173, %c0_174] : memref<3x3x32x64xf32, #tpu.memory_space<vmem>>, vector<1x1x32x64xf32>
    %114 = vector.shape_cast %113 : vector<1x1x32x64xf32> to vector<32x64xf32>
    %cst_175 = arith.constant dense<0.000000e+00> : vector<128x64xf32>
    %115 = tpu.matmul %112, %114, %cst_175 {dimension_numbers = #tpu.dot_dimension_numbers<[1], [0], [0], [1], [0, 0, 1, 1], [], []>} : vector<128x32xf32>, vector<32x64xf32>, vector<128x64xf32> -> vector<128x64xf32>
    %116 = arith.addf %110, %115 : vector<128x64xf32>
    %c0_176 = arith.constant 0 : index
    %c2_177 = arith.constant 2 : index
    %c2_178 = arith.constant 2 : index
    %c0_179 = arith.constant 0 : index
    %117 = vector.load %arg8[%c0_176, %c2_177, %c2_178, %c0_179] : memref<2x10x10x32xf32, #tpu.memory_space<vmem>>, vector<2x8x8x32xf32>
    %118 = vector.shape_cast %117 : vector<2x8x8x32xf32> to vector<128x32xf32>
    %c2_180 = arith.constant 2 : index
    %c2_181 = arith.constant 2 : index
    %c0_182 = arith.constant 0 : index
    %c0_183 = arith.constant 0 : index
    %119 = vector.load %arg4[%c2_180, %c2_181, %c0_182, %c0_183] : memref<3x3x32x64xf32, #tpu.memory_space<vmem>>, vector<1x1x32x64xf32>
    %120 = vector.shape_cast %119 : vector<1x1x32x64xf32> to vector<32x64xf32>
    %cst_184 = arith.constant dense<0.000000e+00> : vector<128x64xf32>
    %121 = tpu.matmul %118, %120, %cst_184 {dimension_numbers = #tpu.dot_dimension_numbers<[1], [0], [0], [1], [0, 0, 1, 1], [], []>} : vector<128x32xf32>, vector<32x64xf32>, vector<128x64xf32> -> vector<128x64xf32>
    %122 = arith.addf %116, %121 : vector<128x64xf32>
    %c0_185 = arith.constant 0 : index
    %c0_186 = arith.constant 0 : index
    %123 = vector.load %arg5[%c0_185, %c0_186] : memref<1x64xf32, #tpu.memory_space<vmem>>, vector<1x64xf32>
    %124 = vector.broadcast %123 : vector<1x64xf32> to vector<128x64xf32>
    %125 = arith.addf %122, %124 : vector<128x64xf32>
    %cst_187 = arith.constant 0.000000e+00 : f32
    %126 = vector.broadcast %cst_187 : f32 to vector<128x64xf32>
    %127 = arith.maximumf %125, %126 : vector<128x64xf32>
    %128 = vector.shape_cast %127 : vector<128x64xf32> to vector<2x64x64xf32>
    %c0_188 = arith.constant 0 : index
    %c0_189 = arith.constant 0 : index
    %c0_190 = arith.constant 0 : index
    %129 = vector.load %arg6[%c0_188, %c0_189, %c0_190] : memref<2x64x64xf32, #tpu.memory_space<vmem>>, vector<2x64x64xf32>
    tpu.vector_store %arg6[%c0_188, %c0_189, %c0_190], %128 {strides = array<i32>} : memref<2x64x64xf32, #tpu.memory_space<vmem>>, vector<2x64x64xf32>,
    return
  }
  func.func @transform_0(%arg0: i32) -> (i32, i32, i32, i32) {
    %c0_i32 = arith.constant 0 : i32
    %c0_i32_0 = arith.constant 0 : i32
    %c0_i32_1 = arith.constant 0 : i32
    %c0_i32_2 = arith.constant 0 : i32
    return %arg0, %c0_i32, %c0_i32_0, %c0_i32_1 : i32, i32, i32, i32
  }
  func.func @transform_1(%arg0: i32) -> (i32, i32, i32, i32) {
    %c0_i32 = arith.constant 0 : i32
    %c0_i32_0 = arith.constant 0 : i32
    %c0_i32_1 = arith.constant 0 : i32
    %c0_i32_2 = arith.constant 0 : i32
    %c0_i32_3 = arith.constant 0 : i32
    return %c0_i32, %c0_i32_0, %c0_i32_1, %c0_i32_2 : i32, i32, i32, i32
  }
  func.func @transform_2(%arg0: i32) -> (i32, i32) {
    %c0_i32 = arith.constant 0 : i32
    %c0_i32_0 = arith.constant 0 : i32
    %c0_i32_1 = arith.constant 0 : i32
    return %c0_i32, %c0_i32_0 : i32, i32
  }
  func.func @transform_3(%arg0: i32) -> (i32, i32, i32, i32) {
    %c0_i32 = arith.constant 0 : i32
    %c0_i32_0 = arith.constant 0 : i32
    %c0_i32_1 = arith.constant 0 : i32
    %c0_i32_2 = arith.constant 0 : i32
    %c0_i32_3 = arith.constant 0 : i32
    return %c0_i32, %c0_i32_0, %c0_i32_1, %c0_i32_2 : i32, i32, i32, i32
  }
  func.func @transform_4(%arg0: i32) -> (i32, i32) {
    %c0_i32 = arith.constant 0 : i32
    %c0_i32_0 = arith.constant 0 : i32
    %c0_i32_1 = arith.constant 0 : i32
    return %c0_i32, %c0_i32_0 : i32, i32
  }
  func.func @transform_5(%arg0: i32) -> (i32, i32, i32) {
    %c0_i32 = arith.constant 0 : i32
    %c0_i32_0 = arith.constant 0 : i32
    %c0_i32_1 = arith.constant 0 : i32
    return %arg0, %c0_i32, %c0_i32_0 : i32, i32, i32
  }
}

module attributes {stable_mosaic.version = 11 : i64} {
  func.func @value_tail_kernel(%arg0: memref<2x256xf32, #tpu.memory_space<vmem>>, %arg1: memref<256x1xf32, #tpu.memory_space<vmem>>, %arg2: memref<1x1xf32, #tpu.memory_space<vmem>>, %arg3: memref<2x1xf32, #tpu.memory_space<vmem>>) attributes {dimension_semantics = [], scalar_prefetch = 0 : i64, scratch_operands = 0 : i64, tpu.core_type = #tpu.core_type<tc>} {
    %c0 = arith.constant 0 : index
    %c0_0 = arith.constant 0 : index
    %0 = vector.load %arg0[%c0, %c0_0] : memref<2x256xf32, #tpu.memory_space<vmem>>, vector<2x256xf32>
    %cst = arith.constant 0.000000e+00 : f32
    %1 = vector.broadcast %cst : f32 to vector<2x256xf32>
    %2 = arith.maximumf %0, %1 : vector<2x256xf32>
    %c0_1 = arith.constant 0 : index
    %c0_2 = arith.constant 0 : index
    %3 = vector.load %arg1[%c0_1, %c0_2] : memref<256x1xf32, #tpu.memory_space<vmem>>, vector<256x1xf32>
    %cst_3 = arith.constant dense<0.000000e+00> : vector<2x1xf32>
    %4 = tpu.matmul %2, %3, %cst_3 {dimension_numbers = #tpu.dot_dimension_numbers<[1], [0], [0], [1], [0, 0, 1, 1], [], []>} : vector<2x256xf32>, vector<256x1xf32>, vector<2x1xf32> -> vector<2x1xf32>
    %c0_4 = arith.constant 0 : index
    %c0_5 = arith.constant 0 : index
    %5 = vector.load %arg2[%c0_4, %c0_5] : memref<1x1xf32, #tpu.memory_space<vmem>>, vector<1x1xf32>
    %6 = vector.broadcast %5 : vector<1x1xf32> to vector<2x1xf32>
    %7 = arith.addf %4, %6 : vector<2x1xf32>
    %8 = math.tanh %7 : vector<2x1xf32>
    %c0_6 = arith.constant 0 : index
    %c0_7 = arith.constant 0 : index
    %9 = vector.load %arg3[%c0_6, %c0_7] : memref<2x1xf32, #tpu.memory_space<vmem>>, vector<2x1xf32>
    tpu.vector_store %arg3[%c0_6, %c0_7], %8 {strides = array<i32>} : memref<2x1xf32, #tpu.memory_space<vmem>>, vector<2x1xf32>,
    return
  }
}

</mosaic_0001>

<bundles_post_ra>
// kernel: rookstar_forward.5
= control target key start
LH: loop header
LB: loop body
LE: loop exit
PB: predicated region body
PF: predicated region fallthrough
CT: control target
= control target key end

     0   :  { %vm101_vm0 = vcmask 1024   ;;  %s235_s1 = inlined_call_operand.vmem [shape: f32[256,1], index: 1, kind: input, shape index: {}]   ;;  %s236_s2 = inlined_call_operand.<no memory space> [shape: f32[1,1], index: 2, kind: input, shape index: {}]   ;;  %s237_s0 = inlined_call_operand.vmem [shape: f32[2,256], index: 0, kind: input, shape index: {}]   ;;  %s238_s3 = inlined_call_operand.vmem [shape: f32[2,1], index: 3, kind: output, shape index: {}]  }
   0x1   :  { %v33_v0 = vld [vmem:[%s235_s1 + $0x78] sm:$0xff]  ;;  %v32_v1 = vld [vmem:[%s235_s1 + $0x70] sm:$0xff]  ;;  %v8_v3 = vstv %s236_s2  ;;  %v31_v5 = vld [vmem:[%s235_s1 + $0x68] sm:$0xff] }
   0x2   :  { %v49_v2 = vld [vmem:[%s235_s1 + $0xf8] sm:$0xff]  ;;  %60 = vmatpush.msra.mxu0 %v33_v0  ;;  %v48_v4 = vld [vmem:[%s235_s1 + $0xf0] sm:$0xff]  ;;  %9 = vst [vmem:[#allocation2] sm:$0x1] %v8_v3  ;;  %v47_v6 = vld [vmem:[%s235_s1 + $0xe8] sm:$0xff] }
   0x3   :  { %80 = vmatpush.msra.mxu1 %v49_v2  ;;  %v30_v7 = vld [vmem:[%s235_s1 + $0x60] sm:$0xff]  ;;  %v29_v9 = vld [vmem:[%s235_s1 + $0x58] sm:$0xff]  ;;  %v28_v11 = vld [vmem:[%s235_s1 + $0x50] sm:$0xff] }
   0x4   :  { %61 = vmatpush.msra.mxu0 %v32_v1  ;;  %v46_v8 = vld [vmem:[%s235_s1 + $0xe0] sm:$0xff]  ;;  %v45_v10 = vld [vmem:[%s235_s1 + $0xd8] sm:$0xff]  ;;  %v44_v12 = vld [vmem:[%s235_s1 + $0xd0] sm:$0xff] }
   0x5   :  { %81 = vmatpush.msra.mxu1 %v48_v4  ;;  %v27_v13 = vld [vmem:[%s235_s1 + $0x48] sm:$0xff]  ;;  %v16_v15 = vld [vmem:[%s237_s0] sm:$0xf]  ;;  %v25_v19 = vld [vmem:[%s235_s1 + $0x38] sm:$0xff] }
   0x6   :  { %62 = vmatpush.msra.mxu0 %v31_v5  ;;  %v43_v14 = vld [vmem:[%s235_s1 + $0xc8] sm:$0xff]  ;;  %v17_v16 = vmax.f32 %v16_v15, 0.0  ;;  %v26_v17 = vld [vmem:[%s235_s1 + $0x40] sm:$0xff]  ;;  %v41_v20 = vld [vmem:[%s235_s1 + $0xb8] sm:$0xff] }
   0x7   :  { %82 = vmatpush.msra.mxu1 %v47_v6  ;;  %v42_v18 = vld [vmem:[%s235_s1 + $0xc0] sm:$0xff]  ;;  %v24_v21 = vld [vmem:[%s235_s1 + $0x30] sm:$0xff]  ;;  %v23_v23 = vld [vmem:[%s235_s1 + $0x28] sm:$0xff] }
   0x8   :  { %63 = vmatpush.msra.mxu0 %v30_v7  ;;  %55 = vst [vmem:[#allocation1] ss:$4 sm:$0xff] %v17_v16  ;;  %v40_v22 = vld [vmem:[%s235_s1 + $0xb0] sm:$0xff]  ;;  %v39_v24 = vld [vmem:[%s235_s1 + $0xa8] sm:$0xff]  ;;  %v22_v25 = vld [vmem:[%s235_s1 + $0x20] sm:$0xff] }
   0x9   :  { %83 = vmatpush.msra.mxu1 %v46_v8  ;;  %v38_v26 = vld [vmem:[%s235_s1 + $0xa0] sm:$0xff]  ;;  %v21_v27 = vld [vmem:[%s235_s1 + $0x18] sm:$0xff]  ;;  %v20_v29 = vld [vmem:[%s235_s1 + $0x10] sm:$0xff] }
   0xa   :  { %64 = vmatpush.msra.mxu0 %v29_v9  ;;  %v37_v28 = vld [vmem:[%s235_s1 + $0x98] sm:$0xff]  ;;  %v36_v30 = vld [vmem:[%s235_s1 + $0x90] sm:$0xff]  ;;  %v19_v31 = vld [vmem:[%s235_s1 + $0x8] sm:$0xff] }
   0xb   :  { %84 = vmatpush.msra.mxu1 %v45_v10  ;;  %v35_v32 = vld [vmem:[%s235_s1 + $0x88] sm:$0xff]  ;;  %v18_v33 = vld [vmem:[%s235_s1] sm:$0xff] }
   0xc   :  { %65 = vmatpush.msra.mxu0 %v28_v11  ;;  %v34_v34 = vld [vmem:[%s235_s1 + $0x80] sm:$0xff]  ;;  %v107_v37 = vld [vmem:[#allocation2] ss:$0 sm:$0xff] }
   0xd   :  { %85 = vmatpush.msra.mxu1 %v44_v12 }
   0xe   :  { %66 = vmatpush.msra.mxu0 %v27_v13 }
   0xf   :  { %86 = vmatpush.msra.mxu1 %v43_v14  ;;  %v56_v35 = vld.sshfl [vmem:[#allocation1] sm:$0xff pattern:$0x73625140]  ;;  %v57_v36 = vld.sshfl [vmem:[#allocation1 + $0x8] sm:$0xff pattern:$0x73625140] }
  0x10   :  { %67 = vmatpush.msra.mxu0 %v26_v17 }
  0x11   :  { %87 = vmatpush.msra.mxu1 %v42_v18 }
  0x12   :  { %68 = vmatpush.msra.mxu0 %v25_v19 }
  0x13   :  { %88 = vmatpush.msra.mxu1 %v41_v20 }
  0x14   :  { %69 = vmatpush.msra.mxu0 %v24_v21 }
  0x15   :  { %89 = vmatpush.msra.mxu1 %v40_v22 }
  0x16   :  { %70 = vmatpush.msra.mxu0 %v23_v23 }
  0x17   :  { %90 = vmatpush.msra.mxu1 %v39_v24 }
  0x18   :  { %71 = vmatpush.msra.mxu0 %v22_v25 }
  0x19   :  { %91 = vmatpush.msra.mxu1 %v38_v26 }
  0x1a   :  { %72 = vmatpush.msra.mxu0 %v21_v27 }
  0x1b   :  { %92 = vmatpush.msra.mxu1 %v37_v28 }
  0x1c   :  { %73 = vmatpush.msra.mxu0 %v20_v29 }
  0x1d   :  { %93 = vmatpush.msra.mxu1 %v36_v30 }
  0x1e   :  { %74 = vmatpush.msra.mxu0 %v19_v31 }
  0x1f   :  { %94 = vmatpush.msra.mxu1 %v35_v32 }
  0x20   :  { %75 = vmatpush.msra.mxu0 %v18_v33 }
  0x21   :  { %95 = vmatpush.msra.mxu1 %v34_v34  ;;  %76 = vmatmul.f32.vlgmr.msra.gmra.mxu0 %v56_v35 }
  0x22   :  { %96 = vmatmul.f32.vlgmr.msra.gmra.mxu1 %v57_v36 }
  0x9e   :  { %v77_v38 = vpop.f32.mrf.mxu0 }
  0x9f   :  { %v97_v39 = vpop.f32.mrf.mxu1  ;;  %v78_v40 = vadd.f32 %v107_v37, %v77_v38 }
  0xa1   :  { %v98_v41 = vadd.f32 %v97_v39, %v78_v40 }
  0xa3   :  { %108 = vtanh.f32 %v98_v41 }
  0xa9   :  { %v109_v42 = vpop.eup %108 }
  0xaa   :  { %102 = vst.msk [vmem:[%s238_s3] sm:$0x3] %vm101_vm0, %v109_v42 }

// kernel: rookstar_forward.3
= control target key start
LH: loop header
LB: loop body
LE: loop exit
PB: predicated region body
PF: predicated region fallthrough
CT: control target
= control target key end

     0   :  { %10 = vsyncpa [#allocation5], 0  ;;  %s4747_s0 = inlined_call_operand.hbm [shape: f32[2,8,8,12], index: 0, kind: input, shape index: {}]   ;;  %s4748_s1 = inlined_call_operand.hbm [shape: f32[3,3,12,32], index: 1, kind: input, shape index: {}]   ;;  %s4749_s2 = inlined_call_operand.hbm [shape: f32[1,32], index: 2, kind: input, shape index: {}]   ;;  %s4750_s3 = inlined_call_operand.hbm [shape: f32[3,3,32,64], index: 3, kind: input, shape index: {}]   ;;  %s4751_s4 = inlined_call_operand.hbm [shape: f32[1,64], index: 4, kind: input, shape index: {}]   ;;  %s4752_s5 = inlined_call_operand.vmem [shape: f32[2,64,64], index: 5, kind: output, shape index: {}]  }
   0x1   :  { %11 = vsyncpa [#allocation7], 0 }
   0x2   :  { %12 = vsyncpa [#allocation10], 0  ;;  %s30_s20 = sshll.u32 %s4748_s1, 4  ;;  %s3407_s21 = smov [#allocation6]   ;;  %s31_s20 = int_to_ptr.hbm [resolvable:$true] %s30_s20 }
   0x3   :  { %s32_s22 = sshll.u32 %s3407_s21, 4  ;;  %s54_s25 = sshll.u32 %s4750_s3, 4  ;;  %s33_s22 = int_to_ptr.vmem [resolvable:$true] %s32_s22  ;;  %s55_s25 = int_to_ptr.hbm [resolvable:$true] %s54_s25 }
   0x4   :  { %s3408_s26 = smov 128   ;;  %s3409_s27 = smov 8  }
   0x5   :  { %38 = dma.hbm_to_vmem [thread:$0]  %s31_s20, 2304, %s33_s22, [#allocation7], %s3408_s26, %s3408_s26, %s3409_s27  }
   0x6   :  { %s3410_s28 = smov [#allocation9]   ;;  %s17_s7 = sshll.u32 %s4747_s0, 4  ;;  %s18_s7 = int_to_ptr.hbm [resolvable:$true] %s17_s7 }
   0x7   :  { %s56_s29 = sshll.u32 %s3410_s28, 4  ;;  %s44_s9 = sshll.u32 %s4749_s2, 4  ;;  %s57_s29 = int_to_ptr.vmem [resolvable:$true] %s56_s29  ;;  %s45_s9 = int_to_ptr.hbm [resolvable:$true] %s44_s9 }
   0x8   :  { %62 = dma.hbm_to_vmem [thread:$0]  %s55_s25, 4608, %s57_s29, [#allocation10], %s3408_s26, %s3408_s26, %s3409_s27  }
   0x9   :  { %s3411_s10 = smov [#allocation4]   ;;  %s3412_s3 = smov [#allocation8]  }
   0xa   :  { %s19_s11 = sshll.u32 %s3411_s10, 4  ;;  %s46_s12 = sshll.u32 %s3412_s3, 4  ;;  %s20_s11 = int_to_ptr.vmem [resolvable:$true] %s19_s11  ;;  %s47_s12 = int_to_ptr.vmem [resolvable:$true] %s46_s12 }
   0xb   :  { %25 = dma.hbm_to_vmem [thread:$0]  %s18_s7, 2048, %s20_s11, [#allocation5], %s3408_s26, %s3408_s26, %s3409_s27  }
   0xc   :  { %s68_s15 = sshll.u32 %s4751_s4, 4  ;;  %s3413_s0 = smov [#allocation11]   ;;  %s69_s15 = int_to_ptr.hbm [resolvable:$true] %s68_s15 }
   0xd   :  { %49 = dma.hbm_to_vmem [thread:$0]  %s45_s9, 16, %s47_s12, [#allocation7]  }
   0xe   :  { %s70_s16 = sshll.u32 %s3413_s0, 4  ;;  %s71_s16 = int_to_ptr.vmem [resolvable:$true] %s70_s16 }
   0xf   :  { %73 = dma.hbm_to_vmem [thread:$0]  %s69_s15, 16, %s71_s16, [#allocation10]  }
  0x10   :  { %3401 = dma.done.wait [#allocation5], 2048  }
  0x11   :  { %3402 = vsyncadd [#allocation5], 4294965248 }
  0x12   :  { %3403 = dma.done.wait [#allocation7], 2320  }
  0x13   :  { %3404 = vsyncadd [#allocation7], 4294964976 }
  0x14   :  { %3405 = dma.done.wait [#allocation10], 4624  }
  0x15   :  { %3406 = vsyncadd [#allocation10], 4294962672  ;;  %vm94_vm0 = vcmask 97280   ;;  %vm96_vm1 = vcmask 91136   ;;  %v4753_v0 = vmov 0.0   ;;  %vm254_vm2 = vcmask 1043456  }
  0x16   :  { %116 = vst.msk [vmem:[#allocation2 + $0xa0] sm:$0xff] %vm94_vm0, %v4753_v0  ;;  %v205_v1 = vld [vmem:[#allocation6 + $0x18] sm:$0xf]  ;;  %v186_v2 = vld [vmem:[#allocation6 + $0x8] sm:$0xf]  ;;  %v204_v3 = vld [vmem:[#allocation6 + $0x10] sm:$0xff] }
  0x17   :  { %117 = vst.msk [vmem:[#allocation2 + $0xa8] sm:$0x3] %vm96_vm1, %v4753_v0  ;;  %3267 = vmatpush.msk.msra.mxu2 %vm254_vm2, %v205_v1  ;;  %3269 = vmatpush.msk.msra.mxu3 %vm254_vm2, %v186_v2  ;;  %v185_v4 = vld [vmem:[#allocation6] sm:$0xff]  ;;  %v457_v7 = vld [vmem:[#allocation6 + $0x28] sm:$0xf]  ;;  %v146_v15 = vld [vmem:[#allocation4 + $0x50] sm:$0xff] }
  0x18   :  { %95 = vst.msk [vmem:[#allocation2] sm:$0xff] %vm94_vm0, %v4753_v0  ;;  %v608_v8 = vld [vmem:[#allocation6 + $0x38] sm:$0xf]  ;;  %2970 = vmatpush.msk.msra.mxu0 %vm254_vm2, %v205_v1  ;;  %2987 = vmatpush.msk.msra.mxu1 %vm254_vm2, %v186_v2  ;;  %v759_v11 = vld [vmem:[#allocation6 + $0x48] sm:$0xf]  ;;  %v144_v12 = vld [vmem:[#allocation4 + $0x40] sm:$0xff] }
  0x19   :  { %97 = vst.msk [vmem:[#allocation2 + $0x8] sm:$0x3] %vm96_vm1, %v4753_v0  ;;  %3268 = vmatpush.msra.mxu2 %v204_v3  ;;  %3270 = vmatpush.msra.mxu3 %v185_v4  ;;  %v145_v13 = vld [vmem:[#allocation4 + $0x48] sm:$0xff]  ;;  %v136_v14 = vld [vmem:[#allocation4] sm:$0xff]  ;;  %v607_v17 = vld [vmem:[#allocation6 + $0x30] sm:$0xff]  ;;  %vm1533_vm3 = vcmask 261120  }
  0x1a   :  { %98 = vst.msk [vmem:[#allocation2 + $0x10] sm:$0xff] %vm94_vm0, %v4753_v0  ;;  %273 = vmatpush.msra.mxu0 %v204_v3  ;;  %389 = vmatpush.msra.mxu1 %v185_v4  ;;  %v456_v16 = vld [vmem:[#allocation6 + $0x20] sm:$0xff]  ;;  %v137_v18 = vld [vmem:[#allocation4 + $0x8] sm:$0xff]  ;;  %v147_v19 = vld [vmem:[#allocation4 + $0x58] sm:$0xff]  ;;  %vm1535_vm4 = vcmask 254976   ;;  %vm2946_vm5 = vcmask 523264  }
  0x1b   :  { %99 = vst.msk [vmem:[#allocation2 + $0x18] sm:$0x3] %vm96_vm1, %v4753_v0  ;;  %3004 = vmatpush.msk.msrb.mxu2 %vm254_vm2, %v457_v7  ;;  %3021 = vmatpush.msk.msrb.mxu3 %vm254_vm2, %v608_v8  ;;  %v138_v20 = vld [vmem:[#allocation4 + $0x10] sm:$0xff]  ;;  %v148_v21 = vld [vmem:[#allocation4 + $0x60] sm:$0xff]  ;;  %v139_v22 = vld [vmem:[#allocation4 + $0x18] sm:$0xff] }
  0x1c   :  { %100 = vst.msk [vmem:[#allocation2 + $0x20] sm:$0xff] %vm94_vm0, %v4753_v0  ;;  %3038 = vmatpush.msk.msrb.mxu0 %vm254_vm2, %v759_v11  ;;  %v149_v25 = vld [vmem:[#allocation4 + $0x68] sm:$0xff]  ;;  %v758_v26 = vld [vmem:[#allocation6 + $0x40] sm:$0xff]  ;;  %v150_v34 = vld [vmem:[#allocation4 + $0x70] sm:$0xff] }
  0x1d   :  { %101 = vst.msk [vmem:[#allocation2 + $0x28] sm:$0x3] %vm96_vm1, %v4753_v0  ;;  %v177_v5 = vld [vmem:[#allocation2 + $0xa0] sm:$0xff]  ;;  %524 = vmatpush.msrb.mxu2 %v456_v16  ;;  %675 = vmatpush.msrb.mxu3 %v607_v17  ;;  %v141_v35 = vld [vmem:[#allocation4 + $0x28] sm:$0xff]  ;;  %v142_v40 = vld [vmem:[#allocation4 + $0x30] sm:$0xff] }
  0x1e   :  { %v195_v6 = vld [vmem:[#allocation2 + $0xa1] sm:$0xff]  ;;  %102 = vst.msk [vmem:[#allocation2 + $0x30] sm:$0xff] %vm94_vm0, %v4753_v0  ;;  %2996 = vmatmul.msk.f32.vlgmr.msra.gmra.mxu3 %vm94_vm0, %v177_v5  ;;  %826 = vmatpush.msrb.mxu0 %v758_v26  ;;  %v1213_v46 = vld [vmem:[#allocation6 + $0x78] sm:$0xf]  ;;  %v909_v53 = vld [vmem:[#allocation6 + $0x50] sm:$0xff] }
  0x1f   :  { %103 = vst.msk [vmem:[#allocation2 + $0x38] sm:$0x3] %vm96_vm1, %v4753_v0  ;;  %2979 = vmatmul.msk.f32.vlgmr.msra.gmra.mxu2 %vm94_vm0, %v195_v6  ;;  %v169_v10 = vld [vmem:[#allocation2] sm:$0xff]  ;;  %v1062_v45 = vld [vmem:[#allocation6 + $0x68] sm:$0xf]  ;;  %3089 = vmatpush.msk.msra.mxu3 %vm254_vm2, %v1213_v46  ;;  %v143_v3 = vld [vmem:[#allocation4 + $0x38] sm:$0xff] }
  0x20   :  { %104 = vst.msk [vmem:[#allocation2 + $0x40] sm:$0xff] %vm94_vm0, %v4753_v0  ;;  %v187_v9 = vld [vmem:[#allocation2 + $0x1] sm:$0xff]  ;;  %2988 = vmatmul.msk.f32.vlgmr.msra.gmra.mxu1 %vm94_vm0, %v169_v10  ;;  %3072 = vmatpush.msk.msra.mxu2 %vm254_vm2, %v1062_v45  ;;  %v910_v51 = vld [vmem:[#allocation6 + $0x58] sm:$0xf]  ;;  %v1212_v6 = vld [vmem:[#allocation6 + $0x70] sm:$0xff] }
  0x21   :  { %105 = vst.msk [vmem:[#allocation2 + $0x48] sm:$0x3] %vm96_vm1, %v4753_v0  ;;  %2971 = vmatmul.msk.f32.vlgmr.msra.gmra.mxu0 %vm94_vm0, %v187_v9  ;;  %v140_v29 = vld [vmem:[#allocation4 + $0x20] sm:$0xff]  ;;  %v1364_v52 = vld [vmem:[#allocation6 + $0x88] sm:$0xf]  ;;  %3055 = vmatpush.msk.msrb.mxu1 %vm254_vm2, %v910_v51  ;;  %v151_v26 = vld [vmem:[#allocation4 + $0x78] sm:$0xff] }
  0x22   :  { %106 = vst.msk [vmem:[#allocation2 + $0x50] sm:$0xff] %vm94_vm0, %v4753_v0  ;;  %3106 = vmatpush.msk.msra.mxu0 %vm254_vm2, %v1364_v52  ;;  %v439_v62 = vld [vmem:[#allocation2 + $0x2] sm:$0xff]  ;;  %1280 = vmatpush.msra.mxu3 %v1212_v6 }
  0x23   :  { %107 = vst.msk [vmem:[#allocation2 + $0x58] sm:$0x3] %vm96_vm1, %v4753_v0  ;;  %977 = vmatpush.msrb.mxu1 %v909_v53  ;;  %v1061_v5 = vld [vmem:[#allocation6 + $0x60] sm:$0xff] }
  0x24   :  { %108 = vst.msk [vmem:[#allocation2 + $0x60] sm:$0xff] %vm94_vm0, %v4753_v0  ;;  %1129 = vmatpush.msra.mxu2 %v1061_v5  ;;  %v1363_v8 = vld [vmem:[#allocation6 + $0x80] sm:$0xff] }
  0x25   :  { %109 = vst.msk [vmem:[#allocation2 + $0x68] sm:$0x3] %vm96_vm1, %v4753_v0  ;;  %1431 = vmatpush.msra.mxu0 %v1363_v8 }
  0x26   :  { %110 = vst.msk [vmem:[#allocation2 + $0x70] sm:$0xff] %vm94_vm0, %v4753_v0 }
  0x27   :  { %111 = vst.msk [vmem:[#allocation2 + $0x78] sm:$0x3] %vm96_vm1, %v4753_v0 }
  0x28   :  { %112 = vst.msk [vmem:[#allocation2 + $0x80] sm:$0xff] %vm94_vm0, %v4753_v0 }
  0x29   :  { %113 = vst.msk [vmem:[#allocation2 + $0x88] sm:$0x3] %vm96_vm1, %v4753_v0 }
  0x2a   :  { %114 = vst.msk [vmem:[#allocation2 + $0x90] sm:$0xff] %vm94_vm0, %v4753_v0 }
  0x2b   :  { %115 = vst.msk [vmem:[#allocation2 + $0x98] sm:$0x3] %vm96_vm1, %v4753_v0 }
  0x2c   :  { %118 = vst.msk [vmem:[#allocation2 + $0xb0] sm:$0xff] %vm94_vm0, %v4753_v0 }
  0x2d   :  { %119 = vst.msk [vmem:[#allocation2 + $0xb8] sm:$0x3] %vm96_vm1, %v4753_v0 }
  0x2e   :  { %120 = vst.msk [vmem:[#allocation2 + $0xc0] sm:$0xff] %vm94_vm0, %v4753_v0 }
  0x2f   :  { %121 = vst.msk [vmem:[#allocation2 + $0xc8] sm:$0x3] %vm96_vm1, %v4753_v0 }
  0x30   :  { %122 = vst.msk [vmem:[#allocation2 + $0xd0] sm:$0xff] %vm94_vm0, %v4753_v0 }
  0x31   :  { %123 = vst.msk [vmem:[#allocation2 + $0xd8] sm:$0x3] %vm96_vm1, %v4753_v0 }
  0x32   :  { %124 = vst.msk [vmem:[#allocation2 + $0xe0] sm:$0xff] %vm94_vm0, %v4753_v0 }
  0x33   :  { %125 = vst.msk [vmem:[#allocation2 + $0xe8] sm:$0x3] %vm96_vm1, %v4753_v0 }
  0x34   :  { %126 = vst.msk [vmem:[#allocation2 + $0xf0] sm:$0xff] %vm94_vm0, %v4753_v0 }
  0x35   :  { %127 = vst.msk [vmem:[#allocation2 + $0xf8] sm:$0x3] %vm96_vm1, %v4753_v0 }
  0x36   :  { %128 = vst.msk [vmem:[#allocation2 + $0x100] sm:$0xff] %vm94_vm0, %v4753_v0 }
  0x37   :  { %129 = vst.msk [vmem:[#allocation2 + $0x108] sm:$0x3] %vm96_vm1, %v4753_v0 }
  0x38   :  { %130 = vst.msk [vmem:[#allocation2 + $0x110] sm:$0xff] %vm94_vm0, %v4753_v0 }
  0x39   :  { %131 = vst.msk [vmem:[#allocation2 + $0x118] sm:$0x3] %vm96_vm1, %v4753_v0 }
  0x3a   :  { %132 = vst.msk [vmem:[#allocation2 + $0x120] sm:$0xff] %vm94_vm0, %v4753_v0 }
  0x3b   :  { %133 = vst.msk [vmem:[#allocation2 + $0x128] sm:$0x3] %vm96_vm1, %v4753_v0 }
  0x3c   :  { %134 = vst.msk [vmem:[#allocation2 + $0x130] sm:$0xff] %vm94_vm0, %v4753_v0 }
  0x3d   :  { %135 = vst.msk [vmem:[#allocation2 + $0x138] sm:$0x3] %vm96_vm1, %v4753_v0 }
  0x3e   :  { %161 = vst.msk [vmem:[#allocation2 + $0xb1] sm:$0xff] %vm94_vm0, %v144_v12 }
  0x3f   :  { %162 = vst.msk [vmem:[#allocation2 + $0xc1] sm:$0xff] %vm94_vm0, %v145_v13 }
  0x40   :  { %153 = vst.msk [vmem:[#allocation2 + $0x11] sm:$0xff] %vm94_vm0, %v136_v14  ;;  %v447_v14 = vld [vmem:[#allocation2 + $0xa2] sm:$0xff] }
  0x41   :  { %163 = vst.msk [vmem:[#allocation2 + $0xd1] sm:$0xff] %vm94_vm0, %v146_v15 }
  0x42   :  { %154 = vst.msk [vmem:[#allocation2 + $0x21] sm:$0xff] %vm94_vm0, %v137_v18 }
  0x43   :  { %164 = vst.msk [vmem:[#allocation2 + $0xe1] sm:$0xff] %vm94_vm0, %v147_v19 }
  0x44   :  { %155 = vst.msk [vmem:[#allocation2 + $0x31] sm:$0xff] %vm94_vm0, %v138_v20 }
  0x45   :  { %v3558_v23 = vld [vmem:[#allocation2 + $0xb1] sm:$0xff]  ;;  %165 = vst.msk [vmem:[#allocation2 + $0xf1] sm:$0xff] %vm94_vm0, %v148_v21 }
  0x46   :  { %v3560_v24 = vld [vmem:[#allocation2 + $0xb0] sm:$0xff]  ;;  %2980 = vmatmul.msk.f32.gmra.mxu2 %vm94_vm0, %v3558_v23  ;;  %156 = vst.msk [vmem:[#allocation2 + $0x41] sm:$0xff] %vm94_vm0, %v139_v22  ;;  %v3578_v30 = vld [vmem:[#allocation2 + $0xc1] sm:$0xff] }
  0x47   :  { %2997 = vmatmul.msk.f32.gmra.mxu3 %vm94_vm0, %v3560_v24  ;;  %v3568_v27 = vld [vmem:[#allocation2 + $0x11] sm:$0xff]  ;;  %166 = vst.msk [vmem:[#allocation2 + $0x101] sm:$0xff] %vm94_vm0, %v149_v25  ;;  %v3580_v31 = vld [vmem:[#allocation2 + $0xc0] sm:$0xff] }
  0x48   :  { %v3570_v28 = vld [vmem:[#allocation2 + $0x10] sm:$0xff]  ;;  %2972 = vmatmul.msk.f32.gmra.mxu0 %vm94_vm0, %v3568_v27  ;;  %157 = vst.msk [vmem:[#allocation2 + $0x51] sm:$0xff] %vm94_vm0, %v140_v29  ;;  %v3778_v20 = vld [vmem:[#allocation2 + $0xc2] sm:$0xff] }
  0x49   :  { %2989 = vmatmul.msk.f32.gmra.mxu1 %vm94_vm0, %v3570_v28  ;;  %v3582_v32 = vld [vmem:[#allocation2 + $0x21] sm:$0xff]  ;;  %167 = vst.msk [vmem:[#allocation2 + $0x111] sm:$0xff] %vm94_vm0, %v150_v34  ;;  %v3596_v36 = vld [vmem:[#allocation2 + $0xd1] sm:$0xff] }
  0x4a   :  { %v3584_v33 = vld [vmem:[#allocation2 + $0x20] sm:$0xff]  ;;  %158 = vst.msk [vmem:[#allocation2 + $0x61] sm:$0xff] %vm94_vm0, %v141_v35  ;;  %v3598_v37 = vld [vmem:[#allocation2 + $0xd0] sm:$0xff] }
  0x4b   :  { %v3600_v38 = vld [vmem:[#allocation2 + $0x31] sm:$0xff]  ;;  %159 = vst.msk [vmem:[#allocation2 + $0x71] sm:$0xff] %vm94_vm0, %v142_v40  ;;  %v3613_v41 = vld [vmem:[#allocation2 + $0xe1] sm:$0xff] }
  0x4c   :  { %v3602_v39 = vld [vmem:[#allocation2 + $0x30] sm:$0xff]  ;;  %v3615_v42 = vld [vmem:[#allocation2 + $0xe0] sm:$0xff]  ;;  %160 = vst.msk [vmem:[#allocation2 + $0x81] sm:$0xff] %vm94_vm0, %v143_v3 }
  0x4d   :  { %v3617_v43 = vld [vmem:[#allocation2 + $0x41] sm:$0xff]  ;;  %v3631_v47 = vld [vmem:[#allocation2 + $0xf1] sm:$0xff]  ;;  %168 = vst.msk [vmem:[#allocation2 + $0x121] sm:$0xff] %vm94_vm0, %v151_v26 }
  0x4e   :  { %2981 = vmatmul.msk.f32.gmra.mxu2 %vm94_vm0, %v3578_v30  ;;  %v3619_v44 = vld [vmem:[#allocation2 + $0x40] sm:$0xff]  ;;  %v3633_v48 = vld [vmem:[#allocation2 + $0xf0] sm:$0xff] }
  0x4f   :  { %2998 = vmatmul.msk.f32.gmra.mxu3 %vm94_vm0, %v3580_v31  ;;  %v3635_v49 = vld [vmem:[#allocation2 + $0x51] sm:$0xff]  ;;  %v3649_v54 = vld [vmem:[#allocation2 + $0x101] sm:$0xff] }
  0x50   :  { %2973 = vmatmul.msk.f32.gmra.mxu0 %vm94_vm0, %v3582_v32  ;;  %v3637_v50 = vld [vmem:[#allocation2 + $0x50] sm:$0xff]  ;;  %v3651_v55 = vld [vmem:[#allocation2 + $0x100] sm:$0xff] }
  0x51   :  { %2990 = vmatmul.msk.f32.gmra.mxu1 %vm94_vm0, %v3584_v33  ;;  %v3653_v56 = vld [vmem:[#allocation2 + $0x61] sm:$0xff]  ;;  %v3665_v58 = vld [vmem:[#allocation2 + $0x111] sm:$0xff] }
  0x52   :  { %v3655_v57 = vld [vmem:[#allocation2 + $0x60] sm:$0xff]  ;;  %v3667_v59 = vld [vmem:[#allocation2 + $0x110] sm:$0xff] }
  0x53   :  { %v3669_v60 = vld [vmem:[#allocation2 + $0x71] sm:$0xff]  ;;  %v3690_v1 = vld [vmem:[#allocation2 + $0x22] sm:$0xff] }
  0x54   :  { %v3671_v61 = vld [vmem:[#allocation2 + $0x70] sm:$0xff]  ;;  %v3711_v4 = vld [vmem:[#allocation2 + $0x42] sm:$0xff] }
  0x55   :  { %v440_v63 = vld [vmem:[#allocation2 + $0x12] sm:$0xff]  ;;  %v3731_v9 = vld [vmem:[#allocation2 + $0x62] sm:$0xff] }
  0x56   :  { %2982 = vmatmul.msk.f32.gmra.mxu2 %vm94_vm0, %v3596_v36  ;;  %v3700_v2 = vld [vmem:[#allocation2 + $0x32] sm:$0xff]  ;;  %v3747_v11 = vld [vmem:[#allocation2 + $0x80] sm:$0xff] }
  0x57   :  { %2999 = vmatmul.msk.f32.gmra.mxu3 %vm94_vm0, %v3598_v37  ;;  %v3721_v7 = vld [vmem:[#allocation2 + $0x52] sm:$0xff]  ;;  %v3749_v12 = vld [vmem:[#allocation2 + $0x81] sm:$0xff] }
  0x58   :  { %2974 = vmatmul.msk.f32.gmra.mxu0 %vm94_vm0, %v3600_v38  ;;  %v3741_v10 = vld [vmem:[#allocation2 + $0x72] sm:$0xff]  ;;  %v3751_v13 = vld [vmem:[#allocation2 + $0x82] sm:$0xff] }
  0x59   :  { %2991 = vmatmul.msk.f32.gmra.mxu1 %vm94_vm0, %v3602_v39  ;;  %v448_v18 = vld [vmem:[#allocation2 + $0xb2] sm:$0xff]  ;;  %v3807_v35 = vld [vmem:[#allocation2 + $0xe2] sm:$0xff] }
  0x5a   :  { %v3792_v25 = vld [vmem:[#allocation2 + $0xd2] sm:$0xff]  ;;  %v3835_v5 = vld [vmem:[#allocation2 + $0x102] sm:$0xff] }
  0x5b   :  { %v3821_v52 = vld [vmem:[#allocation2 + $0xf2] sm:$0xff] }
  0x5c   :  { %v3849_v26 = vld [vmem:[#allocation2 + $0x112] sm:$0xff] }
  0x5e   :  { %2983 = vmatmul.msk.f32.gmra.mxu2 %vm94_vm0, %v3613_v41 }
  0x5f   :  { %3000 = vmatmul.msk.f32.gmra.mxu3 %vm94_vm0, %v3615_v42 }
  0x60   :  { %2975 = vmatmul.msk.f32.gmra.mxu0 %vm94_vm0, %v3617_v43 }
  0x61   :  { %2992 = vmatmul.msk.f32.gmra.mxu1 %vm94_vm0, %v3619_v44 }
  0x66   :  { %2984 = vmatmul.msk.f32.gmra.mxu2 %vm94_vm0, %v3631_v47 }
  0x67   :  { %3001 = vmatmul.msk.f32.gmra.mxu3 %vm94_vm0, %v3633_v48 }
  0x68   :  { %2976 = vmatmul.msk.f32.gmra.mxu0 %vm94_vm0, %v3635_v49 }
  0x69   :  { %2993 = vmatmul.msk.f32.gmra.mxu1 %vm94_vm0, %v3637_v50 }
  0x6e   :  { %2985 = vmatmul.msk.f32.gmra.mxu2 %vm94_vm0, %v3649_v54 }
  0x6f   :  { %3002 = vmatmul.msk.f32.gmra.mxu3 %vm94_vm0, %v3651_v55 }
  0x70   :  { %2977 = vmatmul.msk.f32.gmra.mxu0 %vm94_vm0, %v3653_v56 }
  0x71   :  { %2994 = vmatmul.msk.f32.gmra.mxu1 %vm94_vm0, %v3655_v57 }
  0x76   :  { %2986 = vmatmul.msk.f32.gmra.mxu2 %vm94_vm0, %v3665_v58 }
  0x77   :  { %3003 = vmatmul.msk.f32.gmra.mxu3 %vm94_vm0, %v3667_v59 }
  0x78   :  { %2978 = vmatmul.msk.f32.gmra.mxu0 %vm94_vm0, %v3669_v60 }
  0x79   :  { %2995 = vmatmul.msk.f32.gmra.mxu1 %vm94_vm0, %v3671_v61 }
  0x7e   :  { %3005 = vmatmul.msk.f32.vlgmr.msrb.gmra.mxu2 %vm94_vm0, %v439_v62 }
  0x7f   :  { %3022 = vmatmul.msk.f32.vlgmr.msrb.gmra.mxu3 %vm94_vm0, %v3570_v28 }
  0x80   :  { %3039 = vmatmul.msk.f32.vlgmr.msrb.gmra.mxu0 %vm94_vm0, %v3568_v27 }
  0x81   :  { %3056 = vmatmul.msk.f32.vlgmr.msrb.gmra.mxu1 %vm94_vm0, %v440_v63 }
  0x86   :  { %3006 = vmatmul.msk.f32.gmra.mxu2 %vm94_vm0, %v440_v63 }
  0x87   :  { %3023 = vmatmul.msk.f32.gmra.mxu3 %vm94_vm0, %v3584_v33 }
  0x88   :  { %3040 = vmatmul.msk.f32.gmra.mxu0 %vm94_vm0, %v3582_v32 }
  0x89   :  { %3057 = vmatmul.msk.f32.gmra.mxu1 %vm94_vm0, %v3690_v1 }
  0x8e   :  { %3007 = vmatmul.msk.f32.gmra.mxu2 %vm94_vm0, %v3690_v1 }
  0x8f   :  { %3024 = vmatmul.msk.f32.gmra.mxu3 %vm94_vm0, %v3602_v39 }
  0x90   :  { %3041 = vmatmul.msk.f32.gmra.mxu0 %vm94_vm0, %v3600_v38 }
  0x91   :  { %3058 = vmatmul.msk.f32.gmra.mxu1 %vm94_vm0, %v3700_v2 }
  0x96   :  { %3008 = vmatmul.msk.f32.gmra.mxu2 %vm94_vm0, %v3700_v2 }
  0x97   :  { %3025 = vmatmul.msk.f32.gmra.mxu3 %vm94_vm0, %v3619_v44 }
  0x98   :  { %3042 = vmatmul.msk.f32.gmra.mxu0 %vm94_vm0, %v3617_v43 }
  0x99   :  { %3059 = vmatmul.msk.f32.gmra.mxu1 %vm94_vm0, %v3711_v4 }
  0x9e   :  { %3009 = vmatmul.msk.f32.gmra.mxu2 %vm94_vm0, %v3711_v4  ;;  %v3761_v15 = vpop.f32.mrf.mxu0 }
  0x9f   :  { %3026 = vmatmul.msk.f32.gmra.mxu3 %vm94_vm0, %v3637_v50 }
  0xa0   :  { %3043 = vmatmul.msk.f32.gmra.mxu0 %vm94_vm0, %v3635_v49 }
  0xa1   :  { %3060 = vmatmul.msk.f32.gmra.mxu1 %vm94_vm0, %v3721_v7  ;;  %v3768_v17 = vpop.f32.mrf.mxu3 }
  0xa2   :  { %v3766_v16 = vpop.f32.mrf.mxu2 }
  0xa6   :  { %3010 = vmatmul.msk.f32.gmra.mxu2 %vm94_vm0, %v3721_v7 }
  0xa7   :  { %3027 = vmatmul.msk.f32.gmra.mxu3 %vm94_vm0, %v3655_v57 }
  0xa8   :  { %3044 = vmatmul.msk.f32.gmra.mxu0 %vm94_vm0, %v3653_v56 }
  0xa9   :  { %3061 = vmatmul.msk.f32.gmra.mxu1 %vm94_vm0, %v3731_v9 }
  0xae   :  { %3011 = vmatmul.msk.f32.gmra.mxu2 %vm94_vm0, %v3731_v9 }
  0xaf   :  { %3028 = vmatmul.msk.f32.gmra.mxu3 %vm94_vm0, %v3671_v61 }
  0xb0   :  { %3045 = vmatmul.msk.f32.gmra.mxu0 %vm94_vm0, %v3669_v60 }
  0xb1   :  { %3062 = vmatmul.msk.f32.gmra.mxu1 %vm94_vm0, %v3741_v10 }
  0xb6   :  { %3012 = vmatmul.msk.f32.gmra.mxu2 %vm94_vm0, %v3741_v10 }
  0xb7   :  { %3029 = vmatmul.msk.f32.gmra.mxu3 %vm94_vm0, %v3747_v11 }
  0xb8   :  { %3046 = vmatmul.msk.f32.gmra.mxu0 %vm94_vm0, %v3749_v12 }
  0xb9   :  { %3063 = vmatmul.msk.f32.gmra.mxu1 %vm94_vm0, %v3751_v13 }
  0xbe   :  { %3013 = vmatmul.msk.f32.gmra.mxu2 %vm94_vm0, %v447_v14 }
  0xbf   :  { %3030 = vmatmul.msk.f32.gmra.mxu3 %vm94_vm0, %v3560_v24 }
  0xc0   :  { %3047 = vmatmul.msk.f32.gmra.mxu0 %vm94_vm0, %v3558_v23 }
  0xc1   :  { %3064 = vmatmul.msk.f32.gmra.mxu1 %vm94_vm0, %v448_v18 }
  0xc5   :  { %v3773_v19 = vpop.f32.mrf.mxu0 }
  0xc6   :  { %3014 = vmatmul.msk.f32.gmra.mxu2 %vm94_vm0, %v448_v18  ;;  %v1632_v18 = vld [vmem:[#allocation9 + $0x38] sm:$0xff] }
  0xc7   :  { %3031 = vmatmul.msk.f32.gmra.mxu3 %vm94_vm0, %v3580_v31  ;;  %1693 = vmatpush.msra.mxu1 %v1632_v18 }
  0xc8   :  { %3048 = vmatmul.msk.f32.gmra.mxu0 %vm94_vm0, %v3578_v30 }
  0xc9   :  { %3065 = vmatmul.msk.f32.gmra.mxu1 %vm94_vm0, %v3778_v20  ;;  %v302_v21 = vpop.f32.mrf.mxu2 }
  0xca   :  { %v418_v22 = vpop.f32.mrf.mxu3 }
  0xcb   :  { %v3784_v23 = vadd.f32 %v418_v22, %v302_v21  ;;  %v391_v22 = vpop.f32.mrf.mxu1 }
  0xcd   :  { %4756 = vst [vmem:[#allocation15_spill] sm:$0xff] %v3784_v23  ;;  %v3786_v24 = vpop.f32.mrf.mxu0 }
  0xce   :  { %3015 = vmatmul.msk.f32.gmra.mxu2 %vm94_vm0, %v3778_v20 }
  0xcf   :  { %3032 = vmatmul.msk.f32.gmra.mxu3 %vm94_vm0, %v3598_v37 }
  0xd0   :  { %3049 = vmatmul.msk.f32.gmra.mxu0 %vm94_vm0, %v3596_v36 }
  0xd1   :  { %3066 = vmatmul.msk.f32.gmra.mxu1 %vm94_vm0, %v3792_v25  ;;  %v305_v27 = vpop.f32.mrf.mxu2 }
  0xd2   :  { %v421_v28 = vpop.f32.mrf.mxu3 }
  0xd3   :  { %v3799_v29 = vadd.f32 %v421_v28, %v305_v27 }
  0xd5   :  { %4757 = vst [vmem:[#allocation16_spill] sm:$0xff] %v3799_v29  ;;  %v3801_v34 = vpop.f32.mrf.mxu0 }
  0xd6   :  { %3016 = vmatmul.msk.f32.gmra.mxu2 %vm94_vm0, %v3792_v25 }
  0xd7   :  { %3033 = vmatmul.msk.f32.gmra.mxu3 %vm94_vm0, %v3615_v42 }
  0xd8   :  { %3050 = vmatmul.msk.f32.gmra.mxu0 %vm94_vm0, %v3613_v41 }
  0xd9   :  { %3067 = vmatmul.msk.f32.gmra.mxu1 %vm94_vm0, %v3807_v35  ;;  %v308_v40 = vpop.f32.mrf.mxu2 }
  0xda   :  { %v424_v45 = vpop.f32.mrf.mxu3 }
  0xdb   :  { %v3813_v46 = vadd.f32 %v424_v45, %v308_v40  ;;  %v3857_v45 = vld [vmem:[#allocation2 + $0x120] sm:$0xff] }
  0xdd   :  { %4758 = vst [vmem:[#allocation17_spill] sm:$0xff] %v3813_v46  ;;  %v3815_v51 = vpop.f32.mrf.mxu0 }
  0xde   :  { %3017 = vmatmul.msk.f32.gmra.mxu2 %vm94_vm0, %v3807_v35 }
  0xdf   :  { %3034 = vmatmul.msk.f32.gmra.mxu3 %vm94_vm0, %v3633_v48 }
  0xe0   :  { %3051 = vmatmul.msk.f32.gmra.mxu0 %vm94_vm0, %v3631_v47 }
  0xe1   :  { %3068 = vmatmul.msk.f32.gmra.mxu1 %vm94_vm0, %v3821_v52  ;;  %v311_v53 = vpop.f32.mrf.mxu2 }
  0xe2   :  { %v427_v62 = vpop.f32.mrf.mxu3 }
  0xe3   :  { %v3827_v63 = vadd.f32 %v427_v62, %v311_v53  ;;  %v3861_v62 = vld [vmem:[#allocation2 + $0x121] sm:$0xff] }
  0xe5   :  { %4759 = vst [vmem:[#allocation18_spill] sm:$0xff] %v3827_v63  ;;  %v3829_v3 = vpop.f32.mrf.mxu0 }
  0xe6   :  { %3018 = vmatmul.msk.f32.gmra.mxu2 %vm94_vm0, %v3821_v52 }
  0xe7   :  { %3035 = vmatmul.msk.f32.gmra.mxu3 %vm94_vm0, %v3651_v55 }
  0xe8   :  { %3052 = vmatmul.msk.f32.gmra.mxu0 %vm94_vm0, %v3649_v54 }
  0xe9   :  { %3069 = vmatmul.msk.f32.gmra.mxu1 %vm94_vm0, %v3835_v5  ;;  %v314_v6 = vpop.f32.mrf.mxu2 }
  0xea   :  { %v430_v8 = vpop.f32.mrf.mxu3 }
  0xeb   :  { %v3841_v14 = vadd.f32 %v430_v8, %v314_v6  ;;  %v3863_v6 = vld [vmem:[#allocation2 + $0x122] sm:$0xff]  ;;  %v394_v8 = vpop.f32.mrf.mxu1 }
  0xec   :  { %4762 = vst [vmem:[#allocation21_spill] sm:$0xff] %v3863_v6 }
  0xed   :  { %4760 = vst [vmem:[#allocation19_spill] sm:$0xff] %v3841_v14  ;;  %v3843_v21 = vpop.f32.mrf.mxu0 }
  0xee   :  { %3019 = vmatmul.msk.f32.gmra.mxu2 %vm94_vm0, %v3835_v5 }
  0xef   :  { %3036 = vmatmul.msk.f32.gmra.mxu3 %vm94_vm0, %v3667_v59 }
  0xf0   :  { %3053 = vmatmul.msk.f32.gmra.mxu0 %vm94_vm0, %v3665_v58 }
  0xf1   :  { %3070 = vmatmul.msk.f32.gmra.mxu1 %vm94_vm0, %v3849_v26  ;;  %v317_v27 = vpop.f32.mrf.mxu2 }
  0xf2   :  { %v433_v28 = vpop.f32.mrf.mxu3 }
  0xf3   :  { %v3855_v40 = vadd.f32 %v433_v28, %v317_v27  ;;  %v397_v46 = vpop.f32.mrf.mxu1 }
  0xf5   :  { %4761 = vst [vmem:[#allocation20_spill] sm:$0xff] %v3855_v40  ;;  %v3859_v53 = vpop.f32.mrf.mxu0  ;;  %v392_v40 = vadd.f32 %v391_v22, %v3761_v15 }
  0xf6   :  { %3020 = vmatmul.msk.f32.gmra.mxu2 %vm94_vm0, %v3849_v26 }
  0xf7   :  { %3037 = vmatmul.msk.f32.gmra.mxu3 %vm94_vm0, %v3857_v45 }
  0xf8   :  { %3054 = vmatmul.msk.f32.gmra.mxu0 %vm94_vm0, %v3861_v62 }
  0xf9   :  { %3071 = vmatmul.msk.f32.gmra.mxu1 %vm94_vm0, %v3863_v6  ;;  %v320_v18 = vpop.f32.mrf.mxu2 }
  0xfa   :  { %v436_v27 = vpop.f32.mrf.mxu3 }
  0xfb   :  { %v3873_v28 = vadd.f32 %v436_v27, %v320_v18  ;;  %v400_v22 = vpop.f32.mrf.mxu1 }
  0xfd   :  { %v828_v0 = vpop.f32.mrf.mxu0 }
  0xfe   :  { %3073 = vmatmul.msk.f32.vlgmr.msra.gmra.mxu2 %vm94_vm0, %v3584_v33 }
  0xff   :  { %3090 = vmatmul.msk.f32.vlgmr.msra.gmra.mxu3 %vm94_vm0, %v3582_v32  ;;  %v395_v32 = vadd.f32 %v394_v8, %v3773_v19 }
 0x100   :  { %3107 = vmatmul.msk.f32.vlgmr.msra.gmra.mxu0 %vm94_vm0, %v3690_v1 }
 0x101   :  { %v526_v14 = vpop.f32.mrf.mxu2 }
 0x102   :  { %v677_v63 = vpop.f32.mrf.mxu3  ;;  %v574_v29 = vadd.f32 %v526_v14, %v392_v40 }
 0x103   :  { %v403_v8 = vpop.f32.mrf.mxu1 }
 0x104   :  { %v725_v23 = vadd.f32 %v677_v63, %v574_v29  ;;  %v1631_v29 = vld [vmem:[#allocation9 + $0x30] sm:$0xff] }
 0x105   :  { %v831_v6 = vpop.f32.mrf.mxu0  ;;  %1694 = vmatpush.msra.mxu1 %v1631_v29 }
 0x106   :  { %v3882_v18 = vadd.f32 %v828_v0, %v725_v23  ;;  %3074 = vmatmul.msk.f32.gmra.mxu2 %vm94_vm0, %v3602_v39 }
 0x107   :  { %3091 = vmatmul.msk.f32.gmra.mxu3 %vm94_vm0, %v3600_v38  ;;  %v398_v38 = vadd.f32 %v397_v46, %v3786_v24 }
 0x108   :  { %3108 = vmatmul.msk.f32.gmra.mxu0 %vm94_vm0, %v3700_v2 }
 0x109   :  { %v529_v33 = vpop.f32.mrf.mxu2 }
 0x10a   :  { %v680_v1 = vpop.f32.mrf.mxu3  ;;  %v575_v15 = vadd.f32 %v529_v33, %v395_v32 }
 0x10c   :  { %v726_v14 = vadd.f32 %v680_v1, %v575_v15 }
 0x10d   :  { %v834_v63 = vpop.f32.mrf.mxu0 }
 0x10e   :  { %v3891_v0 = vadd.f32 %v831_v6, %v726_v14  ;;  %3075 = vmatmul.msk.f32.gmra.mxu2 %vm94_vm0, %v3619_v44 }
 0x10f   :  { %3092 = vmatmul.msk.f32.gmra.mxu3 %vm94_vm0, %v3617_v43  ;;  %v401_v43 = vadd.f32 %v400_v22, %v3801_v34 }
 0x110   :  { %3109 = vmatmul.msk.f32.gmra.mxu0 %vm94_vm0, %v3711_v4 }
 0x111   :  { %v532_v39 = vpop.f32.mrf.mxu2 }
 0x112   :  { %v683_v2 = vpop.f32.mrf.mxu3  ;;  %v576_v19 = vadd.f32 %v532_v39, %v398_v38 }
 0x114   :  { %v727_v23 = vadd.f32 %v683_v2, %v576_v19  ;;  %v1051_v2 = vld [vmem:[#allocation2 + $0x90] sm:$0xff] }
 0x115   :  { %v837_v40 = vpop.f32.mrf.mxu0  ;;  %v1202_v19 = vld [vmem:[#allocation2 + $0x91] sm:$0xff] }
 0x116   :  { %v3900_v27 = vadd.f32 %v834_v63, %v727_v23  ;;  %3076 = vmatmul.msk.f32.gmra.mxu2 %vm94_vm0, %v3637_v50  ;;  %v406_v50 = vpop.f32.mrf.mxu1  ;;  %v1630_v63 = vld [vmem:[#allocation9 + $0x28] sm:$0xff] }
 0x117   :  { %3093 = vmatmul.msk.f32.gmra.mxu3 %vm94_vm0, %v3635_v49  ;;  %v404_v49 = vadd.f32 %v403_v8, %v3815_v51  ;;  %1695 = vmatpush.msra.mxu1 %v1630_v63 }
 0x118   :  { %3110 = vmatmul.msk.f32.gmra.mxu0 %vm94_vm0, %v3721_v7 }
 0x119   :  { %v535_v44 = vpop.f32.mrf.mxu2 }
 0x11a   :  { %v686_v4 = vpop.f32.mrf.mxu3  ;;  %v577_v24 = vadd.f32 %v535_v44, %v401_v43  ;;  %v1353_v43 = vld [vmem:[#allocation2 + $0x92] sm:$0xff] }
 0x11c   :  { %v728_v46 = vadd.f32 %v686_v4, %v577_v24 }
 0x11d   :  { %v840_v6 = vpop.f32.mrf.mxu0 }
 0x11e   :  { %v3909_v32 = vadd.f32 %v837_v40, %v728_v46  ;;  %3077 = vmatmul.msk.f32.gmra.mxu2 %vm94_vm0, %v3655_v57  ;;  %v409_v14 = vpop.f32.mrf.mxu1 }
 0x11f   :  { %3094 = vmatmul.msk.f32.gmra.mxu3 %vm94_vm0, %v3653_v56  ;;  %v407_v56 = vadd.f32 %v406_v50, %v3829_v3 }
 0x120   :  { %3111 = vmatmul.msk.f32.gmra.mxu0 %vm94_vm0, %v3731_v9 }
 0x121   :  { %v538_v7 = vpop.f32.mrf.mxu2 }
 0x122   :  { %v689_v34 = vpop.f32.mrf.mxu3  ;;  %v578_v33 = vadd.f32 %v538_v7, %v404_v49 }
 0x124   :  { %v729_v1 = vadd.f32 %v689_v34, %v578_v33  ;;  %v1879_v33 = vld [vmem:[#allocation9 + $0x58] sm:$0xff] }
 0x125   :  { %v843_v15 = vpop.f32.mrf.mxu0  ;;  %1940 = vmatpush.msrb.mxu3 %v1879_v33 }
 0x126   :  { %v3918_v22 = vadd.f32 %v840_v6, %v729_v1  ;;  %3078 = vmatmul.msk.f32.gmra.mxu2 %vm94_vm0, %v3671_v61  ;;  %v412_v40 = vpop.f32.mrf.mxu1  ;;  %v416_v6 = vadd.f32 %v3768_v17, %v3766_v16  ;;  %v1629_v16 = vld [vmem:[#allocation9 + $0x20] sm:$0xff]  ;;  %v1609_v1 = vld [vmem:[#allocation9 + $0x8] sm:$0xff] }
 0x127   :  { %3095 = vmatmul.msk.f32.gmra.mxu3 %vm94_vm0, %v3669_v60  ;;  %v410_v60 = vadd.f32 %v409_v14, %v3843_v21  ;;  %1696 = vmatpush.msra.mxu1 %v1629_v16  ;;  %v4122_v16 = vld [vmem:[#allocation8] ss:$0 sm:$0xff] }
 0x128   :  { %3112 = vmatmul.msk.f32.gmra.mxu0 %vm94_vm0, %v3741_v10 }
 0x129   :  { %v541_v57 = vpop.f32.mrf.mxu2 }
 0x12a   :  { %v692_v9 = vpop.f32.mrf.mxu3  ;;  %v579_v51 = vadd.f32 %v541_v57, %v407_v56  ;;  %v1877_v56 = vld [vmem:[#allocation9 + $0x48] sm:$0xff] }
 0x12c   :  { %v730_v29 = vadd.f32 %v692_v9, %v579_v51  ;;  %v1876_v9 = vld [vmem:[#allocation9 + $0x40] sm:$0xff] }
 0x12d   :  { %v846_v38 = vpop.f32.mrf.mxu0 }
 0x12e   :  { %v3927_v39 = vadd.f32 %v843_v15, %v730_v29  ;;  %3079 = vmatmul.msk.f32.gmra.mxu2 %vm94_vm0, %v3747_v11  ;;  %v413_v11 = vadd.f32 %v412_v40, %v3859_v53  ;;  %v1878_v15 = vld [vmem:[#allocation9 + $0x50] sm:$0xff]  ;;  %v2179_v29 = vld [vmem:[#allocation9 + $0x98] sm:$0xff]  ;;  %v1361_v40 = vld [vmem:[#allocation2 + $0x132] sm:$0xff] }
 0x12f   :  { %3096 = vmatmul.msk.f32.gmra.mxu3 %vm94_vm0, %v3749_v12  ;;  %2240 = vmatpush.msrb.mxu1 %v2179_v29 }
 0x130   :  { %3113 = vmatmul.msk.f32.gmra.mxu0 %vm94_vm0, %v3751_v13  ;;  %1941 = vmatpush.msrb.mxu3 %v1878_v15 }
 0x131   :  { %v544_v61 = vpop.f32.mrf.mxu2 }
 0x132   :  { %v695_v10 = vpop.f32.mrf.mxu3  ;;  %v580_v3 = vadd.f32 %v544_v61, %v410_v60  ;;  %1942 = vmatpush.msrb.mxu3 %v1877_v56  ;;  %v4764_v60 = vld [vmem:[#allocation21_spill] sm:$0xff]  ;;  %v2027_v61 = vld [vmem:[#allocation9 + $0x68] sm:$0xff] }
 0x134   :  { %v731_v23 = vadd.f32 %v695_v10, %v580_v3  ;;  %1943 = vmatpush.msrb.mxu3 %v1876_v9  ;;  %v2026_v3 = vld [vmem:[#allocation9 + $0x60] sm:$0xff] }
 0x135   :  { %v849_v8 = vpop.f32.mrf.mxu0 }
 0x136   :  { %v3936_v44 = vadd.f32 %v846_v38, %v731_v23  ;;  %3080 = vmatmul.msk.f32.gmra.mxu2 %vm94_vm0, %v1051_v2  ;;  %v2028_v38 = vld [vmem:[#allocation9 + $0x70] sm:$0xff]  ;;  %v1059_v2 = vld [vmem:[#allocation2 + $0x130] sm:$0xff] }
 0x137   :  { %3097 = vmatmul.msk.f32.gmra.mxu3 %vm94_vm0, %v1202_v19  ;;  %v1210_v19 = vld [vmem:[#allocation2 + $0x131] sm:$0xff] }
 0x138   :  { %3114 = vmatmul.msk.f32.gmra.mxu0 %vm94_vm0, %v1353_v43 }
 0x139   :  { %v547_v12 = vpop.f32.mrf.mxu2 }
 0x13a   :  { %v698_v13 = vpop.f32.mrf.mxu3  ;;  %v581_v21 = vadd.f32 %v547_v12, %v413_v11 }
 0x13c   :  { %v732_v4 = vadd.f32 %v698_v13, %v581_v21 }
 0x13d   :  { %v3942_v24 = vpop.f32.mrf.mxu0 }
 0x13e   :  { %v3944_v46 = vadd.f32 %v849_v8, %v732_v4  ;;  %3081 = vmatmul.msk.f32.gmra.mxu2 %vm94_vm0, %v3580_v31 }
 0x13f   :  { %3098 = vmatmul.msk.f32.gmra.mxu3 %vm94_vm0, %v3578_v30 }
 0x140   :  { %3115 = vmatmul.msk.f32.gmra.mxu0 %vm94_vm0, %v3778_v20 }
 0x141   :  { %v550_v53 = vpop.f32.mrf.mxu2 }
 0x142   :  { %v701_v49 = vpop.f32.mrf.mxu3  ;;  %v582_v50 = vadd.f32 %v550_v53, %v416_v6 }
 0x144   :  { %v3954_v7 = vadd.f32 %v701_v49, %v582_v50 }
 0x145   :  { %v3956_v34 = vpop.f32.mrf.mxu0 }
 0x146   :  { %3082 = vmatmul.msk.f32.gmra.mxu2 %vm94_vm0, %v3598_v37 }
 0x147   :  { %3099 = vmatmul.msk.f32.gmra.mxu3 %vm94_vm0, %v3596_v36 }
 0x148   :  { %3116 = vmatmul.msk.f32.gmra.mxu0 %vm94_vm0, %v3792_v25 }
 0x149   :  { %v3964_v30 = vpop.f32.mrf.mxu2 }
 0x14a   :  { %v3966_v31 = vpop.f32.mrf.mxu3 }
 0x14d   :  { %v3968_v17 = vpop.f32.mrf.mxu0 }
 0x14e   :  { %3083 = vmatmul.msk.f32.gmra.mxu2 %vm94_vm0, %v3615_v42 }
 0x14f   :  { %3100 = vmatmul.msk.f32.gmra.mxu3 %vm94_vm0, %v3613_v41 }
 0x150   :  { %3117 = vmatmul.msk.f32.gmra.mxu0 %vm94_vm0, %v3807_v35  ;;  %v3994_v35 = vpop.f32.mrf.mxu1 }
 0x151   :  { %v3976_v36 = vpop.f32.mrf.mxu2  ;;  %v1027_v4 = vadd.f32 %v3994_v35, %v3882_v18 }
 0x152   :  { %v3978_v37 = vpop.f32.mrf.mxu3 }
 0x155   :  { %v3980_v20 = vpop.f32.mrf.mxu0 }
 0x156   :  { %3084 = vmatmul.msk.f32.gmra.mxu2 %vm94_vm0, %v3633_v48  ;;  %v1611_v48 = vld [vmem:[#allocation9 + $0x18] sm:$0xff] }
 0x157   :  { %3101 = vmatmul.msk.f32.gmra.mxu3 %vm94_vm0, %v3631_v47  ;;  %v4763_v47 = vmov 0.0   ;;  %1806 = vmatpush.msrb.mxu2 %v1611_v48 }
 0x158   :  { %3118 = vmatmul.msk.f32.gmra.mxu0 %vm94_vm0, %v3821_v52  ;;  %1537 = vst.msk [vmem:[#allocation3 + $0x10] sm:$0xff] %vm1533_vm3, %v4763_v47  ;;  %v1610_v52 = vld [vmem:[#allocation9 + $0x10] sm:$0xff]  ;;  %v4032_v51 = vpop.f32.mrf.mxu1 }
 0x159   :  { %v3988_v42 = vpop.f32.mrf.mxu2  ;;  %1534 = vst.msk [vmem:[#allocation3] sm:$0xff] %vm1533_vm3, %v4763_v47  ;;  %1807 = vmatpush.msrb.mxu2 %v1610_v52  ;;  %v1028_v52 = vadd.f32 %v4032_v51, %v3891_v0 }
 0x15a   :  { %v3990_v41 = vpop.f32.mrf.mxu3  ;;  %1538 = vst.msk [vmem:[#allocation3 + $0x18] sm:$0x3] %vm1535_vm4, %v4763_v47 }
 0x15b   :  { %1536 = vst.msk [vmem:[#allocation3 + $0x8] sm:$0x3] %vm1535_vm4, %v4763_v47  ;;  %1808 = vmatpush.msrb.mxu2 %v1609_v1 }
 0x15c   :  { %1539 = vst.msk [vmem:[#allocation3 + $0x20] sm:$0xff] %vm1533_vm3, %v4763_v47 }
 0x15d   :  { %v3992_v25 = vpop.f32.mrf.mxu0  ;;  %1540 = vst.msk [vmem:[#allocation3 + $0x28] sm:$0x3] %vm1535_vm4, %v4763_v47 }
 0x15e   :  { %3085 = vmatmul.msk.f32.gmra.mxu2 %vm94_vm0, %v3651_v55  ;;  %1541 = vst.msk [vmem:[#allocation3 + $0x30] sm:$0xff] %vm1533_vm3, %v4763_v47 }
 0x15f   :  { %3102 = vmatmul.msk.f32.gmra.mxu3 %vm94_vm0, %v3649_v54  ;;  %1542 = vst.msk [vmem:[#allocation3 + $0x38] sm:$0x3] %vm1535_vm4, %v4763_v47 }
 0x160   :  { %3119 = vmatmul.msk.f32.gmra.mxu0 %vm94_vm0, %v3835_v5  ;;  %v1608_v5 = vld [vmem:[#allocation9] sm:$0xff]  ;;  %1543 = vst.msk [vmem:[#allocation3 + $0x40] sm:$0xff] %vm1533_vm3, %v4763_v47  ;;  %v1592_v11 = vld [vmem:[#allocation3] sm:$0xff] }
 0x161   :  { %v4008_v55 = vpop.f32.mrf.mxu2  ;;  %1809 = vmatpush.msrb.mxu2 %v1608_v5  ;;  %1544 = vst.msk [vmem:[#allocation3 + $0x48] sm:$0x3] %vm1535_vm4, %v4763_v47 }
 0x162   :  { %v4010_v54 = vpop.f32.mrf.mxu3  ;;  %1545 = vst.msk [vmem:[#allocation3 + $0x50] sm:$0xff] %vm1533_vm3, %v4763_v47  ;;  %v1859_v12 = vld [vmem:[#allocation3 + $0x2] sm:$0xff] }
 0x163   :  { %1546 = vst.msk [vmem:[#allocation3 + $0x58] sm:$0x3] %vm1535_vm4, %v4763_v47 }
 0x164   :  { %1547 = vst.msk [vmem:[#allocation3 + $0x60] sm:$0xff] %vm1533_vm3, %v4763_v47 }
 0x165   :  { %v4020_v57 = vpop.f32.mrf.mxu0  ;;  %1548 = vst.msk [vmem:[#allocation3 + $0x68] sm:$0x3] %vm1535_vm4, %v4763_v47 }
 0x166   :  { %3086 = vmatmul.msk.f32.gmra.mxu2 %vm94_vm0, %v3667_v59  ;;  %1549 = vst.msk [vmem:[#allocation3 + $0x70] sm:$0xff] %vm1533_vm3, %v4763_v47 }
 0x167   :  { %3103 = vmatmul.msk.f32.gmra.mxu3 %vm94_vm0, %v3665_v58  ;;  %v1612_v58 = vld [vmem:[#allocation3 + $0x1] sm:$0xff]  ;;  %1550 = vst.msk [vmem:[#allocation3 + $0x78] sm:$0x3] %vm1535_vm4, %v4763_v47 }
 0x168   :  { %3120 = vmatmul.msk.f32.gmra.mxu0 %vm94_vm0, %v3849_v26  ;;  %v2029_v26 = vld [vmem:[#allocation9 + $0x78] sm:$0xff]  ;;  %3123 = vmatmul.msk.f32.vlgmr.msra.gmra.mxu1 %vm1533_vm3, %v1612_v58  ;;  %1551 = vst.msk [vmem:[#allocation3 + $0x80] sm:$0xff] %vm1533_vm3, %v4763_v47 }
 0x169   :  { %v4038_v59 = vpop.f32.mrf.mxu2  ;;  %2090 = vmatpush.msrb.mxu0 %v2029_v26  ;;  %1552 = vst.msk [vmem:[#allocation3 + $0x88] sm:$0x3] %vm1535_vm4, %v4763_v47  ;;  %v2178_v26 = vld [vmem:[#allocation9 + $0x90] sm:$0xff] }
 0x16a   :  { %v4040_v14 = vpop.f32.mrf.mxu3  ;;  %1553 = vst.msk [vmem:[#allocation3 + $0x90] sm:$0xff] %vm1533_vm3, %v4763_v47  ;;  %2241 = vmatpush.msrb.mxu1 %v2178_v26 }
 0x16b   :  { %2091 = vmatpush.msrb.mxu0 %v2028_v38  ;;  %1554 = vst.msk [vmem:[#allocation3 + $0x98] sm:$0x3] %vm1535_vm4, %v4763_v47 }
 0x16c   :  { %1555 = vst.msk [vmem:[#allocation3 + $0xa0] sm:$0xff] %vm1533_vm3, %v4763_v47 }
 0x16d   :  { %v4051_v63 = vpop.f32.mrf.mxu0  ;;  %2092 = vmatpush.msrb.mxu0 %v2027_v61  ;;  %1556 = vst.msk [vmem:[#allocation3 + $0xa8] sm:$0x3] %vm1535_vm4, %v4763_v47 }
 0x16e   :  { %3087 = vmatmul.msk.f32.gmra.mxu2 %vm94_vm0, %v3857_v45  ;;  %1557 = vst.msk [vmem:[#allocation3 + $0xb0] sm:$0xff] %vm1533_vm3, %v4763_v47 }
 0x16f   :  { %3104 = vmatmul.msk.f32.gmra.mxu3 %vm94_vm0, %v3861_v62  ;;  %v985_v62 = vpop.f32.mrf.mxu1  ;;  %2093 = vmatpush.msrb.mxu0 %v2026_v3  ;;  %1558 = vst.msk [vmem:[#allocation3 + $0xb8] sm:$0x3] %vm1535_vm4, %v4763_v47 }
 0x170   :  { %3121 = vmatmul.msk.f32.gmra.mxu0 %vm94_vm0, %v4764_v60  ;;  %1559 = vst.msk [vmem:[#allocation3 + $0xc0] sm:$0xff] %vm1533_vm3, %v4763_v47 }
 0x171   :  { %v4067_v10 = vpop.f32.mrf.mxu2  ;;  %1560 = vst.msk [vmem:[#allocation3 + $0xc8] sm:$0x3] %vm1535_vm4, %v4763_v47 }
 0x172   :  { %v4069_v45 = vpop.f32.mrf.mxu3  ;;  %1561 = vst.msk [vmem:[#allocation3 + $0xd0] sm:$0xff] %vm1533_vm3, %v4763_v47 }
 0x173   :  { %1562 = vst.msk [vmem:[#allocation3 + $0xd8] sm:$0x3] %vm1535_vm4, %v4763_v47 }
 0x174   :  { %1563 = vst.msk [vmem:[#allocation3 + $0xe0] sm:$0xff] %vm1533_vm3, %v4763_v47 }
 0x175   :  { %v4079_v23 = vpop.f32.mrf.mxu0  ;;  %1564 = vst.msk [vmem:[#allocation3 + $0xe8] sm:$0x3] %vm1535_vm4, %v4763_v47 }
 0x176   :  { %3088 = vmatmul.msk.f32.gmra.mxu2 %vm94_vm0, %v1059_v2  ;;  %1565 = vst.msk [vmem:[#allocation3 + $0xf0] sm:$0xff] %vm1533_vm3, %v4763_v47 }
 0x177   :  { %3105 = vmatmul.msk.f32.gmra.mxu3 %vm94_vm0, %v1210_v19  ;;  %v988_v13 = vpop.f32.mrf.mxu1  ;;  %1566 = vst.msk [vmem:[#allocation3 + $0xf8] sm:$0x3] %vm1535_vm4, %v4763_v47 }
 0x178   :  { %3122 = vmatmul.msk.f32.gmra.mxu0 %vm94_vm0, %v1361_v40  ;;  %1567 = vst.msk [vmem:[#allocation3 + $0x100] sm:$0xff] %vm1533_vm3, %v4763_v47 }
 0x179   :  { %v4092_v8 = vpop.f32.mrf.mxu2  ;;  %1568 = vst.msk [vmem:[#allocation3 + $0x108] sm:$0x3] %vm1535_vm4, %v4763_v47 }
 0x17a   :  { %v4094_v43 = vpop.f32.mrf.mxu3  ;;  %1569 = vst.msk [vmem:[#allocation3 + $0x110] sm:$0xff] %vm1533_vm3, %v4763_v47 }
 0x17b   :  { %1570 = vst.msk [vmem:[#allocation3 + $0x118] sm:$0x3] %vm1535_vm4, %v4763_v47 }
 0x17c   :  { %1571 = vst.msk [vmem:[#allocation3 + $0x120] sm:$0xff] %vm1533_vm3, %v4763_v47 }
 0x17d   :  { %v1433_v21 = vpop.f32.mrf.mxu0  ;;  %1572 = vst.msk [vmem:[#allocation3 + $0x128] sm:$0x3] %vm1535_vm4, %v4763_v47 }
 0x17e   :  { %3139 = vmatmul.msk.f32.vlgmr.msrb.gmra.mxu2 %vm1533_vm3, %v1592_v11  ;;  %1573 = vst.msk [vmem:[#allocation3 + $0x130] sm:$0xff] %vm1533_vm3, %v4763_v47 }
 0x17f   :  { %3155 = vmatmul.msk.f32.vlgmr.msrb.gmra.mxu3 %vm1533_vm3, %v1859_v12  ;;  %1574 = vst.msk [vmem:[#allocation3 + $0x138] sm:$0x3] %vm1535_vm4, %v4763_v47  ;;  %v991_v35 = vpop.f32.mrf.mxu1  ;;  %v1029_v47 = vadd.f32 %v985_v62, %v3900_v27  ;;  %v1030_v12 = vadd.f32 %v988_v13, %v3909_v32 }
 0x181   :  { %v1131_v6 = vpop.f32.mrf.mxu2 }
 0x182   :  { %v1282_v53 = vpop.f32.mrf.mxu3  ;;  %v1179_v49 = vadd.f32 %v1131_v6, %v1027_v4 }
 0x184   :  { %v1330_v50 = vadd.f32 %v1282_v53, %v1179_v49 }
 0x185   :  { %v1436_v18 = vpop.f32.mrf.mxu0 }
 0x186   :  { %v1481_v48 = vadd.f32 %v1433_v21, %v1330_v50 }
 0x187   :  { %v994_v38 = vpop.f32.mrf.mxu1 }
 0x188   :  { %v1501_v33 = vadd.f32 %v4122_v16, %v1481_v48 }
 0x189   :  { %v1134_v1 = vpop.f32.mrf.mxu2 }
 0x18a   :  { %v1285_v15 = vpop.f32.mrf.mxu3  ;;  %v1517_v5 = vmax.f32 %v1501_v33, 0.0  ;;  %v1180_v56 = vadd.f32 %v1134_v1, %v1028_v52  ;;  %v1031_v1 = vadd.f32 %v991_v35, %v3918_v22 }
 0x18c   :  { %1576 = vst.msk [vmem:[#allocation3 + $0x11] sm:$0xff] %vm1533_vm3, %v1517_v5  ;;  %v1331_v9 = vadd.f32 %v1285_v15, %v1180_v56 }
 0x18d   :  { %v1439_v58 = vpop.f32.mrf.mxu0 }
 0x18e   :  { %v1482_v29 = vadd.f32 %v1436_v18, %v1331_v9 }
 0x18f   :  { %v997_v53 = vpop.f32.mrf.mxu1 }
 0x190   :  { %v1502_v60 = vadd.f32 %v4122_v16, %v1482_v29 }
 0x191   :  { %v1137_v61 = vpop.f32.mrf.mxu2 }
 0x192   :  { %v1288_v0 = vpop.f32.mrf.mxu3  ;;  %v1518_v51 = vmax.f32 %v1502_v60, 0.0  ;;  %v1181_v3 = vadd.f32 %v1137_v61, %v1029_v47 }
 0x193   :  { %v4134_v2 = vld [vmem:[#allocation3 + $0x11] sm:$0xff] }
 0x194   :  { %v1593_v19 = vld [vmem:[#allocation3 + $0x10] sm:$0xff]  ;;  %1577 = vst.msk [vmem:[#allocation3 + $0x21] sm:$0xff] %vm1533_vm3, %v1518_v51  ;;  %v1332_v11 = vadd.f32 %v1288_v0, %v1181_v3  ;;  %3124 = vmatmul.msk.f32.gmra.mxu1 %vm1533_vm3, %v4134_v2  ;;  %v1032_v0 = vadd.f32 %v994_v38, %v3927_v39  ;;  %v2177_v38 = vld [vmem:[#allocation9 + $0x88] sm:$0xff] }
 0x195   :  { %v4136_v40 = vld [vmem:[#allocation3 + $0x12] sm:$0xff]  ;;  %3140 = vmatmul.msk.f32.gmra.mxu2 %vm1533_vm3, %v1593_v19  ;;  %3171 = vmatmul.msk.f32.vlgmr.msrb.gmra.mxu0 %vm1533_vm3, %v1593_v19  ;;  %v1442_v27 = vpop.f32.mrf.mxu0 }
 0x196   :  { %3156 = vmatmul.msk.f32.gmra.mxu3 %vm1533_vm3, %v4136_v40  ;;  %v1483_v62 = vadd.f32 %v1439_v58, %v1332_v11  ;;  %2242 = vmatpush.msrb.mxu1 %v2177_v38  ;;  %v884_v38 = vadd.f32 %v3942_v24, %v3954_v7 }
 0x197   :  { %v1000_v60 = vpop.f32.mrf.mxu1 }
 0x198   :  { %v1503_v21 = vadd.f32 %v4122_v16, %v1483_v62 }
 0x199   :  { %v1140_v4 = vpop.f32.mrf.mxu2 }
 0x19a   :  { %v1291_v6 = vpop.f32.mrf.mxu3  ;;  %v1519_v49 = vmax.f32 %v1503_v21, 0.0  ;;  %v1182_v50 = vadd.f32 %v1140_v4, %v1030_v12 }
 0x19b   :  { %v4147_v18 = vld [vmem:[#allocation3 + $0x21] sm:$0xff] }
 0x19c   :  { %v4149_v48 = vld [vmem:[#allocation3 + $0x20] sm:$0xff]  ;;  %1578 = vst.msk [vmem:[#allocation3 + $0x31] sm:$0xff] %vm1533_vm3, %v1519_v49  ;;  %v1333_v33 = vadd.f32 %v1291_v6, %v1182_v50  ;;  %3125 = vmatmul.msk.f32.gmra.mxu1 %vm1533_vm3, %v4147_v18  ;;  %v1033_v50 = vadd.f32 %v997_v53, %v3936_v44 }
 0x19d   :  { %v4151_v52 = vld [vmem:[#allocation3 + $0x22] sm:$0xff]  ;;  %3141 = vmatmul.msk.f32.gmra.mxu2 %vm1533_vm3, %v4149_v48  ;;  %3172 = vmatmul.msk.f32.gmra.mxu0 %vm1533_vm3, %v4149_v48  ;;  %v1445_v32 = vpop.f32.mrf.mxu0 }
 0x19e   :  { %3157 = vmatmul.msk.f32.gmra.mxu3 %vm1533_vm3, %v4151_v52  ;;  %v1484_v13 = vadd.f32 %v1442_v27, %v1333_v33 }
 0x19f   :  { %v1003_v6 = vpop.f32.mrf.mxu1 }
 0x1a0   :  { %v1504_v15 = vadd.f32 %v4122_v16, %v1484_v13  ;;  %v1035_v7 = vadd.f32 %v1003_v6, %v884_v38 }
 0x1a1   :  { %v1143_v5 = vpop.f32.mrf.mxu2 }
 0x1a2   :  { %v1294_v56 = vpop.f32.mrf.mxu3  ;;  %v1520_v9 = vmax.f32 %v1504_v15, 0.0  ;;  %v1183_v58 = vadd.f32 %v1143_v5, %v1031_v1 }
 0x1a3   :  { %v4164_v26 = vld [vmem:[#allocation3 + $0x31] sm:$0xff] }
 0x1a4   :  { %v4166_v29 = vld [vmem:[#allocation3 + $0x30] sm:$0xff]  ;;  %1579 = vst.msk [vmem:[#allocation3 + $0x41] sm:$0xff] %vm1533_vm3, %v1520_v9  ;;  %v1334_v61 = vadd.f32 %v1294_v56, %v1183_v58  ;;  %3126 = vmatmul.msk.f32.gmra.mxu1 %vm1533_vm3, %v4164_v26 }
 0x1a5   :  { %v4168_v47 = vld [vmem:[#allocation3 + $0x32] sm:$0xff]  ;;  %3142 = vmatmul.msk.f32.gmra.mxu2 %vm1533_vm3, %v4166_v29  ;;  %3173 = vmatmul.msk.f32.gmra.mxu0 %vm1533_vm3, %v4166_v29  ;;  %v1448_v22 = vpop.f32.mrf.mxu0 }
 0x1a6   :  { %3158 = vmatmul.msk.f32.gmra.mxu3 %vm1533_vm3, %v4168_v47  ;;  %v1485_v35 = vadd.f32 %v1445_v32, %v1334_v61  ;;  %v1034_v61 = vadd.f32 %v1000_v60, %v3944_v46 }
 0x1a8   :  { %v1505_v51 = vadd.f32 %v4122_v16, %v1485_v35 }
 0x1a9   :  { %v1146_v3 = vpop.f32.mrf.mxu2 }
 0x1aa   :  { %v1297_v19 = vpop.f32.mrf.mxu3  ;;  %v1521_v11 = vmax.f32 %v1505_v51, 0.0  ;;  %v1184_v27 = vadd.f32 %v1146_v3, %v1032_v0 }
 0x1ab   :  { %v4181_v62 = vld [vmem:[#allocation3 + $0x41] sm:$0xff] }
 0x1ac   :  { %v4183_v12 = vld [vmem:[#allocation3 + $0x40] sm:$0xff]  ;;  %1580 = vst.msk [vmem:[#allocation3 + $0x51] sm:$0xff] %vm1533_vm3, %v1521_v11  ;;  %v1335_v4 = vadd.f32 %v1297_v19, %v1184_v27  ;;  %3127 = vmatmul.msk.f32.gmra.mxu1 %vm1533_vm3, %v4181_v62 }
 0x1ad   :  { %v4185_v21 = vld [vmem:[#allocation3 + $0x42] sm:$0xff]  ;;  %3143 = vmatmul.msk.f32.gmra.mxu2 %vm1533_vm3, %v4183_v12  ;;  %3174 = vmatmul.msk.f32.gmra.mxu0 %vm1533_vm3, %v4183_v12  ;;  %v1451_v39 = vpop.f32.mrf.mxu0 }
 0x1ae   :  { %3159 = vmatmul.msk.f32.gmra.mxu3 %vm1533_vm3, %v4185_v21  ;;  %v1486_v49 = vadd.f32 %v1448_v22, %v1335_v4  ;;  %v1006_v22 = vpop.f32.mrf.mxu1 }
 0x1b0   :  { %v1506_v33 = vadd.f32 %v4122_v16, %v1486_v49  ;;  %v4765_v49 = vld [vmem:[#allocation15_spill] sm:$0xff] }
 0x1b1   :  { %v1149_v32 = vpop.f32.mrf.mxu2 }
 0x1b2   :  { %v1300_v13 = vpop.f32.mrf.mxu3  ;;  %v1522_v1 = vmax.f32 %v1506_v33, 0.0  ;;  %v1185_v15 = vadd.f32 %v1149_v32, %v1033_v50 }
 0x1b3   :  { %v4198_v5 = vld [vmem:[#allocation3 + $0x51] sm:$0xff] }
 0x1b4   :  { %v4200_v56 = vld [vmem:[#allocation3 + $0x50] sm:$0xff]  ;;  %1581 = vst.msk [vmem:[#allocation3 + $0x61] sm:$0xff] %vm1533_vm3, %v1522_v1  ;;  %v1336_v58 = vadd.f32 %v1300_v13, %v1185_v15  ;;  %3128 = vmatmul.msk.f32.gmra.mxu1 %vm1533_vm3, %v4198_v5 }
 0x1b5   :  { %v4202_v9 = vld [vmem:[#allocation3 + $0x52] sm:$0xff]  ;;  %3144 = vmatmul.msk.f32.gmra.mxu2 %vm1533_vm3, %v4200_v56  ;;  %3175 = vmatmul.msk.f32.gmra.mxu0 %vm1533_vm3, %v4200_v56  ;;  %v1454_v44 = vpop.f32.mrf.mxu0 }
 0x1b6   :  { %3160 = vmatmul.msk.f32.gmra.mxu3 %vm1533_vm3, %v4202_v9  ;;  %v1487_v53 = vadd.f32 %v1451_v39, %v1336_v58  ;;  %v583_v39 = vadd.f32 %v3964_v30, %v4765_v49  ;;  %v1009_v13 = vpop.f32.mrf.mxu1  ;;  %v1620_v49 = vld [vmem:[#allocation3 + $0xa1] sm:$0xff] }
 0x1b8   :  { %v1507_v35 = vadd.f32 %v4122_v16, %v1487_v53  ;;  %v734_v30 = vadd.f32 %v3966_v31, %v583_v39  ;;  %v1600_v39 = vld [vmem:[#allocation3 + $0xa0] sm:$0xff] }
 0x1b9   :  { %v1152_v0 = vpop.f32.mrf.mxu2 }
 0x1ba   :  { %v1303_v51 = vpop.f32.mrf.mxu3  ;;  %v1523_v3 = vmax.f32 %v1507_v35, 0.0  ;;  %v1186_v19 = vadd.f32 %v1152_v0, %v1034_v61  ;;  %v885_v35 = vadd.f32 %v3956_v34, %v734_v30  ;;  %v4766_v0 = vld [vmem:[#allocation16_spill] sm:$0xff] }
 0x1bb   :  { %v4215_v11 = vld [vmem:[#allocation3 + $0x61] sm:$0xff]  ;;  %v584_v6 = vadd.f32 %v3976_v36, %v4766_v0 }
 0x1bc   :  { %v4217_v27 = vld [vmem:[#allocation3 + $0x60] sm:$0xff]  ;;  %1582 = vst.msk [vmem:[#allocation3 + $0x71] sm:$0xff] %vm1533_vm3, %v1523_v3  ;;  %v1337_v46 = vadd.f32 %v1303_v51, %v1186_v19  ;;  %3129 = vmatmul.msk.f32.gmra.mxu1 %vm1533_vm3, %v4215_v11  ;;  %v1036_v51 = vadd.f32 %v1006_v22, %v885_v35 }
 0x1bd   :  { %v4219_v4 = vld [vmem:[#allocation3 + $0x62] sm:$0xff]  ;;  %3145 = vmatmul.msk.f32.gmra.mxu2 %vm1533_vm3, %v4217_v27  ;;  %3176 = vmatmul.msk.f32.gmra.mxu0 %vm1533_vm3, %v4217_v27  ;;  %v1457_v60 = vpop.f32.mrf.mxu0  ;;  %v735_v36 = vadd.f32 %v3978_v37, %v584_v6 }
 0x1be   :  { %3161 = vmatmul.msk.f32.gmra.mxu3 %vm1533_vm3, %v4219_v4  ;;  %v1488_v24 = vadd.f32 %v1454_v44, %v1337_v46 }
 0x1c0   :  { %v1508_v50 = vadd.f32 %v4122_v16, %v1488_v24 }
 0x1c1   :  { %v1155_v33 = vpop.f32.mrf.mxu2 }
 0x1c2   :  { %v1306_v32 = vpop.f32.mrf.mxu3  ;;  %v1524_v1 = vmax.f32 %v1508_v50, 0.0  ;;  %v1187_v15 = vadd.f32 %v1155_v33, %v1035_v7  ;;  %v1867_v7 = vld [vmem:[#allocation3 + $0xa2] sm:$0xff]  ;;  %v886_v50 = vadd.f32 %v3968_v17, %v735_v36 }
 0x1c3   :  { %v4236_v58 = vld [vmem:[#allocation3 + $0x71] sm:$0xff]  ;;  %v4767_v33 = vld [vmem:[#allocation17_spill] sm:$0xff] }
 0x1c4   :  { %v4238_v53 = vld [vmem:[#allocation3 + $0x70] sm:$0xff]  ;;  %1583 = vst.msk [vmem:[#allocation3 + $0x81] sm:$0xff] %vm1533_vm3, %v1524_v1  ;;  %v1338_v31 = vadd.f32 %v1306_v32, %v1187_v15  ;;  %3130 = vmatmul.msk.f32.gmra.mxu1 %vm1533_vm3, %v4236_v58  ;;  %v585_v32 = vadd.f32 %v3988_v42, %v4767_v33  ;;  %v1037_v17 = vadd.f32 %v1009_v13, %v886_v50 }
 0x1c5   :  { %v4240_v61 = vld [vmem:[#allocation3 + $0x72] sm:$0xff]  ;;  %3146 = vmatmul.msk.f32.gmra.mxu2 %vm1533_vm3, %v4238_v53  ;;  %3177 = vmatmul.msk.f32.gmra.mxu0 %vm1533_vm3, %v4238_v53  ;;  %v1460_v44 = vpop.f32.mrf.mxu0 }
 0x1c6   :  { %3162 = vmatmul.msk.f32.gmra.mxu3 %vm1533_vm3, %v4240_v61  ;;  %v1489_v34 = vadd.f32 %v1457_v60, %v1338_v31  ;;  %v1012_v60 = vpop.f32.mrf.mxu1  ;;  %v2176_v1 = vld [vmem:[#allocation9 + $0x80] sm:$0xff]  ;;  %v736_v42 = vadd.f32 %v3990_v41, %v585_v32 }
 0x1c7   :  { %2243 = vmatpush.msrb.mxu1 %v2176_v1 }
 0x1c8   :  { %v1509_v3 = vadd.f32 %v4122_v16, %v1489_v34 }
 0x1c9   :  { %v1158_v19 = vpop.f32.mrf.mxu2 }
 0x1ca   :  { %v1309_v38 = vpop.f32.mrf.mxu3  ;;  %v1525_v46 = vmax.f32 %v1509_v3, 0.0  ;;  %v1188_v24 = vadd.f32 %v1158_v19, %v1036_v51  ;;  %v887_v19 = vadd.f32 %v3980_v20, %v736_v42 }
 0x1cb   :  { %v4256_v30 = vld [vmem:[#allocation3 + $0x80] sm:$0xff] }
 0x1cc   :  { %1584 = vst.msk [vmem:[#allocation3 + $0xb1] sm:$0xff] %vm1533_vm3, %v1525_v46  ;;  %v1339_v37 = vadd.f32 %v1309_v38, %v1188_v24  ;;  %3131 = vmatmul.msk.f32.gmra.mxu1 %vm1533_vm3, %v1620_v49  ;;  %v4768_v38 = vld [vmem:[#allocation18_spill] sm:$0xff]  ;;  %v1038_v20 = vadd.f32 %v1012_v60, %v887_v19 }
 0x1cd   :  { %3147 = vmatmul.msk.f32.gmra.mxu2 %vm1533_vm3, %v1600_v39  ;;  %3178 = vmatmul.msk.f32.gmra.mxu0 %vm1533_vm3, %v4256_v30  ;;  %v1463_v22 = vpop.f32.mrf.mxu0 }
 0x1ce   :  { %3163 = vmatmul.msk.f32.gmra.mxu3 %vm1533_vm3, %v1867_v7  ;;  %v1490_v15 = vadd.f32 %v1460_v44, %v1339_v37  ;;  %v586_v44 = vadd.f32 %v4008_v55, %v4768_v38  ;;  %v1015_v49 = vpop.f32.mrf.mxu1 }
 0x1d0   :  { %v1510_v35 = vadd.f32 %v4122_v16, %v1490_v15  ;;  %v737_v46 = vadd.f32 %v4010_v54, %v586_v44 }
 0x1d1   :  { %v1161_v0 = vpop.f32.mrf.mxu2 }
 0x1d2   :  { %v1312_v6 = vpop.f32.mrf.mxu3  ;;  %v1526_v31 = vmax.f32 %v1510_v35, 0.0  ;;  %v1189_v34 = vadd.f32 %v1161_v0, %v1037_v17  ;;  %v888_v15 = vadd.f32 %v3992_v25, %v737_v46  ;;  %v4769_v17 = vld [vmem:[#allocation19_spill] sm:$0xff]  ;;  %v2479_v46 = vld [vmem:[#allocation9 + $0xd0] sm:$0xff] }
 0x1d3   :  { %v4269_v51 = vld [vmem:[#allocation3 + $0xb1] sm:$0xff] }
 0x1d4   :  { %v1601_v36 = vld [vmem:[#allocation3 + $0xb0] sm:$0xff]  ;;  %1585 = vst.msk [vmem:[#allocation3 + $0xc1] sm:$0xff] %vm1533_vm3, %v1526_v31  ;;  %v1340_v13 = vadd.f32 %v1312_v6, %v1189_v34  ;;  %3132 = vmatmul.msk.f32.gmra.mxu1 %vm1533_vm3, %v4269_v51  ;;  %v1039_v42 = vadd.f32 %v1015_v49, %v888_v15 }
 0x1d5   :  { %v4271_v3 = vld [vmem:[#allocation3 + $0xb2] sm:$0xff]  ;;  %3148 = vmatmul.msk.f32.gmra.mxu2 %vm1533_vm3, %v1601_v36  ;;  %3179 = vmatmul.msk.f32.gmra.mxu0 %vm1533_vm3, %v1601_v36  ;;  %v1466_v41 = vpop.f32.mrf.mxu0  ;;  %v2329_v49 = vld [vmem:[#allocation9 + $0xb8] sm:$0xff] }
 0x1d6   :  { %3164 = vmatmul.msk.f32.gmra.mxu3 %vm1533_vm3, %v4271_v3  ;;  %v1491_v39 = vadd.f32 %v1463_v22, %v1340_v13  ;;  %v587_v22 = vadd.f32 %v4038_v59, %v4769_v17  ;;  %v1018_v35 = vpop.f32.mrf.mxu1  ;;  %2390 = vmatpush.msra.mxu2 %v2329_v49 }
 0x1d8   :  { %v1511_v55 = vadd.f32 %v4122_v16, %v1491_v39  ;;  %v738_v59 = vadd.f32 %v4040_v14, %v587_v22  ;;  %v4770_v39 = vld [vmem:[#allocation20_spill] sm:$0xff] }
 0x1d9   :  { %v1164_v24 = vpop.f32.mrf.mxu2 }
 0x1da   :  { %v1315_v7 = vpop.f32.mrf.mxu3  ;;  %v1527_v50 = vmax.f32 %v1511_v55, 0.0  ;;  %v1190_v33 = vadd.f32 %v1164_v24, %v1038_v20  ;;  %v889_v13 = vadd.f32 %v4020_v57, %v738_v59  ;;  %v2480_v20 = vld [vmem:[#allocation9 + $0xd8] sm:$0xff]  ;;  %v2328_v57 = vld [vmem:[#allocation9 + $0xb0] sm:$0xff]  ;;  %v2477_v59 = vld [vmem:[#allocation9 + $0xc0] sm:$0xff] }
 0x1db   :  { %v4285_v32 = vld [vmem:[#allocation3 + $0xc1] sm:$0xff]  ;;  %2541 = vmatpush.msra.mxu3 %v2480_v20  ;;  %v2630_v24 = vld [vmem:[#allocation9 + $0xf8] sm:$0xff]  ;;  %2391 = vmatpush.msra.mxu2 %v2328_v57 }
 0x1dc   :  { %v4287_v37 = vld [vmem:[#allocation3 + $0xc0] sm:$0xff]  ;;  %1586 = vst.msk [vmem:[#allocation3 + $0xd1] sm:$0xff] %vm1533_vm3, %v1527_v50  ;;  %v1341_v54 = vadd.f32 %v1315_v7, %v1190_v33  ;;  %3133 = vmatmul.msk.f32.gmra.mxu1 %vm1533_vm3, %v4285_v32  ;;  %2691 = vmatpush.msra.mxu0 %v2630_v24  ;;  %v1040_v33 = vadd.f32 %v1018_v35, %v889_v13  ;;  %v2780_v13 = vld [vmem:[#allocation9 + $0x118] sm:$0xff] }
 0x1dd   :  { %v4289_v1 = vld [vmem:[#allocation3 + $0xc2] sm:$0xff]  ;;  %3149 = vmatmul.msk.f32.gmra.mxu2 %vm1533_vm3, %v4287_v37  ;;  %3180 = vmatmul.msk.f32.gmra.mxu0 %vm1533_vm3, %v4287_v37  ;;  %v1469_v60 = vpop.f32.mrf.mxu0  ;;  %v2327_v7 = vld [vmem:[#allocation9 + $0xa8] sm:$0xff] }
 0x1de   :  { %3165 = vmatmul.msk.f32.gmra.mxu3 %vm1533_vm3, %v4289_v1  ;;  %v1492_v25 = vadd.f32 %v1466_v41, %v1341_v54  ;;  %v588_v41 = vadd.f32 %v4067_v10, %v4770_v39  ;;  %v2478_v50 = vld [vmem:[#allocation9 + $0xc8] sm:$0xff]  ;;  %2392 = vmatpush.msra.mxu2 %v2327_v7 }
 0x1df   :  { %2542 = vmatpush.msra.mxu3 %v2479_v46  ;;  %2841 = vmatpush.msra.mxu1 %v2780_v13  ;;  %v2628_v57 = vld [vmem:[#allocation9 + $0xe8] sm:$0xff] }
 0x1e0   :  { %v1512_v0 = vadd.f32 %v4122_v16, %v1492_v25  ;;  %v739_v15 = vadd.f32 %v4069_v45, %v588_v41 }
 0x1e1   :  { %v1167_v6 = vpop.f32.mrf.mxu2  ;;  %2543 = vmatpush.msra.mxu3 %v2478_v50 }
 0x1e2   :  { %v1318_v31 = vpop.f32.mrf.mxu3  ;;  %v1528_v34 = vmax.f32 %v1512_v0, 0.0  ;;  %v1191_v36 = vadd.f32 %v1167_v6, %v1039_v42  ;;  %v1021_v0 = vpop.f32.mrf.mxu1  ;;  %v890_v45 = vadd.f32 %v4051_v63, %v739_v15  ;;  %v2629_v63 = vld [vmem:[#allocation9 + $0xf0] sm:$0xff] }
 0x1e3   :  { %v4305_v19 = vld [vmem:[#allocation3 + $0xd1] sm:$0xff]  ;;  %2544 = vmatpush.msra.mxu3 %v2477_v59  ;;  %2692 = vmatpush.msra.mxu0 %v2629_v63 }
 0x1e4   :  { %v4307_v38 = vld [vmem:[#allocation3 + $0xd0] sm:$0xff]  ;;  %1587 = vst.msk [vmem:[#allocation3 + $0xe1] sm:$0xff] %vm1533_vm3, %v1528_v34  ;;  %v1342_v14 = vadd.f32 %v1318_v31, %v1191_v36  ;;  %3134 = vmatmul.msk.f32.gmra.mxu1 %vm1533_vm3, %v4305_v19  ;;  %v589_v34 = vadd.f32 %v4092_v8, %v3873_v28  ;;  %v1041_v28 = vadd.f32 %v1021_v0, %v890_v45 }
 0x1e5   :  { %v4309_v44 = vld [vmem:[#allocation3 + $0xd2] sm:$0xff]  ;;  %3150 = vmatmul.msk.f32.gmra.mxu2 %vm1533_vm3, %v4307_v38  ;;  %3181 = vmatmul.msk.f32.gmra.mxu0 %vm1533_vm3, %v4307_v38  ;;  %v1472_v55 = vpop.f32.mrf.mxu0 }
 0x1e6   :  { %3166 = vmatmul.msk.f32.gmra.mxu3 %vm1533_vm3, %v4309_v44  ;;  %v1493_v10 = vadd.f32 %v1469_v60, %v1342_v14  ;;  %v2326_v60 = vld [vmem:[#allocation9 + $0xa0] sm:$0xff]  ;;  %v740_v8 = vadd.f32 %v4094_v43, %v589_v34  ;;  %2693 = vmatpush.msra.mxu0 %v2628_v57 }
 0x1e7   :  { %2393 = vmatpush.msra.mxu2 %v2326_v60 }
 0x1e8   :  { %v1513_v17 = vadd.f32 %v4122_v16, %v1493_v10  ;;  %v891_v50 = vadd.f32 %v4079_v23, %v740_v8 }
 0x1e9   :  { %v1170_v22 = vpop.f32.mrf.mxu2 }
 0x1ea   :  { %v1321_v54 = vpop.f32.mrf.mxu3  ;;  %v1529_v25 = vmax.f32 %v1513_v17, 0.0  ;;  %v1192_v42 = vadd.f32 %v1170_v22, %v1040_v33  ;;  %v2627_v33 = vld [vmem:[#allocation9 + $0xe0] sm:$0xff]  ;;  %v1024_v15 = vpop.f32.mrf.mxu1 }
 0x1eb   :  { %v4325_v6 = vld [vmem:[#allocation3 + $0xe1] sm:$0xff]  ;;  %2694 = vmatpush.msra.mxu0 %v2627_v33  ;;  %v1042_v23 = vadd.f32 %v1024_v15, %v891_v50 }
 0x1ec   :  { %v4327_v31 = vld [vmem:[#allocation3 + $0xe0] sm:$0xff]  ;;  %1588 = vst.msk [vmem:[#allocation3 + $0xf1] sm:$0xff] %vm1533_vm3, %v1529_v25  ;;  %v1343_v36 = vadd.f32 %v1321_v54, %v1192_v42  ;;  %3135 = vmatmul.msk.f32.gmra.mxu1 %vm1533_vm3, %v4325_v6 }
 0x1ed   :  { %v4329_v35 = vld [vmem:[#allocation3 + $0xe2] sm:$0xff]  ;;  %3151 = vmatmul.msk.f32.gmra.mxu2 %vm1533_vm3, %v4327_v31  ;;  %3182 = vmatmul.msk.f32.gmra.mxu0 %vm1533_vm3, %v4327_v31  ;;  %v1475_v14 = vpop.f32.mrf.mxu0 }
 0x1ee   :  { %3167 = vmatmul.msk.f32.gmra.mxu3 %vm1533_vm3, %v4329_v35  ;;  %v1494_v39 = vadd.f32 %v1472_v55, %v1343_v36 }
 0x1f0   :  { %v1514_v41 = vadd.f32 %v4122_v16, %v1494_v39 }
 0x1f1   :  { %v1173_v49 = vpop.f32.mrf.mxu2 }
 0x1f2   :  { %v1324_v20 = vpop.f32.mrf.mxu3  ;;  %v1530_v46 = vmax.f32 %v1514_v41, 0.0  ;;  %v1193_v10 = vadd.f32 %v1173_v49, %v1041_v28  ;;  %v2779_v49 = vld [vmem:[#allocation9 + $0x110] sm:$0xff] }
 0x1f3   :  { %v4345_v24 = vld [vmem:[#allocation3 + $0xf1] sm:$0xff]  ;;  %2842 = vmatpush.msra.mxu1 %v2779_v49 }
 0x1f4   :  { %v4347_v7 = vld [vmem:[#allocation3 + $0xf0] sm:$0xff]  ;;  %1589 = vst.msk [vmem:[#allocation3 + $0x101] sm:$0xff] %vm1533_vm3, %v1530_v46  ;;  %v1344_v43 = vadd.f32 %v1324_v20, %v1193_v10  ;;  %3136 = vmatmul.msk.f32.gmra.mxu1 %vm1533_vm3, %v4345_v24 }
 0x1f5   :  { %v4349_v55 = vld [vmem:[#allocation3 + $0xf2] sm:$0xff]  ;;  %3152 = vmatmul.msk.f32.gmra.mxu2 %vm1533_vm3, %v4347_v7  ;;  %3183 = vmatmul.msk.f32.gmra.mxu0 %vm1533_vm3, %v4347_v7  ;;  %v1478_v34 = vpop.f32.mrf.mxu0 }
 0x1f6   :  { %3168 = vmatmul.msk.f32.gmra.mxu3 %vm1533_vm3, %v4349_v55  ;;  %v1495_v17 = vadd.f32 %v1475_v14, %v1344_v43 }
 0x1f8   :  { %v1515_v22 = vadd.f32 %v4122_v16, %v1495_v17 }
 0x1f9   :  { %v1176_v54 = vpop.f32.mrf.mxu2 }
 0x1fa   :  { %v1327_v25 = vpop.f32.mrf.mxu3  ;;  %v1531_v42 = vmax.f32 %v1515_v22, 0.0  ;;  %v1194_v60 = vadd.f32 %v1176_v54, %v1042_v23 }
 0x1fb   :  { %v4362_v59 = vld [vmem:[#allocation3 + $0x101] sm:$0xff] }
 0x1fc   :  { %v4364_v0 = vld [vmem:[#allocation3 + $0x100] sm:$0xff]  ;;  %1590 = vst.msk [vmem:[#allocation3 + $0x111] sm:$0xff] %vm1533_vm3, %v1531_v42  ;;  %v1345_v36 = vadd.f32 %v1327_v25, %v1194_v60  ;;  %3137 = vmatmul.msk.f32.gmra.mxu1 %vm1533_vm3, %v4362_v59 }
 0x1fd   :  { %v4366_v45 = vld [vmem:[#allocation3 + $0x102] sm:$0xff]  ;;  %3153 = vmatmul.msk.f32.gmra.mxu2 %vm1533_vm3, %v4364_v0  ;;  %3184 = vmatmul.msk.f32.gmra.mxu0 %vm1533_vm3, %v4364_v0 }
 0x1fe   :  { %3169 = vmatmul.msk.f32.gmra.mxu3 %vm1533_vm3, %v4366_v45  ;;  %v1496_v13 = vadd.f32 %v1478_v34, %v1345_v36 }
 0x200   :  { %v1516_v63 = vadd.f32 %v4122_v16, %v1496_v13  ;;  %v4393_v16 = vpop.f32.mrf.mxu1 }
 0x201   :  { %v4405_v20 = vpop.f32.mrf.mxu2 }
 0x202   :  { %v1532_v39 = vmax.f32 %v1516_v63, 0.0  ;;  %v4407_v57 = vpop.f32.mrf.mxu3 }
 0x203   :  { %v4378_v28 = vld [vmem:[#allocation3 + $0x111] sm:$0xff] }
 0x204   :  { %v4380_v8 = vld [vmem:[#allocation3 + $0x110] sm:$0xff]  ;;  %1591 = vst.msk [vmem:[#allocation3 + $0x121] sm:$0xff] %vm1533_vm3, %v1532_v39  ;;  %3138 = vmatmul.msk.f32.gmra.mxu1 %vm1533_vm3, %v4378_v28 }
 0x205   :  { %v4382_v41 = vld [vmem:[#allocation3 + $0x112] sm:$0xff]  ;;  %3154 = vmatmul.msk.f32.gmra.mxu2 %vm1533_vm3, %v4380_v8  ;;  %3185 = vmatmul.msk.f32.gmra.mxu0 %vm1533_vm3, %v4380_v8 }
 0x206   :  { %3170 = vmatmul.msk.f32.gmra.mxu3 %vm1533_vm3, %v4382_v41 }
 0x20b   :  { %v4395_v14 = vld [vmem:[#allocation3 + $0x120] sm:$0xff] }
 0x20c   :  { %3187 = vmatmul.msk.f32.vlgmr.msrb.gmra.mxu1 %vm1533_vm3, %v4134_v2 }
 0x20d   :  { %3203 = vmatmul.msk.f32.vlgmr.msra.gmra.mxu2 %vm1533_vm3, %v4136_v40  ;;  %3186 = vmatmul.msk.f32.gmra.mxu0 %vm1533_vm3, %v4395_v14 }
 0x20e   :  { %3219 = vmatmul.msk.f32.vlgmr.msra.gmra.mxu3 %vm1533_vm3, %v4149_v48 }
 0x211   :  { %v1701_v46 = vpop.f32.mrf.mxu1 }
 0x212   :  { %v4409_v10 = vpop.f32.mrf.mxu0 }
 0x214   :  { %3188 = vmatmul.msk.f32.gmra.mxu1 %vm1533_vm3, %v4147_v18 }
 0x215   :  { %3204 = vmatmul.msk.f32.gmra.mxu2 %vm1533_vm3, %v4151_v52  ;;  %3235 = vmatmul.msk.f32.vlgmr.msra.gmra.mxu0 %vm1533_vm3, %v4147_v18 }
 0x216   :  { %3220 = vmatmul.msk.f32.gmra.mxu3 %vm1533_vm3, %v4166_v29 }
 0x218   :  { %v1814_v2 = vpop.f32.mrf.mxu2 }
 0x219   :  { %v1815_v40 = vadd.f32 %v1814_v2, %v1701_v46  ;;  %v1948_v48 = vpop.f32.mrf.mxu3  ;;  %v1704_v50 = vpop.f32.mrf.mxu1 }
 0x21a   :  { %v4421_v33 = vpop.f32.mrf.mxu0 }
 0x21b   :  { %v4419_v43 = vadd.f32 %v1948_v48, %v1815_v40 }
 0x21c   :  { %3189 = vmatmul.msk.f32.gmra.mxu1 %vm1533_vm3, %v4164_v26 }
 0x21d   :  { %3205 = vmatmul.msk.f32.gmra.mxu2 %vm1533_vm3, %v4168_v47  ;;  %3236 = vmatmul.msk.f32.gmra.mxu0 %vm1533_vm3, %v4164_v26 }
 0x21e   :  { %3221 = vmatmul.msk.f32.gmra.mxu3 %vm1533_vm3, %v4183_v12 }
 0x220   :  { %v1817_v18 = vpop.f32.mrf.mxu2 }
 0x221   :  { %v1818_v29 = vadd.f32 %v1817_v18, %v1704_v50  ;;  %v1951_v15 = vpop.f32.mrf.mxu3  ;;  %v1707_v17 = vpop.f32.mrf.mxu1 }
 0x222   :  { %v4433_v22 = vpop.f32.mrf.mxu0 }
 0x223   :  { %v4431_v23 = vadd.f32 %v1951_v15, %v1818_v29  ;;  %v2467_v15 = vld [vmem:[#allocation3 + $0x90] sm:$0xff] }
 0x224   :  { %3190 = vmatmul.msk.f32.gmra.mxu1 %vm1533_vm3, %v4181_v62 }
 0x225   :  { %3206 = vmatmul.msk.f32.gmra.mxu2 %vm1533_vm3, %v4185_v21  ;;  %3237 = vmatmul.msk.f32.gmra.mxu0 %vm1533_vm3, %v4181_v62  ;;  %v2778_v62 = vld [vmem:[#allocation9 + $0x108] sm:$0xff] }
 0x226   :  { %3222 = vmatmul.msk.f32.gmra.mxu3 %vm1533_vm3, %v4200_v56  ;;  %2843 = vmatpush.msra.mxu1 %v2778_v62 }
 0x228   :  { %v1820_v26 = vpop.f32.mrf.mxu2 }
 0x229   :  { %v1821_v12 = vadd.f32 %v1820_v26, %v1707_v17  ;;  %v1954_v54 = vpop.f32.mrf.mxu3  ;;  %v1710_v25 = vpop.f32.mrf.mxu1  ;;  %v2166_v17 = vld [vmem:[#allocation3 + $0x81] sm:$0xff] }
 0x22a   :  { %v4445_v60 = vpop.f32.mrf.mxu0  ;;  %v4483_v26 = vld [vmem:[#allocation3 + $0x82] sm:$0xff] }
 0x22b   :  { %v4443_v42 = vadd.f32 %v1954_v54, %v1821_v12 }
 0x22c   :  { %3191 = vmatmul.msk.f32.gmra.mxu1 %vm1533_vm3, %v4198_v5 }
 0x22d   :  { %3207 = vmatmul.msk.f32.gmra.mxu2 %vm1533_vm3, %v4202_v9  ;;  %3238 = vmatmul.msk.f32.gmra.mxu0 %vm1533_vm3, %v4198_v5 }
 0x22e   :  { %3223 = vmatmul.msk.f32.gmra.mxu3 %vm1533_vm3, %v4217_v27 }
 0x230   :  { %v1823_v56 = vpop.f32.mrf.mxu2 }
 0x231   :  { %v1824_v34 = vadd.f32 %v1823_v56, %v1710_v25  ;;  %v1957_v36 = vpop.f32.mrf.mxu3  ;;  %v1713_v13 = vpop.f32.mrf.mxu1  ;;  %v2617_v56 = vld [vmem:[#allocation3 + $0x91] sm:$0xff] }
 0x232   :  { %v4457_v39 = vpop.f32.mrf.mxu0 }
 0x233   :  { %v4455_v63 = vadd.f32 %v1957_v36, %v1824_v34  ;;  %v2777_v34 = vld [vmem:[#allocation9 + $0x100] sm:$0xff] }
 0x234   :  { %3192 = vmatmul.msk.f32.gmra.mxu1 %vm1533_vm3, %v4215_v11 }
 0x235   :  { %3208 = vmatmul.msk.f32.gmra.mxu2 %vm1533_vm3, %v4219_v4  ;;  %3239 = vmatmul.msk.f32.gmra.mxu0 %vm1533_vm3, %v4215_v11 }
 0x236   :  { %3224 = vmatmul.msk.f32.gmra.mxu3 %vm1533_vm3, %v4238_v53  ;;  %2844 = vmatpush.msra.mxu1 %v2777_v34 }
 0x238   :  { %v1826_v5 = vpop.f32.mrf.mxu2 }
 0x239   :  { %v1827_v27 = vadd.f32 %v1826_v5, %v1713_v13  ;;  %v1960_v49 = vpop.f32.mrf.mxu3  ;;  %v1716_v46 = vpop.f32.mrf.mxu1 }
 0x23a   :  { %v4469_v40 = vpop.f32.mrf.mxu0 }
 0x23b   :  { %v4467_v2 = vadd.f32 %v1960_v49, %v1827_v27 }
 0x23c   :  { %3193 = vmatmul.msk.f32.gmra.mxu1 %vm1533_vm3, %v4236_v58 }
 0x23d   :  { %3209 = vmatmul.msk.f32.gmra.mxu2 %vm1533_vm3, %v4240_v61  ;;  %3240 = vmatmul.msk.f32.gmra.mxu0 %vm1533_vm3, %v4236_v58 }
 0x23e   :  { %3225 = vmatmul.msk.f32.gmra.mxu3 %vm1533_vm3, %v4256_v30 }
 0x240   :  { %v1829_v11 = vpop.f32.mrf.mxu2 }
 0x241   :  { %v1830_v53 = vadd.f32 %v1829_v11, %v1716_v46  ;;  %v1963_v48 = vpop.f32.mrf.mxu3  ;;  %v1719_v50 = vpop.f32.mrf.mxu1 }
 0x242   :  { %v4481_v29 = vpop.f32.mrf.mxu0 }
 0x243   :  { %v4479_v18 = vadd.f32 %v1963_v48, %v1830_v53 }
 0x244   :  { %3194 = vmatmul.msk.f32.gmra.mxu1 %vm1533_vm3, %v2166_v17 }
 0x245   :  { %3210 = vmatmul.msk.f32.gmra.mxu2 %vm1533_vm3, %v4483_v26  ;;  %3241 = vmatmul.msk.f32.gmra.mxu0 %vm1533_vm3, %v2166_v17 }
 0x246   :  { %3226 = vmatmul.msk.f32.gmra.mxu3 %vm1533_vm3, %v2467_v15 }
 0x248   :  { %v1832_v58 = vpop.f32.mrf.mxu2 }
 0x249   :  { %v1833_v30 = vadd.f32 %v1832_v58, %v1719_v50  ;;  %v1966_v12 = vpop.f32.mrf.mxu3  ;;  %v1722_v54 = vpop.f32.mrf.mxu1 }
 0x24a   :  { %v4492_v62 = vpop.f32.mrf.mxu0 }
 0x24b   :  { %v4490_v25 = vadd.f32 %v1966_v12, %v1833_v30 }
 0x24c   :  { %3195 = vmatmul.msk.f32.gmra.mxu1 %vm1533_vm3, %v4269_v51 }
 0x24d   :  { %3211 = vmatmul.msk.f32.gmra.mxu2 %vm1533_vm3, %v4271_v3  ;;  %3242 = vmatmul.msk.f32.gmra.mxu0 %vm1533_vm3, %v2617_v56 }
 0x24e   :  { %3227 = vmatmul.msk.f32.gmra.mxu3 %vm1533_vm3, %v4287_v37 }
 0x250   :  { %v1835_v36 = vpop.f32.mrf.mxu2 }
 0x251   :  { %v1836_v13 = vadd.f32 %v1835_v36, %v1722_v54  ;;  %v1969_v5 = vpop.f32.mrf.mxu3  ;;  %v1725_v27 = vpop.f32.mrf.mxu1 }
 0x252   :  { %v2119_v46 = vpop.f32.mrf.mxu0 }
 0x253   :  { %v2001_v49 = vadd.f32 %v1969_v5, %v1836_v13 }
 0x254   :  { %3196 = vmatmul.msk.f32.gmra.mxu1 %vm1533_vm3, %v4285_v32 }
 0x255   :  { %v4501_v11 = vadd.f32 %v2119_v46, %v2001_v49  ;;  %3212 = vmatmul.msk.f32.gmra.mxu2 %vm1533_vm3, %v4289_v1  ;;  %3243 = vmatmul.msk.f32.gmra.mxu0 %vm1533_vm3, %v4285_v32 }
 0x256   :  { %3228 = vmatmul.msk.f32.gmra.mxu3 %vm1533_vm3, %v4307_v38 }
 0x258   :  { %v1838_v51 = vpop.f32.mrf.mxu2 }
 0x259   :  { %v1839_v3 = vadd.f32 %v1838_v51, %v1725_v27  ;;  %v1972_v37 = vpop.f32.mrf.mxu3  ;;  %v1728_v53 = vpop.f32.mrf.mxu1 }
 0x25a   :  { %v2122_v50 = vpop.f32.mrf.mxu0 }
 0x25b   :  { %v2002_v48 = vadd.f32 %v1972_v37, %v1839_v3 }
 0x25c   :  { %3197 = vmatmul.msk.f32.gmra.mxu1 %vm1533_vm3, %v4305_v19 }
 0x25d   :  { %v4511_v15 = vadd.f32 %v2122_v50, %v2002_v48  ;;  %3213 = vmatmul.msk.f32.gmra.mxu2 %vm1533_vm3, %v4309_v44  ;;  %3244 = vmatmul.msk.f32.gmra.mxu0 %vm1533_vm3, %v4305_v19 }
 0x25e   :  { %3229 = vmatmul.msk.f32.gmra.mxu3 %vm1533_vm3, %v4327_v31 }
 0x260   :  { %v1841_v32 = vpop.f32.mrf.mxu2 }
 0x261   :  { %v1842_v38 = vadd.f32 %v1841_v32, %v1728_v53  ;;  %v1975_v17 = vpop.f32.mrf.mxu3  ;;  %v1731_v58 = vpop.f32.mrf.mxu1 }
 0x262   :  { %v2125_v12 = vpop.f32.mrf.mxu0 }
 0x263   :  { %v2003_v30 = vadd.f32 %v1975_v17, %v1842_v38 }
 0x264   :  { %3198 = vmatmul.msk.f32.gmra.mxu1 %vm1533_vm3, %v4325_v6 }
 0x265   :  { %v4521_v54 = vadd.f32 %v2125_v12, %v2003_v30  ;;  %3214 = vmatmul.msk.f32.gmra.mxu2 %vm1533_vm3, %v4329_v35  ;;  %3245 = vmatmul.msk.f32.gmra.mxu0 %vm1533_vm3, %v4325_v6  ;;  %v2475_v12 = vld [vmem:[#allocation3 + $0x130] sm:$0xff] }
 0x266   :  { %3230 = vmatmul.msk.f32.gmra.mxu3 %vm1533_vm3, %v4347_v7 }
 0x268   :  { %v1844_v19 = vpop.f32.mrf.mxu2 }
 0x269   :  { %v1845_v31 = vadd.f32 %v1844_v19, %v1731_v58  ;;  %v1978_v56 = vpop.f32.mrf.mxu3  ;;  %v1734_v34 = vpop.f32.mrf.mxu1  ;;  %v2174_v19 = vld [vmem:[#allocation3 + $0x121] sm:$0xff] }
 0x26a   :  { %v2128_v13 = vpop.f32.mrf.mxu0 }
 0x26b   :  { %v2004_v36 = vadd.f32 %v1978_v56, %v1845_v31  ;;  %v4561_v31 = vld [vmem:[#allocation3 + $0x122] sm:$0xff] }
 0x26c   :  { %3199 = vmatmul.msk.f32.gmra.mxu1 %vm1533_vm3, %v4345_v24 }
 0x26d   :  { %v4531_v5 = vadd.f32 %v2128_v13, %v2004_v36  ;;  %3215 = vmatmul.msk.f32.gmra.mxu2 %vm1533_vm3, %v4349_v55  ;;  %3246 = vmatmul.msk.f32.gmra.mxu0 %vm1533_vm3, %v4345_v24 }
 0x26e   :  { %3231 = vmatmul.msk.f32.gmra.mxu3 %vm1533_vm3, %v4364_v0 }
 0x270   :  { %v1847_v6 = vpop.f32.mrf.mxu2 }
 0x271   :  { %v1848_v7 = vadd.f32 %v1847_v6, %v1734_v34  ;;  %v1981_v27 = vpop.f32.mrf.mxu3  ;;  %v1737_v49 = vpop.f32.mrf.mxu1  ;;  %v2625_v6 = vld [vmem:[#allocation3 + $0x131] sm:$0xff] }
 0x272   :  { %v2131_v51 = vpop.f32.mrf.mxu0 }
 0x273   :  { %v2005_v46 = vadd.f32 %v1981_v27, %v1848_v7 }
 0x274   :  { %3200 = vmatmul.msk.f32.gmra.mxu1 %vm1533_vm3, %v4362_v59 }
 0x275   :  { %v4541_v3 = vadd.f32 %v2131_v51, %v2005_v46  ;;  %3216 = vmatmul.msk.f32.gmra.mxu2 %vm1533_vm3, %v4366_v45  ;;  %3247 = vmatmul.msk.f32.gmra.mxu0 %vm1533_vm3, %v4362_v59 }
 0x276   :  { %3232 = vmatmul.msk.f32.gmra.mxu3 %vm1533_vm3, %v4380_v8 }
 0x278   :  { %v1850_v24 = vpop.f32.mrf.mxu2 }
 0x279   :  { %v1851_v0 = vadd.f32 %v1850_v24, %v1737_v49  ;;  %v1984_v37 = vpop.f32.mrf.mxu3  ;;  %v1740_v53 = vpop.f32.mrf.mxu1 }
 0x27a   :  { %v2134_v50 = vpop.f32.mrf.mxu0 }
 0x27b   :  { %v2006_v48 = vadd.f32 %v1984_v37, %v1851_v0  ;;  %v2767_v0 = vld [vmem:[#allocation3 + $0x92] sm:$0xff] }
 0x27c   :  { %3201 = vmatmul.msk.f32.gmra.mxu1 %vm1533_vm3, %v4378_v28 }
 0x27d   :  { %v4551_v32 = vadd.f32 %v2134_v50, %v2006_v48  ;;  %3217 = vmatmul.msk.f32.gmra.mxu2 %vm1533_vm3, %v4382_v41  ;;  %3248 = vmatmul.msk.f32.gmra.mxu0 %vm1533_vm3, %v4378_v28 }
 0x27e   :  { %3233 = vmatmul.msk.f32.gmra.mxu3 %vm1533_vm3, %v4395_v14 }
 0x280   :  { %v1853_v59 = vpop.f32.mrf.mxu2 }
 0x281   :  { %v1854_v8 = vadd.f32 %v1853_v59, %v1740_v53  ;;  %v1987_v38 = vpop.f32.mrf.mxu3  ;;  %v1743_v17 = vpop.f32.mrf.mxu1 }
 0x282   :  { %v2137_v30 = vpop.f32.mrf.mxu0 }
 0x283   :  { %v2007_v58 = vadd.f32 %v1987_v38, %v1854_v8 }
 0x284   :  { %3202 = vmatmul.msk.f32.gmra.mxu1 %vm1533_vm3, %v2174_v19 }
 0x285   :  { %v2157_v56 = vadd.f32 %v2137_v30, %v2007_v58  ;;  %3218 = vmatmul.msk.f32.gmra.mxu2 %vm1533_vm3, %v4561_v31  ;;  %3249 = vmatmul.msk.f32.gmra.mxu0 %vm1533_vm3, %v2174_v19 }
 0x286   :  { %3234 = vmatmul.msk.f32.gmra.mxu3 %vm1533_vm3, %v2475_v12 }
 0x288   :  { %v1856_v28 = vpop.f32.mrf.mxu2 }
 0x289   :  { %v1857_v14 = vadd.f32 %v1856_v28, %v1743_v17  ;;  %v1990_v34 = vpop.f32.mrf.mxu3  ;;  %v2245_v36 = vpop.f32.mrf.mxu1 }
 0x28a   :  { %v2140_v7 = vpop.f32.mrf.mxu0 }
 0x28b   :  { %v2008_v13 = vadd.f32 %v1990_v34, %v1857_v14 }
 0x28c   :  { %3251 = vmatmul.msk.f32.vlgmr.msra.gmra.mxu1 %vm1533_vm3, %v4151_v52 }
 0x28d   :  { %v2158_v27 = vadd.f32 %v2140_v7, %v2008_v13  ;;  %3250 = vmatmul.msk.f32.gmra.mxu0 %vm1533_vm3, %v2625_v6 }
 0x290   :  { %v2395_v48 = vpop.f32.mrf.mxu2 }
 0x291   :  { %v2248_v49 = vpop.f32.mrf.mxu1 }
 0x294   :  { %3252 = vmatmul.msk.f32.gmra.mxu1 %vm1533_vm3, %v4168_v47 }
 0x298   :  { %v2398_v59 = vpop.f32.mrf.mxu2 }
 0x299   :  { %v4573_v46 = vpop.f32.mrf.mxu1 }
 0x29c   :  { %3253 = vmatmul.msk.f32.gmra.mxu1 %vm1533_vm3, %v4185_v21 }
 0x2a1   :  { %v4577_v51 = vpop.f32.mrf.mxu1 }
 0x2a4   :  { %3254 = vmatmul.msk.f32.gmra.mxu1 %vm1533_vm3, %v4202_v9 }
 0x2a9   :  { %v4581_v24 = vpop.f32.mrf.mxu1 }
 0x2ac   :  { %3255 = vmatmul.msk.f32.gmra.mxu1 %vm1533_vm3, %v4219_v4 }
 0x2b1   :  { %v4585_v52 = vpop.f32.mrf.mxu1 }
 0x2b4   :  { %3256 = vmatmul.msk.f32.gmra.mxu1 %vm1533_vm3, %v4240_v61 }
 0x2b9   :  { %v4589_v47 = vpop.f32.mrf.mxu1 }
 0x2bc   :  { %3257 = vmatmul.msk.f32.gmra.mxu1 %vm1533_vm3, %v4483_v26 }
 0x2c1   :  { %v4593_v21 = vpop.f32.mrf.mxu1 }
 0x2c4   :  { %3258 = vmatmul.msk.f32.gmra.mxu1 %vm1533_vm3, %v2767_v0 }
 0x2c9   :  { %v2269_v9 = vpop.f32.mrf.mxu1 }
 0x2ca   :  { %v4597_v37 = vadd.f32 %v2269_v9, %v4501_v11 }
 0x2cc   :  { %3259 = vmatmul.msk.f32.gmra.mxu1 %vm1533_vm3, %v4289_v1  ;;  %v2546_v1 = vpop.f32.mrf.mxu3 }
 0x2d1   :  { %v2272_v4 = vpop.f32.mrf.mxu1 }
 0x2d2   :  { %v4602_v61 = vadd.f32 %v2272_v4, %v4511_v15  ;;  %v2696_v15 = vpop.f32.mrf.mxu0 }
 0x2d4   :  { %3260 = vmatmul.msk.f32.gmra.mxu1 %vm1533_vm3, %v4309_v44 }
 0x2d9   :  { %v2275_v26 = vpop.f32.mrf.mxu1 }
 0x2da   :  { %v4607_v53 = vadd.f32 %v2275_v26, %v4521_v54  ;;  %v2549_v54 = vpop.f32.mrf.mxu3  ;;  %v2699_v38 = vpop.f32.mrf.mxu0 }
 0x2dc   :  { %3261 = vmatmul.msk.f32.gmra.mxu1 %vm1533_vm3, %v4329_v35 }
 0x2e1   :  { %v2278_v11 = vpop.f32.mrf.mxu1 }
 0x2e2   :  { %v4612_v50 = vadd.f32 %v2278_v11, %v4531_v5  ;;  %v2401_v5 = vpop.f32.mrf.mxu2  ;;  %v2552_v58 = vpop.f32.mrf.mxu3 }
 0x2e3   :  { %v2702_v19 = vpop.f32.mrf.mxu0 }
 0x2e4   :  { %3262 = vmatmul.msk.f32.gmra.mxu1 %vm1533_vm3, %v4349_v55  ;;  %v1812_v55 = vadd.f32 %v4405_v20, %v4393_v16  ;;  %v2144_v20 = vadd.f32 %v4421_v33, %v4419_v43 }
 0x2e9   :  { %v2281_v8 = vpop.f32.mrf.mxu1 }
 0x2ea   :  { %v4617_v44 = vadd.f32 %v2281_v8, %v4541_v3  ;;  %v1993_v3 = vadd.f32 %v4407_v57, %v1812_v55  ;;  %v2555_v16 = vpop.f32.mrf.mxu3 }
 0x2ec   :  { %3263 = vmatmul.msk.f32.gmra.mxu1 %vm1533_vm3, %v4366_v45  ;;  %v2143_v45 = vadd.f32 %v4409_v10, %v1993_v3  ;;  %v2705_v10 = vpop.f32.mrf.mxu0 }
 0x2ee   :  { %v2293_v28 = vadd.f32 %v2245_v36, %v2143_v45 }
 0x2f0   :  { %v2443_v14 = vadd.f32 %v2395_v48, %v2293_v28 }
 0x2f1   :  { %v2284_v35 = vpop.f32.mrf.mxu1 }
 0x2f2   :  { %v4622_v17 = vadd.f32 %v2284_v35, %v4551_v32  ;;  %v2404_v32 = vpop.f32.mrf.mxu2  ;;  %v2594_v57 = vadd.f32 %v2546_v1, %v2443_v14  ;;  %v2558_v48 = vpop.f32.mrf.mxu3 }
 0x2f4   :  { %3264 = vmatmul.msk.f32.gmra.mxu1 %vm1533_vm3, %v4382_v41  ;;  %v2775_v41 = vld [vmem:[#allocation3 + $0x132] sm:$0xff]  ;;  %v2744_v7 = vadd.f32 %v2696_v15, %v2594_v57  ;;  %v2708_v1 = vpop.f32.mrf.mxu0  ;;  %v2148_v57 = vadd.f32 %v4469_v40, %v4467_v2  ;;  %v2149_v2 = vadd.f32 %v4481_v29, %v4479_v18  ;;  %v2150_v18 = vadd.f32 %v4492_v62, %v4490_v25 }
 0x2f9   :  { %v2287_v30 = vpop.f32.mrf.mxu1 }
 0x2fa   :  { %v4629_v12 = vadd.f32 %v2287_v30, %v2157_v56  ;;  %v2294_v56 = vadd.f32 %v2248_v49, %v2144_v20  ;;  %v2407_v6 = vpop.f32.mrf.mxu2 }
 0x2fc   :  { %3265 = vmatmul.msk.f32.gmra.mxu1 %vm1533_vm3, %v4561_v31  ;;  %v2444_v0 = vadd.f32 %v2398_v59, %v2294_v56  ;;  %v4639_v31 = vld [vmem:[#allocation11] ss:$0 sm:$0xff]  ;;  %v2711_v3 = vpop.f32.mrf.mxu0 }
 0x2fe   :  { %v2595_v4 = vadd.f32 %v2549_v54, %v2444_v0 }
 0x300   :  { %v2745_v49 = vadd.f32 %v2699_v38, %v2595_v4  ;;  %v2561_v38 = vpop.f32.mrf.mxu3  ;;  %v2299_v4 = vadd.f32 %v4589_v47, %v2149_v2  ;;  %v2300_v47 = vadd.f32 %v4593_v21, %v2150_v18 }
 0x301   :  { %v2290_v34 = vpop.f32.mrf.mxu1 }
 0x302   :  { %v4634_v13 = vadd.f32 %v2290_v34, %v2158_v27  ;;  %v2145_v27 = vadd.f32 %v4433_v22, %v4431_v23  ;;  %v2410_v15 = vpop.f32.mrf.mxu2  ;;  %v2146_v23 = vadd.f32 %v4445_v60, %v4443_v42  ;;  %v2147_v42 = vadd.f32 %v4457_v39, %v4455_v63 }
 0x304   :  { %3266 = vmatmul.msk.f32.gmra.mxu1 %vm1533_vm3, %v2775_v41  ;;  %v2295_v43 = vadd.f32 %v4573_v46, %v2145_v27  ;;  %v2296_v46 = vadd.f32 %v4577_v51, %v2146_v23  ;;  %v2297_v51 = vadd.f32 %v4581_v24, %v2147_v42  ;;  %v2714_v39 = vpop.f32.mrf.mxu0  ;;  %v2298_v24 = vadd.f32 %v4585_v52, %v2148_v57 }
 0x306   :  { %v2445_v11 = vadd.f32 %v2401_v5, %v2295_v43  ;;  %v2446_v55 = vadd.f32 %v2404_v32, %v2296_v46  ;;  %v2447_v32 = vadd.f32 %v2407_v6, %v2297_v51 }
 0x308   :  { %v2596_v22 = vadd.f32 %v2552_v58, %v2445_v11  ;;  %v2597_v60 = vadd.f32 %v2555_v16, %v2446_v55  ;;  %v2564_v34 = vpop.f32.mrf.mxu3  ;;  %v2598_v63 = vadd.f32 %v2558_v48, %v2447_v32 }
 0x309   :  { %v2846_v36 = vpop.f32.mrf.mxu1 }
 0x30a   :  { %v2894_v9 = vadd.f32 %v2846_v36, %v2744_v7  ;;  %v2746_v5 = vadd.f32 %v2702_v19, %v2596_v22  ;;  %v2413_v28 = vpop.f32.mrf.mxu2  ;;  %v2747_v19 = vadd.f32 %v2705_v10, %v2597_v60  ;;  %v2748_v6 = vadd.f32 %v2708_v1, %v2598_v63 }
 0x30b   :  { %v2448_v7 = vadd.f32 %v2410_v15, %v2298_v24 }
 0x30c   :  { %v2914_v26 = vadd.f32 %v4639_v31, %v2894_v9  ;;  %v2717_v52 = vpop.f32.mrf.mxu0 }
 0x30d   :  { %v2599_v40 = vadd.f32 %v2561_v38, %v2448_v7 }
 0x30e   :  { %v2930_v33 = vmax.f32 %v2914_v26, 0.0 }
 0x30f   :  { %v2749_v43 = vadd.f32 %v2711_v3, %v2599_v40 }
 0x310   :  { %2947 = vst.msk [vmem:[%s4752_s5] sm:$0xff] %vm2946_vm5, %v2930_v33  ;;  %v2567_v9 = vpop.f32.mrf.mxu3  ;;  %v2449_v33 = vadd.f32 %v2413_v28, %v2299_v4 }
 0x311   :  { %v2849_v59 = vpop.f32.mrf.mxu1 }
 0x312   :  { %v2895_v8 = vadd.f32 %v2849_v59, %v2745_v49  ;;  %v2416_v56 = vpop.f32.mrf.mxu2  ;;  %v2600_v29 = vadd.f32 %v2564_v34, %v2449_v33 }
 0x313   :  { %v2450_v23 = vadd.f32 %v2416_v56, %v2300_v47 }
 0x314   :  { %v2915_v54 = vadd.f32 %v4639_v31, %v2895_v8  ;;  %v2750_v8 = vadd.f32 %v2714_v39, %v2600_v29  ;;  %v2720_v22 = vpop.f32.mrf.mxu0 }
 0x315   :  { %v2601_v38 = vadd.f32 %v2567_v9, %v2450_v23 }
 0x316   :  { %v2931_v35 = vmax.f32 %v2915_v54, 0.0 }
 0x317   :  { %v2751_v55 = vadd.f32 %v2717_v52, %v2601_v38 }
 0x318   :  { %2948 = vst.msk [vmem:[%s4752_s5 + $0x8] sm:$0xff] %vm2946_vm5, %v2931_v35  ;;  %v2570_v15 = vpop.f32.mrf.mxu3 }
 0x319   :  { %v2852_v30 = vpop.f32.mrf.mxu1 }
 0x31a   :  { %v2896_v45 = vadd.f32 %v2852_v30, %v2746_v5  ;;  %v2419_v48 = vpop.f32.mrf.mxu2 }
 0x31b   :  { %v2451_v21 = vadd.f32 %v2419_v48, %v4597_v37 }
 0x31c   :  { %v2916_v58 = vadd.f32 %v4639_v31, %v2896_v45  ;;  %v2723_v3 = vpop.f32.mrf.mxu0 }
 0x31d   :  { %v2602_v42 = vadd.f32 %v2570_v15, %v2451_v21 }
 0x31e   :  { %v2932_v14 = vmax.f32 %v2916_v58, 0.0 }
 0x31f   :  { %v2752_v51 = vadd.f32 %v2720_v22, %v2602_v42 }
 0x320   :  { %2949 = vst.msk [vmem:[%s4752_s5 + $0x10] sm:$0xff] %vm2946_vm5, %v2932_v14  ;;  %v2573_v5 = vpop.f32.mrf.mxu3 }
 0x321   :  { %v2855_v41 = vpop.f32.mrf.mxu1 }
 0x322   :  { %v2897_v20 = vadd.f32 %v2855_v41, %v2747_v19  ;;  %v2422_v54 = vpop.f32.mrf.mxu2 }
 0x323   :  { %v2452_v14 = vadd.f32 %v2422_v54, %v4602_v61 }
 0x324   :  { %v2917_v16 = vadd.f32 %v4639_v31, %v2897_v20  ;;  %v2726_v41 = vpop.f32.mrf.mxu0 }
 0x325   :  { %v2603_v34 = vadd.f32 %v2573_v5, %v2452_v14 }
 0x326   :  { %v2933_v10 = vmax.f32 %v2917_v16, 0.0 }
 0x327   :  { %v2753_v39 = vadd.f32 %v2723_v3, %v2603_v34 }
 0x328   :  { %2950 = vst.msk [vmem:[%s4752_s5 + $0x18] sm:$0xff] %vm2946_vm5, %v2933_v10  ;;  %v2576_v37 = vpop.f32.mrf.mxu3 }
 0x329   :  { %v2858_v0 = vpop.f32.mrf.mxu1 }
 0x32a   :  { %v2898_v36 = vadd.f32 %v2858_v0, %v2748_v6  ;;  %v2425_v28 = vpop.f32.mrf.mxu2 }
 0x32b   :  { %v2453_v16 = vadd.f32 %v2425_v28, %v4607_v53 }
 0x32c   :  { %v2918_v27 = vadd.f32 %v4639_v31, %v2898_v36  ;;  %v2729_v7 = vpop.f32.mrf.mxu0 }
 0x32d   :  { %v2604_v10 = vadd.f32 %v2576_v37, %v2453_v16 }
 0x32e   :  { %v2934_v26 = vmax.f32 %v2918_v27, 0.0 }
 0x32f   :  { %v2754_v9 = vadd.f32 %v2726_v41, %v2604_v10 }
 0x330   :  { %2951 = vst.msk [vmem:[%s4752_s5 + $0x20] sm:$0xff] %vm2946_vm5, %v2934_v26  ;;  %v2579_v24 = vpop.f32.mrf.mxu3 }
 0x331   :  { %v2861_v49 = vpop.f32.mrf.mxu1 }
 0x332   :  { %v2899_v11 = vadd.f32 %v2861_v49, %v2749_v43  ;;  %v2428_v57 = vpop.f32.mrf.mxu2 }
 0x333   :  { %v2454_v2 = vadd.f32 %v2428_v57, %v4612_v50 }
 0x334   :  { %v2919_v1 = vadd.f32 %v4639_v31, %v2899_v11  ;;  %v2732_v33 = vpop.f32.mrf.mxu0 }
 0x335   :  { %v2605_v27 = vadd.f32 %v2579_v24, %v2454_v2 }
 0x336   :  { %v2935_v59 = vmax.f32 %v2919_v1, 0.0 }
 0x337   :  { %v2755_v48 = vadd.f32 %v2729_v7, %v2605_v27 }
 0x338   :  { %2952 = vst.msk [vmem:[%s4752_s5 + $0x28] sm:$0xff] %vm2946_vm5, %v2935_v59  ;;  %v2582_v52 = vpop.f32.mrf.mxu3 }
 0x339   :  { %v2864_v46 = vpop.f32.mrf.mxu1 }
 0x33a   :  { %v2900_v35 = vadd.f32 %v2864_v46, %v2750_v8  ;;  %v2431_v36 = vpop.f32.mrf.mxu2 }
 0x33b   :  { %v2455_v43 = vadd.f32 %v2431_v36, %v4617_v44 }
 0x33c   :  { %v2920_v25 = vadd.f32 %v4639_v31, %v2900_v35  ;;  %v2735_v23 = vpop.f32.mrf.mxu0 }
 0x33d   :  { %v2606_v18 = vadd.f32 %v2582_v52, %v2455_v43 }
 0x33e   :  { %v2936_v62 = vmax.f32 %v2920_v25, 0.0 }
 0x33f   :  { %v2756_v47 = vadd.f32 %v2732_v33, %v2606_v18 }
 0x340   :  { %2953 = vst.msk [vmem:[%s4752_s5 + $0x30] sm:$0xff] %vm2946_vm5, %v2936_v62  ;;  %v2585_v15 = vpop.f32.mrf.mxu3 }
 0x341   :  { %v2867_v30 = vpop.f32.mrf.mxu1 }
 0x342   :  { %v2901_v45 = vadd.f32 %v2867_v30, %v2751_v55  ;;  %v2434_v50 = vpop.f32.mrf.mxu2 }
 0x343   :  { %v2456_v59 = vadd.f32 %v2434_v50, %v4622_v17 }
 0x344   :  { %v2921_v60 = vadd.f32 %v4639_v31, %v2901_v45  ;;  %v2738_v30 = vpop.f32.mrf.mxu0 }
 0x345   :  { %v2607_v54 = vadd.f32 %v2585_v15, %v2456_v59 }
 0x346   :  { %v2937_v58 = vmax.f32 %v2921_v60, 0.0 }
 0x347   :  { %v2757_v38 = vadd.f32 %v2735_v23, %v2607_v54 }
 0x348   :  { %2954 = vst.msk [vmem:[%s4752_s5 + $0x38] sm:$0xff] %vm2946_vm5, %v2937_v58  ;;  %v2588_v17 = vpop.f32.mrf.mxu3 }
 0x349   :  { %v2870_v19 = vpop.f32.mrf.mxu1 }
 0x34a   :  { %v2902_v32 = vadd.f32 %v2870_v19, %v2752_v51  ;;  %v2437_v22 = vpop.f32.mrf.mxu2 }
 0x34b   :  { %v2457_v25 = vadd.f32 %v2437_v22, %v4629_v12 }
 0x34c   :  { %v2922_v20 = vadd.f32 %v4639_v31, %v2902_v32  ;;  %v2741_v37 = vpop.f32.mrf.mxu0 }
 0x34d   :  { %v2608_v55 = vadd.f32 %v2588_v17, %v2457_v25 }
 0x34e   :  { %v2938_v63 = vmax.f32 %v2922_v20, 0.0 }
 0x34f   :  { %v2758_v28 = vadd.f32 %v2738_v30, %v2608_v55 }
 0x350   :  { %2955 = vst.msk [vmem:[%s4752_s5 + $0x40] sm:$0xff] %vm2946_vm5, %v2938_v63  ;;  %v2591_v12 = vpop.f32.mrf.mxu3 }
 0x351   :  { %v2873_v61 = vpop.f32.mrf.mxu1 }
 0x352   :  { %v2903_v56 = vadd.f32 %v2873_v61, %v2753_v39  ;;  %v2440_v3 = vpop.f32.mrf.mxu2 }
 0x353   :  { %v2458_v42 = vadd.f32 %v2440_v3, %v4634_v13 }
 0x354   :  { %v2923_v6 = vadd.f32 %v4639_v31, %v2903_v56 }
 0x355   :  { %v2609_v51 = vadd.f32 %v2591_v12, %v2458_v42 }
 0x356   :  { %v2939_v0 = vmax.f32 %v2923_v6, 0.0 }
 0x357   :  { %v2759_v32 = vadd.f32 %v2741_v37, %v2609_v51 }
 0x358   :  { %2956 = vst.msk [vmem:[%s4752_s5 + $0x48] sm:$0xff] %vm2946_vm5, %v2939_v0 }
 0x359   :  { %v2876_v53 = vpop.f32.mrf.mxu1 }
 0x35a   :  { %v2904_v40 = vadd.f32 %v2876_v53, %v2754_v9 }
 0x35c   :  { %v2924_v4 = vadd.f32 %v4639_v31, %v2904_v40 }
 0x35e   :  { %v2940_v26 = vmax.f32 %v2924_v4, 0.0 }
 0x360   :  { %2957 = vst.msk [vmem:[%s4752_s5 + $0x50] sm:$0xff] %vm2946_vm5, %v2940_v26 }
 0x361   :  { %v2879_v49 = vpop.f32.mrf.mxu1 }
 0x362   :  { %v2905_v11 = vadd.f32 %v2879_v49, %v2755_v48 }
 0x364   :  { %v2925_v29 = vadd.f32 %v4639_v31, %v2905_v11 }
 0x366   :  { %v2941_v1 = vmax.f32 %v2925_v29, 0.0 }
 0x368   :  { %2958 = vst.msk [vmem:[%s4752_s5 + $0x58] sm:$0xff] %vm2946_vm5, %v2941_v1 }
 0x369   :  { %v2882_v44 = vpop.f32.mrf.mxu1 }
 0x36a   :  { %v2906_v8 = vadd.f32 %v2882_v44, %v2756_v47 }
 0x36c   :  { %v2926_v46 = vadd.f32 %v4639_v31, %v2906_v8 }
 0x36e   :  { %v2942_v35 = vmax.f32 %v2926_v46, 0.0 }
 0x370   :  { %2959 = vst.msk [vmem:[%s4752_s5 + $0x60] sm:$0xff] %vm2946_vm5, %v2942_v35 }
 0x371   :  { %v2885_v62 = vpop.f32.mrf.mxu1 }
 0x372   :  { %v2907_v5 = vadd.f32 %v2885_v62, %v2757_v38 }
 0x374   :  { %v2927_v21 = vadd.f32 %v4639_v31, %v2907_v5 }
 0x376   :  { %v2943_v45 = vmax.f32 %v2927_v21, 0.0 }
 0x378   :  { %2960 = vst.msk [vmem:[%s4752_s5 + $0x68] sm:$0xff] %vm2946_vm5, %v2943_v45 }
 0x379   :  { %v2888_v60 = vpop.f32.mrf.mxu1 }
 0x37a   :  { %v2908_v58 = vadd.f32 %v2888_v60, %v2758_v28 }
 0x37c   :  { %v2928_v14 = vadd.f32 %v4639_v31, %v2908_v58 }
 0x37e   :  { %v2944_v19 = vmax.f32 %v2928_v14, 0.0 }
 0x380   :  { %2961 = vst.msk [vmem:[%s4752_s5 + $0x70] sm:$0xff] %vm2946_vm5, %v2944_v19 }
 0x381   :  { %v2891_v13 = vpop.f32.mrf.mxu1 }
 0x382   :  { %v2909_v34 = vadd.f32 %v2891_v13, %v2759_v32 }
 0x384   :  { %v2929_v41 = vadd.f32 %v4639_v31, %v2909_v34 }
 0x386   :  { %v2945_v20 = vmax.f32 %v2929_v41, 0.0 }
 0x388   :  { %2962 = vst.msk [vmem:[%s4752_s5 + $0x78] sm:$0xff] %vm2946_vm5, %v2945_v20 }
 0x389   :  { %2967 = vsyncpa [#allocation5], 1 }
 0x38a   :  { %2968 = vsyncpa [#allocation7], 1 }
 0x38b   :  { %2969 = vsyncpa [#allocation10], 1 }

// kernel: rookstar_forward.4
= control target key start
LH: loop header
LB: loop body
LE: loop exit
PB: predicated region body
PF: predicated region fallthrough
CT: control target
= control target key end

     0   :  { %8 = vsyncpa [#allocation3], 0  ;;  %s8381_s0 = inlined_call_operand.vmem [shape: f32[2,4096], index: 0, kind: input, shape index: {}]   ;;  %s8382_s1 = inlined_call_operand.hbm [shape: bf16[4096,4352], index: 1, kind: input, shape index: {}]   ;;  %s8383_s2 = inlined_call_operand.vmem [shape: f32[1,4352], index: 2, kind: input, shape index: {}]   ;;  %s8384_s3 = inlined_call_operand.vmem [shape: f32[2,4352], index: 3, kind: output, shape index: {}]  }
   0x1   :  { %10 = vsyncpa [#allocation3 + $0x1], 0  ;;  %s7035_s12 = smov 0   ;;  %s7037_s13 = smov 0  }
   0x2   :  { %s7039_s14 = smov 0   ;;  %s7041_s15 = smov 0  }
   0x3 LB: > { %s4328_s16 = sadd.s32 4294967295, %s7010_s15   ;;  %s7055_s17 = sadd.s32 1, %s7010_s15   ;;  %s7010_s15 = sphi %s7041_s15, %s8391_s15   ;;  %s7006_s14 = sphi %s7039_s14, %s8390_s14   ;;  %s7002_s13 = sphi %s7037_s13, %s8389_s13   ;;  %s6998_s12 = sphi %s7035_s12, %s8388_s12  }
   0x4   : > { %s41_s18 = ssub.s32 %s7010_s15, %s7055_s17  ;;  %s44_s19 = sadd.s32 1, %s7006_s14 }
   0x5   : > { %p42_p0 = scmp.eq.s32.totalorder %s41_s18, 0  ;;  %p51_p1 = scmp.ne.s32.totalorder %s7006_s14, %s7002_s13 }
   0x6   : > { %p52_p2 = scmp.eq.s32.totalorder %s7010_s15, 0  ;;  %p57_p3 = scmp.ne.s32.totalorder %s7002_s13, %s6998_s12 }
   0x7   : > { %s7065_s20 = scalar_select %p42_p0, %s7006_s14, %s44_s19  }
   0x8   : > { %p7067_p4 = por %p52_p2, %p51_p1  ;;  %p58_p5 = scmp.eq.s32.totalorder %s4328_s16, 0 }
   0x9   : > { %p6909_p6 = scmp.lt.s32.totalorder %s7010_s15, 17  ;;  %s136_s23 = sand.u32 1, %s7006_s14  }
   0xa   : > { %p7074_p7 = por %p58_p5, %p57_p3  ;;  %s4332_s24 = sshll.u32 %s136_s23, 12 }
   0xb   : > { %s6390_s25 = sshll.u32 %s7010_s15, 3  ;;  %s140_s29 = scalar_lea.vmem [#allocation2], %s4332_s24 }
   0xc   : > { %s145_s28 = scalar_lea.hbm %s8382_s1, %s6390_s25  ;;  %s148_s30 = sshll.u32 %s140_s29, 4  ;;  %s149_s30 = int_to_ptr.vmem [resolvable:$true] %s148_s30 }
   0xd   : > { %s146_s4 = sshll.u32 %s145_s28, 4  ;;  %p7085_p8 = pnand %p6909_p6, %p7067_p4  ;;  %s147_s4 = int_to_ptr.hbm [resolvable:$true] %s146_s4 }
   0xe   : > { %s137_s6 = scalar_lea.sflag [#allocation3], %s136_s23  ;;  %s6946_s7 = sshra.s32 %s147_s4, 4  ;;  %s6947_s7 = int_to_ptr.hbm [resolvable:$true] %s6946_s7 }
   0xf   : > { %s6948_s8 = scalar_lea.hbm %s6947_s7, 4096  ;;  %p6950_p10 = pneg %p7085_p8 }
  0x10   : > { %p6949_p9 = scmp.ne.s32.totalorder %s6947_s7, %s6948_s8  ;;  %s6953_s11 = scalar_lea.hbm %s8382_s1, 69632 }
  0x11   : > { %p6954_p13 = scmp.lt.s32.totalorder %s6947_s7, %s8382_s1  ;;  %p6955_p0 = scmp.lt.s32.totalorder %s6953_s11, %s6948_s8 }
  0x12   : > { %p6951_p11 = pnand %p6950_p10, %p6949_p9 }
  0x13   : > { %p6956_p1 = por %p6955_p0, %p6954_p13 }
  0x14   : > { %p6952_p12 = pneg %p6951_p11 }
  0x16   : > { %p6957_p2 = pnand %p6956_p1, %p6952_p12 }
  0x18   : > { %6960 = shalt.err (!%p6957_p2)
}
  0x19   : > { %s7012_s19 = smov 2176   ;;  %s7013_s21 = smov 128  }
  0x1a   : > { %s7014_s23 = smov 8   ;;  %p4335_p3 = scmp.ge.s32.totalorder %s7010_s15, 1 }
  0x1b   : > { %6908 = dma.hbm_to_vmem [thread:$0]  (!%p7085_p8), %s147_s4, 65536, %s149_s30, %s137_s6, %s7012_s19, %s7013_s21, %s7014_s23  }
  0x1c   : > { %p164_p4 = scmp.lt.s32.totalorder %s7010_s15, 18 }
  0x1e   : > { %p165_p5 = pnand %p4335_p3, %p164_p4 }
  0x1f   : > { %s170_s24 = sand.u32 (!%p165_p5), 1, %s7002_s13  }
  0x20   : > { %168 = sbr.rel (%p165_p5) target bundleno = 695 (0x2b7), region = 32  ;;  %s4336_s25 = sshll.u32 (!%p165_p5), %s170_s24, 12 }
  0x21   : > { %s171_s26 = scalar_lea.sflag (!%p165_p5), [#allocation3], %s170_s24  ;;  %s7102_s27 = scalar_lea.vmem (!%p165_p5), [#allocation2], %s4336_s25 }
  0x25   : > { %6993 = dma.done.wait (%p7074_p7), %s171_s26, 65536  }
  0x26   : > { %6995 = vsyncadd (%p7074_p7), %s171_s26, 4294901760  ;;  %v4398_v0 = vld [vmem:[%s7102_s27 + $0x70] sm:$0xf]  ;;  %v6406_v1 = vld [vmem:[%s7102_s27 + $0x74] sm:$0xf0]  ;;  %s7512_s12 = sshll.u32 %s4328_s16, 1 }
  0x27   : > { %v4462_v2 = vld [vmem:[%s7102_s27 + $0xf0] sm:$0xf]  ;;  %v4399_v3 = vor.u32 %v6406_v1, %v4398_v0  ;;  %v6422_v4 = vld [vmem:[%s7102_s27 + $0xf4] sm:$0xf0]  ;;  %v4390_v11 = vld [vmem:[%s7102_s27 + $0x60] sm:$0xf] }
  0x28   : > { %v4526_v5 = vld [vmem:[%s7102_s27 + $0x170] sm:$0xf]  ;;  %v6438_v6 = vld [vmem:[%s7102_s27 + $0x174] sm:$0xf0]  ;;  %v4463_v7 = vor.u32 %v6422_v4, %v4462_v2  ;;  %v6404_v13 = vld [vmem:[%s7102_s27 + $0x64] sm:$0xf0] }
  0x29   : > { %v4527_v8 = vor.u32 %v6438_v6, %v4526_v5  ;;  %v4590_v9 = vld [vmem:[%s7102_s27 + $0x1f0] sm:$0xf]  ;;  %v6454_v10 = vld [vmem:[%s7102_s27 + $0x1f4] sm:$0xf0]  ;;  %3413 = vmatpush.bf16.msra.mxu0 %v4399_v3  ;;  %v4454_v14 = vld [vmem:[%s7102_s27 + $0xe0] sm:$0xf]  ;;  %v4391_v16 = vor.u32 %v6404_v13, %v4390_v11 }
  0x2a   : > { %v4591_v12 = vor.u32 %v6454_v10, %v4590_v9  ;;  %v6420_v15 = vld [vmem:[%s7102_s27 + $0xe4] sm:$0xf0]  ;;  %3426 = vmatpush.bf16.msra.mxu1 %v4463_v7  ;;  %v4518_v18 = vld [vmem:[%s7102_s27 + $0x160] sm:$0xf]  ;;  %v4382_v23 = vld [vmem:[%s7102_s27 + $0x50] sm:$0xf] }
  0x2b   : > { %3439 = vmatpush.bf16.msra.mxu2 %v4527_v8  ;;  %v4455_v17 = vor.u32 %v6420_v15, %v4454_v14  ;;  %v6436_v19 = vld [vmem:[%s7102_s27 + $0x164] sm:$0xf0]  ;;  %v4582_v20 = vld [vmem:[%s7102_s27 + $0x1e0] sm:$0xf]  ;;  %v6402_v24 = vld [vmem:[%s7102_s27 + $0x54] sm:$0xf0] }
  0x2c   : > { %3452 = vmatpush.bf16.msra.mxu3 %v4591_v12  ;;  %v4519_v21 = vor.u32 %v6436_v19, %v4518_v18  ;;  %v6452_v22 = vld [vmem:[%s7102_s27 + $0x1e4] sm:$0xf0]  ;;  %v4446_v26 = vld [vmem:[%s7102_s27 + $0xd0] sm:$0xf]  ;;  %v6418_v27 = vld [vmem:[%s7102_s27 + $0xd4] sm:$0xf0]  ;;  %v4383_v29 = vor.u32 %v6402_v24, %v4382_v23 }
  0x2d   : > { %v4583_v25 = vor.u32 %v6452_v22, %v4582_v20  ;;  %v4510_v28 = vld [vmem:[%s7102_s27 + $0x150] sm:$0xf]  ;;  %3414 = vmatpush.bf16.msra.mxu0 %v4391_v16  ;;  %v6434_v30 = vld [vmem:[%s7102_s27 + $0x154] sm:$0xf0]  ;;  %v4447_v33 = vor.u32 %v6418_v27, %v4446_v26  ;;  %v4374_v35 = vld [vmem:[%s7102_s27 + $0x40] sm:$0xf] }
  0x2e   : > { %v4574_v31 = vld [vmem:[%s7102_s27 + $0x1d0] sm:$0xf]  ;;  %v6450_v32 = vld [vmem:[%s7102_s27 + $0x1d4] sm:$0xf0]  ;;  %3427 = vmatpush.bf16.msra.mxu1 %v4455_v17  ;;  %v4511_v34 = vor.u32 %v6434_v30, %v4510_v28  ;;  %v6400_v36 = vld [vmem:[%s7102_s27 + $0x44] sm:$0xf0] }
  0x2f   : > { %3440 = vmatpush.bf16.msra.mxu2 %v4519_v21  ;;  %v4438_v37 = vld [vmem:[%s7102_s27 + $0xc0] sm:$0xf]  ;;  %v4575_v38 = vor.u32 %v6450_v32, %v4574_v31  ;;  %v6416_v39 = vld [vmem:[%s7102_s27 + $0xc4] sm:$0xf0]  ;;  %v4375_v44 = vor.u32 %v6400_v36, %v4374_v35  ;;  %v4366_v47 = vld [vmem:[%s7102_s27 + $0x30] sm:$0xf] }
  0x30   : > { %3453 = vmatpush.bf16.msra.mxu3 %v4583_v25  ;;  %v4502_v40 = vld [vmem:[%s7102_s27 + $0x140] sm:$0xf]  ;;  %v6432_v41 = vld [vmem:[%s7102_s27 + $0x144] sm:$0xf0]  ;;  %v4439_v45 = vor.u32 %v6416_v39, %v4438_v37  ;;  %v6398_v48 = vld [vmem:[%s7102_s27 + $0x34] sm:$0xf0] }
  0x31   : > { %v4566_v42 = vld [vmem:[%s7102_s27 + $0x1c0] sm:$0xf]  ;;  %v6448_v43 = vld [vmem:[%s7102_s27 + $0x1c4] sm:$0xf0]  ;;  %3415 = vmatpush.bf16.msra.mxu0 %v4383_v29  ;;  %v4503_v46 = vor.u32 %v6432_v41, %v4502_v40  ;;  %v4430_v49 = vld [vmem:[%s7102_s27 + $0xb0] sm:$0xf]  ;;  %v4367_v56 = vor.u32 %v6398_v48, %v4366_v47 }
  0x32   : > { %3428 = vmatpush.bf16.msra.mxu1 %v4447_v33  ;;  %v4567_v50 = vor.u32 %v6448_v43, %v4566_v42  ;;  %v6414_v51 = vld [vmem:[%s7102_s27 + $0xb4] sm:$0xf0]  ;;  %v4494_v52 = vld [vmem:[%s7102_s27 + $0x130] sm:$0xf]  ;;  %v4358_v59 = vld [vmem:[%s7102_s27 + $0x20] sm:$0xf] }
  0x33   : > { %3441 = vmatpush.bf16.msra.mxu2 %v4511_v34  ;;  %v6430_v53 = vld [vmem:[%s7102_s27 + $0x134] sm:$0xf0]  ;;  %v4558_v54 = vld [vmem:[%s7102_s27 + $0x1b0] sm:$0xf]  ;;  %v4431_v57 = vor.u32 %v6414_v51, %v4430_v49  ;;  %v6396_v60 = vld [vmem:[%s7102_s27 + $0x24] sm:$0xf0] }
  0x34   : > { %3454 = vmatpush.bf16.msra.mxu3 %v4575_v38  ;;  %v6446_v55 = vld [vmem:[%s7102_s27 + $0x1b4] sm:$0xf0]  ;;  %v4495_v58 = vor.u32 %v6430_v53, %v4494_v52  ;;  %v4422_v61 = vld [vmem:[%s7102_s27 + $0xa0] sm:$0xf]  ;;  %v6412_v63 = vld [vmem:[%s7102_s27 + $0xa4] sm:$0xf0]  ;;  %v4359_v4 = vor.u32 %v6396_v60, %v4358_v59 }
  0x35   : > { %3416 = vmatpush.bf16.msra.mxu0 %v4375_v44  ;;  %v4559_v62 = vor.u32 %v6446_v55, %v4558_v54  ;;  %v4486_v0 = vld [vmem:[%s7102_s27 + $0x120] sm:$0xf]  ;;  %v6428_v1 = vld [vmem:[%s7102_s27 + $0x124] sm:$0xf0]  ;;  %v4423_v5 = vor.u32 %v6412_v63, %v4422_v61  ;;  %v4350_v7 = vld [vmem:[%s7102_s27 + $0x10] sm:$0xf] }
  0x36   : > { %3429 = vmatpush.bf16.msra.mxu1 %v4439_v45  ;;  %v4550_v2 = vld [vmem:[%s7102_s27 + $0x1a0] sm:$0xf]  ;;  %v6444_v3 = vld [vmem:[%s7102_s27 + $0x1a4] sm:$0xf0]  ;;  %v4487_v6 = vor.u32 %v6428_v1, %v4486_v0  ;;  %v6394_v8 = vld [vmem:[%s7102_s27 + $0x14] sm:$0xf0] }
  0x37   : > { %3442 = vmatpush.bf16.msra.mxu2 %v4503_v46  ;;  %v4414_v9 = vld [vmem:[%s7102_s27 + $0x90] sm:$0xf]  ;;  %v4551_v10 = vor.u32 %v6444_v3, %v4550_v2  ;;  %v6410_v11 = vld [vmem:[%s7102_s27 + $0x94] sm:$0xf0]  ;;  %v4351_v16 = vor.u32 %v6394_v8, %v4350_v7  ;;  %v4342_v17 = vld [vmem:[%s7102_s27] sm:$0xf] }
  0x38   : > { %3455 = vmatpush.bf16.msra.mxu3 %v4567_v50  ;;  %v4478_v12 = vld [vmem:[%s7102_s27 + $0x110] sm:$0xf]  ;;  %v6426_v13 = vld [vmem:[%s7102_s27 + $0x114] sm:$0xf0]  ;;  %v6392_v18 = vld [vmem:[%s7102_s27 + $0x4] sm:$0xf0]  ;;  %v4415_v19 = vor.u32 %v6410_v11, %v4414_v9 }
  0x39   : > { %3417 = vmatpush.bf16.msra.mxu0 %v4367_v56  ;;  %v4542_v14 = vld [vmem:[%s7102_s27 + $0x190] sm:$0xf]  ;;  %v6442_v15 = vld [vmem:[%s7102_s27 + $0x194] sm:$0xf0]  ;;  %v4479_v20 = vor.u32 %v6426_v13, %v4478_v12  ;;  %v4406_v21 = vld [vmem:[%s7102_s27 + $0x80] sm:$0xf]  ;;  %v4343_v31 = vor.u32 %v6392_v18, %v4342_v17 }
  0x3a   : > { %3430 = vmatpush.bf16.msra.mxu1 %v4431_v57  ;;  %v6408_v22 = vld [vmem:[%s7102_s27 + $0x84] sm:$0xf0]  ;;  %v4470_v23 = vld [vmem:[%s7102_s27 + $0x100] sm:$0xf]  ;;  %v4543_v24 = vor.u32 %v6442_v15, %v4542_v14  ;;  %v4654_v28 = vld [vmem:[%s7102_s27 + $0x270] sm:$0xf] }
  0x3b   : > { %3443 = vmatpush.bf16.msra.mxu2 %v4495_v58  ;;  %v6424_v25 = vld [vmem:[%s7102_s27 + $0x104] sm:$0xf0]  ;;  %v4534_v26 = vld [vmem:[%s7102_s27 + $0x180] sm:$0xf]  ;;  %v6470_v29 = vld [vmem:[%s7102_s27 + $0x274] sm:$0xf0]  ;;  %v4407_v35 = vor.u32 %v6408_v22, %v4406_v21 }
  0x3c   : > { %3456 = vmatpush.bf16.msra.mxu3 %v4559_v62  ;;  %v6440_v27 = vld [vmem:[%s7102_s27 + $0x184] sm:$0xf0]  ;;  %v4718_v30 = vld [vmem:[%s7102_s27 + $0x2f0] sm:$0xf]  ;;  %v6486_v32 = vld [vmem:[%s7102_s27 + $0x2f4] sm:$0xf0]  ;;  %v4471_v36 = vor.u32 %v6424_v25, %v4470_v23  ;;  %v4655_v40 = vor.u32 %v6470_v29, %v4654_v28 }
  0x3d   : > { %3418 = vmatpush.bf16.msra.mxu0 %v4359_v4  ;;  %v4782_v33 = vld [vmem:[%s7102_s27 + $0x370] sm:$0xf]  ;;  %v6502_v34 = vld [vmem:[%s7102_s27 + $0x374] sm:$0xf0]  ;;  %v4535_v39 = vor.u32 %v6440_v27, %v4534_v26  ;;  %v4719_v41 = vor.u32 %v6486_v32, %v4718_v30  ;;  %v4646_v43 = vld [vmem:[%s7102_s27 + $0x260] sm:$0xf] }
  0x3e   : > { %3431 = vmatpush.bf16.msra.mxu1 %v4423_v5  ;;  %v4846_v37 = vld [vmem:[%s7102_s27 + $0x3f0] sm:$0xf]  ;;  %v6518_v38 = vld [vmem:[%s7102_s27 + $0x3f4] sm:$0xf0]  ;;  %v4783_v42 = vor.u32 %v6502_v34, %v4782_v33  ;;  %v6468_v44 = vld [vmem:[%s7102_s27 + $0x264] sm:$0xf0] }
  0x3f   : > { %3444 = vmatpush.bf16.msra.mxu2 %v4487_v6  ;;  %v4710_v45 = vld [vmem:[%s7102_s27 + $0x2e0] sm:$0xf]  ;;  %v4847_v46 = vor.u32 %v6518_v38, %v4846_v37  ;;  %v6484_v47 = vld [vmem:[%s7102_s27 + $0x2e4] sm:$0xf0]  ;;  %v4647_v52 = vor.u32 %v6468_v44, %v4646_v43  ;;  %v4638_v53 = vld [vmem:[%s7102_s27 + $0x250] sm:$0xf] }
  0x40   : > { %3457 = vmatpush.bf16.msra.mxu3 %v4551_v10  ;;  %v4774_v48 = vld [vmem:[%s7102_s27 + $0x360] sm:$0xf]  ;;  %v6500_v49 = vld [vmem:[%s7102_s27 + $0x364] sm:$0xf0]  ;;  %v6466_v54 = vld [vmem:[%s7102_s27 + $0x254] sm:$0xf0]  ;;  %v4711_v55 = vor.u32 %v6484_v47, %v4710_v45 }
  0x41   : > { %3419 = vmatpush.bf16.msra.mxu0 %v4351_v16  ;;  %v4838_v50 = vld [vmem:[%s7102_s27 + $0x3e0] sm:$0xf]  ;;  %v6516_v51 = vld [vmem:[%s7102_s27 + $0x3e4] sm:$0xf0]  ;;  %v4775_v56 = vor.u32 %v6500_v49, %v4774_v48  ;;  %v4702_v57 = vld [vmem:[%s7102_s27 + $0x2d0] sm:$0xf]  ;;  %v4639_v1 = vor.u32 %v6466_v54, %v4638_v53 }
  0x42   : > { %3432 = vmatpush.bf16.msra.mxu1 %v4415_v19  ;;  %v6482_v58 = vld [vmem:[%s7102_s27 + $0x2d4] sm:$0xf0]  ;;  %v4839_v60 = vor.u32 %v6516_v51, %v4838_v50  ;;  %v4766_v61 = vld [vmem:[%s7102_s27 + $0x350] sm:$0xf]  ;;  %v4630_v2 = vld [vmem:[%s7102_s27 + $0x240] sm:$0xf] }
  0x43   : > { %3445 = vmatpush.bf16.msra.mxu2 %v4479_v20  ;;  %v214_v59 = vld [vmem:[%s8381_s0] sm:$0xff]  ;;  %v4830_v63 = vld [vmem:[%s7102_s27 + $0x3d0] sm:$0xf]  ;;  %v4703_v3 = vor.u32 %v6482_v58, %v4702_v57  ;;  %v6464_v5 = vld [vmem:[%s7102_s27 + $0x244] sm:$0xf0]  ;;  %p204_p6 = scmp.lt.s32.totalorder %s7512_s12, 33 }
  0x44   : > { %3458 = vmatpush.bf16.msra.mxu3 %v4543_v24  ;;  %v6498_v62 = vld [vmem:[%s7102_s27 + $0x354] sm:$0xf0]  ;;  %230 = vst [vmem:[#allocation1] ss:$4 sm:$0xff] %v214_v59  ;;  %v4694_v6 = vld [vmem:[%s7102_s27 + $0x2c0] sm:$0xf]  ;;  %v4631_v15 = vor.u32 %v6464_v5, %v4630_v2 }
  0x45   : > { %3420 = vmatpush.bf16.msra.mxu0 %v4343_v31  ;;  %v6514_v0 = vld [vmem:[%s7102_s27 + $0x3d4] sm:$0xf0]  ;;  %v4767_v4 = vor.u32 %v6498_v62, %v4766_v61  ;;  %v6480_v7 = vld [vmem:[%s7102_s27 + $0x2c4] sm:$0xf0]  ;;  %v4758_v9 = vld [vmem:[%s7102_s27 + $0x340] sm:$0xf] }
  0x46   : > { %3433 = vmatpush.bf16.msra.mxu1 %v4407_v35  ;;  %v4831_v8 = vor.u32 %v6514_v0, %v4830_v63  ;;  %v6496_v10 = vld [vmem:[%s7102_s27 + $0x344] sm:$0xf0]  ;;  %v4822_v11 = vld [vmem:[%s7102_s27 + $0x3c0] sm:$0xf]  ;;  %v4622_v13 = vld [vmem:[%s7102_s27 + $0x230] sm:$0xf]  ;;  %v4695_v21 = vor.u32 %v6480_v7, %v4694_v6 }
  0x47   : > { %3446 = vmatpush.bf16.msra.mxu2 %v4471_v36  ;;  %v6512_v12 = vld [vmem:[%s7102_s27 + $0x3c4] sm:$0xf0]  ;;  %v6462_v14 = vld [vmem:[%s7102_s27 + $0x234] sm:$0xf0]  ;;  %v4686_v16 = vld [vmem:[%s7102_s27 + $0x2b0] sm:$0xf]  ;;  %v4759_v22 = vor.u32 %v6496_v10, %v4758_v9 }
  0x48   : > { %3459 = vmatpush.bf16.msra.mxu3 %v4535_v39  ;;  %v6478_v17 = vld [vmem:[%s7102_s27 + $0x2b4] sm:$0xf0]  ;;  %v4750_v18 = vld [vmem:[%s7102_s27 + $0x330] sm:$0xf]  ;;  %v216_v20 = vld [vmem:[%s8381_s0 + $0x10] sm:$0xff]  ;;  %v4823_v25 = vor.u32 %v6512_v12, %v4822_v11  ;;  %v4623_v34 = vor.u32 %v6462_v14, %v4622_v13  ;;  %s8393_s12 = smov (!%p204_p6, %s7512_s12), 33 }
  0x49   : > { %3465 = vmatpush.bf16.msrb.mxu0 %v4655_v40  ;;  %v6494_v19 = vld [vmem:[%s7102_s27 + $0x334] sm:$0xf0]  ;;  %v4814_v30 = vld [vmem:[%s7102_s27 + $0x3b0] sm:$0xf]  ;;  %v4687_v35 = vor.u32 %v6478_v17, %v4686_v16  ;;  %v4614_v37 = vld [vmem:[%s7102_s27 + $0x220] sm:$0xf]  ;;  %s7590_s18 = scalar_lea.vmem %s8383_s2, %s8393_s12 }
  0x4a   : > { %3478 = vmatpush.bf16.msrb.mxu1 %v4719_v41  ;;  %v6510_v31 = vld [vmem:[%s7102_s27 + $0x3b4] sm:$0xf0]  ;;  %v4751_v36 = vor.u32 %v6494_v19, %v4750_v18  ;;  %v6460_v38 = vld [vmem:[%s7102_s27 + $0x224] sm:$0xf0]  ;;  %v4678_v39 = vld [vmem:[%s7102_s27 + $0x2a0] sm:$0xf] }
  0x4b   : > { %3491 = vmatpush.bf16.msrb.mxu2 %v4783_v42  ;;  %v235_v23 = vld.sshfl [vmem:[#allocation1 + $0x10] sm:$0xff pattern:$0x73625140]  ;;  %v233_v24 = vld.sshfl [vmem:[#allocation1] sm:$0xff pattern:$0x73625140]  ;;  %v4815_v40 = vor.u32 %v6510_v31, %v4814_v30 }
  0x4c   : > { %3504 = vmatpush.bf16.msrb.mxu3 %v4847_v46  ;;  %v7216_v26 = vpack.c.bf16 %v235_v23, %v235_v23  ;;  %v7218_v27 = vpack.c.bf16 %v233_v24, %v233_v24  ;;  %v236_v28 = vld.sshfl [vmem:[#allocation1 + $0x18] sm:$0xff pattern:$0x73625140]  ;;  %v234_v29 = vld.sshfl [vmem:[#allocation1 + $0x8] sm:$0xff pattern:$0x73625140]  ;;  %v4615_v46 = vor.u32 %v6460_v38, %v4614_v37 }
  0x4d   : > { %3466 = vmatpush.bf16.msrb.mxu0 %v4647_v52  ;;  %v7222_v32 = vpack.c.bf16 %v236_v28, %v236_v28  ;;  %241 = vst [vmem:[#allocation1] ss:$4 sm:$0xff] %v216_v20  ;;  %v7224_v33 = vpack.c.bf16 %v234_v29, %v234_v29  ;;  %v6476_v41 = vld [vmem:[%s7102_s27 + $0x2a4] sm:$0xf0]  ;;  %v4742_v42 = vld [vmem:[%s7102_s27 + $0x320] sm:$0xf] }
  0x4e   : > { %3479 = vmatpush.bf16.msrb.mxu1 %v4711_v55  ;;  %3447 = vmatmul.bf16.vlgmr.msra.gmra.mxu2 %v7216_v26  ;;  %v6492_v43 = vld [vmem:[%s7102_s27 + $0x324] sm:$0xf0]  ;;  %v4806_v44 = vld [vmem:[%s7102_s27 + $0x3a0] sm:$0xf]  ;;  %v4606_v47 = vld [vmem:[%s7102_s27 + $0x210] sm:$0xf]  ;;  %v4679_v49 = vor.u32 %v6476_v41, %v4678_v39 }
  0x4f   : > { %3492 = vmatpush.bf16.msrb.mxu2 %v4775_v56  ;;  %3421 = vmatmul.bf16.vlgmr.msra.gmra.mxu0 %v7218_v27  ;;  %v6508_v45 = vld [vmem:[%s7102_s27 + $0x3a4] sm:$0xf0]  ;;  %v6458_v48 = vld [vmem:[%s7102_s27 + $0x214] sm:$0xf0]  ;;  %v4743_v50 = vor.u32 %v6492_v43, %v4742_v42  ;;  %v4670_v51 = vld [vmem:[%s7102_s27 + $0x290] sm:$0xf] }
  0x50   : > { %3505 = vmatpush.bf16.msrb.mxu3 %v4839_v60  ;;  %3434 = vmatmul.bf16.vlgmr.msra.gmra.mxu1 %v7224_v33  ;;  %v6474_v52 = vld [vmem:[%s7102_s27 + $0x294] sm:$0xf0]  ;;  %v4734_v53 = vld [vmem:[%s7102_s27 + $0x310] sm:$0xf]  ;;  %v4807_v54 = vor.u32 %v6508_v45, %v4806_v44  ;;  %v215_v57 = vld [vmem:[%s8381_s0 + $0x8] sm:$0xff]  ;;  %v4607_v60 = vor.u32 %v6458_v48, %v4606_v47  ;;  %s4339_s25 = sshll.u32 %s8393_s12, 1 }
  0x51   : > { %3467 = vmatpush.bf16.msrb.mxu0 %v4639_v1  ;;  %3460 = vmatmul.bf16.vlgmr.msra.gmra.mxu3 %v7222_v32  ;;  %v6490_v55 = vld [vmem:[%s7102_s27 + $0x314] sm:$0xf0]  ;;  %v4798_v56 = vld [vmem:[%s7102_s27 + $0x390] sm:$0xf]  ;;  %v4598_v59 = vld [vmem:[%s7102_s27 + $0x200] sm:$0xf]  ;;  %v4671_v0 = vor.u32 %v6474_v52, %v4670_v51  ;;  %s212_s22 = scalar_lea.vmem %s8384_s3, %s4339_s25 }
  0x52   : > { %3480 = vmatpush.bf16.msrb.mxu1 %v4703_v3  ;;  %v6506_v58 = vld [vmem:[%s7102_s27 + $0x394] sm:$0xf0]  ;;  %232 = vst [vmem:[#allocation1 + $0x20] ss:$4 sm:$0xff] %v215_v57  ;;  %v6456_v61 = vld [vmem:[%s7102_s27 + $0x204] sm:$0xf0]  ;;  %v4735_v1 = vor.u32 %v6490_v55, %v4734_v53 }
  0x53   : > { %3493 = vmatpush.bf16.msrb.mxu2 %v4767_v4  ;;  %v4662_v62 = vld [vmem:[%s7102_s27 + $0x280] sm:$0xf]  ;;  %v6472_v63 = vld [vmem:[%s7102_s27 + $0x284] sm:$0xf0]  ;;  %v4799_v5 = vor.u32 %v6506_v58, %v4798_v56  ;;  %v4910_v7 = vld [vmem:[%s7102_s27 + $0x470] sm:$0xf]  ;;  %v4599_v12 = vor.u32 %v6456_v61, %v4598_v59 }
  0x54   : > { %3506 = vmatpush.bf16.msrb.mxu3 %v4831_v8  ;;  %v4726_v2 = vld [vmem:[%s7102_s27 + $0x300] sm:$0xf]  ;;  %v6488_v3 = vld [vmem:[%s7102_s27 + $0x304] sm:$0xf0]  ;;  %v6534_v8 = vld [vmem:[%s7102_s27 + $0x474] sm:$0xf0]  ;;  %v4663_v16 = vor.u32 %v6472_v63, %v4662_v62 }
  0x55   : > { %3468 = vmatpush.bf16.msrb.mxu0 %v4631_v15  ;;  %v4790_v4 = vld [vmem:[%s7102_s27 + $0x380] sm:$0xf]  ;;  %v6504_v6 = vld [vmem:[%s7102_s27 + $0x384] sm:$0xf0]  ;;  %v4974_v9 = vld [vmem:[%s7102_s27 + $0x4f0] sm:$0xf]  ;;  %v4727_v17 = vor.u32 %v6488_v3, %v4726_v2 }
  0x56   : > { %3481 = vmatpush.bf16.msrb.mxu1 %v4695_v21  ;;  %v6550_v10 = vld [vmem:[%s7102_s27 + $0x4f4] sm:$0xf0]  ;;  %v5038_v11 = vld [vmem:[%s7102_s27 + $0x570] sm:$0xf]  ;;  %v4902_v18 = vld [vmem:[%s7102_s27 + $0x460] sm:$0xf]  ;;  %v4791_v21 = vor.u32 %v6504_v6, %v4790_v4 }
  0x57   : > { %3494 = vmatpush.bf16.msrb.mxu2 %v4759_v22  ;;  %v6566_v13 = vld [vmem:[%s7102_s27 + $0x574] sm:$0xf0]  ;;  %v5102_v14 = vld [vmem:[%s7102_s27 + $0x5f0] sm:$0xf]  ;;  %v6532_v19 = vld [vmem:[%s7102_s27 + $0x464] sm:$0xf0]  ;;  %v4911_v22 = vor.u32 %v6534_v8, %v4910_v7  ;;  %v4975_v29 = vor.u32 %v6550_v10, %v4974_v9 }
  0x58   : > { %3507 = vmatpush.bf16.msrb.mxu3 %v4823_v25  ;;  %v6582_v15 = vld [vmem:[%s7102_s27 + $0x5f4] sm:$0xf0]  ;;  %v217_v20 = vld [vmem:[%s8381_s0 + $0x18] sm:$0xff]  ;;  %v4966_v23 = vld [vmem:[%s7102_s27 + $0x4e0] sm:$0xf]  ;;  %v5039_v30 = vor.u32 %v6566_v13, %v5038_v11  ;;  %v4903_v43 = vor.u32 %v6532_v19, %v4902_v18  ;;  %vm4248_vm0 = vcmask 1041408  }
  0x59   : > { %3469 = vmatpush.bf16.msrb.mxu0 %v4623_v34  ;;  %v6548_v24 = vld [vmem:[%s7102_s27 + $0x4e4] sm:$0xf0]  ;;  %v237_v28 = vld.sshfl [vmem:[#allocation1 + $0x20] sm:$0xff pattern:$0x73625140] }
  0x5a   : > { %3482 = vmatpush.bf16.msrb.mxu1 %v4687_v35  ;;  %v239_v25 = vld.sshfl [vmem:[#allocation1 + $0x30] sm:$0xff pattern:$0x73625140]  ;;  %v240_v31 = vld.sshfl [vmem:[#allocation1 + $0x38] sm:$0xff pattern:$0x73625140]  ;;  %v5103_v35 = vor.u32 %v6582_v15, %v5102_v14  ;;  %v7278_v41 = vpack.c.bf16 %v237_v28, %v237_v28  ;;  %v4967_v45 = vor.u32 %v6548_v24, %v4966_v23 }
  0x5b   : > { %3495 = vmatpush.bf16.msrb.mxu2 %v4751_v36  ;;  %v238_v34 = vld.sshfl [vmem:[#allocation1 + $0x28] sm:$0xff pattern:$0x73625140]  ;;  %v6564_v37 = vld [vmem:[%s7102_s27 + $0x564] sm:$0xf0]  ;;  %v7274_v38 = vpack.c.bf16 %v239_v25, %v239_v25  ;;  %v7280_v42 = vpack.c.bf16 %v240_v31, %v240_v31 }
  0x5c   : > { %3508 = vmatpush.bf16.msrb.mxu3 %v4815_v40  ;;  %v5030_v36 = vld [vmem:[%s7102_s27 + $0x560] sm:$0xf]  ;;  %242 = vst [vmem:[#allocation1 + $0x20] ss:$4 sm:$0xff] %v217_v20  ;;  %v6580_v40 = vld [vmem:[%s7102_s27 + $0x5e4] sm:$0xf0]  ;;  %v7282_v44 = vpack.c.bf16 %v238_v34, %v238_v34 }
  0x5d   : > { %3470 = vmatpush.bf16.msrb.mxu0 %v4615_v46  ;;  %v5094_v39 = vld [vmem:[%s7102_s27 + $0x5e0] sm:$0xf]  ;;  %v5031_v46 = vor.u32 %v6564_v37, %v5030_v36  ;;  %v4894_v47 = vld [vmem:[%s7102_s27 + $0x450] sm:$0xf]  ;;  %v6530_v48 = vld [vmem:[%s7102_s27 + $0x454] sm:$0xf0] }
  0x5e   : > { %3483 = vmatpush.bf16.msrb.mxu1 %v4679_v49  ;;  %v4958_v49 = vld [vmem:[%s7102_s27 + $0x4d0] sm:$0xf]  ;;  %v6546_v51 = vld [vmem:[%s7102_s27 + $0x4d4] sm:$0xf0]  ;;  %v4895_v56 = vor.u32 %v6530_v48, %v4894_v47  ;;  %v4886_v59 = vld [vmem:[%s7102_s27 + $0x440] sm:$0xf] }
  0x5f   : > { %3496 = vmatpush.bf16.msrb.mxu2 %v4743_v50  ;;  %v5095_v50 = vor.u32 %v6580_v40, %v5094_v39  ;;  %v5022_v52 = vld [vmem:[%s7102_s27 + $0x550] sm:$0xf]  ;;  %v6562_v53 = vld [vmem:[%s7102_s27 + $0x554] sm:$0xf0]  ;;  %v4959_v57 = vor.u32 %v6546_v51, %v4958_v49  ;;  %v4950_v61 = vld [vmem:[%s7102_s27 + $0x4c0] sm:$0xf] }
  0x60   : > { %3509 = vmatpush.bf16.msrb.mxu3 %v4807_v54  ;;  %v5086_v54 = vld [vmem:[%s7102_s27 + $0x5d0] sm:$0xf]  ;;  %v6578_v55 = vld [vmem:[%s7102_s27 + $0x5d4] sm:$0xf0]  ;;  %v5023_v58 = vor.u32 %v6562_v53, %v5022_v52  ;;  %v6544_v63 = vld [vmem:[%s7102_s27 + $0x4c4] sm:$0xf0] }
  0x61   : > { %3471 = vmatpush.bf16.msrb.mxu0 %v4607_v60  ;;  %v6528_v60 = vld [vmem:[%s7102_s27 + $0x444] sm:$0xf0]  ;;  %v5087_v62 = vor.u32 %v6578_v55, %v5086_v54  ;;  %v5078_v2 = vld [vmem:[%s7102_s27 + $0x5c0] sm:$0xf]  ;;  %v6526_v6 = vld [vmem:[%s7102_s27 + $0x434] sm:$0xf0]  ;;  %v4951_v8 = vor.u32 %v6544_v63, %v4950_v61 }
  0x62   : > { %3484 = vmatpush.bf16.msrb.mxu1 %v4671_v0  ;;  %v5014_v0 = vld [vmem:[%s7102_s27 + $0x540] sm:$0xf]  ;;  %v6576_v3 = vld [vmem:[%s7102_s27 + $0x5c4] sm:$0xf0]  ;;  %v4887_v4 = vor.u32 %v6528_v60, %v4886_v59  ;;  %v4942_v7 = vld [vmem:[%s7102_s27 + $0x4b0] sm:$0xf] }
  0x63   : > { %3497 = vmatpush.bf16.msrb.mxu2 %v4735_v1  ;;  %v6560_v1 = vld [vmem:[%s7102_s27 + $0x544] sm:$0xf0]  ;;  %v6542_v10 = vld [vmem:[%s7102_s27 + $0x4b4] sm:$0xf0]  ;;  %v5006_v11 = vld [vmem:[%s7102_s27 + $0x530] sm:$0xf]  ;;  %v5079_v13 = vor.u32 %v6576_v3, %v5078_v2 }
  0x64   : > { %3510 = vmatpush.bf16.msrb.mxu3 %v4799_v5  ;;  %v4878_v5 = vld [vmem:[%s7102_s27 + $0x430] sm:$0xf]  ;;  %v5015_v9 = vor.u32 %v6560_v1, %v5014_v0  ;;  %v6574_v15 = vld [vmem:[%s7102_s27 + $0x5b4] sm:$0xf0]  ;;  %v4943_v23 = vor.u32 %v6542_v10, %v4942_v7  ;;  %v6524_v25 = vld [vmem:[%s7102_s27 + $0x424] sm:$0xf0] }
  0x65   : > { %3472 = vmatpush.bf16.msrb.mxu0 %v4599_v12  ;;  %v6558_v12 = vld [vmem:[%s7102_s27 + $0x534] sm:$0xf0]  ;;  %v5070_v14 = vld [vmem:[%s7102_s27 + $0x5b0] sm:$0xf]  ;;  %v4879_v20 = vor.u32 %v6526_v6, %v4878_v5  ;;  %v4934_v28 = vld [vmem:[%s7102_s27 + $0x4a0] sm:$0xf] }
  0x66   : > { %3485 = vmatpush.bf16.msrb.mxu1 %v4663_v16  ;;  %v218_v16 = vld [vmem:[%s8381_s0 + $0x20] sm:$0xff]  ;;  %v7318_v19 = vld.sshfl [vmem:[#allocation1 + $0x10] sm:$0xff pattern:$0x73625140]  ;;  %v5007_v24 = vor.u32 %v6558_v12, %v5006_v11  ;;  %v4998_v31 = vld [vmem:[%s7102_s27 + $0x520] sm:$0xf] }
  0x67   : > { %3498 = vmatpush.bf16.msrb.mxu2 %v4727_v17  ;;  %v4870_v17 = vld [vmem:[%s7102_s27 + $0x420] sm:$0xf]  ;;  %v7316_v18 = vld.sshfl [vmem:[#allocation1] sm:$0xff pattern:$0x73625140] }
  0x68   : > { %3511 = vmatpush.bf16.msrb.mxu3 %v4791_v21  ;;  %3473 = vmatmul.bf16.vlgmr.msrb.gmra.mxu0 %v7278_v41  ;;  %v7320_v21 = vld.sshfl [vmem:[#allocation1 + $0x8] sm:$0xff pattern:$0x73625140]  ;;  %v6556_v34 = vld [vmem:[%s7102_s27 + $0x524] sm:$0xf0]  ;;  %v4871_v37 = vor.u32 %v6524_v25, %v4870_v17 }
  0x69   : > { %3517 = vmatpush.bf16.msra.mxu0 %v4911_v22  ;;  %3486 = vmatmul.bf16.vlgmr.msrb.gmra.mxu1 %v7282_v44  ;;  %v7322_v22 = vld.sshfl [vmem:[#allocation1 + $0x18] sm:$0xff pattern:$0x73625140]  ;;  %v6572_v36 = vld [vmem:[%s7102_s27 + $0x5a4] sm:$0xf0]  ;;  %v4999_v40 = vor.u32 %v6556_v34, %v4998_v31  ;;  %v7371_v31 = vpack.c.bf16 %v7320_v21, %v7320_v21 }
  0x6a   : > { %3530 = vmatpush.bf16.msra.mxu1 %v4975_v29  ;;  %3499 = vmatmul.bf16.vlgmr.msrb.gmra.mxu2 %v7274_v38  ;;  %251 = vst [vmem:[#allocation1] ss:$4 sm:$0xff] %v218_v16  ;;  %v5071_v29 = vor.u32 %v6574_v15, %v5070_v14  ;;  %v6538_v48 = vld [vmem:[%s7102_s27 + $0x494] sm:$0xf0]  ;;  %v4990_v49 = vld [vmem:[%s7102_s27 + $0x510] sm:$0xf] }
  0x6b   : > { %3543 = vmatpush.bf16.msra.mxu2 %v5039_v30  ;;  %3512 = vmatmul.bf16.vlgmr.msrb.gmra.mxu3 %v7280_v42  ;;  %v6540_v30 = vld [vmem:[%s7102_s27 + $0x4a4] sm:$0xf0]  ;;  %v5054_v51 = vld [vmem:[%s7102_s27 + $0x590] sm:$0xf]  ;;  %v6570_v52 = vld [vmem:[%s7102_s27 + $0x594] sm:$0xf0] }
  0x6c   : > { %3556 = vmatpush.bf16.msra.mxu3 %v5103_v35  ;;  %v5062_v35 = vld [vmem:[%s7102_s27 + $0x5a0] sm:$0xf]  ;;  %v4935_v39 = vor.u32 %v6540_v30, %v4934_v28  ;;  %v6520_v55 = vld [vmem:[%s7102_s27 + $0x404] sm:$0xf0]  ;;  %v5055_v61 = vor.u32 %v6570_v52, %v5054_v51  ;;  %v5166_v1 = vld [vmem:[%s7102_s27 + $0x670] sm:$0xf]  ;;  %v7367_v30 = vpack.c.bf16 %v7318_v19, %v7318_v19 }
  0x6d   : > { %3518 = vmatpush.bf16.msra.mxu0 %v4903_v43  ;;  %v4862_v43 = vld [vmem:[%s7102_s27 + $0x410] sm:$0xf]  ;;  %v5063_v47 = vor.u32 %v6572_v36, %v5062_v35  ;;  %v4854_v54 = vld [vmem:[%s7102_s27 + $0x400] sm:$0xf]  ;;  %v6536_v59 = vld [vmem:[%s7102_s27 + $0x484] sm:$0xf0] }
  0x6e   : > { %3531 = vmatpush.bf16.msra.mxu1 %v4967_v45  ;;  %v6522_v45 = vld [vmem:[%s7102_s27 + $0x414] sm:$0xf0]  ;;  %v4982_v60 = vld [vmem:[%s7102_s27 + $0x500] sm:$0xf]  ;;  %v6568_v0 = vld [vmem:[%s7102_s27 + $0x584] sm:$0xf0] }
  0x6f   : > { %3544 = vmatpush.bf16.msra.mxu2 %v5031_v46  ;;  %v4926_v46 = vld [vmem:[%s7102_s27 + $0x490] sm:$0xf]  ;;  %v4863_v53 = vor.u32 %v6522_v45, %v4862_v43  ;;  %v5046_v63 = vld [vmem:[%s7102_s27 + $0x580] sm:$0xf]  ;;  %v6598_v2 = vld [vmem:[%s7102_s27 + $0x674] sm:$0xf0] }
  0x70   : > { %3557 = vmatpush.bf16.msra.mxu3 %v5095_v50  ;;  %v6554_v50 = vld [vmem:[%s7102_s27 + $0x514] sm:$0xf0]  ;;  %v5230_v3 = vld [vmem:[%s7102_s27 + $0x6f0] sm:$0xf]  ;;  %v5047_v12 = vor.u32 %v6568_v0, %v5046_v63  ;;  %v5158_v16 = vld [vmem:[%s7102_s27 + $0x660] sm:$0xf] }
  0x71   : > { %3519 = vmatpush.bf16.msra.mxu0 %v4895_v56  ;;  %v4927_v56 = vor.u32 %v6538_v48, %v4926_v46  ;;  %v6614_v5 = vld [vmem:[%s7102_s27 + $0x6f4] sm:$0xf0]  ;;  %v5294_v6 = vld [vmem:[%s7102_s27 + $0x770] sm:$0xf]  ;;  %v6596_v17 = vld [vmem:[%s7102_s27 + $0x664] sm:$0xf0] }
  0x72   : > { %3532 = vmatpush.bf16.msra.mxu1 %v4959_v57  ;;  %v4991_v57 = vor.u32 %v6554_v50, %v4990_v49  ;;  %v6630_v7 = vld [vmem:[%s7102_s27 + $0x774] sm:$0xf0]  ;;  %v5358_v10 = vld [vmem:[%s7102_s27 + $0x7f0] sm:$0xf]  ;;  %v5231_v14 = vor.u32 %v6614_v5, %v5230_v3  ;;  %v6612_v25 = vld [vmem:[%s7102_s27 + $0x6e4] sm:$0xf0]  ;;  %v5159_v36 = vor.u32 %v6596_v17, %v5158_v16 }
  0x73   : > { %3545 = vmatpush.bf16.msra.mxu2 %v5023_v58  ;;  %v4918_v58 = vld [vmem:[%s7102_s27 + $0x480] sm:$0xf]  ;;  %v6646_v11 = vld [vmem:[%s7102_s27 + $0x7f4] sm:$0xf0]  ;;  %v5295_v15 = vor.u32 %v6630_v7, %v5294_v6  ;;  %v6644_v35 = vld [vmem:[%s7102_s27 + $0x7e4] sm:$0xf0] }
  0x74   : > { %3558 = vmatpush.bf16.msra.mxu3 %v5087_v62  ;;  %v6552_v62 = vld [vmem:[%s7102_s27 + $0x504] sm:$0xf0]  ;;  %v5286_v28 = vld [vmem:[%s7102_s27 + $0x760] sm:$0xf]  ;;  %v6610_v43 = vld [vmem:[%s7102_s27 + $0x6d4] sm:$0xf0] }
  0x75   : > { %3520 = vmatpush.bf16.msra.mxu0 %v4887_v4  ;;  %v4855_v4 = vor.u32 %v6520_v55, %v4854_v54  ;;  %v5350_v34 = vld [vmem:[%s7102_s27 + $0x7e0] sm:$0xf]  ;;  %v5278_v45 = vld [vmem:[%s7102_s27 + $0x750] sm:$0xf]  ;;  %v6626_v46 = vld [vmem:[%s7102_s27 + $0x754] sm:$0xf0] }
  0x76   : > { %3533 = vmatpush.bf16.msra.mxu1 %v4951_v8  ;;  %v4919_v8 = vor.u32 %v6536_v59, %v4918_v58  ;;  %v6642_v48 = vld [vmem:[%s7102_s27 + $0x7d4] sm:$0xf0]  ;;  %v5142_v49 = vld [vmem:[%s7102_s27 + $0x640] sm:$0xf]  ;;  %v6592_v50 = vld [vmem:[%s7102_s27 + $0x644] sm:$0xf0]  ;;  %v5279_v58 = vor.u32 %v6626_v46, %v5278_v45 }
  0x77   : > { %3546 = vmatpush.bf16.msra.mxu2 %v5015_v9  ;;  %v4983_v9 = vor.u32 %v6552_v62, %v4982_v60  ;;  %v5206_v52 = vld [vmem:[%s7102_s27 + $0x6c0] sm:$0xf]  ;;  %v6624_v55 = vld [vmem:[%s7102_s27 + $0x744] sm:$0xf0]  ;;  %v5134_v5 = vld [vmem:[%s7102_s27 + $0x630] sm:$0xf] }
  0x78   : > { %3559 = vmatpush.bf16.msra.mxu3 %v5079_v13  ;;  %v5167_v13 = vor.u32 %v6598_v2, %v5166_v1  ;;  %v5270_v54 = vld [vmem:[%s7102_s27 + $0x740] sm:$0xf]  ;;  %v7400_v59 = vld.sshfl [vmem:[#allocation1 + $0x20] sm:$0xff pattern:$0x73625140]  ;;  %v5143_v2 = vor.u32 %v6592_v50, %v5142_v49 }
  0x79   : > { %3521 = vmatpush.bf16.msra.mxu0 %v4879_v20  ;;  %v5222_v20 = vld [vmem:[%s7102_s27 + $0x6e0] sm:$0xf]  ;;  %v7402_v60 = vld.sshfl [vmem:[#allocation1 + $0x30] sm:$0xff pattern:$0x73625140] }
  0x7a   : > { %3534 = vmatpush.bf16.msra.mxu1 %v4943_v23  ;;  %v5359_v23 = vor.u32 %v6646_v11, %v5358_v10  ;;  %v5223_v19 = vor.u32 %v6612_v25, %v5222_v20  ;;  %v7404_v62 = vld.sshfl [vmem:[#allocation1 + $0x28] sm:$0xff pattern:$0x73625140]  ;;  %v7406_v63 = vld.sshfl [vmem:[#allocation1 + $0x38] sm:$0xff pattern:$0x73625140] }
  0x7b   : > { %3547 = vmatpush.bf16.msra.mxu2 %v5007_v24  ;;  %v7360_v24 = vpack.c.bf16 %v7316_v18, %v7316_v18  ;;  %v7377_v18 = vpack.c.bf16 %v7322_v22, %v7322_v22  ;;  %v5351_v22 = vor.u32 %v6644_v35, %v5350_v34  ;;  %v5334_v0 = vld [vmem:[%s7102_s27 + $0x7c0] sm:$0xf]  ;;  %v6640_v1 = vld [vmem:[%s7102_s27 + $0x7c4] sm:$0xf0]  ;;  %v6590_v6 = vld [vmem:[%s7102_s27 + $0x634] sm:$0xf0] }
  0x7c   : > { %3560 = vmatpush.bf16.msra.mxu3 %v5071_v29  ;;  %v6628_v29 = vld [vmem:[%s7102_s27 + $0x764] sm:$0xf0]  ;;  %v5198_v7 = vld [vmem:[%s7102_s27 + $0x6b0] sm:$0xf]  ;;  %v6622_v11 = vld [vmem:[%s7102_s27 + $0x734] sm:$0xf0] }
  0x7d   : > { %3522 = vmatpush.bf16.msra.mxu0 %v4871_v37  ;;  %v5150_v37 = vld [vmem:[%s7102_s27 + $0x650] sm:$0xf]  ;;  %v5287_v21 = vor.u32 %v6628_v29, %v5286_v28  ;;  %v5126_v17 = vld [vmem:[%s7102_s27 + $0x620] sm:$0xf]  ;;  %v6588_v20 = vld [vmem:[%s7102_s27 + $0x624] sm:$0xf0] }
  0x7e   : > { %3535 = vmatpush.bf16.msra.mxu1 %v4935_v39  ;;  %v6594_v39 = vld [vmem:[%s7102_s27 + $0x654] sm:$0xf0]  ;;  %v5262_v10 = vld [vmem:[%s7102_s27 + $0x730] sm:$0xf]  ;;  %v6604_v28 = vld [vmem:[%s7102_s27 + $0x6a4] sm:$0xf0] }
  0x7f   : > { %3548 = vmatpush.bf16.msra.mxu2 %v4999_v40  ;;  %v5214_v40 = vld [vmem:[%s7102_s27 + $0x6d0] sm:$0xf]  ;;  %v5151_v51 = vor.u32 %v6594_v39, %v5150_v37  ;;  %v5263_v16 = vor.u32 %v6622_v11, %v5262_v10  ;;  %v5254_v29 = vld [vmem:[%s7102_s27 + $0x720] sm:$0xf]  ;;  %v6620_v34 = vld [vmem:[%s7102_s27 + $0x724] sm:$0xf0]  ;;  %v5127_v37 = vor.u32 %v6588_v20, %v5126_v17 }
  0x80   : > { %3561 = vmatpush.bf16.msra.mxu3 %v5063_v47  ;;  %v5342_v47 = vld [vmem:[%s7102_s27 + $0x7d0] sm:$0xf]  ;;  %v5318_v35 = vld [vmem:[%s7102_s27 + $0x7a0] sm:$0xf]  ;;  %v6602_v45 = vld [vmem:[%s7102_s27 + $0x694] sm:$0xf0] }
  0x81   : > { %3523 = vmatpush.bf16.msra.mxu0 %v4863_v53  ;;  %v6608_v53 = vld [vmem:[%s7102_s27 + $0x6c4] sm:$0xf0]  ;;  %v5118_v39 = vld [vmem:[%s7102_s27 + $0x610] sm:$0xf]  ;;  %v6634_v49 = vld [vmem:[%s7102_s27 + $0x794] sm:$0xf0] }
  0x82   : > { %3536 = vmatpush.bf16.msra.mxu1 %v4927_v56  ;;  %v219_v56 = vld [vmem:[%s8381_s0 + $0x28] sm:$0xff]  ;;  %v5207_v3 = vor.u32 %v6608_v53, %v5206_v52  ;;  %v5246_v46 = vld [vmem:[%s7102_s27 + $0x710] sm:$0xf]  ;;  %v6584_v52 = vld [vmem:[%s7102_s27 + $0x604] sm:$0xf0] }
  0x83   : > { %3549 = vmatpush.bf16.msra.mxu2 %v4991_v57  ;;  %v5215_v57 = vor.u32 %v6610_v43, %v5214_v40  ;;  %252 = vst [vmem:[#allocation1 + $0x20] ss:$4 sm:$0xff] %v219_v56  ;;  %v6586_v40 = vld [vmem:[%s7102_s27 + $0x614] sm:$0xf0]  ;;  %v5182_v43 = vld [vmem:[%s7102_s27 + $0x690] sm:$0xf] }
  0x84   : > { %3562 = vmatpush.bf16.msra.mxu3 %v5055_v61  ;;  %v5343_v61 = vor.u32 %v6642_v48, %v5342_v47  ;;  %v6618_v47 = vld [vmem:[%s7102_s27 + $0x714] sm:$0xf0]  ;;  %v5310_v48 = vld [vmem:[%s7102_s27 + $0x790] sm:$0xf]  ;;  %v5119_v50 = vor.u32 %v6586_v40, %v5118_v39  ;;  %v5183_v53 = vor.u32 %v6602_v45, %v5182_v43  ;;  %v6600_v56 = vld [vmem:[%s7102_s27 + $0x684] sm:$0xf0] }
  0x85   : > { %3524 = vmatpush.bf16.msra.mxu0 %v4855_v4  ;;  %v5271_v4 = vor.u32 %v6624_v55, %v5270_v54  ;;  %v5247_v54 = vor.u32 %v6618_v47, %v5246_v46  ;;  %v5174_v55 = vld [vmem:[%s7102_s27 + $0x680] sm:$0xf]  ;;  %v5614_v11 = vld [vmem:[%s7102_s27 + $0x9f0] sm:$0xf]  ;;  %v6660_v20 = vld [vmem:[%s7102_s27 + $0x864] sm:$0xf0] }
  0x86   : > { %3537 = vmatpush.bf16.msra.mxu1 %v4919_v8  ;;  %v5335_v8 = vor.u32 %v6640_v1, %v5334_v0  ;;  %v5302_v0 = vld [vmem:[%s7102_s27 + $0x780] sm:$0xf]  ;;  %v6632_v1 = vld [vmem:[%s7102_s27 + $0x784] sm:$0xf0]  ;;  %v6658_v43 = vld [vmem:[%s7102_s27 + $0x854] sm:$0xf0] }
  0x87   : > { %3550 = vmatpush.bf16.msra.mxu2 %v4983_v9  ;;  %v6606_v9 = vld [vmem:[%s7102_s27 + $0x6b4] sm:$0xf0]  ;;  %v5414_v17 = vld [vmem:[%s7102_s27 + $0x860] sm:$0xf] }
  0x88   : > { %3563 = vmatpush.bf16.msra.mxu3 %v5047_v12  ;;  %3525 = vmatmul.bf16.vlgmr.msra.gmra.mxu0 %v7360_v24  ;;  %v5326_v12 = vld [vmem:[%s7102_s27 + $0x7b0] sm:$0xf]  ;;  %v5415_v39 = vor.u32 %v6660_v20, %v5414_v17  ;;  %v6674_v46 = vld [vmem:[%s7102_s27 + $0x8d4] sm:$0xf0]  ;;  %v5382_v17 = vld [vmem:[%s7102_s27 + $0x820] sm:$0xf] }
  0x89   : > { %3569 = vmatpush.bf16.msrb.mxu0 %v5167_v13  ;;  %3538 = vmatmul.bf16.vlgmr.msra.gmra.mxu1 %v7371_v31  ;;  %v6638_v13 = vld [vmem:[%s7102_s27 + $0x7b4] sm:$0xf0]  ;;  %v6652_v20 = vld [vmem:[%s7102_s27 + $0x824] sm:$0xf0] }
  0x8a   : > { %3582 = vmatpush.bf16.msrb.mxu1 %v5231_v14  ;;  %3551 = vmatmul.bf16.vlgmr.msra.gmra.mxu2 %v7367_v30  ;;  %v5135_v14 = vor.u32 %v6590_v6, %v5134_v5  ;;  %v5327_v25 = vor.u32 %v6638_v13, %v5326_v12  ;;  %v6678_v6 = vld [vmem:[%s7102_s27 + $0x8f4] sm:$0xf0]  ;;  %v5303_v13 = vor.u32 %v6632_v1, %v5302_v0  ;;  %v5590_v0 = vld [vmem:[%s7102_s27 + $0x9c0] sm:$0xf]  ;;  %v6704_v1 = vld [vmem:[%s7102_s27 + $0x9c4] sm:$0xf0] }
  0x8b   : > { %3595 = vmatpush.bf16.msrb.mxu2 %v5295_v15  ;;  %3564 = vmatmul.bf16.vlgmr.msra.gmra.mxu3 %v7377_v18  ;;  %v5199_v15 = vor.u32 %v6606_v9, %v5198_v7  ;;  %v5550_v7 = vld [vmem:[%s7102_s27 + $0x970] sm:$0xf]  ;;  %v5175_v9 = vor.u32 %v6600_v56, %v5174_v55  ;;  %v6710_v12 = vld [vmem:[%s7102_s27 + $0x9f4] sm:$0xf0]  ;;  %v5462_v55 = vld [vmem:[%s7102_s27 + $0x8c0] sm:$0xf] }
  0x8c   : > { %3608 = vmatpush.bf16.msrb.mxu3 %v5359_v23  ;;  %v5190_v23 = vld [vmem:[%s7102_s27 + $0x6a0] sm:$0xf]  ;;  %v6690_v47 = vld [vmem:[%s7102_s27 + $0x954] sm:$0xf0] }
  0x8d   : > { %3570 = vmatpush.bf16.msrb.mxu0 %v5159_v36  ;;  %v6636_v36 = vld [vmem:[%s7102_s27 + $0x7a4] sm:$0xf0] }
  0x8e   : > { %3583 = vmatpush.bf16.msrb.mxu1 %v5223_v19  ;;  %v5191_v19 = vor.u32 %v6604_v28, %v5190_v23  ;;  %v5478_v23 = vld [vmem:[%s7102_s27 + $0x8e0] sm:$0xf]  ;;  %v7455_v28 = vpack.c.bf16 %v7400_v59, %v7400_v59  ;;  %v6708_v59 = vld [vmem:[%s7102_s27 + $0x9e4] sm:$0xf0] }
  0x8f   : > { %3596 = vmatpush.bf16.msrb.mxu2 %v5287_v21  ;;  %v5255_v21 = vor.u32 %v6620_v34, %v5254_v29  ;;  %v6676_v29 = vld [vmem:[%s7102_s27 + $0x8e4] sm:$0xf0]  ;;  %v5542_v34 = vld [vmem:[%s7102_s27 + $0x960] sm:$0xf] }
  0x90   : > { %3609 = vmatpush.bf16.msrb.mxu3 %v5351_v22  ;;  %v5319_v22 = vor.u32 %v6636_v36, %v5318_v35  ;;  %v6692_v35 = vld [vmem:[%s7102_s27 + $0x964] sm:$0xf0]  ;;  %v7462_v36 = vpack.c.bf16 %v7402_v60, %v7402_v60  ;;  %v5479_v60 = vor.u32 %v6676_v29, %v5478_v23  ;;  %v5446_v23 = vld [vmem:[%s7102_s27 + $0x8a0] sm:$0xf] }
  0x91   : > { %3571 = vmatpush.bf16.msrb.mxu0 %v5151_v51  ;;  %v5110_v51 = vld [vmem:[%s7102_s27 + $0x600] sm:$0xf]  ;;  %v5543_v40 = vor.u32 %v6692_v35, %v5542_v34  ;;  %v6668_v29 = vld [vmem:[%s7102_s27 + $0x8a4] sm:$0xf0] }
  0x92   : > { %3584 = vmatpush.bf16.msrb.mxu1 %v5215_v57  ;;  %v5238_v57 = vld [vmem:[%s7102_s27 + $0x700] sm:$0xf]  ;;  %v5111_v5 = vor.u32 %v6584_v52, %v5110_v51  ;;  %v6684_v35 = vld [vmem:[%s7102_s27 + $0x924] sm:$0xf0] }
  0x93   : > { %3597 = vmatpush.bf16.msrb.mxu2 %v5279_v58  ;;  %v5311_v58 = vor.u32 %v6634_v49, %v5310_v48  ;;  %v5598_v48 = vld [vmem:[%s7102_s27 + $0x9d0] sm:$0xf]  ;;  %v6706_v49 = vld [vmem:[%s7102_s27 + $0x9d4] sm:$0xf0]  ;;  %v5510_v34 = vld [vmem:[%s7102_s27 + $0x920] sm:$0xf] }
  0x94   : > { %3610 = vmatpush.bf16.msrb.mxu3 %v5343_v61  ;;  %v6616_v61 = vld [vmem:[%s7102_s27 + $0x704] sm:$0xf0]  ;;  %v5599_v56 = vor.u32 %v6706_v49, %v5598_v48  ;;  %v5566_v48 = vld [vmem:[%s7102_s27 + $0x990] sm:$0xf]  ;;  %v6698_v49 = vld [vmem:[%s7102_s27 + $0x994] sm:$0xf0] }
  0x95   : > { %3572 = vmatpush.bf16.msrb.mxu0 %v5143_v2  ;;  %v5422_v2 = vld [vmem:[%s7102_s27 + $0x870] sm:$0xf]  ;;  %v5239_v10 = vor.u32 %v6616_v61, %v5238_v57  ;;  %v6672_v57 = vld [vmem:[%s7102_s27 + $0x8c4] sm:$0xf0] }
  0x96   : > { %3585 = vmatpush.bf16.msrb.mxu1 %v5207_v3  ;;  %v6662_v3 = vld [vmem:[%s7102_s27 + $0x874] sm:$0xf0]  ;;  %v6688_v61 = vld [vmem:[%s7102_s27 + $0x944] sm:$0xf0] }
  0x97   : > { %3598 = vmatpush.bf16.msrb.mxu2 %v5271_v4  ;;  %v5486_v4 = vld [vmem:[%s7102_s27 + $0x8f0] sm:$0xf] }
  0x98   : > { %3611 = vmatpush.bf16.msrb.mxu3 %v5335_v8  ;;  %v6694_v8 = vld [vmem:[%s7102_s27 + $0x974] sm:$0xf0] }
  0x99   : > { %3573 = vmatpush.bf16.msrb.mxu0 %v5135_v14  ;;  %v5423_v14 = vor.u32 %v6662_v3, %v5422_v2  ;;  %v5463_v3 = vor.u32 %v6672_v57, %v5462_v55  ;;  %v5494_v57 = vld [vmem:[%s7102_s27 + $0x900] sm:$0xf] }
  0x9a   : > { %3586 = vmatpush.bf16.msrb.mxu1 %v5199_v15  ;;  %v5487_v15 = vor.u32 %v6678_v6, %v5486_v4  ;;  %v6654_v6 = vld [vmem:[%s7102_s27 + $0x834] sm:$0xf0] }
  0x9b   : > { %3599 = vmatpush.bf16.msrb.mxu2 %v5263_v16  ;;  %v5551_v16 = vor.u32 %v6694_v8, %v5550_v7  ;;  %v5454_v7 = vld [vmem:[%s7102_s27 + $0x8b0] sm:$0xf]  ;;  %v5591_v8 = vor.u32 %v6704_v1, %v5590_v0  ;;  %v5567_v0 = vor.u32 %v6698_v49, %v5566_v48  ;;  %v6696_v1 = vld [vmem:[%s7102_s27 + $0x984] sm:$0xf0] }
  0x9c   : > { %3612 = vmatpush.bf16.msrb.mxu3 %v5327_v25  ;;  %v5615_v25 = vor.u32 %v6710_v12, %v5614_v11  ;;  %v6686_v11 = vld [vmem:[%s7102_s27 + $0x934] sm:$0xf0]  ;;  %v5582_v12 = vld [vmem:[%s7102_s27 + $0x9b0] sm:$0xf] }
  0x9d   : > { %3574 = vmatpush.bf16.msrb.mxu0 %v5127_v37  ;;  %v7466_v37 = vpack.c.bf16 %v7404_v62, %v7404_v62  ;;  %v5406_v62 = vld [vmem:[%s7102_s27 + $0x850] sm:$0xf] }
  0x9e   : > { %3587 = vmatpush.bf16.msrb.mxu1 %v5191_v19  ;;  %v5606_v19 = vld [vmem:[%s7102_s27 + $0x9e0] sm:$0xf]  ;;  %v5662_v49 = vld [vmem:[%s7102_s27 + $0xa50] sm:$0xf] }
  0x9f   : > { %3600 = vmatpush.bf16.msrb.mxu2 %v5255_v21  ;;  %v7472_v21 = vpack.c.bf16 %v7406_v63, %v7406_v63  ;;  %v5607_v45 = vor.u32 %v6708_v59, %v5606_v19  ;;  %v5534_v63 = vld [vmem:[%s7102_s27 + $0x950] sm:$0xf]  ;;  %v5574_v19 = vld [vmem:[%s7102_s27 + $0x9a0] sm:$0xf]  ;;  %v6700_v59 = vld [vmem:[%s7102_s27 + $0x9a4] sm:$0xf0] }
  0xa0   : > { %3613 = vmatpush.bf16.msrb.mxu3 %v5319_v22  ;;  %v5470_v22 = vld [vmem:[%s7102_s27 + $0x8d0] sm:$0xf]  ;;  %v5535_v52 = vor.u32 %v6690_v47, %v5534_v63  ;;  %v6682_v47 = vld [vmem:[%s7102_s27 + $0x914] sm:$0xf0] }
  0xa1   : > { %3575 = vmatpush.bf16.msrb.mxu0 %v5119_v50  ;;  %v5407_v50 = vor.u32 %v6658_v43, %v5406_v62  ;;  %v5471_v51 = vor.u32 %v6674_v46, %v5470_v22  ;;  %v5374_v62 = vld [vmem:[%s7102_s27 + $0x810] sm:$0xf]  ;;  %v6650_v43 = vld [vmem:[%s7102_s27 + $0x814] sm:$0xf0] }
  0xa2   : > { %3588 = vmatpush.bf16.msrb.mxu1 %v5183_v53  ;;  %v5398_v53 = vld [vmem:[%s7102_s27 + $0x840] sm:$0xf]  ;;  %v5438_v22 = vld [vmem:[%s7102_s27 + $0x890] sm:$0xf]  ;;  %v6666_v46 = vld [vmem:[%s7102_s27 + $0x894] sm:$0xf0] }
  0xa3   : > { %3601 = vmatpush.bf16.msrb.mxu2 %v5247_v54  ;;  %v6656_v54 = vld [vmem:[%s7102_s27 + $0x844] sm:$0xf0]  ;;  %v5502_v63 = vld [vmem:[%s7102_s27 + $0x910] sm:$0xf]  ;;  %v5439_v55 = vor.u32 %v6666_v46, %v5438_v22  ;;  %v5862_v22 = vld [vmem:[%s7102_s27 + $0xbe0] sm:$0xf] }
  0xa4   : > { %3614 = vmatpush.bf16.msrb.mxu3 %v5311_v58  ;;  %v5526_v58 = vld [vmem:[%s7102_s27 + $0x940] sm:$0xf]  ;;  %v5399_v2 = vor.u32 %v6656_v54, %v5398_v53  ;;  %v6664_v54 = vld [vmem:[%s7102_s27 + $0x884] sm:$0xf0] }
  0xa5   : > { %3576 = vmatpush.bf16.msrb.mxu0 %v5111_v5  ;;  %v5527_v4 = vor.u32 %v6688_v61, %v5526_v58  ;;  %v5390_v5 = vld [vmem:[%s7102_s27 + $0x830] sm:$0xf]  ;;  %v5430_v53 = vld [vmem:[%s7102_s27 + $0x880] sm:$0xf]  ;;  %v6680_v58 = vld [vmem:[%s7102_s27 + $0x904] sm:$0xf0] }
  0xa6   : > { %3589 = vmatpush.bf16.msrb.mxu1 %v5175_v9  ;;  %v6670_v9 = vld [vmem:[%s7102_s27 + $0x8b4] sm:$0xf0]  ;;  %v5558_v61 = vld [vmem:[%s7102_s27 + $0x980] sm:$0xf] }
  0xa7   : > { %3602 = vmatpush.bf16.msrb.mxu2 %v5239_v10  ;;  %v5518_v10 = vld [vmem:[%s7102_s27 + $0x930] sm:$0xf] }
  0xa8   : > { %3615 = vmatpush.bf16.msrb.mxu3 %v5303_v13  ;;  %3577 = vmatmul.bf16.vlgmr.msrb.gmra.mxu0 %v7455_v28  ;;  %v6702_v13 = vld [vmem:[%s7102_s27 + $0x9b4] sm:$0xf0] }
  0xa9   : > { %3621 = vmatpush.bf16.msra.mxu0 %v5423_v14  ;;  %3590 = vmatmul.bf16.vlgmr.msrb.gmra.mxu1 %v7466_v37  ;;  %v5391_v14 = vor.u32 %v6654_v6, %v5390_v5  ;;  %v6742_v5 = vld [vmem:[%s7102_s27 + $0xaf4] sm:$0xf0]  ;;  %v5806_v6 = vld [vmem:[%s7102_s27 + $0xb70] sm:$0xf] }
  0xaa   : > { %3634 = vmatpush.bf16.msra.mxu1 %v5487_v15  ;;  %3603 = vmatmul.bf16.vlgmr.msrb.gmra.mxu2 %v7462_v36  ;;  %v5455_v15 = vor.u32 %v6670_v9, %v5454_v7  ;;  %v5870_v9 = vld [vmem:[%s7102_s27 + $0xbf0] sm:$0xf] }
  0xab   : > { %3647 = vmatpush.bf16.msra.mxu2 %v5551_v16  ;;  %3616 = vmatmul.bf16.vlgmr.msrb.gmra.mxu3 %v7472_v21  ;;  %v5519_v16 = vor.u32 %v6686_v11, %v5518_v10  ;;  %v6774_v10 = vld [vmem:[%s7102_s27 + $0xbf4] sm:$0xf0]  ;;  %v5431_v11 = vor.u32 %v6664_v54, %v5430_v53  ;;  %v5790_v54 = vld [vmem:[%s7102_s27 + $0xb50] sm:$0xf] }
  0xac   : > { %3660 = vmatpush.bf16.msra.mxu3 %v5615_v25  ;;  %v5583_v25 = vor.u32 %v6702_v13, %v5582_v12  ;;  %v5495_v12 = vor.u32 %v6680_v58, %v5494_v57  ;;  %v253_v13 = vld.sshfl [vmem:[#allocation1] sm:$0xff pattern:$0x73625140] }
  0xad   : > { %3622 = vmatpush.bf16.msra.mxu0 %v5415_v39  ;;  %v5383_v39 = vor.u32 %v6652_v20, %v5382_v17  ;;  %v254_v17 = vld.sshfl [vmem:[#allocation1 + $0x8] sm:$0xff pattern:$0x73625140]  ;;  %v256_v20 = vld.sshfl [vmem:[#allocation1 + $0x18] sm:$0xff pattern:$0x73625140] }
  0xae   : > { %3635 = vmatpush.bf16.msra.mxu1 %v5479_v60  ;;  %v5447_v60 = vor.u32 %v6668_v29, %v5446_v23  ;;  %v5670_v29 = vld [vmem:[%s7102_s27 + $0xa60] sm:$0xf]  ;;  %v7552_v46 = vpack.c.bf16 %v256_v20, %v256_v20  ;;  %v6738_v53 = vld [vmem:[%s7102_s27 + $0xad4] sm:$0xf0]  ;;  %v5774_v20 = vld [vmem:[%s7102_s27 + $0xb30] sm:$0xf] }
  0xaf   : > { %3648 = vmatpush.bf16.msra.mxu2 %v5543_v40  ;;  %v5511_v40 = vor.u32 %v6684_v35, %v5510_v34  ;;  %v6724_v34 = vld [vmem:[%s7102_s27 + $0xa64] sm:$0xf0]  ;;  %v5734_v35 = vld [vmem:[%s7102_s27 + $0xae0] sm:$0xf]  ;;  %v6770_v57 = vld [vmem:[%s7102_s27 + $0xbd4] sm:$0xf0] }
  0xb0   : > { %3661 = vmatpush.bf16.msra.mxu3 %v5607_v45  ;;  %v5575_v45 = vor.u32 %v6700_v59, %v5574_v19  ;;  %v5871_v19 = vor.u32 %v6774_v10, %v5870_v9  ;;  %v7541_v59 = vpack.c.bf16 %v253_v13, %v253_v13  ;;  %v6768_v9 = vld [vmem:[%s7102_s27 + $0xbc4] sm:$0xf0]  ;;  %v5646_v13 = vld [vmem:[%s7102_s27 + $0xa30] sm:$0xf] }
  0xb1   : > { %3623 = vmatpush.bf16.msra.mxu0 %v5407_v50  ;;  %v5366_v50 = vld [vmem:[%s7102_s27 + $0x800] sm:$0xf] }
  0xb2   : > { %3636 = vmatpush.bf16.msra.mxu1 %v5471_v51  ;;  %v5375_v51 = vor.u32 %v6650_v43, %v5374_v62  ;;  %v7548_v43 = vpack.c.bf16 %v254_v17, %v254_v17  ;;  %v6734_v17 = vld [vmem:[%s7102_s27 + $0xab4] sm:$0xf0] }
  0xb3   : > { %3649 = vmatpush.bf16.msra.mxu2 %v5535_v52  ;;  %v6648_v52 = vld [vmem:[%s7102_s27 + $0x804] sm:$0xf0] }
  0xb4   : > { %3662 = vmatpush.bf16.msra.mxu3 %v5599_v56  ;;  %v5503_v56 = vor.u32 %v6682_v47, %v5502_v63  ;;  %v5367_v7 = vor.u32 %v6648_v52, %v5366_v50  ;;  %v5671_v63 = vor.u32 %v6724_v34, %v5670_v29  ;;  %v6722_v50 = vld [vmem:[%s7102_s27 + $0xa54] sm:$0xf0] }
  0xb5   : > { %3624 = vmatpush.bf16.msra.mxu0 %v5399_v2  ;;  %v5678_v2 = vld [vmem:[%s7102_s27 + $0xa70] sm:$0xf]  ;;  %v5663_v58 = vor.u32 %v6722_v50, %v5662_v49  ;;  %v6766_v29 = vld [vmem:[%s7102_s27 + $0xbb4] sm:$0xf0]  ;;  %v5830_v49 = vld [vmem:[%s7102_s27 + $0xba0] sm:$0xf] }
  0xb6   : > { %3637 = vmatpush.bf16.msra.mxu1 %v5463_v3  ;;  %v6726_v3 = vld [vmem:[%s7102_s27 + $0xa74] sm:$0xf0]  ;;  %v6764_v50 = vld [vmem:[%s7102_s27 + $0xba4] sm:$0xf0] }
  0xb7   : > { %3650 = vmatpush.bf16.msra.mxu2 %v5527_v4  ;;  %v5742_v4 = vld [vmem:[%s7102_s27 + $0xaf0] sm:$0xf] }
  0xb8   : > { %3663 = vmatpush.bf16.msra.mxu3 %v5591_v8  ;;  %v6758_v8 = vld [vmem:[%s7102_s27 + $0xb74] sm:$0xf0]  ;;  %v5743_v23 = vor.u32 %v6742_v5, %v5742_v4  ;;  %v6736_v5 = vld [vmem:[%s7102_s27 + $0xac4] sm:$0xf0] }
  0xb9   : > { %3625 = vmatpush.bf16.msra.mxu0 %v5391_v14  ;;  %v255_v14 = vld.sshfl [vmem:[#allocation1 + $0x10] sm:$0xff pattern:$0x73625140] }
  0xba   : > { %3638 = vmatpush.bf16.msra.mxu1 %v5455_v15  ;;  %v5559_v15 = vor.u32 %v6696_v1, %v5558_v61  ;;  %v7546_v62 = vpack.c.bf16 %v255_v14, %v255_v14  ;;  %v5654_v1 = vld [vmem:[%s7102_s27 + $0xa40] sm:$0xf]  ;;  %v6718_v14 = vld [vmem:[%s7102_s27 + $0xa34] sm:$0xf0] }
  0xbb   : > { %3651 = vmatpush.bf16.msra.mxu2 %v5519_v16  ;;  %v5679_v16 = vor.u32 %v6726_v3, %v5678_v2  ;;  %v6720_v2 = vld [vmem:[%s7102_s27 + $0xa44] sm:$0xf0]  ;;  %v5718_v3 = vld [vmem:[%s7102_s27 + $0xac0] sm:$0xf]  ;;  %v5647_v34 = vor.u32 %v6718_v14, %v5646_v13 }
  0xbc   : > { %3664 = vmatpush.bf16.msra.mxu3 %v5583_v25  ;;  %v5807_v25 = vor.u32 %v6758_v8, %v5806_v6  ;;  %v5782_v6 = vld [vmem:[%s7102_s27 + $0xb40] sm:$0xf]  ;;  %v5655_v10 = vor.u32 %v6720_v2, %v5654_v1  ;;  %v6746_v1 = vld [vmem:[%s7102_s27 + $0xb14] sm:$0xf0]  ;;  %v5822_v2 = vld [vmem:[%s7102_s27 + $0xb90] sm:$0xf] }
  0xbd   : > { %3626 = vmatpush.bf16.msra.mxu0 %v5383_v39  ;;  %v6740_v39 = vld [vmem:[%s7102_s27 + $0xae4] sm:$0xf0]  ;;  %v5846_v8 = vld [vmem:[%s7102_s27 + $0xbc0] sm:$0xf] }
  0xbe   : > { %3639 = vmatpush.bf16.msra.mxu1 %v5447_v60  ;;  %v5798_v60 = vld [vmem:[%s7102_s27 + $0xb60] sm:$0xf]  ;;  %v5735_v47 = vor.u32 %v6740_v39, %v5734_v35 }
  0xbf   : > { %3652 = vmatpush.bf16.msra.mxu2 %v5511_v40  ;;  %v6756_v40 = vld [vmem:[%s7102_s27 + $0xb64] sm:$0xf0]  ;;  %v5638_v35 = vld [vmem:[%s7102_s27 + $0xa20] sm:$0xf] }
  0xc0   : > { %3665 = vmatpush.bf16.msra.mxu3 %v5575_v45  ;;  %v6772_v45 = vld [vmem:[%s7102_s27 + $0xbe4] sm:$0xf0]  ;;  %v5799_v48 = vor.u32 %v6756_v40, %v5798_v60  ;;  %v5702_v40 = vld [vmem:[%s7102_s27 + $0xaa0] sm:$0xf] }
  0xc1   : > { %3627 = vmatpush.bf16.msra.mxu0 %v5375_v51  ;;  %v5726_v51 = vld [vmem:[%s7102_s27 + $0xad0] sm:$0xf]  ;;  %v5863_v52 = vor.u32 %v6772_v45, %v5862_v22  ;;  %v6716_v60 = vld [vmem:[%s7102_s27 + $0xa24] sm:$0xf0]  ;;  %v847_v22 = vld [vmem:[%s7590_s18] sm:$0x3] }
  0xc2   : > { %3640 = vmatpush.bf16.msra.mxu1 %v5439_v55  ;;  %v6754_v55 = vld [vmem:[%s7102_s27 + $0xb54] sm:$0xf0]  ;;  %v5727_v61 = vor.u32 %v6738_v53, %v5726_v51  ;;  %v5639_v51 = vor.u32 %v6716_v60, %v5638_v35  ;;  %v849_v53 = vperm.slane %v847_v22, 0 }
  0xc3   : > { %3653 = vmatpush.bf16.msra.mxu2 %v5503_v56  ;;  %v5854_v56 = vld [vmem:[%s7102_s27 + $0xbd0] sm:$0xf] }
  0xc4   : > { %3666 = vmatpush.bf16.msra.mxu3 %v5567_v0  ;;  %v5791_v0 = vor.u32 %v6754_v55, %v5790_v54  ;;  %v5855_v4 = vor.u32 %v6770_v57, %v5854_v56  ;;  %v6714_v56 = vld [vmem:[%s7102_s27 + $0xa14] sm:$0xf0]  ;;  %v5694_v57 = vld [vmem:[%s7102_s27 + $0xa90] sm:$0xf] }
  0xc5   : > { %3628 = vmatpush.bf16.msra.mxu0 %v5367_v7  ;;  %v6752_v7 = vld [vmem:[%s7102_s27 + $0xb44] sm:$0xf0] }
  0xc6   : > { %3641 = vmatpush.bf16.msra.mxu1 %v5431_v11  ;;  %v5719_v11 = vor.u32 %v6736_v5, %v5718_v3  ;;  %v6762_v3 = vld [vmem:[%s7102_s27 + $0xb94] sm:$0xf0]  ;;  %v6712_v5 = vld [vmem:[%s7102_s27 + $0xa04] sm:$0xf0] }
  0xc7   : > { %3654 = vmatpush.bf16.msra.mxu2 %v5495_v12  ;;  %v5783_v12 = vor.u32 %v6752_v7, %v5782_v6 }
  0xc8   : > { %3667 = vmatpush.bf16.msra.mxu3 %v5559_v15  ;;  %3629 = vmatmul.bf16.vlgmr.msra.gmra.mxu0 %v7541_v59  ;;  %v5710_v15 = vld [vmem:[%s7102_s27 + $0xab0] sm:$0xf] }
  0xc9   : > { %3673 = vmatpush.bf16.msrb.mxu0 %v5679_v16  ;;  %3642 = vmatmul.bf16.vlgmr.msra.gmra.mxu1 %v7548_v43  ;;  %v5847_v16 = vor.u32 %v6768_v9, %v5846_v8  ;;  %v5686_v8 = vld [vmem:[%s7102_s27 + $0xa80] sm:$0xf]  ;;  %v6728_v9 = vld [vmem:[%s7102_s27 + $0xa84] sm:$0xf0] }
  0xca   : > { %3686 = vmatpush.bf16.msrb.mxu1 %v5743_v23  ;;  %3655 = vmatmul.bf16.vlgmr.msra.gmra.mxu2 %v7546_v62  ;;  %v6750_v23 = vld [vmem:[%s7102_s27 + $0xb34] sm:$0xf0] }
  0xcb   : > { %3699 = vmatpush.bf16.msrb.mxu2 %v5807_v25  ;;  %3668 = vmatmul.bf16.vlgmr.msra.gmra.mxu3 %v7552_v46  ;;  %v5838_v25 = vld [vmem:[%s7102_s27 + $0xbb0] sm:$0xf]  ;;  %v5775_v39 = vor.u32 %v6750_v23, %v5774_v20  ;;  %v5823_v23 = vor.u32 %v6762_v3, %v5822_v2 }
  0xcc   : > { %3712 = vmatpush.bf16.msrb.mxu3 %v5871_v19  ;;  %v5711_v19 = vor.u32 %v6734_v17, %v5710_v15  ;;  %v5839_v45 = vor.u32 %v6766_v29, %v5838_v25  ;;  %v3422_v6 = vpop.f32.mrf.mxu0  ;;  %v6760_v17 = vld [vmem:[%s7102_s27 + $0xb84] sm:$0xf0]  ;;  %v5934_v20 = vld [vmem:[%s7102_s27 + $0xc70] sm:$0xf]  ;;  %v6790_v25 = vld [vmem:[%s7102_s27 + $0xc74] sm:$0xf0] }
  0xcd   : > { %3674 = vmatpush.bf16.msrb.mxu0 %v5671_v63  ;;  %v6732_v63 = vld [vmem:[%s7102_s27 + $0xaa4] sm:$0xf0]  ;;  %v3435_v13 = vpop.f32.mrf.mxu1  ;;  %v5998_v29 = vld [vmem:[%s7102_s27 + $0xcf0] sm:$0xf] }
  0xce   : > { %3687 = vmatpush.bf16.msrb.mxu1 %v5735_v47  ;;  %v5766_v47 = vld [vmem:[%s7102_s27 + $0xb20] sm:$0xf]  ;;  %v5703_v54 = vor.u32 %v6732_v63, %v5702_v40  ;;  %v220_v40 = vld [vmem:[%s8381_s0 + $0x30] sm:$0xff]  ;;  %v6838_v63 = vld [vmem:[%s7102_s27 + $0xdf4] sm:$0xf0] }
  0xcf   : > { %3700 = vmatpush.bf16.msrb.mxu2 %v5799_v48  ;;  %v6748_v48 = vld [vmem:[%s7102_s27 + $0xb24] sm:$0xf0]  ;;  %261 = vst [vmem:[#allocation1] ss:$4 sm:$0xff] %v220_v40  ;;  %v6834_v40 = vld [vmem:[%s7102_s27 + $0xdd4] sm:$0xf0] }
  0xd0   : > { %3713 = vmatpush.bf16.msrb.mxu3 %v5863_v52  ;;  %v5630_v52 = vld [vmem:[%s7102_s27 + $0xa10] sm:$0xf]  ;;  %v5767_v55 = vor.u32 %v6748_v48, %v5766_v47  ;;  %v5687_v48 = vor.u32 %v6728_v9, %v5686_v8  ;;  %v6820_v8 = vld [vmem:[%s7102_s27 + $0xd64] sm:$0xf0] }
  0xd1   : > { %3675 = vmatpush.bf16.msrb.mxu0 %v5663_v58  ;;  %v6730_v58 = vld [vmem:[%s7102_s27 + $0xa94] sm:$0xf0]  ;;  %v5631_v7 = vor.u32 %v6714_v56, %v5630_v52  ;;  %v3448_v60 = vpop.f32.mrf.mxu2 }
  0xd2   : > { %3688 = vmatpush.bf16.msrb.mxu1 %v5727_v61  ;;  %v5831_v61 = vor.u32 %v6764_v50, %v5830_v49  ;;  %v5695_v14 = vor.u32 %v6730_v58, %v5694_v57  ;;  %v257_v50 = vld.sshfl [vmem:[#allocation1 + $0x20] sm:$0xff pattern:$0x73625140] }
  0xd3   : > { %3701 = vmatpush.bf16.msrb.mxu2 %v5791_v0  ;;  %v5758_v0 = vld [vmem:[%s7102_s27 + $0xb10] sm:$0xf] }
  0xd4   : > { %3714 = vmatpush.bf16.msrb.mxu3 %v5855_v4  ;;  %v5622_v4 = vld [vmem:[%s7102_s27 + $0xa00] sm:$0xf]  ;;  %v5759_v15 = vor.u32 %v6746_v1, %v5758_v0  ;;  %v3461_v56 = vpop.f32.mrf.mxu3  ;;  %v6788_v0 = vld [vmem:[%s7102_s27 + $0xc64] sm:$0xf0]  ;;  %v3424_v3 = vpop.f32.mrf.mxu0 }
  0xd5   : > { %3676 = vmatpush.bf16.msrb.mxu0 %v5655_v10  ;;  %v5750_v10 = vld [vmem:[%s7102_s27 + $0xb00] sm:$0xf]  ;;  %v5623_v22 = vor.u32 %v6712_v5, %v5622_v4  ;;  %v7635_v5 = vpack.c.bf16 %v257_v50, %v257_v50  ;;  %v3437_v9 = vpop.f32.mrf.mxu1  ;;  %v6782_v3 = vld [vmem:[%s7102_s27 + $0xc34] sm:$0xf0] }
  0xd6   : > { %3689 = vmatpush.bf16.msrb.mxu1 %v5719_v11  ;;  %v6744_v11 = vld [vmem:[%s7102_s27 + $0xb04] sm:$0xf0]  ;;  %v5990_v1 = vld [vmem:[%s7102_s27 + $0xce0] sm:$0xf]  ;;  %v6798_v9 = vld [vmem:[%s7102_s27 + $0xcb4] sm:$0xf0] }
  0xd7   : > { %3702 = vmatpush.bf16.msrb.mxu2 %v5783_v12  ;;  %v3423_v12 = vadd.f32 %v3422_v6, %v849_v53  ;;  %v5751_v49 = vor.u32 %v6744_v11, %v5750_v10  ;;  %v5935_v53 = vor.u32 %v6790_v25, %v5934_v20  ;;  %v6804_v6 = vld [vmem:[%s7102_s27 + $0xce4] sm:$0xf0]  ;;  %v5918_v20 = vld [vmem:[%s7102_s27 + $0xc50] sm:$0xf]  ;;  %v5974_v50 = vld [vmem:[%s7102_s27 + $0xcc0] sm:$0xf] }
  0xd8   : > { %3715 = vmatpush.bf16.msrb.mxu3 %v5847_v16  ;;  %v5814_v16 = vld [vmem:[%s7102_s27 + $0xb80] sm:$0xf]  ;;  %v5982_v25 = vld [vmem:[%s7102_s27 + $0xcd0] sm:$0xf] }
  0xd9   : > { %3677 = vmatpush.bf16.msrb.mxu0 %v5647_v34  ;;  %v6806_v34 = vld [vmem:[%s7102_s27 + $0xcf4] sm:$0xf0]  ;;  %v3436_v35 = vadd.f32 %v3435_v13, %v3423_v12  ;;  %v5815_v52 = vor.u32 %v6760_v17, %v5814_v16  ;;  %v6118_v12 = vld [vmem:[%s7102_s27 + $0xde0] sm:$0xf]  ;;  %v6836_v13 = vld [vmem:[%s7102_s27 + $0xde4] sm:$0xf0]  ;;  %v5991_v16 = vor.u32 %v6804_v6, %v5990_v1 }
  0xda   : > { %3690 = vmatpush.bf16.msrb.mxu1 %v5711_v19  ;;  %v6062_v19 = vld [vmem:[%s7102_s27 + $0xd70] sm:$0xf]  ;;  %v5999_v57 = vor.u32 %v6806_v34, %v5998_v29  ;;  %v3450_v29 = vpop.f32.mrf.mxu2  ;;  %v6119_v34 = vor.u32 %v6836_v13, %v6118_v12  ;;  %v6814_v13 = vld [vmem:[%s7102_s27 + $0xd34] sm:$0xf0] }
  0xdb   : > { %3703 = vmatpush.bf16.msrb.mxu2 %v5775_v39  ;;  %v6822_v39 = vld [vmem:[%s7102_s27 + $0xd74] sm:$0xf0]  ;;  %v3449_v47 = vadd.f32 %v3448_v60, %v3436_v35  ;;  %v6110_v60 = vld [vmem:[%s7102_s27 + $0xdd0] sm:$0xf]  ;;  %v6780_v29 = vld [vmem:[%s7102_s27 + $0xc24] sm:$0xf0] }
  0xdc   : > { %3716 = vmatpush.bf16.msrb.mxu3 %v5839_v45  ;;  %v6126_v45 = vld [vmem:[%s7102_s27 + $0xdf0] sm:$0xf]  ;;  %v6063_v58 = vor.u32 %v6822_v39, %v6062_v19  ;;  %v6802_v35 = vld [vmem:[%s7102_s27 + $0xcd4] sm:$0xf0] }
  0xdd   : > { %3678 = vmatpush.bf16.msrb.mxu0 %v5639_v51  ;;  %v259_v51 = vld.sshfl [vmem:[#allocation1 + $0x30] sm:$0xff pattern:$0x73625140]  ;;  %v7633_v2 = vadd.f32 %v3461_v56, %v3449_v47  ;;  %v6127_v4 = vor.u32 %v6838_v63, %v6126_v45  ;;  %v6046_v19 = vld [vmem:[%s7102_s27 + $0xd50] sm:$0xf]  ;;  %v3463_v45 = vpop.f32.mrf.mxu3  ;;  %v5983_v63 = vor.u32 %v6802_v35, %v5982_v25 }
  0xde   : > { %3691 = vmatpush.bf16.msrb.mxu1 %v5703_v54  ;;  %v258_v54 = vld.sshfl [vmem:[#allocation1 + $0x28] sm:$0xff pattern:$0x73625140]  ;;  %v7640_v10 = vpack.c.bf16 %v259_v51, %v259_v51  ;;  %v6818_v39 = vld [vmem:[%s7102_s27 + $0xd54] sm:$0xf0]  ;;  %v6111_v51 = vor.u32 %v6834_v40, %v6110_v60 }
  0xdf   : > { %3704 = vmatpush.bf16.msrb.mxu2 %v5767_v55  ;;  %v260_v55 = vld.sshfl [vmem:[#allocation1 + $0x38] sm:$0xff pattern:$0x73625140]  ;;  %v7642_v11 = vpack.c.bf16 %v258_v54, %v258_v54  ;;  %v6047_v47 = vor.u32 %v6818_v39, %v6046_v19  ;;  %v6816_v54 = vld [vmem:[%s7102_s27 + $0xd44] sm:$0xf0] }
  0xe0   : > { %3717 = vmatpush.bf16.msrb.mxu3 %v5831_v61  ;;  %v5926_v61 = vld [vmem:[%s7102_s27 + $0xc60] sm:$0xf]  ;;  %v6832_v56 = vld [vmem:[%s7102_s27 + $0xdc4] sm:$0xf0]  ;;  %v5902_v1 = vld [vmem:[%s7102_s27 + $0xc30] sm:$0xf] }
  0xe1   : > { %3679 = vmatpush.bf16.msrb.mxu0 %v5631_v7  ;;  %v6054_v7 = vld [vmem:[%s7102_s27 + $0xd60] sm:$0xf]  ;;  %v6030_v12 = vld [vmem:[%s7102_s27 + $0xd30] sm:$0xf]  ;;  %v6796_v39 = vld [vmem:[%s7102_s27 + $0xca4] sm:$0xf0] }
  0xe2   : > { %3692 = vmatpush.bf16.msrb.mxu1 %v5695_v14  ;;  %v7646_v14 = vpack.c.bf16 %v260_v55, %v260_v55  ;;  %v6055_v17 = vor.u32 %v6820_v8, %v6054_v7  ;;  %v6102_v55 = vld [vmem:[%s7102_s27 + $0xdc0] sm:$0xf]  ;;  %v6812_v40 = vld [vmem:[%s7102_s27 + $0xd24] sm:$0xf0] }
  0xe3   : > { %3705 = vmatpush.bf16.msrb.mxu2 %v5759_v15  ;;  %v5927_v15 = vor.u32 %v6788_v0, %v5926_v61  ;;  %v6103_v8 = vor.u32 %v6832_v56, %v6102_v55  ;;  %v5894_v25 = vld [vmem:[%s7102_s27 + $0xc20] sm:$0xf]  ;;  %v5950_v55 = vld [vmem:[%s7102_s27 + $0xc90] sm:$0xf]  ;;  %v6794_v56 = vld [vmem:[%s7102_s27 + $0xc94] sm:$0xf0] }
  0xe4   : > { %3718 = vmatpush.bf16.msrb.mxu3 %v5823_v23  ;;  %v6786_v23 = vld [vmem:[%s7102_s27 + $0xc54] sm:$0xf0]  ;;  %v6022_v60 = vld [vmem:[%s7102_s27 + $0xd20] sm:$0xf] }
  0xe5   : > { %3680 = vmatpush.bf16.msrb.mxu0 %v5623_v22  ;;  %v5919_v22 = vor.u32 %v6786_v23, %v5918_v20  ;;  %v5903_v20 = vor.u32 %v6782_v3, %v5902_v1  ;;  %v6031_v23 = vor.u32 %v6814_v13, %v6030_v12  ;;  %v6078_v1 = vld [vmem:[%s7102_s27 + $0xd90] sm:$0xf]  ;;  %v6826_v3 = vld [vmem:[%s7102_s27 + $0xd94] sm:$0xf0]  ;;  %v6006_v12 = vld [vmem:[%s7102_s27 + $0xd00] sm:$0xf] }
  0xe6   : > { %3693 = vmatpush.bf16.msrb.mxu1 %v5687_v48  ;;  %v5910_v48 = vld [vmem:[%s7102_s27 + $0xc40] sm:$0xf]  ;;  %v3487_v7 = vpop.f32.mrf.mxu1  ;;  %v6808_v13 = vld [vmem:[%s7102_s27 + $0xd04] sm:$0xf0] }
  0xe7   : > { %3706 = vmatpush.bf16.msrb.mxu2 %v5751_v49  ;;  %v6784_v49 = vld [vmem:[%s7102_s27 + $0xc44] sm:$0xf0] }
  0xe8   : > { %3719 = vmatpush.bf16.msrb.mxu3 %v5815_v52  ;;  %3681 = vmatmul.bf16.vlgmr.msrb.gmra.mxu0 %v7635_v5  ;;  %v6800_v52 = vld [vmem:[%s7102_s27 + $0xcc4] sm:$0xf0] }
  0xe9   : > { %3725 = vmatpush.bf16.msra.mxu0 %v5935_v53  ;;  %3694 = vmatmul.bf16.vlgmr.msrb.gmra.mxu1 %v7642_v11  ;;  %v6038_v53 = vld [vmem:[%s7102_s27 + $0xd40] sm:$0xf]  ;;  %v5975_v61 = vor.u32 %v6800_v52, %v5974_v50  ;;  %v5886_v50 = vld [vmem:[%s7102_s27 + $0xc10] sm:$0xf] }
  0xea   : > { %3738 = vmatpush.bf16.msra.mxu1 %v5999_v57  ;;  %3707 = vmatmul.bf16.vlgmr.msrb.gmra.mxu2 %v7640_v10  ;;  %v5911_v57 = vor.u32 %v6784_v49, %v5910_v48  ;;  %v6039_v0 = vor.u32 %v6816_v54, %v6038_v53  ;;  %v5895_v48 = vor.u32 %v6780_v29, %v5894_v25  ;;  %v6778_v54 = vld [vmem:[%s7102_s27 + $0xc14] sm:$0xf0] }
  0xeb   : > { %3751 = vmatpush.bf16.msra.mxu2 %v6063_v58  ;;  %3720 = vmatmul.bf16.vlgmr.msrb.gmra.mxu3 %v7646_v14  ;;  %v3474_v58 = vpop.f32.mrf.mxu0  ;;  %v6023_v53 = vor.u32 %v6812_v40, %v6022_v60  ;;  %v6079_v25 = vor.u32 %v6826_v3, %v6078_v1  ;;  %v6854_v29 = vld [vmem:[%s7102_s27 + $0xe74] sm:$0xf0]  ;;  %v221_v40 = vld [vmem:[%s8381_s0 + $0x38] sm:$0xff] }
  0xec   : > { %3764 = vmatpush.bf16.msra.mxu3 %v6127_v4  ;;  %v5966_v4 = vld [vmem:[%s7102_s27 + $0xcb0] sm:$0xf]  ;;  %v3475_v6 = vadd.f32 %v3474_v58, %v7633_v2  ;;  %v6886_v60 = vld [vmem:[%s7102_s27 + $0xf74] sm:$0xf0]  ;;  %262 = vst [vmem:[#allocation1 + $0x20] ss:$4 sm:$0xff] %v221_v40 }
  0xed   : > { %3726 = vmatpush.bf16.msra.mxu0 %v5927_v15  ;;  %v6094_v15 = vld [vmem:[%s7102_s27 + $0xdb0] sm:$0xf]  ;;  %v5967_v2 = vor.u32 %v6798_v9, %v5966_v4  ;;  %v3500_v35 = vpop.f32.mrf.mxu2  ;;  %v5878_v4 = vld [vmem:[%s7102_s27 + $0xc00] sm:$0xf]  ;;  %v6792_v9 = vld [vmem:[%s7102_s27 + $0xc84] sm:$0xf0] }
  0xee   : > { %3739 = vmatpush.bf16.msra.mxu1 %v5991_v16  ;;  %v6830_v16 = vld [vmem:[%s7102_s27 + $0xdb4] sm:$0xf0]  ;;  %v3513_v45 = vpop.f32.mrf.mxu3 }
  0xef   : > { %3752 = vmatpush.bf16.msra.mxu2 %v6055_v17  ;;  %v3488_v17 = vadd.f32 %v3487_v7, %v3475_v6  ;;  %v6095_v19 = vor.u32 %v6830_v16, %v6094_v15  ;;  %v6776_v6 = vld [vmem:[%s7102_s27 + $0xc04] sm:$0xf0]  ;;  %v5887_v7 = vor.u32 %v6778_v54, %v5886_v50  ;;  %v5951_v15 = vor.u32 %v6794_v56, %v5950_v55  ;;  %v263_v50 = vld.sshfl [vmem:[#allocation1] sm:$0xff pattern:$0x73625140] }
  0xf0   : > { %3765 = vmatpush.bf16.msra.mxu3 %v6119_v34  ;;  %v5958_v34 = vld [vmem:[%s7102_s27 + $0xca0] sm:$0xf]  ;;  %v266_v55 = vld.sshfl [vmem:[#allocation1 + $0x18] sm:$0xff pattern:$0x73625140]  ;;  %v7717_v3 = vpack.c.bf16 %v263_v50, %v263_v50 }
  0xf1   : > { %3727 = vmatpush.bf16.msra.mxu0 %v5919_v22  ;;  %v3501_v22 = vadd.f32 %v3500_v35, %v3488_v17  ;;  %v5959_v52 = vor.u32 %v6796_v39, %v5958_v34  ;;  %v6070_v17 = vld [vmem:[%s7102_s27 + $0xd80] sm:$0xf]  ;;  %v6254_v34 = vld [vmem:[%s7102_s27 + $0xef0] sm:$0xf]  ;;  %v6870_v35 = vld [vmem:[%s7102_s27 + $0xef4] sm:$0xf0] }
  0xf2   : > { %3740 = vmatpush.bf16.msra.mxu1 %v5983_v63  ;;  %v6086_v63 = vld [vmem:[%s7102_s27 + $0xda0] sm:$0xf]  ;;  %v6318_v39 = vld [vmem:[%s7102_s27 + $0xf70] sm:$0xf]  ;;  %v6255_v56 = vor.u32 %v6870_v35, %v6254_v34  ;;  %v6866_v34 = vld [vmem:[%s7102_s27 + $0xed4] sm:$0xf0] }
  0xf3   : > { %3753 = vmatpush.bf16.msra.mxu2 %v6047_v47  ;;  %v6828_v47 = vld [vmem:[%s7102_s27 + $0xda4] sm:$0xf0]  ;;  %v7685_v49 = vadd.f32 %v3513_v45, %v3501_v22  ;;  %v5879_v22 = vor.u32 %v6776_v6, %v5878_v4  ;;  %v6382_v45 = vld [vmem:[%s7102_s27 + $0xff0] sm:$0xf]  ;;  %v6310_v6 = vld [vmem:[%s7102_s27 + $0xf60] sm:$0xf] }
  0xf4   : > { %3766 = vmatpush.bf16.msra.mxu3 %v6111_v51  ;;  %v3476_v51 = vpop.f32.mrf.mxu0  ;;  %v6087_v58 = vor.u32 %v6828_v47, %v6086_v63  ;;  %v6902_v63 = vld [vmem:[%s7102_s27 + $0xff4] sm:$0xf0]  ;;  %v264_v54 = vld.sshfl [vmem:[#allocation1 + $0x8] sm:$0xff pattern:$0x73625140] }
  0xf5   : > { %3728 = vmatpush.bf16.msra.mxu0 %v5911_v57  ;;  %v3489_v57 = vpop.f32.mrf.mxu1  ;;  %v265_v51 = vld.sshfl [vmem:[#allocation1 + $0x10] sm:$0xff pattern:$0x73625140]  ;;  %v6383_v1 = vor.u32 %v6902_v63, %v6382_v45  ;;  %v6302_v35 = vld [vmem:[%s7102_s27 + $0xf50] sm:$0xf] }
  0xf6   : > { %3741 = vmatpush.bf16.msra.mxu1 %v5975_v61  ;;  %v6014_v61 = vld [vmem:[%s7102_s27 + $0xd10] sm:$0xf]  ;;  %v6319_v57 = vor.u32 %v6886_v60, %v6318_v39  ;;  %v6868_v4 = vld [vmem:[%s7102_s27 + $0xee4] sm:$0xf0]  ;;  %v6898_v60 = vld [vmem:[%s7102_s27 + $0xfd4] sm:$0xf0] }
  0xf7   : > { %3754 = vmatpush.bf16.msra.mxu2 %v6039_v0  ;;  %v6810_v0 = vld [vmem:[%s7102_s27 + $0xd14] sm:$0xf0]  ;;  %v6366_v39 = vld [vmem:[%s7102_s27 + $0xfd0] sm:$0xf]  ;;  %v6166_v63 = vld [vmem:[%s7102_s27 + $0xe40] sm:$0xf] }
  0xf8   : > { %3767 = vmatpush.bf16.msra.mxu3 %v6103_v8  ;;  %v5942_v8 = vld [vmem:[%s7102_s27 + $0xc80] sm:$0xf]  ;;  %v6015_v16 = vor.u32 %v6810_v0, %v6014_v61  ;;  %v6852_v61 = vld [vmem:[%s7102_s27 + $0xe64] sm:$0xf0]  ;;  %v6367_v50 = vor.u32 %v6898_v60, %v6366_v39 }
  0xf9   : > { %3729 = vmatpush.bf16.msra.mxu0 %v5903_v20  ;;  %v6824_v20 = vld [vmem:[%s7102_s27 + $0xd84] sm:$0xf0]  ;;  %v5943_v47 = vor.u32 %v6792_v9, %v5942_v8  ;;  %v6246_v0 = vld [vmem:[%s7102_s27 + $0xee0] sm:$0xf]  ;;  %v7722_v8 = vpack.c.bf16 %v265_v51, %v265_v51  ;;  %v7724_v9 = vpack.c.bf16 %v264_v54, %v264_v54 }
  0xfa   : > { %3742 = vmatpush.bf16.msra.mxu1 %v5967_v2  ;;  %v6190_v2 = vld [vmem:[%s7102_s27 + $0xe70] sm:$0xf]  ;;  %v6864_v51 = vld [vmem:[%s7102_s27 + $0xec4] sm:$0xf0] }
  0xfb   : > { %3755 = vmatpush.bf16.msra.mxu2 %v6031_v23  ;;  %v3502_v23 = vpop.f32.mrf.mxu2 }
  0xfc   : > { %3768 = vmatpush.bf16.msra.mxu3 %v6095_v19  ;;  %v3515_v19 = vpop.f32.mrf.mxu3  ;;  %v6850_v23 = vld [vmem:[%s7102_s27 + $0xe54] sm:$0xf0] }
  0xfd   : > { %3730 = vmatpush.bf16.msra.mxu0 %v5895_v48  ;;  %v6007_v48 = vor.u32 %v6808_v13, %v6006_v12  ;;  %v6374_v12 = vld [vmem:[%s7102_s27 + $0xfe0] sm:$0xf]  ;;  %v6900_v13 = vld [vmem:[%s7102_s27 + $0xfe4] sm:$0xf0]  ;;  %v6882_v19 = vld [vmem:[%s7102_s27 + $0xf54] sm:$0xf0] }
  0xfe   : > { %3743 = vmatpush.bf16.msra.mxu1 %v5959_v52  ;;  %v6071_v52 = vor.u32 %v6824_v20, %v6070_v17  ;;  %v6247_v17 = vor.u32 %v6868_v4, %v6246_v0  ;;  %v6303_v45 = vor.u32 %v6882_v19, %v6302_v35  ;;  %v6158_v4 = vld [vmem:[%s7102_s27 + $0xe30] sm:$0xf]  ;;  %v6844_v35 = vld [vmem:[%s7102_s27 + $0xe24] sm:$0xf0]  ;;  %v6214_v19 = vld [vmem:[%s7102_s27 + $0xea0] sm:$0xf] }
  0xff   : > { %3756 = vmatpush.bf16.msra.mxu2 %v6023_v53  ;;  %v6191_v53 = vor.u32 %v6854_v29, %v6190_v2  ;;  %v6174_v2 = vld [vmem:[%s7102_s27 + $0xe50] sm:$0xf]  ;;  %v6375_v29 = vor.u32 %v6900_v13, %v6374_v12 }
 0x100   : > { %3769 = vmatpush.bf16.msra.mxu3 %v6087_v58  ;;  %v6182_v58 = vld [vmem:[%s7102_s27 + $0xe60] sm:$0xf]  ;;  %v6175_v40 = vor.u32 %v6850_v23, %v6174_v2  ;;  %v6894_v2 = vld [vmem:[%s7102_s27 + $0xfb4] sm:$0xf0] }
 0x101   : > { %3731 = vmatpush.bf16.msra.mxu0 %v5887_v7  ;;  %v6884_v7 = vld [vmem:[%s7102_s27 + $0xf64] sm:$0xf0] }
 0x102   : > { %3744 = vmatpush.bf16.msra.mxu1 %v5951_v15  ;;  %v7728_v15 = vpack.c.bf16 %v266_v55, %v266_v55  ;;  %v6311_v20 = vor.u32 %v6884_v7, %v6310_v6  ;;  %v6358_v55 = vld [vmem:[%s7102_s27 + $0xfc0] sm:$0xf]  ;;  %v6846_v6 = vld [vmem:[%s7102_s27 + $0xe34] sm:$0xf0]  ;;  %v6222_v7 = vld [vmem:[%s7102_s27 + $0xeb0] sm:$0xf] }
 0x103   : > { %3757 = vmatpush.bf16.msra.mxu2 %v6015_v16  ;;  %v6183_v16 = vor.u32 %v6852_v61, %v6182_v58  ;;  %v6159_v23 = vor.u32 %v6846_v6, %v6158_v4  ;;  %v6270_v4 = vld [vmem:[%s7102_s27 + $0xf10] sm:$0xf]  ;;  %v6874_v6 = vld [vmem:[%s7102_s27 + $0xf14] sm:$0xf0] }
 0x104   : > { %3770 = vmatpush.bf16.msra.mxu3 %v6079_v25  ;;  %v6238_v25 = vld [vmem:[%s7102_s27 + $0xed0] sm:$0xf] }
 0x105   : > { %3732 = vmatpush.bf16.msra.mxu0 %v5879_v22  ;;  %v6239_v22 = vor.u32 %v6866_v34, %v6238_v25  ;;  %v3526_v54 = vpop.f32.mrf.mxu0  ;;  %v6150_v34 = vld [vmem:[%s7102_s27 + $0xe20] sm:$0xf] }
 0x106   : > { %3745 = vmatpush.bf16.msra.mxu1 %v5943_v47  ;;  %v6848_v47 = vld [vmem:[%s7102_s27 + $0xe44] sm:$0xf0]  ;;  %v3539_v61 = vpop.f32.mrf.mxu1 }
 0x107   : > { %3758 = vmatpush.bf16.msra.mxu2 %v6007_v48  ;;  %v6230_v48 = vld [vmem:[%s7102_s27 + $0xec0] sm:$0xf]  ;;  %v6167_v58 = vor.u32 %v6848_v47, %v6166_v63 }
 0x108   : > { %3771 = vmatpush.bf16.msra.mxu3 %v6071_v52  ;;  %3733 = vmatmul.bf16.vlgmr.msra.gmra.mxu0 %v7717_v3  ;;  %v6294_v52 = vld [vmem:[%s7102_s27 + $0xf40] sm:$0xf]  ;;  %v6231_v0 = vor.u32 %v6864_v51, %v6230_v48 }
 0x109   : > { %3777 = vmatpush.bf16.msrb.mxu0 %v6191_v53  ;;  %3746 = vmatmul.bf16.vlgmr.msra.gmra.mxu1 %v7724_v9  ;;  %v6880_v53 = vld [vmem:[%s7102_s27 + $0xf44] sm:$0xf0]  ;;  %v6342_v48 = vld [vmem:[%s7102_s27 + $0xfa0] sm:$0xf] }
 0x10a   : > { %3790 = vmatpush.bf16.msrb.mxu1 %v6255_v56  ;;  %3759 = vmatmul.bf16.vlgmr.msra.gmra.mxu2 %v7722_v8  ;;  %v6896_v56 = vld [vmem:[%s7102_s27 + $0xfc4] sm:$0xf0] }
 0x10b   : > { %3803 = vmatpush.bf16.msrb.mxu2 %v6319_v57  ;;  %3772 = vmatmul.bf16.vlgmr.msra.gmra.mxu3 %v7728_v15  ;;  %v3527_v57 = vadd.f32 %v3526_v54, %v7685_v49  ;;  %v6359_v12 = vor.u32 %v6896_v56, %v6358_v55  ;;  %v6878_v49 = vld [vmem:[%s7102_s27 + $0xf34] sm:$0xf0] }
 0x10c   : > { %3816 = vmatpush.bf16.msrb.mxu3 %v6383_v1  ;;  %v6295_v1 = vor.u32 %v6880_v53, %v6294_v52  ;;  %v6151_v52 = vor.u32 %v6844_v35, %v6150_v34  ;;  %v6326_v34 = vld [vmem:[%s7102_s27 + $0xf80] sm:$0xf] }
 0x10d   : > { %3778 = vmatpush.bf16.msrb.mxu0 %v6183_v16  ;;  %v3540_v13 = vadd.f32 %v3539_v61, %v3527_v57  ;;  %v6862_v16 = vld [vmem:[%s7102_s27 + $0xeb4] sm:$0xf0]  ;;  %v3552_v60 = vpop.f32.mrf.mxu2  ;;  %v3528_v51 = vpop.f32.mrf.mxu0  ;;  %v6142_v57 = vld [vmem:[%s7102_s27 + $0xe10] sm:$0xf] }
 0x10e   : > { %3791 = vmatpush.bf16.msrb.mxu1 %v6247_v17  ;;  %v6286_v17 = vld [vmem:[%s7102_s27 + $0xf30] sm:$0xf]  ;;  %v6223_v25 = vor.u32 %v6862_v16, %v6222_v7  ;;  %v3565_v47 = vpop.f32.mrf.mxu3  ;;  %v3541_v53 = vpop.f32.mrf.mxu1  ;;  %v6453_v51 = vld [vmem:[%s7102_s27 + $0x1f4] sm:$0xf] }
 0x10f   : > { %3804 = vmatpush.bf16.msrb.mxu2 %v6311_v20  ;;  %v6350_v20 = vld [vmem:[%s7102_s27 + $0xfb0] sm:$0xf]  ;;  %v3553_v63 = vadd.f32 %v3552_v60, %v3540_v13  ;;  %v6134_v13 = vld [vmem:[%s7102_s27 + $0xe00] sm:$0xf]  ;;  %v4400_v60 = vld [vmem:[%s7102_s27 + $0x78] sm:$0xf0] }
 0x110   : > { %3817 = vmatpush.bf16.msrb.mxu3 %v6375_v29  ;;  %v6287_v29 = vor.u32 %v6878_v49, %v6286_v17  ;;  %v6351_v39 = vor.u32 %v6894_v2, %v6350_v20  ;;  %v6206_v61 = vld [vmem:[%s7102_s27 + $0xe90] sm:$0xf]  ;;  %v6840_v17 = vld [vmem:[%s7102_s27 + $0xe04] sm:$0xf0]  ;;  %v6198_v49 = vld [vmem:[%s7102_s27 + $0xe80] sm:$0xf] }
 0x111   : > { %3779 = vmatpush.bf16.msrb.mxu0 %v6175_v40  ;;  %v6860_v40 = vld [vmem:[%s7102_s27 + $0xea4] sm:$0xf0]  ;;  %v7767_v54 = vadd.f32 %v3565_v47, %v3553_v63  ;;  %v6334_v7 = vld [vmem:[%s7102_s27 + $0xf90] sm:$0xf]  ;;  %v6437_v63 = vld [vmem:[%s7102_s27 + $0x174] sm:$0xf] }
 0x112   : > { %3792 = vmatpush.bf16.msrb.mxu1 %v6239_v22  ;;  %v6278_v22 = vld [vmem:[%s7102_s27 + $0xf20] sm:$0xf]  ;;  %v6215_v55 = vor.u32 %v6860_v40, %v6214_v19  ;;  %v6856_v20 = vld [vmem:[%s7102_s27 + $0xe84] sm:$0xf0] }
 0x113   : > { %3805 = vmatpush.bf16.msrb.mxu2 %v6303_v45  ;;  %v6876_v45 = vld [vmem:[%s7102_s27 + $0xf24] sm:$0xf0]  ;;  %v6199_v53 = vor.u32 %v6856_v20, %v6198_v49  ;;  %v4456_v49 = vld [vmem:[%s7102_s27 + $0xe8] sm:$0xf0]  ;;  %v6435_v20 = vld [vmem:[%s7102_s27 + $0x164] sm:$0xf] }
 0x114   : > { %3818 = vmatpush.bf16.msrb.mxu3 %v6367_v50  ;;  %v6892_v50 = vld [vmem:[%s7102_s27 + $0xfa4] sm:$0xf0]  ;;  %v6279_v56 = vor.u32 %v6876_v45, %v6278_v22  ;;  %v6421_v22 = vld [vmem:[%s7102_s27 + $0xf4] sm:$0xf]  ;;  %v4464_v45 = vld [vmem:[%s7102_s27 + $0xf8] sm:$0xf0] }
 0x115   : > { %3780 = vmatpush.bf16.msrb.mxu0 %v6167_v58  ;;  %v6842_v58 = vld [vmem:[%s7102_s27 + $0xe14] sm:$0xf0]  ;;  %v6888_v19 = vld [vmem:[%s7102_s27 + $0xf84] sm:$0xf0]  ;;  %v3554_v40 = vpop.f32.mrf.mxu2 }
 0x116   : > { %3793 = vmatpush.bf16.msrb.mxu1 %v6231_v0  ;;  %v6343_v0 = vor.u32 %v6892_v50, %v6342_v48  ;;  %v6143_v16 = vor.u32 %v6842_v58, %v6142_v57  ;;  %v3567_v47 = vpop.f32.mrf.mxu3  ;;  %v6135_v48 = vor.u32 %v6840_v17, %v6134_v13  ;;  %v4528_v50 = vld [vmem:[%s7102_s27 + $0x178] sm:$0xf0]  ;;  %v269_v57 = vld.sshfl [vmem:[#allocation1 + $0x30] sm:$0xff pattern:$0x73625140]  ;;  %v6327_v58 = vor.u32 %v6888_v19, %v6326_v34 }
 0x117   : > { %3806 = vmatpush.bf16.msrb.mxu2 %v6295_v1  ;;  %v6858_v1 = vld [vmem:[%s7102_s27 + $0xe94] sm:$0xf0]  ;;  %v6419_v13 = vld [vmem:[%s7102_s27 + $0xe4] sm:$0xf]  ;;  %v4584_v34 = vld [vmem:[%s7102_s27 + $0x1e8] sm:$0xf0] }
 0x118   : > { %3819 = vmatpush.bf16.msrb.mxu3 %v6359_v12  ;;  %v6890_v12 = vld [vmem:[%s7102_s27 + $0xf94] sm:$0xf0]  ;;  %v6207_v2 = vor.u32 %v6858_v1, %v6206_v61  ;;  %v270_v1 = vld.sshfl [vmem:[#allocation1 + $0x38] sm:$0xff pattern:$0x73625140] }
 0x119   : > { %3781 = vmatpush.bf16.msrb.mxu0 %v6159_v23  ;;  %v6271_v23 = vor.u32 %v6874_v6, %v6270_v4  ;;  %v6335_v35 = vor.u32 %v6890_v12, %v6334_v7  ;;  %v4467_v4 = vor.u32 %v6421_v22, %v4464_v45  ;;  %v4531_v6 = vor.u32 %v6437_v63, %v4528_v50  ;;  %v6403_v7 = vld [vmem:[%s7102_s27 + $0x64] sm:$0xf]  ;;  %v4392_v12 = vld [vmem:[%s7102_s27 + $0x68] sm:$0xf0]  ;;  %v6401_v40 = vld [vmem:[%s7102_s27 + $0x54] sm:$0xf] }
 0x11a   : > { %3794 = vmatpush.bf16.msrb.mxu1 %v6223_v25  ;;  %v6262_v25 = vld [vmem:[%s7102_s27 + $0xf00] sm:$0xf]  ;;  %v4395_v19 = vor.u32 %v6403_v7, %v4392_v12  ;;  %v4384_v22 = vld [vmem:[%s7102_s27 + $0x58] sm:$0xf0]  ;;  %v6417_v45 = vld [vmem:[%s7102_s27 + $0xd4] sm:$0xf] }
 0x11b   : > { %3807 = vmatpush.bf16.msrb.mxu2 %v6287_v29  ;;  %v6872_v29 = vld [vmem:[%s7102_s27 + $0xf04] sm:$0xf0]  ;;  %v4448_v47 = vld [vmem:[%s7102_s27 + $0xd8] sm:$0xf0]  ;;  %v6447_v12 = vld [vmem:[%s7102_s27 + $0x1c4] sm:$0xf] }
 0x11c   : > { %3820 = vmatpush.bf16.msrb.mxu3 %v6351_v39  ;;  %v6405_v39 = vld [vmem:[%s7102_s27 + $0x74] sm:$0xf]  ;;  %v4512_v50 = vld [vmem:[%s7102_s27 + $0x158] sm:$0xf0] }
 0x11d   : > { %3782 = vmatpush.bf16.msrb.mxu0 %v6151_v52  ;;  %v4592_v52 = vld [vmem:[%s7102_s27 + $0x1f8] sm:$0xf0]  ;;  %v4403_v61 = vor.u32 %v6405_v39, %v4400_v60  ;;  %v4459_v39 = vor.u32 %v6419_v13, %v4456_v49  ;;  %v4568_v13 = vld [vmem:[%s7102_s27 + $0x1c8] sm:$0xf0] }
 0x11e   : > { %3795 = vmatpush.bf16.msrb.mxu1 %v6215_v55  ;;  %v6263_v55 = vor.u32 %v6872_v29, %v6262_v25  ;;  %v6451_v29 = vld [vmem:[%s7102_s27 + $0x1e4] sm:$0xf] }
 0x11f   : > { %3808 = vmatpush.bf16.msrb.mxu2 %v6279_v56  ;;  %v267_v56 = vld.sshfl [vmem:[#allocation1 + $0x20] sm:$0xff pattern:$0x73625140]  ;;  %v4587_v63 = vor.u32 %v6451_v29, %v4584_v34  ;;  %v6397_v34 = vld [vmem:[%s7102_s27 + $0x34] sm:$0xf] }
 0x120   : > { %3821 = vmatpush.bf16.msrb.mxu3 %v6343_v0  ;;  %v268_v0 = vld.sshfl [vmem:[#allocation1 + $0x28] sm:$0xff pattern:$0x73625140]  ;;  %v7796_v17 = vpack.c.bf16 %v267_v56, %v267_v56 }
 0x121   : > { %3783 = vmatpush.bf16.msrb.mxu0 %v6143_v16  ;;  %v4595_v16 = vor.u32 %v6453_v51, %v4592_v52  ;;  %v7803_v25 = vpack.c.bf16 %v268_v0, %v268_v0  ;;  %v6449_v51 = vld [vmem:[%s7102_s27 + $0x1d4] sm:$0xf]  ;;  %v4576_v52 = vld [vmem:[%s7102_s27 + $0x1d8] sm:$0xf0] }
 0x122   : > { %3796 = vmatpush.bf16.msrb.mxu1 %v6207_v2  ;;  %v4520_v2 = vld [vmem:[%s7102_s27 + $0x168] sm:$0xf0]  ;;  %v4579_v0 = vor.u32 %v6449_v51, %v4576_v52  ;;  %v6395_v52 = vld [vmem:[%s7102_s27 + $0x24] sm:$0xf] }
 0x123   : > { %3809 = vmatpush.bf16.msrb.mxu2 %v6271_v23  ;;  %v7801_v23 = vpack.c.bf16 %v269_v57, %v269_v57  ;;  %v4523_v60 = vor.u32 %v6435_v20, %v4520_v2  ;;  %v6399_v57 = vld [vmem:[%s7102_s27 + $0x44] sm:$0xf] }
 0x124   : > { %3822 = vmatpush.bf16.msrb.mxu3 %v6335_v35  ;;  %v7807_v35 = vpack.c.bf16 %v270_v1, %v270_v1  ;;  %v4440_v1 = vld [vmem:[%s7102_s27 + $0xc8] sm:$0xf0] }
 0x125   : > { %3784 = vmatpush.bf16.msrb.mxu0 %v6135_v48  ;;  %v6433_v48 = vld [vmem:[%s7102_s27 + $0x154] sm:$0xf]  ;;  %v3578_v7 = vpop.f32.mrf.mxu0 }
 0x126   : > { %3797 = vmatpush.bf16.msrb.mxu1 %v6199_v53  ;;  %v4387_v53 = vor.u32 %v6401_v40, %v4384_v22  ;;  %v4515_v56 = vor.u32 %v6433_v48, %v4512_v50  ;;  %v3591_v20 = vpop.f32.mrf.mxu1  ;;  %v4432_v22 = vld [vmem:[%s7102_s27 + $0xb8] sm:$0xf0] }
 0x127   : > { %3810 = vmatpush.bf16.msrb.mxu2 %v6263_v55  ;;  %v4451_v55 = vor.u32 %v6417_v45, %v4448_v47  ;;  %v6429_v45 = vld [vmem:[%s7102_s27 + $0x134] sm:$0xf]  ;;  %v4560_v47 = vld [vmem:[%s7102_s27 + $0x1b8] sm:$0xf0] }
 0x128   : > { %3823 = vmatpush.bf16.msrb.mxu3 %v6327_v58  ;;  %3785 = vmatmul.bf16.vlgmr.msrb.gmra.mxu0 %v7796_v17  ;;  %v4376_v58 = vld [vmem:[%s7102_s27 + $0x48] sm:$0xf0] }
 0x129   : > { %3829 = vmatpush.bf16.msra.mxu0 %v4403_v61  ;;  %3798 = vmatmul.bf16.vlgmr.msrb.gmra.mxu1 %v7803_v25  ;;  %v6415_v61 = vld [vmem:[%s7102_s27 + $0xc4] sm:$0xf]  ;;  %v4379_v49 = vor.u32 %v6399_v57, %v4376_v58  ;;  %v4424_v58 = vld [vmem:[%s7102_s27 + $0xa8] sm:$0xf0] }
 0x12a   : > { %3842 = vmatpush.bf16.msra.mxu1 %v4467_v4  ;;  %3811 = vmatmul.bf16.vlgmr.msrb.gmra.mxu2 %v7801_v23  ;;  %v6431_v4 = vld [vmem:[%s7102_s27 + $0x144] sm:$0xf]  ;;  %v4443_v2 = vor.u32 %v6415_v61, %v4440_v1 }
 0x12b   : > { %3855 = vmatpush.bf16.msra.mxu2 %v4531_v6  ;;  %3824 = vmatmul.bf16.vlgmr.msrb.gmra.mxu3 %v7807_v35  ;;  %v4504_v6 = vld [vmem:[%s7102_s27 + $0x148] sm:$0xf0]  ;;  %v6427_v61 = vld [vmem:[%s7102_s27 + $0x124] sm:$0xf] }
 0x12c   : > { %3868 = vmatpush.bf16.msra.mxu3 %v4595_v16  ;;  %v3579_v16 = vadd.f32 %v3578_v7, %v7767_v54  ;;  %v4507_v29 = vor.u32 %v6431_v4, %v4504_v6  ;;  %v4496_v54 = vld [vmem:[%s7102_s27 + $0x138] sm:$0xf0]  ;;  %v6443_v6 = vld [vmem:[%s7102_s27 + $0x1a4] sm:$0xf]  ;;  %v4552_v7 = vld [vmem:[%s7102_s27 + $0x1a8] sm:$0xf0] }
 0x12d   : > { %3830 = vmatpush.bf16.msra.mxu0 %v4395_v19  ;;  %v4368_v19 = vld [vmem:[%s7102_s27 + $0x38] sm:$0xf0]  ;;  %v4499_v51 = vor.u32 %v6429_v45, %v4496_v54  ;;  %v3604_v57 = vpop.f32.mrf.mxu2  ;;  %v6441_v45 = vld [vmem:[%s7102_s27 + $0x194] sm:$0xf] }
 0x12e   : > { %3843 = vmatpush.bf16.msra.mxu1 %v4459_v39  ;;  %v6413_v39 = vld [vmem:[%s7102_s27 + $0xb4] sm:$0xf]  ;;  %v3592_v40 = vadd.f32 %v3591_v20, %v3579_v16  ;;  %v4371_v48 = vor.u32 %v6397_v34, %v4368_v19  ;;  %v3617_v4 = vpop.f32.mrf.mxu3  ;;  %v3593_v16 = vpop.f32.mrf.mxu1  ;;  %v4352_v34 = vld [vmem:[%s7102_s27 + $0x18] sm:$0xf0] }
 0x12f   : > { %3856 = vmatpush.bf16.msra.mxu2 %v4523_v60  ;;  %v4571_v60 = vor.u32 %v6447_v12, %v4568_v13  ;;  %v4435_v50 = vor.u32 %v6413_v39, %v4432_v22  ;;  %v3580_v12 = vpop.f32.mrf.mxu0  ;;  %v6409_v19 = vld [vmem:[%s7102_s27 + $0x94] sm:$0xf]  ;;  %v4555_v39 = vor.u32 %v6443_v6, %v4552_v7  ;;  %v4480_v22 = vld [vmem:[%s7102_s27 + $0x118] sm:$0xf0] }
 0x130   : > { %3869 = vmatpush.bf16.msra.mxu3 %v4587_v63  ;;  %v6445_v63 = vld [vmem:[%s7102_s27 + $0x1b4] sm:$0xf]  ;;  %v3605_v1 = vadd.f32 %v3604_v57, %v3592_v40  ;;  %v4544_v54 = vld [vmem:[%s7102_s27 + $0x198] sm:$0xf0]  ;;  %v4472_v57 = vld [vmem:[%s7102_s27 + $0x108] sm:$0xf0] }
 0x131   : > { %3831 = vmatpush.bf16.msra.mxu0 %v4387_v53  ;;  %v4360_v53 = vld [vmem:[%s7102_s27 + $0x28] sm:$0xf0]  ;;  %v6425_v40 = vld [vmem:[%s7102_s27 + $0x114] sm:$0xf] }
 0x132   : > { %3844 = vmatpush.bf16.msra.mxu1 %v4451_v55  ;;  %v6411_v55 = vld [vmem:[%s7102_s27 + $0xa4] sm:$0xf]  ;;  %v4363_v13 = vor.u32 %v6395_v52, %v4360_v53  ;;  %v4408_v53 = vld [vmem:[%s7102_s27 + $0x88] sm:$0xf0]  ;;  %v6485_v6 = vld [vmem:[%s7102_s27 + $0x2f4] sm:$0xf] }
 0x133   : > { %3857 = vmatpush.bf16.msra.mxu2 %v4515_v56  ;;  %v4563_v56 = vor.u32 %v6445_v63, %v4560_v47  ;;  %v4427_v20 = vor.u32 %v6411_v55, %v4424_v58  ;;  %v6391_v47 = vld [vmem:[%s7102_s27 + $0x4] sm:$0xf]  ;;  %v6501_v16 = vld [vmem:[%s7102_s27 + $0x374] sm:$0xf] }
 0x134   : > { %3870 = vmatpush.bf16.msra.mxu3 %v4579_v0  ;;  %v4488_v0 = vld [vmem:[%s7102_s27 + $0x128] sm:$0xf0]  ;;  %v6407_v52 = vld [vmem:[%s7102_s27 + $0x84] sm:$0xf] }
 0x135   : > { %3832 = vmatpush.bf16.msra.mxu0 %v4379_v49  ;;  %v7846_v49 = vadd.f32 %v3617_v4, %v3605_v1  ;;  %v6423_v55 = vld [vmem:[%s7102_s27 + $0x104] sm:$0xf]  ;;  %v6469_v1 = vld [vmem:[%s7102_s27 + $0x274] sm:$0xf]  ;;  %v4656_v4 = vld [vmem:[%s7102_s27 + $0x278] sm:$0xf0] }
 0x136   : > { %3845 = vmatpush.bf16.msra.mxu1 %v4443_v2  ;;  %v4491_v2 = vor.u32 %v6427_v61, %v4488_v0  ;;  %v6439_v58 = vld [vmem:[%s7102_s27 + $0x184] sm:$0xf]  ;;  %v4536_v61 = vld [vmem:[%s7102_s27 + $0x188] sm:$0xf0]  ;;  %v3606_v0 = vpop.f32.mrf.mxu2  ;;  %v3619_v7 = vpop.f32.mrf.mxu3 }
 0x137   : > { %3858 = vmatpush.bf16.msra.mxu2 %v4507_v29  ;;  %v6393_v29 = vld [vmem:[%s7102_s27 + $0x14] sm:$0xf]  ;;  %v4768_v7 = vld [vmem:[%s7102_s27 + $0x358] sm:$0xf0] }
 0x138   : > { %3871 = vmatpush.bf16.msra.mxu3 %v4571_v60  ;;  %v4416_v60 = vld [vmem:[%s7102_s27 + $0x98] sm:$0xf0]  ;;  %v4355_v63 = vor.u32 %v6393_v29, %v4352_v34  ;;  %v4475_v29 = vor.u32 %v6423_v55, %v4472_v57  ;;  %v6517_v34 = vld [vmem:[%s7102_s27 + $0x3f4] sm:$0xf] }
 0x139   : > { %3833 = vmatpush.bf16.msra.mxu0 %v4371_v48  ;;  %v4344_v48 = vld [vmem:[%s7102_s27 + $0x8] sm:$0xf0]  ;;  %v6481_v0 = vld [vmem:[%s7102_s27 + $0x2d4] sm:$0xf] }
 0x13a   : > { %3846 = vmatpush.bf16.msra.mxu1 %v4435_v50  ;;  %v4419_v50 = vor.u32 %v6409_v19, %v4416_v60  ;;  %v4347_v12 = vor.u32 %v6391_v47, %v4344_v48  ;;  %v4848_v19 = vld [vmem:[%s7102_s27 + $0x3f8] sm:$0xf0]  ;;  %v4659_v60 = vor.u32 %v6469_v1, %v4656_v4  ;;  %v4712_v48 = vld [vmem:[%s7102_s27 + $0x2e8] sm:$0xf0] }
 0x13b   : > { %3859 = vmatpush.bf16.msra.mxu2 %v4499_v51  ;;  %v4483_v51 = vor.u32 %v6425_v40, %v4480_v22  ;;  %v4851_v47 = vor.u32 %v6517_v34, %v4848_v19  ;;  %v4704_v4 = vld [vmem:[%s7102_s27 + $0x2d8] sm:$0xf0]  ;;  %v6479_v34 = vld [vmem:[%s7102_s27 + $0x2c4] sm:$0xf] }
 0x13c   : > { %3872 = vmatpush.bf16.msra.mxu3 %v4563_v56  ;;  %v4547_v56 = vor.u32 %v6441_v45, %v4544_v54  ;;  %v6467_v45 = vld [vmem:[%s7102_s27 + $0x264] sm:$0xf]  ;;  %v4648_v54 = vld [vmem:[%s7102_s27 + $0x268] sm:$0xf0] }
 0x13d   : > { %3834 = vmatpush.bf16.msra.mxu0 %v4363_v13  ;;  %v4720_v13 = vld [vmem:[%s7102_s27 + $0x2f8] sm:$0xf0]  ;;  %v4651_v55 = vor.u32 %v6467_v45, %v4648_v54 }
 0x13e   : > { %3847 = vmatpush.bf16.msra.mxu1 %v4427_v20  ;;  %v4784_v20 = vld [vmem:[%s7102_s27 + $0x378] sm:$0xf0]  ;;  %v4723_v40 = vor.u32 %v6485_v6, %v4720_v13  ;;  %v6497_v6 = vld [vmem:[%s7102_s27 + $0x354] sm:$0xf] }
 0x13f   : > { %3860 = vmatpush.bf16.msra.mxu2 %v4491_v2  ;;  %v4411_v2 = vor.u32 %v6407_v52, %v4408_v53  ;;  %v4787_v22 = vor.u32 %v6501_v16, %v4784_v20  ;;  %v6515_v52 = vld [vmem:[%s7102_s27 + $0x3e4] sm:$0xf]  ;;  %v4840_v53 = vld [vmem:[%s7102_s27 + $0x3e8] sm:$0xf0]  ;;  %v4832_v13 = vld [vmem:[%s7102_s27 + $0x3d8] sm:$0xf0]  ;;  %v4707_v20 = vor.u32 %v6481_v0, %v4704_v4 }
 0x140   : > { %3873 = vmatpush.bf16.msra.mxu3 %v4555_v39  ;;  %v4539_v39 = vor.u32 %v6439_v58, %v4536_v61  ;;  %v6465_v58 = vld [vmem:[%s7102_s27 + $0x254] sm:$0xf]  ;;  %v4640_v61 = vld [vmem:[%s7102_s27 + $0x258] sm:$0xf0]  ;;  %v4843_v1 = vor.u32 %v6515_v52, %v4840_v53  ;;  %v6459_v4 = vld [vmem:[%s7102_s27 + $0x224] sm:$0xf] }
 0x141   : > { %3835 = vmatpush.bf16.msra.mxu0 %v4355_v63  ;;  %v6483_v63 = vld [vmem:[%s7102_s27 + $0x2e4] sm:$0xf]  ;;  %v4643_v16 = vor.u32 %v6465_v58, %v4640_v61  ;;  %v4816_v58 = vld [vmem:[%s7102_s27 + $0x3b8] sm:$0xf0] }
 0x142   : > { %3848 = vmatpush.bf16.msra.mxu1 %v4419_v50  ;;  %v6499_v50 = vld [vmem:[%s7102_s27 + $0x364] sm:$0xf] }
 0x143   : > { %3861 = vmatpush.bf16.msra.mxu2 %v4483_v51  ;;  %v4776_v51 = vld [vmem:[%s7102_s27 + $0x368] sm:$0xf0] }
 0x144   : > { %3874 = vmatpush.bf16.msra.mxu3 %v4547_v56  ;;  %v4715_v56 = vor.u32 %v6483_v63, %v4712_v48  ;;  %v4779_v57 = vor.u32 %v6499_v50, %v4776_v51  ;;  %v6461_v48 = vld [vmem:[%s7102_s27 + $0x234] sm:$0xf]  ;;  %v4624_v50 = vld [vmem:[%s7102_s27 + $0x238] sm:$0xf0] }
 0x145   : > { %3836 = vmatpush.bf16.msra.mxu0 %v4347_v12  ;;  %v6513_v12 = vld [vmem:[%s7102_s27 + $0x3d4] sm:$0xf]  ;;  %v4627_v61 = vor.u32 %v6461_v48, %v4624_v50  ;;  %v4736_v50 = vld [vmem:[%s7102_s27 + $0x318] sm:$0xf0] }
 0x146   : > { %3849 = vmatpush.bf16.msra.mxu1 %v4411_v2  ;;  %v4771_v2 = vor.u32 %v6497_v6, %v4768_v7  ;;  %v4835_v19 = vor.u32 %v6513_v12, %v4832_v13  ;;  %v3643_v54 = vpop.f32.mrf.mxu1  ;;  %v6477_v51 = vld [vmem:[%s7102_s27 + $0x2b4] sm:$0xf]  ;;  %v4616_v6 = vld [vmem:[%s7102_s27 + $0x228] sm:$0xf0]  ;;  %v6475_v7 = vld [vmem:[%s7102_s27 + $0x2a4] sm:$0xf] }
 0x147   : > { %3862 = vmatpush.bf16.msra.mxu2 %v4475_v29  ;;  %v4632_v29 = vld [vmem:[%s7102_s27 + $0x248] sm:$0xf0]  ;;  %v6489_v48 = vld [vmem:[%s7102_s27 + $0x314] sm:$0xf] }
 0x148   : > { %3875 = vmatpush.bf16.msra.mxu3 %v4539_v39  ;;  %3837 = vmatmul.bf16.vlgmr.msra.gmra.mxu0 %v7218_v27  ;;  %v4696_v27 = vld [vmem:[%s7102_s27 + $0x2c8] sm:$0xf0] }
 0x149   : > { %3881 = vmatpush.bf16.msrb.mxu0 %v4659_v60  ;;  %3850 = vmatmul.bf16.vlgmr.msra.gmra.mxu1 %v7224_v33  ;;  %v4760_v39 = vld [vmem:[%s7102_s27 + $0x348] sm:$0xf0]  ;;  %v3630_v60 = vpop.f32.mrf.mxu0  ;;  %v4699_v63 = vor.u32 %v6479_v34, %v4696_v27  ;;  %v6507_v34 = vld [vmem:[%s7102_s27 + $0x3a4] sm:$0xf] }
 0x14a   : > { %3894 = vmatpush.bf16.msrb.mxu1 %v4723_v40  ;;  %3863 = vmatmul.bf16.vlgmr.msra.gmra.mxu2 %v7216_v26  ;;  %v6463_v26 = vld [vmem:[%s7102_s27 + $0x244] sm:$0xf]  ;;  %v3631_v33 = vadd.f32 %v3630_v60, %v7846_v49  ;;  %v4752_v49 = vld [vmem:[%s7102_s27 + $0x338] sm:$0xf0] }
 0x14b   : > { %3907 = vmatpush.bf16.msrb.mxu2 %v4787_v22  ;;  %3876 = vmatmul.bf16.vlgmr.msra.gmra.mxu3 %v7222_v32  ;;  %v6495_v32 = vld [vmem:[%s7102_s27 + $0x344] sm:$0xf]  ;;  %v4824_v22 = vld [vmem:[%s7102_s27 + $0x3c8] sm:$0xf0]  ;;  %v4635_v45 = vor.u32 %v6463_v26, %v4632_v29 }
 0x14c   : > { %3920 = vmatpush.bf16.msrb.mxu3 %v4851_v47  ;;  %v6511_v40 = vld [vmem:[%s7102_s27 + $0x3c4] sm:$0xf]  ;;  %v4763_v47 = vor.u32 %v6495_v32, %v4760_v39  ;;  %v3644_v53 = vadd.f32 %v3643_v54, %v3631_v33  ;;  %v4619_v32 = vor.u32 %v6459_v4, %v4616_v6  ;;  %v6457_v33 = vld [vmem:[%s7102_s27 + $0x214] sm:$0xf]  ;;  %v4728_v4 = vld [vmem:[%s7102_s27 + $0x308] sm:$0xf0] }
 0x14d   : > { %3882 = vmatpush.bf16.msrb.mxu0 %v4651_v55  ;;  %v4827_v52 = vor.u32 %v6511_v40, %v4824_v22  ;;  %v4688_v55 = vld [vmem:[%s7102_s27 + $0x2b8] sm:$0xf0]  ;;  %v3656_v13 = vpop.f32.mrf.mxu2  ;;  %v6473_v54 = vld [vmem:[%s7102_s27 + $0x294] sm:$0xf]  ;;  %v6503_v6 = vld [vmem:[%s7102_s27 + $0x384] sm:$0xf] }
 0x14e   : > { %3895 = vmatpush.bf16.msrb.mxu1 %v4715_v56  ;;  %v6493_v56 = vld [vmem:[%s7102_s27 + $0x334] sm:$0xf]  ;;  %v4691_v0 = vor.u32 %v6477_v51, %v4688_v55  ;;  %v3657_v26 = vadd.f32 %v3656_v13, %v3644_v53  ;;  %v3669_v29 = vpop.f32.mrf.mxu3  ;;  %v3645_v39 = vpop.f32.mrf.mxu1  ;;  %v6455_v55 = vld [vmem:[%s7102_s27 + $0x204] sm:$0xf] }
 0x14f   : > { %3908 = vmatpush.bf16.msrb.mxu2 %v4779_v57  ;;  %v6509_v57 = vld [vmem:[%s7102_s27 + $0x3b4] sm:$0xf] }
 0x150   : > { %3921 = vmatpush.bf16.msrb.mxu3 %v4843_v1  ;;  %v4755_v1 = vor.u32 %v6493_v56, %v4752_v49  ;;  %v4819_v12 = vor.u32 %v6509_v57, %v4816_v58  ;;  %v7917_v60 = vadd.f32 %v3669_v29, %v3657_v26  ;;  %v6505_v51 = vld [vmem:[%s7102_s27 + $0x394] sm:$0xf]  ;;  %v4600_v56 = vld [vmem:[%s7102_s27 + $0x208] sm:$0xf0]  ;;  %v4739_v57 = vor.u32 %v6489_v48, %v4736_v50  ;;  %v6471_v58 = vld [vmem:[%s7102_s27 + $0x284] sm:$0xf] }
 0x151   : > { %3883 = vmatpush.bf16.msrb.mxu0 %v4643_v16  ;;  %v4680_v16 = vld [vmem:[%s7102_s27 + $0x2a8] sm:$0xf0]  ;;  %v3632_v27 = vpop.f32.mrf.mxu0  ;;  %v6533_v13 = vld [vmem:[%s7102_s27 + $0x474] sm:$0xf]  ;;  %v4603_v26 = vor.u32 %v6455_v55, %v4600_v56  ;;  %v4976_v29 = vld [vmem:[%s7102_s27 + $0x4f8] sm:$0xf0] }
 0x152   : > { %3896 = vmatpush.bf16.msrb.mxu1 %v4707_v20  ;;  %v6491_v20 = vld [vmem:[%s7102_s27 + $0x324] sm:$0xf]  ;;  %v4683_v40 = vor.u32 %v6475_v7, %v4680_v16  ;;  %v4792_v7 = vld [vmem:[%s7102_s27 + $0x388] sm:$0xf0]  ;;  %v4912_v16 = vld [vmem:[%s7102_s27 + $0x478] sm:$0xf0] }
 0x153   : > { %3909 = vmatpush.bf16.msrb.mxu2 %v4771_v2  ;;  %v4744_v2 = vld [vmem:[%s7102_s27 + $0x328] sm:$0xf0]  ;;  %v6581_v39 = vld [vmem:[%s7102_s27 + $0x5f4] sm:$0xf]  ;;  %v6547_v48 = vld [vmem:[%s7102_s27 + $0x4e4] sm:$0xf] }
 0x154   : > { %3922 = vmatpush.bf16.msrb.mxu3 %v4835_v19  ;;  %v4808_v19 = vld [vmem:[%s7102_s27 + $0x3a8] sm:$0xf0]  ;;  %v4747_v22 = vor.u32 %v6491_v20, %v4744_v2  ;;  %v6549_v20 = vld [vmem:[%s7102_s27 + $0x4f4] sm:$0xf]  ;;  %v6579_v55 = vld [vmem:[%s7102_s27 + $0x5e4] sm:$0xf] }
 0x155   : > { %3884 = vmatpush.bf16.msrb.mxu0 %v4635_v45  ;;  %v4608_v45 = vld [vmem:[%s7102_s27 + $0x218] sm:$0xf0]  ;;  %v5096_v56 = vld [vmem:[%s7102_s27 + $0x5e8] sm:$0xf0] }
 0x156   : > { %3897 = vmatpush.bf16.msrb.mxu1 %v4699_v63  ;;  %v4811_v63 = vor.u32 %v6507_v34, %v4808_v19  ;;  %v4611_v53 = vor.u32 %v6457_v33, %v4608_v45  ;;  %v3671_v2 = vpop.f32.mrf.mxu3  ;;  %v6565_v34 = vld [vmem:[%s7102_s27 + $0x574] sm:$0xf]  ;;  %v5040_v19 = vld [vmem:[%s7102_s27 + $0x578] sm:$0xf0]  ;;  %v4915_v33 = vor.u32 %v6533_v13, %v4912_v16  ;;  %v4979_v45 = vor.u32 %v6549_v20, %v4976_v29  ;;  %v4888_v29 = vld [vmem:[%s7102_s27 + $0x448] sm:$0xf0] }
 0x157   : > { %3910 = vmatpush.bf16.msrb.mxu2 %v4763_v47  ;;  %v4672_v47 = vld [vmem:[%s7102_s27 + $0x298] sm:$0xf0]  ;;  %v6577_v13 = vld [vmem:[%s7102_s27 + $0x5d4] sm:$0xf] }
 0x158   : > { %3923 = vmatpush.bf16.msrb.mxu3 %v4827_v52  ;;  %v4800_v52 = vld [vmem:[%s7102_s27 + $0x398] sm:$0xf0]  ;;  %v4675_v49 = vor.u32 %v6473_v54, %v4672_v47  ;;  %v5043_v54 = vor.u32 %v6565_v34, %v5040_v19  ;;  %v4904_v47 = vld [vmem:[%s7102_s27 + $0x468] sm:$0xf0]  ;;  %v6559_v19 = vld [vmem:[%s7102_s27 + $0x544] sm:$0xf] }
 0x159   : > { %3885 = vmatpush.bf16.msrb.mxu0 %v4627_v61  ;;  %v4664_v61 = vld [vmem:[%s7102_s27 + $0x288] sm:$0xf0]  ;;  %v5088_v16 = vld [vmem:[%s7102_s27 + $0x5d8] sm:$0xf0] }
 0x15a   : > { %3898 = vmatpush.bf16.msrb.mxu1 %v4691_v0  ;;  %v6487_v0 = vld [vmem:[%s7102_s27 + $0x304] sm:$0xf]  ;;  %v4667_v27 = vor.u32 %v6471_v58, %v4664_v61  ;;  %v6529_v61 = vld [vmem:[%s7102_s27 + $0x454] sm:$0xf]  ;;  %v4952_v34 = vld [vmem:[%s7102_s27 + $0x4c8] sm:$0xf0] }
 0x15b   : > { %3911 = vmatpush.bf16.msrb.mxu2 %v4755_v1  ;;  %v4803_v1 = vor.u32 %v6505_v51, %v4800_v52  ;;  %v4968_v51 = vld [vmem:[%s7102_s27 + $0x4e8] sm:$0xf0]  ;;  %v6563_v52 = vld [vmem:[%s7102_s27 + $0x564] sm:$0xf] }
 0x15c   : > { %3924 = vmatpush.bf16.msrb.mxu3 %v4819_v12  ;;  %v3658_v12 = vpop.f32.mrf.mxu2 }
 0x15d   : > { %3886 = vmatpush.bf16.msrb.mxu0 %v4619_v32  ;;  %v4731_v32 = vor.u32 %v6487_v0, %v4728_v4  ;;  %v4896_v0 = vld [vmem:[%s7102_s27 + $0x458] sm:$0xf0]  ;;  %v5099_v4 = vor.u32 %v6579_v55, %v5096_v56  ;;  %v6573_v55 = vld [vmem:[%s7102_s27 + $0x5b4] sm:$0xf] }
 0x15e   : > { %3899 = vmatpush.bf16.msrb.mxu1 %v4683_v40  ;;  %v5104_v40 = vld [vmem:[%s7102_s27 + $0x5f8] sm:$0xf0]  ;;  %v4899_v20 = vor.u32 %v6529_v61, %v4896_v0  ;;  %v6523_v61 = vld [vmem:[%s7102_s27 + $0x424] sm:$0xf]  ;;  %v4872_v0 = vld [vmem:[%s7102_s27 + $0x428] sm:$0xf0] }
 0x15f   : > { %3912 = vmatpush.bf16.msrb.mxu2 %v4747_v22  ;;  %v4795_v22 = vor.u32 %v6503_v6, %v4792_v7  ;;  %v5107_v50 = vor.u32 %v6581_v39, %v5104_v40  ;;  %v4960_v6 = vld [vmem:[%s7102_s27 + $0x4d8] sm:$0xf0]  ;;  %v6561_v7 = vld [vmem:[%s7102_s27 + $0x554] sm:$0xf]  ;;  %v6575_v39 = vld [vmem:[%s7102_s27 + $0x5c4] sm:$0xf] }
 0x160   : > { %3925 = vmatpush.bf16.msrb.mxu3 %v4811_v63  ;;  %v6531_v63 = vld [vmem:[%s7102_s27 + $0x464] sm:$0xf]  ;;  %v5024_v12 = vld [vmem:[%s7102_s27 + $0x558] sm:$0xf0]  ;;  %v5080_v40 = vld [vmem:[%s7102_s27 + $0x5c8] sm:$0xf0] }
 0x161   : > { %3887 = vmatpush.bf16.msrb.mxu0 %v4611_v53  ;;  %v5032_v53 = vld [vmem:[%s7102_s27 + $0x568] sm:$0xf0]  ;;  %v5027_v2 = vor.u32 %v6561_v7, %v5024_v12  ;;  %v5072_v56 = vld [vmem:[%s7102_s27 + $0x5b8] sm:$0xf0]  ;;  %v6555_v12 = vld [vmem:[%s7102_s27 + $0x524] sm:$0xf] }
 0x162   : > { %3900 = vmatpush.bf16.msrb.mxu1 %v4675_v49  ;;  %v4907_v49 = vor.u32 %v6531_v63, %v4904_v47  ;;  %v5035_v58 = vor.u32 %v6563_v52, %v5032_v53  ;;  %v6525_v63 = vld [vmem:[%s7102_s27 + $0x434] sm:$0xf]  ;;  %v4880_v47 = vld [vmem:[%s7102_s27 + $0x438] sm:$0xf0]  ;;  %v4936_v7 = vld [vmem:[%s7102_s27 + $0x4a8] sm:$0xf0] }
 0x163   : > { %3913 = vmatpush.bf16.msrb.mxu2 %v4739_v57  ;;  %v4971_v57 = vor.u32 %v6547_v48, %v4968_v51  ;;  %v6541_v48 = vld [vmem:[%s7102_s27 + $0x4b4] sm:$0xf]  ;;  %v4944_v52 = vld [vmem:[%s7102_s27 + $0x4b8] sm:$0xf0] }
 0x164   : > { %3926 = vmatpush.bf16.msrb.mxu3 %v4803_v1  ;;  %v6545_v1 = vld [vmem:[%s7102_s27 + $0x4d4] sm:$0xf] }
 0x165   : > { %3888 = vmatpush.bf16.msrb.mxu0 %v4603_v26  ;;  %v6527_v26 = vld [vmem:[%s7102_s27 + $0x444] sm:$0xf]  ;;  %v6557_v53 = vld [vmem:[%s7102_s27 + $0x534] sm:$0xf] }
 0x166   : > { %3901 = vmatpush.bf16.msrb.mxu1 %v4667_v27  ;;  %v5016_v27 = vld [vmem:[%s7102_s27 + $0x548] sm:$0xf0] }
 0x167   : > { %3914 = vmatpush.bf16.msrb.mxu2 %v4731_v32  ;;  %v3682_v32 = vpop.f32.mrf.mxu0 }
 0x168   : > { %3927 = vmatpush.bf16.msrb.mxu3 %v4795_v22  ;;  %3889 = vmatmul.bf16.vlgmr.msrb.gmra.mxu0 %v7278_v41  ;;  %v6543_v41 = vld [vmem:[%s7102_s27 + $0x4c4] sm:$0xf]  ;;  %v4891_v22 = vor.u32 %v6527_v26, %v4888_v29  ;;  %v4875_v29 = vor.u32 %v6523_v61, %v4872_v0  ;;  %v6597_v61 = vld [vmem:[%s7102_s27 + $0x674] sm:$0xf]  ;;  %v5168_v0 = vld [vmem:[%s7102_s27 + $0x678] sm:$0xf0] }
 0x169   : > { %3933 = vmatpush.bf16.msra.mxu0 %v4915_v33  ;;  %3902 = vmatmul.bf16.vlgmr.msrb.gmra.mxu1 %v7282_v44  ;;  %v3683_v44 = vadd.f32 %v3682_v32, %v7917_v60  ;;  %v3695_v33 = vpop.f32.mrf.mxu1  ;;  %v5008_v60 = vld [vmem:[%s7102_s27 + $0x538] sm:$0xf0] }
 0x16a   : > { %3946 = vmatpush.bf16.msra.mxu1 %v4979_v45  ;;  %3915 = vmatmul.bf16.vlgmr.msrb.gmra.mxu2 %v7274_v38  ;;  %v4963_v38 = vor.u32 %v6545_v1, %v4960_v6  ;;  %v4955_v45 = vor.u32 %v6543_v41, %v4952_v34  ;;  %v6539_v1 = vld [vmem:[%s7102_s27 + $0x4a4] sm:$0xf]  ;;  %v4864_v32 = vld [vmem:[%s7102_s27 + $0x418] sm:$0xf0] }
 0x16b   : > { %3959 = vmatpush.bf16.msra.mxu2 %v5043_v54  ;;  %3928 = vmatmul.bf16.vlgmr.msrb.gmra.mxu3 %v7280_v42  ;;  %v5091_v42 = vor.u32 %v6577_v13, %v5088_v16  ;;  %v5019_v54 = vor.u32 %v6559_v19, %v5016_v27  ;;  %v3696_v51 = vadd.f32 %v3695_v33, %v3683_v44  ;;  %v5000_v13 = vld [vmem:[%s7102_s27 + $0x528] sm:$0xf0]  ;;  %v6521_v27 = vld [vmem:[%s7102_s27 + $0x414] sm:$0xf]  ;;  %v4928_v44 = vld [vmem:[%s7102_s27 + $0x498] sm:$0xf0] }
 0x16c   : > { %3972 = vmatpush.bf16.msra.mxu3 %v5107_v50  ;;  %v5083_v50 = vor.u32 %v6575_v39, %v5080_v40  ;;  %v4939_v34 = vor.u32 %v6539_v1, %v4936_v7  ;;  %v5003_v19 = vor.u32 %v6555_v12, %v5000_v13  ;;  %v6537_v39 = vld [vmem:[%s7102_s27 + $0x494] sm:$0xf]  ;;  %v4992_v33 = vld [vmem:[%s7102_s27 + $0x518] sm:$0xf0] }
 0x16d   : > { %3934 = vmatpush.bf16.msra.mxu0 %v4907_v49  ;;  %v4883_v49 = vor.u32 %v6525_v63, %v4880_v47  ;;  %v3708_v6 = vpop.f32.mrf.mxu2  ;;  %v4867_v63 = vor.u32 %v6521_v27, %v4864_v32  ;;  %v6519_v47 = vld [vmem:[%s7102_s27 + $0x404] sm:$0xf]  ;;  %v6613_v1 = vld [vmem:[%s7102_s27 + $0x6f4] sm:$0xf]  ;;  %v5232_v7 = vld [vmem:[%s7102_s27 + $0x6f8] sm:$0xf0] }
 0x16e   : > { %3947 = vmatpush.bf16.msra.mxu1 %v4971_v57  ;;  %v4947_v57 = vor.u32 %v6541_v48, %v4944_v52  ;;  %v3709_v16 = vadd.f32 %v3708_v6, %v3696_v51  ;;  %v4856_v48 = vld [vmem:[%s7102_s27 + $0x408] sm:$0xf0]  ;;  %v6535_v52 = vld [vmem:[%s7102_s27 + $0x484] sm:$0xf]  ;;  %v6629_v12 = vld [vmem:[%s7102_s27 + $0x774] sm:$0xf] }
 0x16f   : > { %3960 = vmatpush.bf16.msra.mxu2 %v5035_v58  ;;  %v5011_v58 = vor.u32 %v6557_v53, %v5008_v60  ;;  %v3684_v26 = vpop.f32.mrf.mxu0  ;;  %v4920_v53 = vld [vmem:[%s7102_s27 + $0x488] sm:$0xf0]  ;;  %v6551_v60 = vld [vmem:[%s7102_s27 + $0x504] sm:$0xf]  ;;  %v4859_v6 = vor.u32 %v6519_v47, %v4856_v48  ;;  %v5296_v13 = vld [vmem:[%s7102_s27 + $0x778] sm:$0xf0] }
 0x170   : > { %3973 = vmatpush.bf16.msra.mxu3 %v5099_v4  ;;  %v5075_v4 = vor.u32 %v6573_v55, %v5072_v56  ;;  %v4984_v56 = vld [vmem:[%s7102_s27 + $0x508] sm:$0xf0]  ;;  %v6611_v32 = vld [vmem:[%s7102_s27 + $0x6e4] sm:$0xf]  ;;  %v6593_v48 = vld [vmem:[%s7102_s27 + $0x654] sm:$0xf] }
 0x171   : > { %3935 = vmatpush.bf16.msra.mxu0 %v4899_v20  ;;  %v3721_v20 = vpop.f32.mrf.mxu3  ;;  %v3697_v41 = vpop.f32.mrf.mxu1  ;;  %v5160_v27 = vld [vmem:[%s7102_s27 + $0x668] sm:$0xf0] }
 0x172   : > { %3948 = vmatpush.bf16.msra.mxu1 %v4963_v38  ;;  %v6571_v38 = vld [vmem:[%s7102_s27 + $0x5a4] sm:$0xf]  ;;  %v5235_v41 = vor.u32 %v6613_v1, %v5232_v7  ;;  %v5208_v1 = vld [vmem:[%s7102_s27 + $0x6c8] sm:$0xf0] }
 0x173   : > { %3961 = vmatpush.bf16.msra.mxu2 %v5027_v2  ;;  %v5064_v2 = vld [vmem:[%s7102_s27 + $0x5a8] sm:$0xf0]  ;;  %v6639_v7 = vld [vmem:[%s7102_s27 + $0x7c4] sm:$0xf] }
 0x174   : > { %3974 = vmatpush.bf16.msra.mxu3 %v5091_v42  ;;  %v7988_v42 = vadd.f32 %v3721_v20, %v3709_v16  ;;  %v5067_v40 = vor.u32 %v6571_v38, %v5064_v2  ;;  %v4923_v16 = vor.u32 %v6535_v52, %v4920_v53  ;;  %v4987_v20 = vor.u32 %v6551_v60, %v4984_v56  ;;  %v6645_v38 = vld [vmem:[%s7102_s27 + $0x7f4] sm:$0xf]  ;;  %v5360_v2 = vld [vmem:[%s7102_s27 + $0x7f8] sm:$0xf0] }
 0x175   : > { %3936 = vmatpush.bf16.msra.mxu0 %v4891_v22  ;;  %v6553_v22 = vld [vmem:[%s7102_s27 + $0x514] sm:$0xf]  ;;  %v5216_v53 = vld [vmem:[%s7102_s27 + $0x6d8] sm:$0xf0] }
 0x176   : > { %3949 = vmatpush.bf16.msra.mxu1 %v4955_v45  ;;  %v6569_v45 = vld [vmem:[%s7102_s27 + $0x594] sm:$0xf]  ;;  %v4995_v51 = vor.u32 %v6553_v22, %v4992_v33  ;;  %v5288_v22 = vld [vmem:[%s7102_s27 + $0x768] sm:$0xf0]  ;;  %v6643_v33 = vld [vmem:[%s7102_s27 + $0x7e4] sm:$0xf] }
 0x177   : > { %3962 = vmatpush.bf16.msra.mxu2 %v5019_v54  ;;  %v5056_v54 = vld [vmem:[%s7102_s27 + $0x598] sm:$0xf0]  ;;  %v6625_v60 = vld [vmem:[%s7102_s27 + $0x754] sm:$0xf] }
 0x178   : > { %3975 = vmatpush.bf16.msra.mxu3 %v5083_v50  ;;  %v4931_v50 = vor.u32 %v6537_v39, %v4928_v44  ;;  %v5059_v55 = vor.u32 %v6569_v45, %v5056_v54  ;;  %v5363_v39 = vor.u32 %v6645_v38, %v5360_v2  ;;  %v6627_v44 = vld [vmem:[%s7102_s27 + $0x764] sm:$0xf]  ;;  %v5352_v45 = vld [vmem:[%s7102_s27 + $0x7e8] sm:$0xf0]  ;;  %v6641_v56 = vld [vmem:[%s7102_s27 + $0x7d4] sm:$0xf] }
 0x179   : > { %3937 = vmatpush.bf16.msra.mxu0 %v4883_v49  ;;  %v6567_v49 = vld [vmem:[%s7102_s27 + $0x584] sm:$0xf]  ;;  %v5291_v47 = vor.u32 %v6627_v44, %v5288_v22  ;;  %v5355_v52 = vor.u32 %v6643_v33, %v5352_v45 }
 0x17a   : > { %3950 = vmatpush.bf16.msra.mxu1 %v4947_v57  ;;  %v5048_v57 = vld [vmem:[%s7102_s27 + $0x588] sm:$0xf0]  ;;  %v6587_v45 = vld [vmem:[%s7102_s27 + $0x624] sm:$0xf] }
 0x17b   : > { %3963 = vmatpush.bf16.msra.mxu2 %v5011_v58  ;;  %v3710_v58 = vpop.f32.mrf.mxu2  ;;  %v5051_v26 = vor.u32 %v6567_v49, %v5048_v57  ;;  %v5344_v49 = vld [vmem:[%s7102_s27 + $0x7d8] sm:$0xf0] }
 0x17c   : > { %3976 = vmatpush.bf16.msra.mxu3 %v5075_v4  ;;  %v3723_v4 = vpop.f32.mrf.mxu3 }
 0x17d   : > { %3938 = vmatpush.bf16.msra.mxu0 %v4875_v29  ;;  %v5171_v29 = vor.u32 %v6597_v61, %v5168_v0  ;;  %v6591_v61 = vld [vmem:[%s7102_s27 + $0x644] sm:$0xf]  ;;  %v5144_v0 = vld [vmem:[%s7102_s27 + $0x648] sm:$0xf0] }
 0x17e   : > { %3951 = vmatpush.bf16.msra.mxu1 %v4939_v34  ;;  %v5299_v34 = vor.u32 %v6629_v12, %v5296_v13  ;;  %v6623_v4 = vld [vmem:[%s7102_s27 + $0x744] sm:$0xf]  ;;  %v5336_v12 = vld [vmem:[%s7102_s27 + $0x7c8] sm:$0xf0] }
 0x17f   : > { %3964 = vmatpush.bf16.msra.mxu2 %v5003_v19  ;;  %v6595_v19 = vld [vmem:[%s7102_s27 + $0x664] sm:$0xf] }
 0x180   : > { %3977 = vmatpush.bf16.msra.mxu3 %v5067_v40  ;;  %v5224_v40 = vld [vmem:[%s7102_s27 + $0x6e8] sm:$0xf0]  ;;  %v5163_v54 = vor.u32 %v6595_v19, %v5160_v27  ;;  %v5200_v27 = vld [vmem:[%s7102_s27 + $0x6b8] sm:$0xf0] }
 0x181   : > { %3939 = vmatpush.bf16.msra.mxu0 %v4867_v63  ;;  %v5227_v63 = vor.u32 %v6611_v32, %v5224_v40  ;;  %v6621_v32 = vld [vmem:[%s7102_s27 + $0x734] sm:$0xf]  ;;  %v5328_v40 = vld [vmem:[%s7102_s27 + $0x7b8] sm:$0xf0] }
 0x182   : > { %3952 = vmatpush.bf16.msra.mxu1 %v4931_v50  ;;  %v5152_v50 = vld [vmem:[%s7102_s27 + $0x658] sm:$0xf0] }
 0x183   : > { %3965 = vmatpush.bf16.msra.mxu2 %v4995_v51  ;;  %v6609_v51 = vld [vmem:[%s7102_s27 + $0x6d4] sm:$0xf] }
 0x184   : > { %3978 = vmatpush.bf16.msra.mxu3 %v5059_v55  ;;  %v5280_v55 = vld [vmem:[%s7102_s27 + $0x758] sm:$0xf0]  ;;  %v5219_v57 = vor.u32 %v6609_v51, %v5216_v53  ;;  %v6619_v51 = vld [vmem:[%s7102_s27 + $0x724] sm:$0xf] }
 0x185   : > { %3940 = vmatpush.bf16.msra.mxu0 %v4859_v6  ;;  %v5283_v58 = vor.u32 %v6625_v60, %v5280_v55  ;;  %v5272_v6 = vld [vmem:[%s7102_s27 + $0x748] sm:$0xf0]  ;;  %v6635_v55 = vld [vmem:[%s7102_s27 + $0x7a4] sm:$0xf] }
 0x186   : > { %3953 = vmatpush.bf16.msra.mxu1 %v4923_v16  ;;  %v5147_v16 = vor.u32 %v6591_v61, %v5144_v0  ;;  %v5275_v2 = vor.u32 %v6623_v4, %v5272_v6  ;;  %v5184_v6 = vld [vmem:[%s7102_s27 + $0x698] sm:$0xf0] }
 0x187   : > { %3966 = vmatpush.bf16.msra.mxu2 %v4987_v20  ;;  %v3747_v20 = vpop.f32.mrf.mxu1 }
 0x188   : > { %3979 = vmatpush.bf16.msra.mxu3 %v5051_v26  ;;  %3941 = vmatmul.bf16.vlgmr.msra.gmra.mxu0 %v7360_v24  ;;  %v5155_v24 = vor.u32 %v6593_v48, %v5152_v50  ;;  %v6589_v26 = vld [vmem:[%s7102_s27 + $0x634] sm:$0xf]  ;;  %v5192_v50 = vld [vmem:[%s7102_s27 + $0x6a8] sm:$0xf0] }
 0x189   : > { %3985 = vmatpush.bf16.msrb.mxu0 %v5171_v29  ;;  %3954 = vmatmul.bf16.vlgmr.msra.gmra.mxu1 %v7371_v31  ;;  %v5347_v31 = vor.u32 %v6641_v56, %v5344_v49  ;;  %v5136_v29 = vld [vmem:[%s7102_s27 + $0x638] sm:$0xf0]  ;;  %v5320_v56 = vld [vmem:[%s7102_s27 + $0x7a8] sm:$0xf0] }
 0x18a   : > { %3998 = vmatpush.bf16.msrb.mxu1 %v5235_v41  ;;  %3967 = vmatmul.bf16.vlgmr.msra.gmra.mxu2 %v7367_v30  ;;  %v6607_v30 = vld [vmem:[%s7102_s27 + $0x6c4] sm:$0xf]  ;;  %v6605_v41 = vld [vmem:[%s7102_s27 + $0x6b4] sm:$0xf]  ;;  %v5139_v44 = vor.u32 %v6589_v26, %v5136_v29  ;;  %v5323_v4 = vor.u32 %v6635_v55, %v5320_v56 }
 0x18b   : > { %4011 = vmatpush.bf16.msrb.mxu2 %v5299_v34  ;;  %3980 = vmatmul.bf16.vlgmr.msra.gmra.mxu3 %v7377_v18  ;;  %v3734_v18 = vpop.f32.mrf.mxu0  ;;  %v5211_v38 = vor.u32 %v6607_v30, %v5208_v1  ;;  %v5339_v34 = vor.u32 %v6639_v7, %v5336_v12  ;;  %v5203_v22 = vor.u32 %v6605_v41, %v5200_v27  ;;  %v6585_v30 = vld [vmem:[%s7102_s27 + $0x614] sm:$0xf]  ;;  %v5248_v7 = vld [vmem:[%s7102_s27 + $0x718] sm:$0xf0]  ;;  %v6599_v29 = vld [vmem:[%s7102_s27 + $0x684] sm:$0xf] }
 0x18c   : > { %4024 = vmatpush.bf16.msrb.mxu3 %v5363_v39  ;;  %v3735_v13 = vadd.f32 %v3734_v18, %v7988_v42  ;;  %v5264_v42 = vld [vmem:[%s7102_s27 + $0x738] sm:$0xf0]  ;;  %v6637_v39 = vld [vmem:[%s7102_s27 + $0x7b4] sm:$0xf]  ;;  %v5176_v41 = vld [vmem:[%s7102_s27 + $0x688] sm:$0xf0] }
 0x18d   : > { %3986 = vmatpush.bf16.msrb.mxu0 %v5163_v54  ;;  %v5267_v33 = vor.u32 %v6621_v32, %v5264_v42  ;;  %v5128_v54 = vld [vmem:[%s7102_s27 + $0x628] sm:$0xf0]  ;;  %v3760_v48 = vpop.f32.mrf.mxu2  ;;  %v6601_v1 = vld [vmem:[%s7102_s27 + $0x694] sm:$0xf]  ;;  %v6631_v32 = vld [vmem:[%s7102_s27 + $0x784] sm:$0xf] }
 0x18e   : > { %3999 = vmatpush.bf16.msrb.mxu1 %v5227_v63  ;;  %v3748_v19 = vadd.f32 %v3747_v20, %v3735_v13  ;;  %v6603_v63 = vld [vmem:[%s7102_s27 + $0x6a4] sm:$0xf]  ;;  %v3773_v60 = vpop.f32.mrf.mxu3  ;;  %v6617_v18 = vld [vmem:[%s7102_s27 + $0x714] sm:$0xf]  ;;  %v5312_v13 = vld [vmem:[%s7102_s27 + $0x798] sm:$0xf0] }
 0x18f   : > { %4012 = vmatpush.bf16.msrb.mxu2 %v5291_v47  ;;  %v5331_v47 = vor.u32 %v6637_v39, %v5328_v40  ;;  %v5195_v61 = vor.u32 %v6603_v63, %v5192_v50  ;;  %v6633_v12 = vld [vmem:[%s7102_s27 + $0x794] sm:$0xf]  ;;  %v6583_v20 = vld [vmem:[%s7102_s27 + $0x604] sm:$0xf]  ;;  %v5251_v26 = vor.u32 %v6617_v18, %v5248_v7  ;;  %v5240_v27 = vld [vmem:[%s7102_s27 + $0x708] sm:$0xf0] }
 0x190   : > { %4025 = vmatpush.bf16.msrb.mxu3 %v5355_v52  ;;  %v5256_v52 = vld [vmem:[%s7102_s27 + $0x728] sm:$0xf0]  ;;  %v3761_v53 = vadd.f32 %v3760_v48, %v3748_v19  ;;  %v5315_v19 = vor.u32 %v6633_v12, %v5312_v13  ;;  %v6661_v40 = vld [vmem:[%s7102_s27 + $0x874] sm:$0xf]  ;;  %v5179_v48 = vor.u32 %v6599_v29, %v5176_v41  ;;  %v5408_v13 = vld [vmem:[%s7102_s27 + $0x858] sm:$0xf0] }
 0x191   : > { %3987 = vmatpush.bf16.msrb.mxu0 %v5155_v24  ;;  %v5131_v24 = vor.u32 %v6587_v45, %v5128_v54  ;;  %v5259_v0 = vor.u32 %v6619_v51, %v5256_v52  ;;  %v5304_v42 = vld [vmem:[%s7102_s27 + $0x788] sm:$0xf0]  ;;  %v5488_v54 = vld [vmem:[%s7102_s27 + $0x8f8] sm:$0xf0]  ;;  %v6693_v63 = vld [vmem:[%s7102_s27 + $0x974] sm:$0xf] }
 0x192   : > { %4000 = vmatpush.bf16.msrb.mxu1 %v5219_v57  ;;  %v3749_v57 = vpop.f32.mrf.mxu1  ;;  %v6709_v51 = vld [vmem:[%s7102_s27 + $0x9f4] sm:$0xf]  ;;  %v5616_v52 = vld [vmem:[%s7102_s27 + $0x9f8] sm:$0xf0] }
 0x193   : > { %4013 = vmatpush.bf16.msrb.mxu2 %v5283_v58  ;;  %v3736_v49 = vpop.f32.mrf.mxu0  ;;  %v8059_v58 = vadd.f32 %v3773_v60, %v3761_v53  ;;  %v5307_v53 = vor.u32 %v6631_v32, %v5304_v42  ;;  %v6675_v57 = vld [vmem:[%s7102_s27 + $0x8e4] sm:$0xf]  ;;  %v6657_v12 = vld [vmem:[%s7102_s27 + $0x854] sm:$0xf]  ;;  %v5600_v41 = vld [vmem:[%s7102_s27 + $0x9d8] sm:$0xf0] }
 0x194   : > { %4026 = vmatpush.bf16.msrb.mxu3 %v5347_v31  ;;  %v5120_v31 = vld [vmem:[%s7102_s27 + $0x618] sm:$0xf0]  ;;  %v6659_v49 = vld [vmem:[%s7102_s27 + $0x864] sm:$0xf]  ;;  %v6705_v29 = vld [vmem:[%s7102_s27 + $0x9d4] sm:$0xf] }
 0x195   : > { %3988 = vmatpush.bf16.msrb.mxu0 %v5147_v16  ;;  %v5123_v16 = vor.u32 %v6585_v30, %v5120_v31  ;;  %v3762_v39 = vpop.f32.mrf.mxu2  ;;  %v6691_v30 = vld [vmem:[%s7102_s27 + $0x964] sm:$0xf]  ;;  %v5544_v31 = vld [vmem:[%s7102_s27 + $0x968] sm:$0xf0] }
 0x196   : > { %4001 = vmatpush.bf16.msrb.mxu1 %v5211_v38  ;;  %v5112_v38 = vld [vmem:[%s7102_s27 + $0x608] sm:$0xf0]  ;;  %v5547_v7 = vor.u32 %v6691_v30, %v5544_v31  ;;  %v6687_v39 = vld [vmem:[%s7102_s27 + $0x944] sm:$0xf] }
 0x197   : > { %4014 = vmatpush.bf16.msrb.mxu2 %v5275_v2  ;;  %v5187_v2 = vor.u32 %v6601_v1, %v5184_v6  ;;  %v5115_v45 = vor.u32 %v6583_v20, %v5112_v38  ;;  %v6707_v1 = vld [vmem:[%s7102_s27 + $0x9e4] sm:$0xf]  ;;  %v5472_v38 = vld [vmem:[%s7102_s27 + $0x8d8] sm:$0xf0]  ;;  %v5400_v32 = vld [vmem:[%s7102_s27 + $0x848] sm:$0xf0] }
 0x198   : > { %4027 = vmatpush.bf16.msrb.mxu3 %v5339_v34  ;;  %v6615_v34 = vld [vmem:[%s7102_s27 + $0x704] sm:$0xf]  ;;  %v5464_v42 = vld [vmem:[%s7102_s27 + $0x8c8] sm:$0xf0] }
 0x199   : > { %3989 = vmatpush.bf16.msrb.mxu0 %v5139_v44  ;;  %v5424_v44 = vld [vmem:[%s7102_s27 + $0x878] sm:$0xf0]  ;;  %v5243_v50 = vor.u32 %v6615_v34, %v5240_v27  ;;  %v6655_v27 = vld [vmem:[%s7102_s27 + $0x844] sm:$0xf]  ;;  %v5384_v30 = vld [vmem:[%s7102_s27 + $0x828] sm:$0xf0] }
 0x19a   : > { %4002 = vmatpush.bf16.msrb.mxu1 %v5203_v22  ;;  %v6677_v22 = vld [vmem:[%s7102_s27 + $0x8f4] sm:$0xf]  ;;  %v5427_v60 = vor.u32 %v6661_v40, %v5424_v44  ;;  %v5528_v40 = vld [vmem:[%s7102_s27 + $0x948] sm:$0xf0]  ;;  %v6703_v44 = vld [vmem:[%s7102_s27 + $0x9c4] sm:$0xf] }
 0x19b   : > { %4015 = vmatpush.bf16.msrb.mxu2 %v5267_v33  ;;  %v3775_v33 = vpop.f32.mrf.mxu3  ;;  %v5491_v55 = vor.u32 %v6677_v22, %v5488_v54  ;;  %v5592_v22 = vld [vmem:[%s7102_s27 + $0x9c8] sm:$0xf0]  ;;  %v6667_v31 = vld [vmem:[%s7102_s27 + $0x8a4] sm:$0xf] }
 0x19c   : > { %4028 = vmatpush.bf16.msrb.mxu3 %v5331_v47  ;;  %v5552_v47 = vld [vmem:[%s7102_s27 + $0x978] sm:$0xf0] }
 0x19d   : > { %3990 = vmatpush.bf16.msrb.mxu0 %v5131_v24  ;;  %v5555_v56 = vor.u32 %v6693_v63, %v5552_v47  ;;  %v5416_v24 = vld [vmem:[%s7102_s27 + $0x868] sm:$0xf0]  ;;  %v5531_v47 = vor.u32 %v6687_v39, %v5528_v40  ;;  %v6697_v39 = vld [vmem:[%s7102_s27 + $0x994] sm:$0xf]  ;;  %v5568_v40 = vld [vmem:[%s7102_s27 + $0x998] sm:$0xf0] }
 0x19e   : > { %4003 = vmatpush.bf16.msrb.mxu1 %v5195_v61  ;;  %v5619_v61 = vor.u32 %v6709_v51, %v5616_v52  ;;  %v5419_v6 = vor.u32 %v6659_v49, %v5416_v24  ;;  %v6669_v51 = vld [vmem:[%s7102_s27 + $0x8b4] sm:$0xf]  ;;  %v5595_v52 = vor.u32 %v6703_v44, %v5592_v22  ;;  %v5584_v49 = vld [vmem:[%s7102_s27 + $0x9b8] sm:$0xf0]  ;;  %v6647_v44 = vld [vmem:[%s7102_s27 + $0x804] sm:$0xf] }
 0x19f   : > { %4016 = vmatpush.bf16.msrb.mxu2 %v5259_v0  ;;  %v5480_v0 = vld [vmem:[%s7102_s27 + $0x8e8] sm:$0xf0] }
 0x1a0   : > { %4029 = vmatpush.bf16.msrb.mxu3 %v5323_v4  ;;  %v5608_v4 = vld [vmem:[%s7102_s27 + $0x9e8] sm:$0xf0]  ;;  %v5483_v18 = vor.u32 %v6675_v57, %v5480_v0  ;;  %v6651_v0 = vld [vmem:[%s7102_s27 + $0x824] sm:$0xf] }
 0x1a1   : > { %3991 = vmatpush.bf16.msrb.mxu0 %v5123_v16  ;;  %v6673_v16 = vld [vmem:[%s7102_s27 + $0x8d4] sm:$0xf]  ;;  %v5611_v20 = vor.u32 %v6707_v1, %v5608_v4  ;;  %v5368_v22 = vld [vmem:[%s7102_s27 + $0x808] sm:$0xf0] }
 0x1a2   : > { %4004 = vmatpush.bf16.msrb.mxu1 %v5187_v2  ;;  %v6689_v2 = vld [vmem:[%s7102_s27 + $0x954] sm:$0xf]  ;;  %v5475_v34 = vor.u32 %v6673_v16, %v5472_v38  ;;  %v6699_v16 = vld [vmem:[%s7102_s27 + $0x9a4] sm:$0xf] }
 0x1a3   : > { %4017 = vmatpush.bf16.msrb.mxu2 %v5251_v26  ;;  %v5536_v26 = vld [vmem:[%s7102_s27 + $0x958] sm:$0xf0] }
 0x1a4   : > { %4030 = vmatpush.bf16.msrb.mxu3 %v5315_v19  ;;  %v5539_v19 = vor.u32 %v6689_v2, %v5536_v26  ;;  %v5387_v2 = vor.u32 %v6651_v0, %v5384_v30 }
 0x1a5   : > { %3992 = vmatpush.bf16.msrb.mxu0 %v5115_v45  ;;  %v5403_v45 = vor.u32 %v6655_v27, %v5400_v32  ;;  %v6665_v27 = vld [vmem:[%s7102_s27 + $0x894] sm:$0xf] }
 0x1a6   : > { %4005 = vmatpush.bf16.msrb.mxu1 %v5179_v48  ;;  %v3799_v54 = vpop.f32.mrf.mxu1  ;;  %v6653_v48 = vld [vmem:[%s7102_s27 + $0x834] sm:$0xf] }
 0x1a7   : > { %4018 = vmatpush.bf16.msrb.mxu2 %v5243_v50  ;;  %v5392_v50 = vld [vmem:[%s7102_s27 + $0x838] sm:$0xf0] }
 0x1a8   : > { %4031 = vmatpush.bf16.msrb.mxu3 %v5307_v53  ;;  %3993 = vmatmul.bf16.vlgmr.msrb.gmra.mxu0 %v7455_v28  ;;  %v5411_v28 = vor.u32 %v6657_v12, %v5408_v13  ;;  %v5395_v24 = vor.u32 %v6653_v48, %v5392_v50  ;;  %v5571_v48 = vor.u32 %v6697_v39, %v5568_v40  ;;  %v5496_v50 = vld [vmem:[%s7102_s27 + $0x908] sm:$0xf0]  ;;  %v5728_v39 = vld [vmem:[%s7102_s27 + $0xad8] sm:$0xf0]  ;;  %v6753_v40 = vld [vmem:[%s7102_s27 + $0xb54] sm:$0xf] }
 0x1a9   : > { %4037 = vmatpush.bf16.msra.mxu0 %v5427_v60  ;;  %4006 = vmatmul.bf16.vlgmr.msrb.gmra.mxu1 %v7466_v37  ;;  %v5603_v37 = vor.u32 %v6705_v29, %v5600_v41  ;;  %v5456_v60 = vld [vmem:[%s7102_s27 + $0x8b8] sm:$0xf0] }
 0x1aa   : > { %4050 = vmatpush.bf16.msra.mxu1 %v5491_v55  ;;  %4019 = vmatmul.bf16.vlgmr.msrb.gmra.mxu2 %v7462_v36  ;;  %v6671_v36 = vld [vmem:[%s7102_s27 + $0x8c4] sm:$0xf]  ;;  %v6685_v55 = vld [vmem:[%s7102_s27 + $0x934] sm:$0xf]  ;;  %v5459_v57 = vor.u32 %v6669_v51, %v5456_v60 }
 0x1ab   : > { %4063 = vmatpush.bf16.msra.mxu2 %v5555_v56  ;;  %4032 = vmatmul.bf16.vlgmr.msrb.gmra.mxu3 %v7472_v21  ;;  %v3786_v21 = vpop.f32.mrf.mxu0  ;;  %v5467_v63 = vor.u32 %v6671_v36, %v5464_v42  ;;  %v6701_v56 = vld [vmem:[%s7102_s27 + $0x9b4] sm:$0xf]  ;;  %v5440_v36 = vld [vmem:[%s7102_s27 + $0x898] sm:$0xf0]  ;;  %v6695_v51 = vld [vmem:[%s7102_s27 + $0x984] sm:$0xf] }
 0x1ac   : > { %4076 = vmatpush.bf16.msra.mxu3 %v5619_v61  ;;  %v3787_v33 = vadd.f32 %v3786_v21, %v8059_v58  ;;  %v5520_v58 = vld [vmem:[%s7102_s27 + $0x938] sm:$0xf0]  ;;  %v5587_v1 = vor.u32 %v6701_v56, %v5584_v49  ;;  %v6725_v60 = vld [vmem:[%s7102_s27 + $0xa74] sm:$0xf]  ;;  %v5371_v49 = vor.u32 %v6647_v44, %v5368_v22 }
 0x1ad   : > { %4038 = vmatpush.bf16.msra.mxu0 %v5419_v6  ;;  %v5523_v61 = vor.u32 %v6685_v55, %v5520_v58  ;;  %v3812_v4 = vpop.f32.mrf.mxu2  ;;  %v5448_v6 = vld [vmem:[%s7102_s27 + $0x8a8] sm:$0xf0]  ;;  %v5504_v42 = vld [vmem:[%s7102_s27 + $0x918] sm:$0xf0]  ;;  %v6741_v58 = vld [vmem:[%s7102_s27 + $0xaf4] sm:$0xf] }
 0x1ae   : > { %4051 = vmatpush.bf16.msra.mxu1 %v5483_v18  ;;  %v3800_v53 = vadd.f32 %v3799_v54, %v3787_v33  ;;  %v6683_v18 = vld [vmem:[%s7102_s27 + $0x924] sm:$0xf]  ;;  %v3825_v13 = vpop.f32.mrf.mxu3  ;;  %v3801_v26 = vpop.f32.mrf.mxu1  ;;  %v5451_v41 = vor.u32 %v6667_v31, %v5448_v6  ;;  %v5443_v33 = vor.u32 %v6665_v27, %v5440_v36  ;;  %v5680_v55 = vld [vmem:[%s7102_s27 + $0xa78] sm:$0xf0]  ;;  %v6773_v31 = vld [vmem:[%s7102_s27 + $0xbf4] sm:$0xf] }
 0x1af   : > { %4064 = vmatpush.bf16.msra.mxu2 %v5547_v7  ;;  %v5512_v7 = vld [vmem:[%s7102_s27 + $0x928] sm:$0xf0]  ;;  %v6663_v54 = vld [vmem:[%s7102_s27 + $0x884] sm:$0xf]  ;;  %v5683_v6 = vor.u32 %v6725_v60, %v5680_v55  ;;  %v5664_v36 = vld [vmem:[%s7102_s27 + $0xa58] sm:$0xf0] }
 0x1b0   : > { %4077 = vmatpush.bf16.msra.mxu3 %v5611_v20  ;;  %v3813_v12 = vadd.f32 %v3812_v4, %v3800_v53  ;;  %v5576_v20 = vld [vmem:[%s7102_s27 + $0x9a8] sm:$0xf0]  ;;  %v6769_v44 = vld [vmem:[%s7102_s27 + $0xbd4] sm:$0xf]  ;;  %v5856_v22 = vld [vmem:[%s7102_s27 + $0xbd8] sm:$0xf0] }
 0x1b1   : > { %4039 = vmatpush.bf16.msra.mxu0 %v5411_v28  ;;  %v5515_v28 = vor.u32 %v6683_v18, %v5512_v7  ;;  %v5579_v32 = vor.u32 %v6699_v16, %v5576_v20  ;;  %v6739_v16 = vld [vmem:[%s7102_s27 + $0xae4] sm:$0xf]  ;;  %v5800_v26 = vld [vmem:[%s7102_s27 + $0xb68] sm:$0xf0] }
 0x1b2   : > { %4052 = vmatpush.bf16.msra.mxu1 %v5475_v34  ;;  %v8130_v29 = vadd.f32 %v3825_v13, %v3813_v12  ;;  %v6649_v34 = vld [vmem:[%s7102_s27 + $0x814] sm:$0xf]  ;;  %v6723_v12 = vld [vmem:[%s7102_s27 + $0xa64] sm:$0xf]  ;;  %v5672_v13 = vld [vmem:[%s7102_s27 + $0xa68] sm:$0xf0] }
 0x1b3   : > { %4065 = vmatpush.bf16.msra.mxu2 %v5539_v19  ;;  %v3788_v38 = vpop.f32.mrf.mxu0  ;;  %v5376_v19 = vld [vmem:[%s7102_s27 + $0x818] sm:$0xf0] }
 0x1b4   : > { %4078 = vmatpush.bf16.msra.mxu3 %v5603_v37  ;;  %v6681_v37 = vld [vmem:[%s7102_s27 + $0x914] sm:$0xf]  ;;  %v5379_v21 = vor.u32 %v6649_v34, %v5376_v19  ;;  %v5736_v38 = vld [vmem:[%s7102_s27 + $0xae8] sm:$0xf0]  ;;  %v5675_v34 = vor.u32 %v6723_v12, %v5672_v13 }
 0x1b5   : > { %4040 = vmatpush.bf16.msra.mxu0 %v5403_v45  ;;  %v5507_v45 = vor.u32 %v6681_v37, %v5504_v42  ;;  %v3814_v53 = vpop.f32.mrf.mxu2  ;;  %v5739_v19 = vor.u32 %v6739_v16, %v5736_v38  ;;  %v6737_v37 = vld [vmem:[%s7102_s27 + $0xad4] sm:$0xf]  ;;  %v5640_v38 = vld [vmem:[%s7102_s27 + $0xa28] sm:$0xf0] }
 0x1b6   : > { %4053 = vmatpush.bf16.msra.mxu1 %v5467_v63  ;;  %v5432_v63 = vld [vmem:[%s7102_s27 + $0x888] sm:$0xf0]  ;;  %v3827_v56 = vpop.f32.mrf.mxu3 }
 0x1b7   : > { %4066 = vmatpush.bf16.msra.mxu2 %v5531_v47  ;;  %v6679_v47 = vld [vmem:[%s7102_s27 + $0x904] sm:$0xf]  ;;  %v5435_v0 = vor.u32 %v6663_v54, %v5432_v63  ;;  %v5656_v63 = vld [vmem:[%s7102_s27 + $0xa48] sm:$0xf0] }
 0x1b8   : > { %4079 = vmatpush.bf16.msra.mxu3 %v5595_v52  ;;  %v5560_v52 = vld [vmem:[%s7102_s27 + $0x988] sm:$0xf0]  ;;  %v5499_v30 = vor.u32 %v6679_v47, %v5496_v50  ;;  %v6945_v47 = vld [vmem:[%s7590_s18] sm:$0x3]  ;;  %v6751_v50 = vld [vmem:[%s7102_s27 + $0xb44] sm:$0xf] }
 0x1b9   : > { %4041 = vmatpush.bf16.msra.mxu0 %v5395_v24  ;;  %v5744_v24 = vld [vmem:[%s7102_s27 + $0xaf8] sm:$0xf0]  ;;  %v5563_v4 = vor.u32 %v6695_v51, %v5560_v52  ;;  %v5784_v51 = vld [vmem:[%s7102_s27 + $0xb48] sm:$0xf0]  ;;  %v6767_v52 = vld [vmem:[%s7102_s27 + $0xbc4] sm:$0xf] }
 0x1ba   : > { %4054 = vmatpush.bf16.msra.mxu1 %v5459_v57  ;;  %v6757_v57 = vld [vmem:[%s7102_s27 + $0xb74] sm:$0xf]  ;;  %v5747_v18 = vor.u32 %v6741_v58, %v5744_v24  ;;  %v5848_v53 = vld [vmem:[%s7102_s27 + $0xbc8] sm:$0xf0]  ;;  %v5787_v56 = vor.u32 %v6751_v50, %v5784_v51  ;;  %v5648_v24 = vld [vmem:[%s7102_s27 + $0xa38] sm:$0xf0] }
 0x1bb   : > { %4067 = vmatpush.bf16.msra.mxu2 %v5523_v61  ;;  %v5808_v61 = vld [vmem:[%s7102_s27 + $0xb78] sm:$0xf0]  ;;  %v6711_v50 = vld [vmem:[%s7102_s27 + $0xa04] sm:$0xf]  ;;  %v5624_v51 = vld [vmem:[%s7102_s27 + $0xa08] sm:$0xf0] }
 0x1bc   : > { %4080 = vmatpush.bf16.msra.mxu3 %v5587_v1  ;;  %v5872_v1 = vld [vmem:[%s7102_s27 + $0xbf8] sm:$0xf0]  ;;  %v5811_v7 = vor.u32 %v6757_v57, %v5808_v61  ;;  %v6733_v57 = vld [vmem:[%s7102_s27 + $0xab4] sm:$0xf] }
 0x1bd   : > { %4042 = vmatpush.bf16.msra.mxu0 %v5387_v2  ;;  %v5875_v20 = vor.u32 %v6773_v31, %v5872_v1  ;;  %v6755_v2 = vld [vmem:[%s7102_s27 + $0xb64] sm:$0xf]  ;;  %v5712_v31 = vld [vmem:[%s7102_s27 + $0xab8] sm:$0xf0]  ;;  %v6749_v1 = vld [vmem:[%s7102_s27 + $0xb34] sm:$0xf] }
 0x1be   : > { %4055 = vmatpush.bf16.msra.mxu1 %v5451_v41  ;;  %v6771_v41 = vld [vmem:[%s7102_s27 + $0xbe4] sm:$0xf]  ;;  %v5803_v27 = vor.u32 %v6755_v2, %v5800_v26  ;;  %v5715_v13 = vor.u32 %v6733_v57, %v5712_v31  ;;  %v5936_v31 = vld [vmem:[%s7102_s27 + $0xc78] sm:$0xf0] }
 0x1bf   : > { %4068 = vmatpush.bf16.msra.mxu2 %v5515_v28  ;;  %v5864_v28 = vld [vmem:[%s7102_s27 + $0xbe8] sm:$0xf0]  ;;  %v6731_v2 = vld [vmem:[%s7102_s27 + $0xaa4] sm:$0xf] }
 0x1c0   : > { %4081 = vmatpush.bf16.msra.mxu3 %v5579_v32  ;;  %v6721_v32 = vld [vmem:[%s7102_s27 + $0xa54] sm:$0xf]  ;;  %v5867_v42 = vor.u32 %v6771_v41, %v5864_v28  ;;  %v5704_v28 = vld [vmem:[%s7102_s27 + $0xaa8] sm:$0xf0]  ;;  %v6759_v57 = vld [vmem:[%s7102_s27 + $0xb84] sm:$0xf] }
 0x1c1   : > { %4043 = vmatpush.bf16.msra.mxu0 %v5379_v21  ;;  %v5792_v21 = vld [vmem:[%s7102_s27 + $0xb58] sm:$0xf0] }
 0x1c2   : > { %4056 = vmatpush.bf16.msra.mxu1 %v5443_v33  ;;  %v6719_v33 = vld [vmem:[%s7102_s27 + $0xa44] sm:$0xf]  ;;  %v5795_v54 = vor.u32 %v6753_v40, %v5792_v21  ;;  %v5707_v21 = vor.u32 %v6731_v2, %v5704_v28 }
 0x1c3   : > { %4069 = vmatpush.bf16.msra.mxu2 %v5507_v45  ;;  %v5731_v45 = vor.u32 %v6737_v37, %v5728_v39  ;;  %v5659_v60 = vor.u32 %v6719_v33, %v5656_v63  ;;  %v5832_v37 = vld [vmem:[%s7102_s27 + $0xba8] sm:$0xf0]  ;;  %v6729_v33 = vld [vmem:[%s7102_s27 + $0xa94] sm:$0xf]  ;;  %v5696_v63 = vld [vmem:[%s7102_s27 + $0xa98] sm:$0xf0] }
 0x1c4   : > { %4082 = vmatpush.bf16.msra.mxu3 %v5571_v48  ;;  %v5859_v48 = vor.u32 %v6769_v44, %v5856_v22  ;;  %v6713_v22 = vld [vmem:[%s7102_s27 + $0xa14] sm:$0xf]  ;;  %v6787_v28 = vld [vmem:[%s7102_s27 + $0xc64] sm:$0xf] }
 0x1c5   : > { %4044 = vmatpush.bf16.msra.mxu0 %v5371_v49  ;;  %v3838_v55 = vpop.f32.mrf.mxu0  ;;  %v6717_v49 = vld [vmem:[%s7102_s27 + $0xa34] sm:$0xf] }
 0x1c6   : > { %4057 = vmatpush.bf16.msra.mxu1 %v5435_v0  ;;  %v3851_v0 = vpop.f32.mrf.mxu1  ;;  %v5651_v12 = vor.u32 %v6717_v49, %v5648_v24  ;;  %v5752_v24 = vld [vmem:[%s7102_s27 + $0xb08] sm:$0xf0] }
 0x1c7   : > { %4070 = vmatpush.bf16.msra.mxu2 %v5499_v30  ;;  %v5851_v30 = vor.u32 %v6767_v52, %v5848_v53  ;;  %v5699_v52 = vor.u32 %v6729_v33, %v5696_v63  ;;  %v5920_v33 = vld [vmem:[%s7102_s27 + $0xc58] sm:$0xf0] }
 0x1c8   : > { %4083 = vmatpush.bf16.msra.mxu3 %v5563_v4  ;;  %4045 = vmatmul.bf16.vlgmr.msra.gmra.mxu0 %v7541_v59  ;;  %v5667_v59 = vor.u32 %v6721_v32, %v5664_v36  ;;  %v5776_v4 = vld [vmem:[%s7102_s27 + $0xb38] sm:$0xf0]  ;;  %v6763_v36 = vld [vmem:[%s7102_s27 + $0xba4] sm:$0xf] }
 0x1c9   : > { %4089 = vmatpush.bf16.msrb.mxu0 %v5683_v6  ;;  %4058 = vmatmul.bf16.vlgmr.msra.gmra.mxu1 %v7548_v43  ;;  %v850_v43 = vperm.slane %v6945_v47, 1  ;;  %v6765_v6 = vld [vmem:[%s7102_s27 + $0xbb4] sm:$0xf]  ;;  %v5779_v16 = vor.u32 %v6749_v1, %v5776_v4  ;;  %v5760_v47 = vld [vmem:[%s7102_s27 + $0xb18] sm:$0xf0]  ;;  %v5627_v4 = vor.u32 %v6711_v50, %v5624_v51 }
 0x1ca   : > { %4102 = vmatpush.bf16.msrb.mxu1 %v5747_v18  ;;  %4071 = vmatmul.bf16.vlgmr.msra.gmra.mxu2 %v7546_v62  ;;  %v6735_v62 = vld [vmem:[%s7102_s27 + $0xac4] sm:$0xf]  ;;  %v5840_v18 = vld [vmem:[%s7102_s27 + $0xbb8] sm:$0xf0]  ;;  %v6805_v1 = vld [vmem:[%s7102_s27 + $0xcf4] sm:$0xf] }
 0x1cb   : > { %4115 = vmatpush.bf16.msrb.mxu2 %v5811_v7  ;;  %4084 = vmatmul.bf16.vlgmr.msra.gmra.mxu3 %v7552_v46  ;;  %v5720_v46 = vld [vmem:[%s7102_s27 + $0xac8] sm:$0xf0]  ;;  %v3839_v61 = vadd.f32 %v3838_v55, %v850_v43  ;;  %v5843_v41 = vor.u32 %v6765_v6, %v5840_v18  ;;  %v6761_v43 = vld [vmem:[%s7102_s27 + $0xb94] sm:$0xf]  ;;  %v6000_v6 = vld [vmem:[%s7102_s27 + $0xcf8] sm:$0xf0] }
 0x1cc   : > { %4128 = vmatpush.bf16.msrb.mxu3 %v5875_v20  ;;  %v5723_v58 = vor.u32 %v6735_v62, %v5720_v46  ;;  %v6715_v20 = vld [vmem:[%s7102_s27 + $0xa24] sm:$0xf]  ;;  %v6745_v62 = vld [vmem:[%s7102_s27 + $0xb14] sm:$0xf]  ;;  %v5688_v55 = vld [vmem:[%s7102_s27 + $0xa88] sm:$0xf0] }
 0x1cd   : > { %4090 = vmatpush.bf16.msrb.mxu0 %v5675_v34  ;;  %v3852_v7 = vadd.f32 %v3851_v0, %v3839_v61  ;;  %v3864_v26 = vpop.f32.mrf.mxu2  ;;  %v6747_v34 = vld [vmem:[%s7102_s27 + $0xb24] sm:$0xf]  ;;  %v3840_v40 = vpop.f32.mrf.mxu0  ;;  %v5763_v53 = vor.u32 %v6745_v62, %v5760_v47  ;;  %v5816_v61 = vld [vmem:[%s7102_s27 + $0xb88] sm:$0xf0]  ;;  %v6821_v18 = vld [vmem:[%s7102_s27 + $0xd74] sm:$0xf] }
 0x1ce   : > { %4103 = vmatpush.bf16.msrb.mxu1 %v5739_v19  ;;  %v5768_v19 = vld [vmem:[%s7102_s27 + $0xb28] sm:$0xf0]  ;;  %v3877_v32 = vpop.f32.mrf.mxu3  ;;  %v5984_v63 = vld [vmem:[%s7102_s27 + $0xcd8] sm:$0xf0]  ;;  %v6817_v62 = vld [vmem:[%s7102_s27 + $0xd54] sm:$0xf] }
 0x1cf   : > { %4116 = vmatpush.bf16.msrb.mxu2 %v5803_v27  ;;  %v3865_v27 = vadd.f32 %v3864_v26, %v3852_v7  ;;  %v5771_v44 = vor.u32 %v6747_v34, %v5768_v19  ;;  %v6064_v7 = vld [vmem:[%s7102_s27 + $0xd78] sm:$0xf0]  ;;  %v6003_v26 = vor.u32 %v6805_v1, %v6000_v6  ;;  %v5928_v34 = vld [vmem:[%s7102_s27 + $0xc68] sm:$0xf0]  ;;  %v6803_v19 = vld [vmem:[%s7102_s27 + $0xce4] sm:$0xf] }
 0x1d0   : > { %4129 = vmatpush.bf16.msrb.mxu3 %v5867_v42  ;;  %v5643_v42 = vor.u32 %v6715_v20, %v5640_v38  ;;  %v6128_v20 = vld [vmem:[%s7102_s27 + $0xdf8] sm:$0xf0]  ;;  %v5819_v38 = vor.u32 %v6759_v57, %v5816_v61  ;;  %v6120_v40 = vld [vmem:[%s7102_s27 + $0xde8] sm:$0xf0]  ;;  %v6783_v51 = vld [vmem:[%s7102_s27 + $0xc44] sm:$0xf] }
 0x1d1   : > { %4091 = vmatpush.bf16.msrb.mxu0 %v5667_v59  ;;  %v8201_v39 = vadd.f32 %v3877_v32, %v3865_v27  ;;  %v5632_v59 = vld [vmem:[%s7102_s27 + $0xa18] sm:$0xf0]  ;;  %v5992_v32 = vld [vmem:[%s7102_s27 + $0xce8] sm:$0xf0]  ;;  %v6781_v61 = vld [vmem:[%s7102_s27 + $0xc34] sm:$0xf] }
 0x1d2   : > { %4104 = vmatpush.bf16.msrb.mxu1 %v5731_v45  ;;  %v3853_v45 = vpop.f32.mrf.mxu1  ;;  %v5635_v46 = vor.u32 %v6713_v22, %v5632_v59  ;;  %v6785_v59 = vld [vmem:[%s7102_s27 + $0xc54] sm:$0xf]  ;;  %v6048_v47 = vld [vmem:[%s7102_s27 + $0xd58] sm:$0xf0] }
 0x1d3   : > { %4117 = vmatpush.bf16.msrb.mxu2 %v5795_v54  ;;  %v5835_v54 = vor.u32 %v6763_v36, %v5832_v37  ;;  %v6819_v36 = vld [vmem:[%s7102_s27 + $0xd64] sm:$0xf]  ;;  %v6056_v37 = vld [vmem:[%s7102_s27 + $0xd68] sm:$0xf0]  ;;  %v6801_v45 = vld [vmem:[%s7102_s27 + $0xcd4] sm:$0xf]  ;;  %v6051_v50 = vor.u32 %v6817_v62, %v6048_v47 }
 0x1d4   : > { %4130 = vmatpush.bf16.msrb.mxu3 %v5859_v48  ;;  %v5824_v48 = vld [vmem:[%s7102_s27 + $0xb98] sm:$0xf0]  ;;  %v6059_v22 = vor.u32 %v6819_v36, %v6056_v37 }
 0x1d5   : > { %4092 = vmatpush.bf16.msrb.mxu0 %v5659_v60  ;;  %v6727_v60 = vld [vmem:[%s7102_s27 + $0xa84] sm:$0xf]  ;;  %v5827_v49 = vor.u32 %v6761_v43, %v5824_v48  ;;  %v6833_v43 = vld [vmem:[%s7102_s27 + $0xdd4] sm:$0xf]  ;;  %v6112_v48 = vld [vmem:[%s7102_s27 + $0xdd8] sm:$0xf0] }
 0x1d6   : > { %4105 = vmatpush.bf16.msrb.mxu1 %v5723_v58  ;;  %v6743_v58 = vld [vmem:[%s7102_s27 + $0xb04] sm:$0xf]  ;;  %v3879_v0 = vpop.f32.mrf.mxu3  ;;  %v5968_v6 = vld [vmem:[%s7102_s27 + $0xcb8] sm:$0xf0] }
 0x1d7   : > { %4118 = vmatpush.bf16.msrb.mxu2 %v5787_v56  ;;  %v3866_v56 = vpop.f32.mrf.mxu2  ;;  %v5904_v0 = vld [vmem:[%s7102_s27 + $0xc38] sm:$0xf0] }
 0x1d8   : > { %4131 = vmatpush.bf16.msrb.mxu3 %v5851_v30  ;;  %v6789_v30 = vld [vmem:[%s7102_s27 + $0xc74] sm:$0xf] }
 0x1d9   : > { %4093 = vmatpush.bf16.msrb.mxu0 %v5651_v12  ;;  %v5691_v12 = vor.u32 %v6727_v60, %v5688_v55  ;;  %v5939_v2 = vor.u32 %v6789_v30, %v5936_v31  ;;  %v6815_v60 = vld [vmem:[%s7102_s27 + $0xd44] sm:$0xf]  ;;  %v6040_v55 = vld [vmem:[%s7102_s27 + $0xd48] sm:$0xf0]  ;;  %v6797_v30 = vld [vmem:[%s7102_s27 + $0xcb4] sm:$0xf] }
 0x1da   : > { %4106 = vmatpush.bf16.msrb.mxu1 %v5715_v13  ;;  %v5755_v13 = vor.u32 %v6743_v58, %v5752_v24  ;;  %v6831_v58 = vld [vmem:[%s7102_s27 + $0xdc4] sm:$0xf]  ;;  %v6043_v57 = vor.u32 %v6815_v60, %v6040_v55  ;;  %v5944_v55 = vld [vmem:[%s7102_s27 + $0xc88] sm:$0xf0] }
 0x1db   : > { %4119 = vmatpush.bf16.msrb.mxu2 %v5779_v16  ;;  %v6837_v16 = vld [vmem:[%s7102_s27 + $0xdf4] sm:$0xf]  ;;  %v6791_v60 = vld [vmem:[%s7102_s27 + $0xc84] sm:$0xf] }
 0x1dc   : > { %4132 = vmatpush.bf16.msrb.mxu3 %v5843_v41  ;;  %v6067_v41 = vor.u32 %v6821_v18, %v6064_v7  ;;  %v6131_v27 = vor.u32 %v6837_v16, %v6128_v20  ;;  %v6813_v18 = vld [vmem:[%s7102_s27 + $0xd34] sm:$0xf]  ;;  %v6032_v7 = vld [vmem:[%s7102_s27 + $0xd38] sm:$0xf0]  ;;  %v5907_v20 = vor.u32 %v6781_v61, %v5904_v0 }
 0x1dd   : > { %4094 = vmatpush.bf16.msrb.mxu0 %v5643_v42  ;;  %v6835_v42 = vld [vmem:[%s7102_s27 + $0xde4] sm:$0xf]  ;;  %v6853_v0 = vld [vmem:[%s7102_s27 + $0xe74] sm:$0xf] }
 0x1de   : > { %4107 = vmatpush.bf16.msrb.mxu1 %v5707_v21  ;;  %v5931_v21 = vor.u32 %v6787_v28, %v5928_v34 }
 0x1df   : > { %4120 = vmatpush.bf16.msrb.mxu2 %v5771_v44  ;;  %v5995_v44 = vor.u32 %v6803_v19, %v5992_v32  ;;  %v5960_v19 = vld [vmem:[%s7102_s27 + $0xca8] sm:$0xf0] }
 0x1e0   : > { %4133 = vmatpush.bf16.msrb.mxu3 %v5835_v54  ;;  %v6123_v54 = vor.u32 %v6835_v42, %v6120_v40  ;;  %v6024_v32 = vld [vmem:[%s7102_s27 + $0xd28] sm:$0xf0]  ;;  %v6827_v42 = vld [vmem:[%s7102_s27 + $0xda4] sm:$0xf] }
 0x1e1   : > { %4095 = vmatpush.bf16.msrb.mxu0 %v5635_v46  ;;  %v5987_v46 = vor.u32 %v6801_v45, %v5984_v63  ;;  %v6088_v40 = vld [vmem:[%s7102_s27 + $0xda8] sm:$0xf0]  ;;  %v6777_v45 = vld [vmem:[%s7102_s27 + $0xc14] sm:$0xf] }
 0x1e2   : > { %4108 = vmatpush.bf16.msrb.mxu1 %v5699_v52  ;;  %v5912_v52 = vld [vmem:[%s7102_s27 + $0xc48] sm:$0xf0]  ;;  %v6793_v63 = vld [vmem:[%s7102_s27 + $0xc94] sm:$0xf]  ;;  %v6091_v47 = vor.u32 %v6827_v42, %v6088_v40 }
 0x1e3   : > { %4121 = vmatpush.bf16.msrb.mxu2 %v5763_v53  ;;  %v5976_v53 = vld [vmem:[%s7102_s27 + $0xcc8] sm:$0xf0]  ;;  %v5915_v56 = vor.u32 %v6783_v51, %v5912_v52  ;;  %v6775_v52 = vld [vmem:[%s7102_s27 + $0xc04] sm:$0xf] }
 0x1e4   : > { %4134 = vmatpush.bf16.msrb.mxu3 %v5827_v49 }
 0x1e5   : > { %4096 = vmatpush.bf16.msrb.mxu0 %v5627_v4  ;;  %v3890_v49 = vpop.f32.mrf.mxu0 }
 0x1e6   : > { %4109 = vmatpush.bf16.msrb.mxu1 %v5691_v12  ;;  %v3891_v31 = vadd.f32 %v3890_v49, %v8201_v39  ;;  %v3903_v1 = vpop.f32.mrf.mxu1  ;;  %v6829_v12 = vld [vmem:[%s7102_s27 + $0xdb4] sm:$0xf]  ;;  %v5971_v39 = vor.u32 %v6797_v30, %v5968_v6  ;;  %v6008_v49 = vld [vmem:[%s7102_s27 + $0xd08] sm:$0xf0]  ;;  %v6192_v30 = vld [vmem:[%s7102_s27 + $0xe78] sm:$0xf0] }
 0x1e7   : > { %4122 = vmatpush.bf16.msrb.mxu2 %v5755_v13  ;;  %v6096_v13 = vld [vmem:[%s7102_s27 + $0xdb8] sm:$0xf0]  ;;  %v6885_v6 = vld [vmem:[%s7102_s27 + $0xf74] sm:$0xf] }
 0x1e8   : > { %4135 = vmatpush.bf16.msrb.mxu3 %v5819_v38  ;;  %4097 = vmatmul.bf16.vlgmr.msrb.gmra.mxu0 %v7635_v5  ;;  %v5923_v5 = vor.u32 %v6785_v59, %v5920_v33  ;;  %v3904_v16 = vadd.f32 %v3903_v1, %v3891_v31  ;;  %v6035_v38 = vor.u32 %v6813_v18, %v6032_v7  ;;  %v6869_v31 = vld [vmem:[%s7102_s27 + $0xef4] sm:$0xf]  ;;  %v6320_v18 = vld [vmem:[%s7102_s27 + $0xf78] sm:$0xf0] }
 0x1e9   : > { %4141 = vmatpush.bf16.msra.mxu0 %v5939_v2  ;;  %4110 = vmatmul.bf16.vlgmr.msrb.gmra.mxu1 %v7642_v11  ;;  %v6115_v11 = vor.u32 %v6833_v43, %v6112_v48  ;;  %v6779_v2 = vld [vmem:[%s7102_s27 + $0xc24] sm:$0xf]  ;;  %v6099_v34 = vor.u32 %v6829_v12, %v6096_v13  ;;  %v5952_v43 = vld [vmem:[%s7102_s27 + $0xc98] sm:$0xf0]  ;;  %v6809_v48 = vld [vmem:[%s7102_s27 + $0xd14] sm:$0xf]  ;;  %v5947_v7 = vor.u32 %v6791_v60, %v5944_v55 }
 0x1ea   : > { %4154 = vmatpush.bf16.msra.mxu1 %v6003_v26  ;;  %4123 = vmatmul.bf16.vlgmr.msrb.gmra.mxu2 %v7640_v10  ;;  %v6799_v10 = vld [vmem:[%s7102_s27 + $0xcc4] sm:$0xf]  ;;  %v5896_v26 = vld [vmem:[%s7102_s27 + $0xc28] sm:$0xf0]  ;;  %v6901_v13 = vld [vmem:[%s7102_s27 + $0xff4] sm:$0xf] }
 0x1eb   : > { %4167 = vmatpush.bf16.msra.mxu2 %v6067_v41  ;;  %4136 = vmatmul.bf16.vlgmr.msrb.gmra.mxu3 %v7646_v14  ;;  %v6104_v14 = vld [vmem:[%s7102_s27 + $0xdc8] sm:$0xf0]  ;;  %v5979_v24 = vor.u32 %v6799_v10, %v5976_v53  ;;  %v6795_v41 = vld [vmem:[%s7102_s27 + $0xca4] sm:$0xf] }
 0x1ec   : > { %4180 = vmatpush.bf16.msra.mxu3 %v6131_v27  ;;  %v6107_v4 = vor.u32 %v6831_v58, %v6104_v14  ;;  %v6811_v27 = vld [vmem:[%s7102_s27 + $0xd24] sm:$0xf]  ;;  %v5963_v59 = vor.u32 %v6795_v41, %v5960_v19  ;;  %v5880_v10 = vld [vmem:[%s7102_s27 + $0xc08] sm:$0xf0] }
 0x1ed   : > { %4142 = vmatpush.bf16.msra.mxu0 %v5931_v21  ;;  %v3916_v28 = vpop.f32.mrf.mxu2  ;;  %v5899_v21 = vor.u32 %v6779_v2, %v5896_v26  ;;  %v6027_v33 = vor.u32 %v6811_v27, %v6024_v32  ;;  %v6807_v58 = vld [vmem:[%s7102_s27 + $0xd04] sm:$0xf]  ;;  %v5883_v1 = vor.u32 %v6775_v52, %v5880_v10  ;;  %v6323_v2 = vor.u32 %v6885_v6, %v6320_v18  ;;  %v6184_v41 = vld [vmem:[%s7102_s27 + $0xe68] sm:$0xf0] }
 0x1ee   : > { %4155 = vmatpush.bf16.msra.mxu1 %v5995_v44  ;;  %v3917_v36 = vadd.f32 %v3916_v28, %v3904_v16  ;;  %v3929_v37 = vpop.f32.mrf.mxu3  ;;  %v3905_v62 = vpop.f32.mrf.mxu1  ;;  %v6011_v12 = vor.u32 %v6807_v58, %v6008_v49  ;;  %v6384_v16 = vld [vmem:[%s7102_s27 + $0xff8] sm:$0xf0]  ;;  %v6851_v26 = vld [vmem:[%s7102_s27 + $0xe64] sm:$0xf]  ;;  %v6248_v19 = vld [vmem:[%s7102_s27 + $0xee8] sm:$0xf0] }
 0x1ef   : > { %4168 = vmatpush.bf16.msra.mxu2 %v6059_v22  ;;  %v3892_v22 = vpop.f32.mrf.mxu0  ;;  %v6867_v28 = vld [vmem:[%s7102_s27 + $0xee4] sm:$0xf]  ;;  %v6312_v32 = vld [vmem:[%s7102_s27 + $0xf68] sm:$0xf0]  ;;  %v6187_v42 = vor.u32 %v6851_v26, %v6184_v41  ;;  %v6304_v62 = vld [vmem:[%s7102_s27 + $0xf58] sm:$0xf0] }
 0x1f0   : > { %4181 = vmatpush.bf16.msra.mxu3 %v6123_v54  ;;  %v8272_v44 = vadd.f32 %v3929_v37, %v3917_v36  ;;  %v5888_v54 = vld [vmem:[%s7102_s27 + $0xc18] sm:$0xf0]  ;;  %v6883_v27 = vld [vmem:[%s7102_s27 + $0xf64] sm:$0xf]  ;;  %v6376_v37 = vld [vmem:[%s7102_s27 + $0xfe8] sm:$0xf0]  ;;  %v6251_v40 = vor.u32 %v6867_v28, %v6248_v19 }
 0x1f1   : > { %4143 = vmatpush.bf16.msra.mxu0 %v5923_v5  ;;  %v6016_v5 = vld [vmem:[%s7102_s27 + $0xd18] sm:$0xf0]  ;;  %v5891_v51 = vor.u32 %v6777_v45, %v5888_v54  ;;  %v6899_v36 = vld [vmem:[%s7102_s27 + $0xfe4] sm:$0xf]  ;;  %v6849_v22 = vld [vmem:[%s7102_s27 + $0xe54] sm:$0xf] }
 0x1f2   : > { %4156 = vmatpush.bf16.msra.mxu1 %v5987_v46  ;;  %v6825_v46 = vld [vmem:[%s7102_s27 + $0xd94] sm:$0xf]  ;;  %v6019_v53 = vor.u32 %v6809_v48, %v6016_v5  ;;  %v6379_v45 = vor.u32 %v6899_v36, %v6376_v37  ;;  %v6240_v54 = vld [vmem:[%s7102_s27 + $0xed8] sm:$0xf0]  ;;  %v6879_v52 = vld [vmem:[%s7102_s27 + $0xf44] sm:$0xf] }
 0x1f3   : > { %4169 = vmatpush.bf16.msra.mxu2 %v6051_v50  ;;  %v6080_v50 = vld [vmem:[%s7102_s27 + $0xd98] sm:$0xf0]  ;;  %v6296_v10 = vld [vmem:[%s7102_s27 + $0xf48] sm:$0xf0]  ;;  %v6845_v49 = vld [vmem:[%s7102_s27 + $0xe34] sm:$0xf] }
 0x1f4   : > { %4182 = vmatpush.bf16.msra.mxu3 %v6115_v11  ;;  %v5955_v11 = vor.u32 %v6793_v63, %v5952_v43  ;;  %v6881_v63 = vld [vmem:[%s7102_s27 + $0xf54] sm:$0xf]  ;;  %v6368_v43 = vld [vmem:[%s7102_s27 + $0xfd8] sm:$0xf0]  ;;  %v6280_v26 = vld [vmem:[%s7102_s27 + $0xf28] sm:$0xf0] }
 0x1f5   : > { %4144 = vmatpush.bf16.msra.mxu0 %v5915_v56  ;;  %v3918_v14 = vpop.f32.mrf.mxu2  ;;  %v6083_v56 = vor.u32 %v6825_v46, %v6080_v50  ;;  %v6307_v5 = vor.u32 %v6881_v63, %v6304_v62  ;;  %v6847_v46 = vld [vmem:[%s7102_s27 + $0xe44] sm:$0xf]  ;;  %v6168_v50 = vld [vmem:[%s7102_s27 + $0xe48] sm:$0xf0]  ;;  %v6272_v63 = vld [vmem:[%s7102_s27 + $0xf18] sm:$0xf0] }
 0x1f6   : > { %4157 = vmatpush.bf16.msra.mxu1 %v5979_v24  ;;  %v6823_v24 = vld [vmem:[%s7102_s27 + $0xd84] sm:$0xf]  ;;  %v3931_v61 = vpop.f32.mrf.mxu3  ;;  %v6171_v55 = vor.u32 %v6847_v46, %v6168_v50  ;;  %v6344_v19 = vld [vmem:[%s7102_s27 + $0xfa8] sm:$0xf0]  ;;  %v6889_v62 = vld [vmem:[%s7102_s27 + $0xf94] sm:$0xf] }
 0x1f7   : > { %4170 = vmatpush.bf16.msra.mxu2 %v6043_v57  ;;  %v6072_v57 = vld [vmem:[%s7102_s27 + $0xd88] sm:$0xf0]  ;;  %v6855_v50 = vld [vmem:[%s7102_s27 + $0xe84] sm:$0xf] }
 0x1f8   : > { %4183 = vmatpush.bf16.msra.mxu3 %v6107_v4  ;;  %v6256_v4 = vld [vmem:[%s7102_s27 + $0xef8] sm:$0xf0]  ;;  %v6136_v46 = vld [vmem:[%s7102_s27 + $0xe08] sm:$0xf0] }
 0x1f9   : > { %4145 = vmatpush.bf16.msra.mxu0 %v5907_v20  ;;  %v6075_v20 = vor.u32 %v6823_v24, %v6072_v57  ;;  %v6160_v24 = vld [vmem:[%s7102_s27 + $0xe38] sm:$0xf0]  ;;  %v6861_v57 = vld [vmem:[%s7102_s27 + $0xeb4] sm:$0xf] }
 0x1fa   : > { %4158 = vmatpush.bf16.msra.mxu1 %v5971_v39  ;;  %v6195_v39 = vor.u32 %v6853_v0, %v6192_v30  ;;  %v6224_v30 = vld [vmem:[%s7102_s27 + $0xeb8] sm:$0xf0]  ;;  %v6163_v6 = vor.u32 %v6845_v49, %v6160_v24 }
 0x1fb   : > { %4171 = vmatpush.bf16.msra.mxu2 %v6035_v38  ;;  %v6259_v38 = vor.u32 %v6869_v31, %v6256_v4  ;;  %v6877_v31 = vld [vmem:[%s7102_s27 + $0xf34] sm:$0xf]  ;;  %v6352_v4 = vld [vmem:[%s7102_s27 + $0xfb8] sm:$0xf0]  ;;  %v6227_v18 = vor.u32 %v6861_v57, %v6224_v30 }
 0x1fc   : > { %4184 = vmatpush.bf16.msra.mxu3 %v6099_v34  ;;  %v6387_v34 = vor.u32 %v6901_v13, %v6384_v16  ;;  %v6152_v13 = vld [vmem:[%s7102_s27 + $0xe28] sm:$0xf0]  ;;  %v6859_v16 = vld [vmem:[%s7102_s27 + $0xea4] sm:$0xf] }
 0x1fd   : > { %4146 = vmatpush.bf16.msra.mxu0 %v5899_v21  ;;  %v6315_v21 = vor.u32 %v6883_v27, %v6312_v32 }
 0x1fe   : > { %4159 = vmatpush.bf16.msra.mxu1 %v5963_v59  ;;  %v6176_v59 = vld [vmem:[%s7102_s27 + $0xe58] sm:$0xf0] }
 0x1ff   : > { %4172 = vmatpush.bf16.msra.mxu2 %v6027_v33  ;;  %v6865_v33 = vld [vmem:[%s7102_s27 + $0xed4] sm:$0xf] }
 0x200   : > { %4185 = vmatpush.bf16.msra.mxu3 %v6091_v47  ;;  %v6897_v47 = vld [vmem:[%s7102_s27 + $0xfd4] sm:$0xf]  ;;  %v6243_v48 = vor.u32 %v6865_v33, %v6240_v54 }
 0x201   : > { %4147 = vmatpush.bf16.msra.mxu0 %v5891_v51  ;;  %v6232_v51 = vld [vmem:[%s7102_s27 + $0xec8] sm:$0xf0]  ;;  %v6873_v54 = vld [vmem:[%s7102_s27 + $0xf14] sm:$0xf] }
 0x202   : > { %4160 = vmatpush.bf16.msra.mxu1 %v5955_v11  ;;  %v6895_v11 = vld [vmem:[%s7102_s27 + $0xfc4] sm:$0xf] }
 0x203   : > { %4173 = vmatpush.bf16.msra.mxu2 %v6019_v53  ;;  %v6360_v53 = vld [vmem:[%s7102_s27 + $0xfc8] sm:$0xf0] }
 0x204   : > { %4186 = vmatpush.bf16.msra.mxu3 %v6083_v56  ;;  %v6299_v56 = vor.u32 %v6879_v52, %v6296_v10  ;;  %v6363_v61 = vor.u32 %v6895_v11, %v6360_v53  ;;  %v6264_v52 = vld [vmem:[%s7102_s27 + $0xf08] sm:$0xf0] }
 0x205   : > { %4148 = vmatpush.bf16.msra.mxu0 %v5883_v1  ;;  %v6893_v1 = vld [vmem:[%s7102_s27 + $0xfb4] sm:$0xf]  ;;  %v6328_v11 = vld [vmem:[%s7102_s27 + $0xf88] sm:$0xf0] }
 0x206   : > { %4161 = vmatpush.bf16.msra.mxu1 %v5947_v7  ;;  %v3955_v58 = vpop.f32.mrf.mxu1 }
 0x207   : > { %4174 = vmatpush.bf16.msra.mxu2 %v6011_v12  ;;  %v6843_v12 = vld [vmem:[%s7102_s27 + $0xe24] sm:$0xf] }
 0x208   : > { %4187 = vmatpush.bf16.msra.mxu3 %v6075_v20  ;;  %4149 = vmatmul.bf16.vlgmr.msra.gmra.mxu0 %v7717_v3  ;;  %v6179_v3 = vor.u32 %v6849_v22, %v6176_v59  ;;  %v6355_v20 = vor.u32 %v6893_v1, %v6352_v4  ;;  %v6155_v32 = vor.u32 %v6843_v12, %v6152_v13  ;;  %v6144_v22 = vld [vmem:[%s7102_s27 + $0xe18] sm:$0xf0]  ;;  %v6857_v59 = vld [vmem:[%s7102_s27 + $0xe94] sm:$0xf] }
 0x209   : > { %4193 = vmatpush.bf16.msrb.mxu0 %v6195_v39  ;;  %4162 = vmatmul.bf16.vlgmr.msra.gmra.mxu1 %v7724_v9  ;;  %v6371_v9 = vor.u32 %v6897_v47, %v6368_v43  ;;  %v6336_v47 = vld [vmem:[%s7102_s27 + $0xf98] sm:$0xf0] }
 0x20a   : > { %4206 = vmatpush.bf16.msrb.mxu1 %v6259_v38  ;;  %4175 = vmatmul.bf16.vlgmr.msra.gmra.mxu2 %v7722_v8  ;;  %v6863_v8 = vld [vmem:[%s7102_s27 + $0xec4] sm:$0xf]  ;;  %v6216_v38 = vld [vmem:[%s7102_s27 + $0xea8] sm:$0xf0] }
 0x20b   : > { %4219 = vmatpush.bf16.msrb.mxu2 %v6323_v2  ;;  %4188 = vmatmul.bf16.vlgmr.msra.gmra.mxu3 %v7728_v15  ;;  %v3942_v15 = vpop.f32.mrf.mxu0  ;;  %v6235_v14 = vor.u32 %v6863_v8, %v6232_v51  ;;  %v6875_v2 = vld [vmem:[%s7102_s27 + $0xf24] sm:$0xf]  ;;  %v6339_v8 = vor.u32 %v6889_v62, %v6336_v47 }
 0x20c   : > { %4232 = vmatpush.bf16.msrb.mxu3 %v6387_v34  ;;  %v3943_v60 = vadd.f32 %v3942_v15, %v8272_v44  ;;  %v6288_v44 = vld [vmem:[%s7102_s27 + $0xf38] sm:$0xf0]  ;;  %v6891_v34 = vld [vmem:[%s7102_s27 + $0xfa4] sm:$0xf] }
 0x20d   : > { %4194 = vmatpush.bf16.msrb.mxu0 %v6187_v42  ;;  %v6291_v7 = vor.u32 %v6877_v31, %v6288_v44  ;;  %v3968_v39 = vpop.f32.mrf.mxu2  ;;  %v6219_v42 = vor.u32 %v6859_v16, %v6216_v38  ;;  %v6347_v33 = vor.u32 %v6891_v34, %v6344_v19  ;;  %v6871_v51 = vld [vmem:[%s7102_s27 + $0xf04] sm:$0xf] }
 0x20e   : > { %4207 = vmatpush.bf16.msrb.mxu1 %v6251_v40  ;;  %v3956_v0 = vadd.f32 %v3955_v58, %v3943_v60  ;;  %v3981_v28 = vpop.f32.mrf.mxu3  ;;  %v3957_v36 = vpop.f32.mrf.mxu1  ;;  %v6283_v40 = vor.u32 %v6875_v2, %v6280_v26  ;;  %v6887_v15 = vld [vmem:[%s7102_s27 + $0xf84] sm:$0xf]  ;;  %v6267_v58 = vor.u32 %v6871_v51, %v6264_v52 }
 0x20f   : > { %4220 = vmatpush.bf16.msrb.mxu2 %v6315_v21  ;;  %v6841_v21 = vld [vmem:[%s7102_s27 + $0xe14] sm:$0xf] }
 0x210   : > { %4233 = vmatpush.bf16.msrb.mxu3 %v6379_v45  ;;  %v3969_v41 = vadd.f32 %v3968_v39, %v3956_v0  ;;  %v6208_v45 = vld [vmem:[%s7102_s27 + $0xe98] sm:$0xf0]  ;;  %v6147_v43 = vor.u32 %v6841_v21, %v6144_v22 }
 0x211   : > { %4195 = vmatpush.bf16.msrb.mxu0 %v6179_v3  ;;  %v6211_v3 = vor.u32 %v6857_v59, %v6208_v45 }
 0x212   : > { %4208 = vmatpush.bf16.msrb.mxu1 %v6243_v48  ;;  %v3982_v37 = vadd.f32 %v3981_v28, %v3969_v41  ;;  %v6275_v48 = vor.u32 %v6873_v54, %v6272_v63 }
 0x213   : > { %4221 = vmatpush.bf16.msrb.mxu2 %v6307_v5  ;;  %v3944_v27 = vpop.f32.mrf.mxu0  ;;  %v6839_v5 = vld [vmem:[%s7102_s27 + $0xe04] sm:$0xf] }
 0x214   : > { %4234 = vmatpush.bf16.msrb.mxu3 %v6371_v9  ;;  %v6200_v9 = vld [vmem:[%s7102_s27 + $0xe88] sm:$0xf0]  ;;  %v6139_v60 = vor.u32 %v6839_v5, %v6136_v46 }
 0x215   : > { %4196 = vmatpush.bf16.msrb.mxu0 %v6171_v55  ;;  %v3970_v10 = vpop.f32.mrf.mxu2  ;;  %v6203_v55 = vor.u32 %v6855_v50, %v6200_v9 }
 0x216   : > { %4209 = vmatpush.bf16.msrb.mxu1 %v6235_v14  ;;  %v3983_v53 = vpop.f32.mrf.mxu3  ;;  %v6331_v14 = vor.u32 %v6887_v15, %v6328_v11 }
 0x217   : > { %4222 = vmatpush.bf16.msrb.mxu2 %v6299_v56 }
 0x218   : > { %4235 = vmatpush.bf16.msrb.mxu3 %v6363_v61 }
 0x219   : > { %4197 = vmatpush.bf16.msrb.mxu0 %v6163_v6 }
 0x21a   : > { %4210 = vmatpush.bf16.msrb.mxu1 %v6227_v18 }
 0x21b   : > { %4223 = vmatpush.bf16.msrb.mxu2 %v6291_v7 }
 0x21c   : > { %4236 = vmatpush.bf16.msrb.mxu3 %v6355_v20 }
 0x21d   : > { %4198 = vmatpush.bf16.msrb.mxu0 %v6155_v32 }
 0x21e   : > { %4211 = vmatpush.bf16.msrb.mxu1 %v6219_v42 }
 0x21f   : > { %4224 = vmatpush.bf16.msrb.mxu2 %v6283_v40 }
 0x220   : > { %4237 = vmatpush.bf16.msrb.mxu3 %v6347_v33 }
 0x221   : > { %4199 = vmatpush.bf16.msrb.mxu0 %v6147_v43 }
 0x222   : > { %4212 = vmatpush.bf16.msrb.mxu1 %v6211_v3 }
 0x223   : > { %4225 = vmatpush.bf16.msrb.mxu2 %v6275_v48 }
 0x224   : > { %4238 = vmatpush.bf16.msrb.mxu3 %v6339_v8 }
 0x225   : > { %4200 = vmatpush.bf16.msrb.mxu0 %v6139_v60  ;;  %v3994_v56 = vpop.f32.mrf.mxu0 }
 0x226   : > { %4213 = vmatpush.bf16.msrb.mxu1 %v6203_v55  ;;  %v3995_v49 = vadd.f32 %v3994_v56, %v3982_v37  ;;  %v4007_v24 = vpop.f32.mrf.mxu1 }
 0x227   : > { %4226 = vmatpush.bf16.msrb.mxu2 %v6267_v58 }
 0x228   : > { %4239 = vmatpush.bf16.msrb.mxu3 %v6331_v14  ;;  %4201 = vmatmul.bf16.vlgmr.msrb.gmra.mxu0 %v7796_v17  ;;  %v4008_v57 = vadd.f32 %v4007_v24, %v3995_v49 }
 0x229   : > { %4214 = vmatmul.bf16.vlgmr.msrb.gmra.mxu1 %v7803_v25 }
 0x22a   : > { %4227 = vmatmul.bf16.vlgmr.msrb.gmra.mxu2 %v7801_v23 }
 0x22b   : > { %4240 = vmatmul.bf16.vlgmr.msrb.gmra.mxu3 %v7807_v35 }
 0x22d   : > { %v4020_v61 = vpop.f32.mrf.mxu2  ;;  %v3996_v31 = vpop.f32.mrf.mxu0 }
 0x22e   : > { %v4021_v0 = vadd.f32 %v4020_v61, %v4008_v57  ;;  %v4033_v30 = vpop.f32.mrf.mxu3  ;;  %v4009_v44 = vpop.f32.mrf.mxu1 }
 0x230   : > { %v4034_v1 = vadd.f32 %v4033_v30, %v4021_v0 }
 0x235   : > { %v4022_v4 = vpop.f32.mrf.mxu2 }
 0x236   : > { %v4035_v6 = vpop.f32.mrf.mxu3 }
 0x245   : > { %v4046_v18 = vpop.f32.mrf.mxu0 }
 0x246   : > { %v4047_v17 = vadd.f32 %v4046_v18, %v4034_v1  ;;  %v4059_v7 = vpop.f32.mrf.mxu1 }
 0x248   : > { %v4060_v25 = vadd.f32 %v4059_v7, %v4047_v17 }
 0x24d   : > { %v4072_v12 = vpop.f32.mrf.mxu2  ;;  %v4048_v35 = vpop.f32.mrf.mxu0 }
 0x24e   : > { %v4073_v23 = vadd.f32 %v4072_v12, %v4060_v25  ;;  %v4085_v13 = vpop.f32.mrf.mxu3  ;;  %v4061_v16 = vpop.f32.mrf.mxu1 }
 0x250   : > { %v4086_v20 = vadd.f32 %v4085_v13, %v4073_v23 }
 0x255   : > { %v4074_v39 = vpop.f32.mrf.mxu2 }
 0x256   : > { %v4087_v38 = vpop.f32.mrf.mxu3 }
 0x265   : > { %v4098_v2 = vpop.f32.mrf.mxu0 }
 0x266   : > { %v4111_v26 = vpop.f32.mrf.mxu1  ;;  %v4099_v42 = vadd.f32 %v4098_v2, %v4086_v20 }
 0x268   : > { %v4112_v33 = vadd.f32 %v4111_v26, %v4099_v42 }
 0x26d   : > { %v4124_v41 = vpop.f32.mrf.mxu2  ;;  %v4100_v34 = vpop.f32.mrf.mxu0 }
 0x26e   : > { %v4137_v28 = vpop.f32.mrf.mxu3  ;;  %v4113_v19 = vpop.f32.mrf.mxu1  ;;  %v4125_v45 = vadd.f32 %v4124_v41, %v4112_v33 }
 0x270   : > { %v4138_v62 = vadd.f32 %v4137_v28, %v4125_v45 }
 0x275   : > { %v4126_v27 = vpop.f32.mrf.mxu2 }
 0x276   : > { %v4139_v32 = vpop.f32.mrf.mxu3 }
 0x285   : > { %v4150_v36 = vpop.f32.mrf.mxu0 }
 0x286   : > { %v4163_v37 = vpop.f32.mrf.mxu1  ;;  %v4151_v47 = vadd.f32 %v4150_v36, %v4138_v62 }
 0x288   : > { %v4164_v43 = vadd.f32 %v4163_v37, %v4151_v47 }
 0x28d   : > { %v4176_v40 = vpop.f32.mrf.mxu2  ;;  %v4152_v22 = vpop.f32.mrf.mxu0 }
 0x28e   : > { %v4189_v21 = vpop.f32.mrf.mxu3  ;;  %v4165_v59 = vpop.f32.mrf.mxu1  ;;  %v4177_v3 = vadd.f32 %v4176_v40, %v4164_v43 }
 0x290   : > { %v4190_v48 = vadd.f32 %v4189_v21, %v4177_v3 }
 0x295   : > { %v4178_v54 = vpop.f32.mrf.mxu2 }
 0x296   : > { %v4191_v63 = vpop.f32.mrf.mxu3 }
 0x2a5   : > { %v4202_v5 = vpop.f32.mrf.mxu0 }
 0x2a6   : > { %v4215_v46 = vpop.f32.mrf.mxu1  ;;  %v4203_v50 = vadd.f32 %v4202_v5, %v4190_v48 }
 0x2a8   : > { %v4216_v8 = vadd.f32 %v4215_v46, %v4203_v50 }
 0x2ad   : > { %v4228_v9 = vpop.f32.mrf.mxu2  ;;  %v4204_v10 = vpop.f32.mrf.mxu0 }
 0x2ae   : > { %v4229_v51 = vadd.f32 %v4228_v9, %v4216_v8  ;;  %v4241_v52 = vpop.f32.mrf.mxu3  ;;  %v4217_v15 = vpop.f32.mrf.mxu1 }
 0x2b0   : > { %v4242_v11 = vadd.f32 %v4241_v52, %v4229_v51 }
 0x2b2   : > { %v4247_v53 = vrot.slane %v4242_v11, 6 }
 0x2b4   : > { %v4249_v60 = vsel %vm4248_vm0, %v8130_v29, %v4247_v53 }
 0x2b5   : > { %4251 = vst [vmem:[%s212_s22] sm:$0xf] %v4249_v60  ;;  %v4230_v55 = vpop.f32.mrf.mxu2 }
 0x2b6   : > { %v4243_v58 = vpop.f32.mrf.mxu3 }
 0x2b7 PF: > { %p13_p7 = scmp.ge.s32.totalorder %s7055_s17, 19   ;;  %s8388_s12 = smov %s7002_s13 }
 0x2b8   : > { %s8389_s13 = smov %s7006_s14  ;;  %s8390_s14 = smov %s7065_s20 }
 0x2b9   : > { %s8391_s15 = smov %s7055_s17  ;;  %15 = sbr.rel (!%p13_p7) target bundleno = 3 (0x3), region = 76 }
 0x2be   :  { %4274 = vsyncpa [#allocation3], 1 }
 0x2bf   :  { %4276 = vsyncpa [#allocation3 + $0x1], 1 }

</bundles_post_ra>
